<compile_context>
chip_gen: v6e
topology: v6e:2x2x1
jax: 0.10.0
libtpu: 0.0.40
codegen_flags: <defaults>
</compile_context>

<pallas_src>
import numpy as np
import jax
import jax.numpy as jnp
from jax.experimental import pallas as pl
from jax.experimental.pallas import tpu as pltpu

N_CHANNELS = 32
PRE_LAYERS = 2
CONV_LAYERS = 6
POST_LAYERS = 2
N_PROPS = 16

NODE_BLOCK = 512     # padded node rows per grid step (multiple of 256 for v6e/v7x MXU)
GRAPH_BLOCK = 64     # padded graphs per grid step (multiple of 8, scales with NODE_BLOCK)
OUT_LANES = 128      # lane-dense output slab; props live in lanes [0, 16)


# --------------------------------------------------------------------------
# Kernel
# --------------------------------------------------------------------------
def gcn_kernel(x_ref, a_hat_ref, pool_ref,
               w_pre_ref, b_pre_ref,
               w_conv_ref, b_conv_ref,
               w_post_ref, b_post_ref,
               w_prop_ref, b_prop_ref,
               out_ref):
    # x: [NODE_BLOCK, C] f32 (already embedded via an on-device gather).
    x = x_ref[...]

    # Preprocess MLP: bf16 x bf16 dot, f32 accumulation, f32 bias + ReLU.
    # Biases are [L, 1, C] so each unrolled layer adds a 2-D row.
    for i in range(PRE_LAYERS):
        x = jnp.dot(x.astype(jnp.bfloat16), w_pre_ref[i],
                    preferred_element_type=jnp.float32) + b_pre_ref[i]
        x = jnp.maximum(x, 0.0)

    # GCN conv layers: (X @ W) first (O(N*C^2)), then A_hat @ XW (O(N^2*C)).
    # A_hat is read from the ref inside the loop (512x512 bf16 cannot live in
    # registers; the MXU streams it from VMEM per matmul).
    for i in range(CONV_LAYERS):
        xw = jnp.dot(x.astype(jnp.bfloat16), w_conv_ref[i],
                     preferred_element_type=jnp.float32)
        x = jnp.dot(a_hat_ref[...], xw.astype(jnp.bfloat16),
                    preferred_element_type=jnp.float32) + b_conv_ref[i]
        x = jnp.maximum(x, 0.0)
        # TODO(synk): F.dropout(p=0.25) is identity in eval mode; not applied.

    # global_add_pool: [GRAPH_BLOCK, NODE_BLOCK] (0/1, exact in bf16) @ [NODE_BLOCK, C]
    g = jnp.dot(pool_ref[...], x.astype(jnp.bfloat16),
                preferred_element_type=jnp.float32)

    # Postprocess MLP.
    for i in range(POST_LAYERS):
        g = jnp.dot(g.astype(jnp.bfloat16), w_post_ref[i],
                    preferred_element_type=jnp.float32) + b_post_ref[i]
        g = jnp.maximum(g, 0.0)

    # Properties head, padded to a lane-dense [GRAPH_BLOCK, 128] slab
    # (unmasked vst). mode='logp' slicing happens in the wrapper.
    out_ref[...] = (jnp.dot(g.astype(jnp.bfloat16), w_prop_ref[...],
                            preferred_element_type=jnp.float32)
                    + b_prop_ref[...])


# --------------------------------------------------------------------------
# Parameters
# --------------------------------------------------------------------------
def init_params(key, n_encodings):
    ks = jax.random.split(key, 9)
    s = 0.1
    C = N_CHANNELS
    return dict(
        emb=jax.random.normal(ks[0], (n_encodings, C), jnp.float32) * s,
        w_pre=jax.random.normal(ks[1], (PRE_LAYERS, C, C), jnp.float32) * s,
        b_pre=jax.random.normal(ks[2], (PRE_LAYERS, 1, C), jnp.float32) * s,
        w_conv=jax.random.normal(ks[3], (CONV_LAYERS, C, C), jnp.float32) * s,
        b_conv=jax.random.normal(ks[4], (CONV_LAYERS, 1, C), jnp.float32) * s,
        w_post=jax.random.normal(ks[5], (POST_LAYERS, C, C), jnp.float32) * s,
        b_post=jax.random.normal(ks[6], (POST_LAYERS, 1, C), jnp.float32) * s,
        w_prop=jax.random.normal(ks[7], (C, N_PROPS), jnp.float32) * s,
        b_prop=jax.random.normal(ks[8], (1, N_PROPS), jnp.float32) * s,
    )


# --------------------------------------------------------------------------
# Host-side packing (pure NumPy, no device arrays touched)
# --------------------------------------------------------------------------
def _pack_graphs(batch_np, node_block, graph_block):
    """Greedily pack consecutive graphs (PyG batch layout) into blocks of at
    most `node_block` nodes and `graph_block` graphs.
    Returns list of (graph_start, graph_end, node_start, node_end)."""
    num_graphs = int(batch_np.max()) + 1
    counts = np.bincount(batch_np, minlength=num_graphs)
    assert counts.max() <= node_block, "a single graph exceeds NODE_BLOCK nodes"
    starts = np.concatenate([[0], np.cumsum(counts)])
    blocks = []
    g0 = 0
    for g in range(num_graphs):
        if g > g0 and (starts[g + 1] - starts[g0] > node_block
                       or (g - g0 + 1) > graph_block):
            blocks.append((g0, g, int(starts[g0]), int(starts[g])))
            g0 = g
    blocks.append((g0, num_graphs, int(starts[g0]), int(starts[num_graphs])))
    return blocks


def _build_block_data(edge_index_np, batch_np, blocks):
    """Build, entirely in NumPy:
       node_gather [nb, NODE_BLOCK]  flat node indices (padding -> node 0)
       a_blk       [nb, NODE_BLOCK, NODE_BLOCK]  block-diagonal normalized adjacency
       p_blk       [nb, GRAPH_BLOCK, NODE_BLOCK] 0/1 pooling matrix
       out_gather  [num_graphs]      flat row index into the padded output slab
    Padded A_hat rows/cols and pool cols are zero, so padded node rows (which
    carry embedding of node 0) can never contaminate real outputs."""
    nb = len(blocks)
    num_graphs = int(batch_np.max()) + 1
    src_all = edge_index_np[0].astype(np.int64)
    dst_all = edge_index_np[1].astype(np.int64)

    node_gather = np.zeros((nb, NODE_BLOCK), np.int32)
    a_blk = np.zeros((nb, NODE_BLOCK, NODE_BLOCK), np.float32)
    p_blk = np.zeros((nb, GRAPH_BLOCK, NODE_BLOCK), np.float32)
    out_gather = np.zeros((num_graphs,), np.int32)

    for b, (gs, ge, ns, ne) in enumerate(blocks):
        nn_ = ne - ns
        node_gather[b, :nn_] = np.arange(ns, ne, dtype=np.int32)

        # Edges with both endpoints inside this block (PyG batching guarantees
        # edges never cross graphs, hence never cross blocks).
        m = (src_all >= ns) & (src_all < ne) & (dst_all >= ns) & (dst_all < ne)
        s = src_all[m] - ns
        d = dst_all[m] - ns
        adj = np.zeros((nn_, nn_), np.float32)
        np.add.at(adj, (d, s), 1.0)
        # Add self-loops only where missing (PyG add_remaining_self_loops),
        # then symmetric normalization D^-1/2 (A + I) D^-1/2.
        diag = np.diagonal(adj).copy()
        adj[np.arange(nn_), np.arange(nn_)] = np.where(diag > 0, diag, 1.0)
        deg = adj.sum(axis=1)
        dinv = np.where(deg > 0, 1.0 / np.sqrt(deg), 0.0).astype(np.float32)
        a_blk[b, :nn_, :nn_] = dinv[:, None] * adj * dinv[None, :]

        p_blk[b, batch_np[ns:ne] - gs, np.arange(nn_)] = 1.0
        out_gather[gs:ge] = b * GRAPH_BLOCK + np.arange(ge - gs, dtype=np.int32)

    return node_gather, a_blk, p_blk, out_gather


# --------------------------------------------------------------------------
# Forward
# --------------------------------------------------------------------------
def gcn_forward(node_ids, edge_index, batch, params):
    """edge_index / batch are consumed as host (NumPy) metadata; node_ids and
    params stay on device. All matmuls / ReLUs happen inside the Pallas kernel."""
    C = N_CHANNELS
    batch_np = np.asarray(batch, dtype=np.int64)
    edge_np = np.asarray(edge_index)

    blocks = _pack_graphs(batch_np, NODE_BLOCK, GRAPH_BLOCK)
    nb = len(blocks)
    node_gather, a_blk, p_blk, out_gather = _build_block_data(edge_np, batch_np, blocks)

    # On-device embedding gather, directly into the packed block layout.
    # nn.Embedding would raise on out-of-range ids; here we clamp explicitly.
    n_enc = params['emb'].shape[0]
    ids_blk = jnp.take(node_ids, jnp.asarray(node_gather), axis=0)      # [nb, NODE_BLOCK]
    ids_blk = jnp.clip(ids_blk, 0, n_enc - 1)
    x_blk = jnp.take(params['emb'], ids_blk, axis=0)                    # [nb, NODE_BLOCK, C] f32

    # A_hat / pool converted to bf16 on the host before upload (0/1 pool is
    # exact in bf16; bf16 A_hat with f32 accumulation is the MXU-rate path).
    a_blk = jnp.asarray(a_blk.astype(jnp.bfloat16))
    p_blk = jnp.asarray(p_blk.astype(jnp.bfloat16))

    # Weights as bf16 (dot inputs); biases stay f32 for the VPU add/ReLU path.
    w_pre = params['w_pre'].astype(jnp.bfloat16)
    w_conv = params['w_conv'].astype(jnp.bfloat16)
    w_post = params['w_post'].astype(jnp.bfloat16)
    # Lane-dense output: pad the property head to 128 output lanes.
    w_prop = jnp.zeros((C, OUT_LANES), jnp.float32).at[:, :N_PROPS].set(
        params['w_prop']).astype(jnp.bfloat16)
    b_prop = jnp.zeros((1, OUT_LANES), jnp.float32).at[:, :N_PROPS].set(params['b_prop'])

    def full(arr):   # whole (small) weight array resident in VMEM, constant index map
        return pl.BlockSpec(arr.shape, lambda b, _nd=arr.ndim: (0,) * _nd)

    in_specs = [
        pl.BlockSpec((None, NODE_BLOCK, C), lambda b: (b, 0, 0)),
        pl.BlockSpec((None, NODE_BLOCK, NODE_BLOCK), lambda b: (b, 0, 0)),
        pl.BlockSpec((None, GRAPH_BLOCK, NODE_BLOCK), lambda b: (b, 0, 0)),
        full(w_pre), full(params['b_pre']),
        full(w_conv), full(params['b_conv']),
        full(w_post), full(params['b_post']),
        full(w_prop), full(b_prop),
    ]
    out_spec = pl.BlockSpec((None, GRAPH_BLOCK, OUT_LANES), lambda b: (b, 0, 0))

    props = pl.pallas_call(
        gcn_kernel,
        out_shape=jax.ShapeDtypeStruct((nb, GRAPH_BLOCK, OUT_LANES), jnp.float32),
        grid=(nb,),
        in_specs=in_specs,
        out_specs=out_spec,
        compiler_params=pltpu.CompilerParams(
            # "parallel" -> blocks can be sharded across TensorCores (v7x).
            # VMEM footprint is < 2 MiB double-buffered; default limit is fine.
            dimension_semantics=("parallel",),
        ),
    )(x_blk, a_blk, p_blk,
      w_pre, params['b_pre'],
      w_conv, params['b_conv'],
      w_post, params['b_post'],
      w_prop, b_prop)

    # mode='logp': property column 0, un-padded with a single flat gather.
    props_flat = props.reshape(nb * GRAPH_BLOCK, OUT_LANES)
    logp = jnp.take(props_flat, jnp.asarray(out_gather), axis=0)[:, 0:1]
    return logp                                                         # [num_graphs, 1]


# --------------------------------------------------------------------------
# Test
# --------------------------------------------------------------------------
if __name__ == "__main__":
    key = jax.random.PRNGKey(0)
    k_param, k_nodes = jax.random.split(key)

    n_encodings = 24
    num_graphs = 2
    nodes_per_graph = 8
    n_nodes = num_graphs * nodes_per_graph

    params = init_params(k_param, n_encodings)

    node_ids = jax.random.randint(k_nodes, (n_nodes,), 0, n_encodings, jnp.int32)

    # Host-side metadata (NumPy) -- matches PyG's Data.batch / edge_index layout.
    batch = np.repeat(np.arange(num_graphs, dtype=np.int32), nodes_per_graph)

    def ring_edges(offset, n):
        src = np.arange(n, dtype=np.int32) + offset
        dst = (np.arange(n, dtype=np.int32) + 1) % n + offset
        return np.stack([np.concatenate([src, dst]),
                         np.concatenate([dst, src])])
    edge_index = np.concatenate(
        [ring_edges(0, nodes_per_graph),
         ring_edges(nodes_per_graph, nodes_per_graph)], axis=1)         # [2, 32]

    out = gcn_forward(node_ids, edge_index, batch, params)
    out = jax.block_until_ready(out)
    assert out.shape == (num_graphs, 1) and out.dtype == jnp.float32
    print("KERNEL_OK")
</pallas_src>

<mosaic_0001>
module attributes {stable_mosaic.version = 11 : i64} {
  func.func @gcn_kernel(%arg0: i32, %arg1: memref<1x512x32xf32, #tpu.memory_space<vmem>>, %arg2: memref<1x512x512xbf16, #tpu.memory_space<vmem>>, %arg3: memref<1x64x512xbf16, #tpu.memory_space<vmem>>, %arg4: memref<2x32x32xbf16, #tpu.memory_space<vmem>>, %arg5: memref<2x1x32xf32, #tpu.memory_space<vmem>>, %arg6: memref<6x32x32xbf16, #tpu.memory_space<vmem>>, %arg7: memref<6x1x32xf32, #tpu.memory_space<vmem>>, %arg8: memref<2x32x32xbf16, #tpu.memory_space<vmem>>, %arg9: memref<2x1x32xf32, #tpu.memory_space<vmem>>, %arg10: memref<32x128xbf16, #tpu.memory_space<vmem>>, %arg11: memref<1x128xf32, #tpu.memory_space<vmem>>, %arg12: memref<1x64x128xf32, #tpu.memory_space<vmem>>) attributes {dimension_semantics = [#tpu.dimension_semantics<parallel>], iteration_bounds = array<i64: 1>, scalar_prefetch = 0 : i64, scratch_operands = 0 : i64, tpu.core_type = #tpu.core_type<tc>, window_params = [{transform_indices = @transform_0, window_bounds = array<i64: 1, 512, 32>}, {transform_indices = @transform_1, window_bounds = array<i64: 1, 512, 512>}, {transform_indices = @transform_2, window_bounds = array<i64: 1, 64, 512>}, {pipeline_mode = #tpu.pipeline_mode<synchronous>, transform_indices = @transform_3, window_bounds = array<i64: 2, 32, 32>}, {pipeline_mode = #tpu.pipeline_mode<synchronous>, transform_indices = @transform_4, window_bounds = array<i64: 2, 1, 32>}, {pipeline_mode = #tpu.pipeline_mode<synchronous>, transform_indices = @transform_5, window_bounds = array<i64: 6, 32, 32>}, {pipeline_mode = #tpu.pipeline_mode<synchronous>, transform_indices = @transform_6, window_bounds = array<i64: 6, 1, 32>}, {pipeline_mode = #tpu.pipeline_mode<synchronous>, transform_indices = @transform_7, window_bounds = array<i64: 2, 32, 32>}, {pipeline_mode = #tpu.pipeline_mode<synchronous>, transform_indices = @transform_8, window_bounds = array<i64: 2, 1, 32>}, {pipeline_mode = #tpu.pipeline_mode<synchronous>, transform_indices = @transform_9, window_bounds = array<i64: 32, 128>}, {pipeline_mode = #tpu.pipeline_mode<synchronous>, transform_indices = @transform_10, window_bounds = array<i64: 1, 128>}, {transform_indices = @transform_11, window_bounds = array<i64: 1, 64, 128>}]} {
    %c0 = arith.constant 0 : index
    %c0_0 = arith.constant 0 : index
    %c0_1 = arith.constant 0 : index
    %0 = vector.load %arg1[%c0, %c0_0, %c0_1] : memref<1x512x32xf32, #tpu.memory_space<vmem>>, vector<1x512x32xf32>
    %1 = vector.shape_cast %0 : vector<1x512x32xf32> to vector<512x32xf32>
    %2 = arith.truncf %1 : vector<512x32xf32> to vector<512x32xbf16>
    %c0_2 = arith.constant 0 : index
    %c0_3 = arith.constant 0 : index
    %c0_4 = arith.constant 0 : index
    %3 = vector.load %arg4[%c0_2, %c0_3, %c0_4] : memref<2x32x32xbf16, #tpu.memory_space<vmem>>, vector<1x32x32xbf16>
    %4 = vector.shape_cast %3 : vector<1x32x32xbf16> to vector<32x32xbf16>
    %cst = arith.constant dense<0.000000e+00> : vector<512x32xf32>
    %5 = tpu.matmul %2, %4, %cst {dimension_numbers = #tpu.dot_dimension_numbers<[1], [0], [0], [1], [0, 0, 1, 1], [], []>} : vector<512x32xbf16>, vector<32x32xbf16>, vector<512x32xf32> -> vector<512x32xf32>
    %c0_5 = arith.constant 0 : index
    %c0_6 = arith.constant 0 : index
    %c0_7 = arith.constant 0 : index
    %6 = vector.load %arg5[%c0_5, %c0_6, %c0_7] : memref<2x1x32xf32, #tpu.memory_space<vmem>>, vector<1x1x32xf32>
    %7 = vector.shape_cast %6 : vector<1x1x32xf32> to vector<1x32xf32>
    %8 = vector.broadcast %7 : vector<1x32xf32> to vector<512x32xf32>
    %9 = arith.addf %5, %8 : vector<512x32xf32>
    %cst_8 = arith.constant 0.000000e+00 : f32
    %10 = vector.broadcast %cst_8 : f32 to vector<512x32xf32>
    %11 = arith.maximumf %9, %10 : vector<512x32xf32>
    %12 = arith.truncf %11 : vector<512x32xf32> to vector<512x32xbf16>
    %c1 = arith.constant 1 : index
    %c0_9 = arith.constant 0 : index
    %c0_10 = arith.constant 0 : index
    %13 = vector.load %arg4[%c1, %c0_9, %c0_10] : memref<2x32x32xbf16, #tpu.memory_space<vmem>>, vector<1x32x32xbf16>
    %14 = vector.shape_cast %13 : vector<1x32x32xbf16> to vector<32x32xbf16>
    %cst_11 = arith.constant dense<0.000000e+00> : vector<512x32xf32>
    %15 = tpu.matmul %12, %14, %cst_11 {dimension_numbers = #tpu.dot_dimension_numbers<[1], [0], [0], [1], [0, 0, 1, 1], [], []>} : vector<512x32xbf16>, vector<32x32xbf16>, vector<512x32xf32> -> vector<512x32xf32>
    %c1_12 = arith.constant 1 : index
    %c0_13 = arith.constant 0 : index
    %c0_14 = arith.constant 0 : index
    %16 = vector.load %arg5[%c1_12, %c0_13, %c0_14] : memref<2x1x32xf32, #tpu.memory_space<vmem>>, vector<1x1x32xf32>
    %17 = vector.shape_cast %16 : vector<1x1x32xf32> to vector<1x32xf32>
    %18 = vector.broadcast %17 : vector<1x32xf32> to vector<512x32xf32>
    %19 = arith.addf %15, %18 : vector<512x32xf32>
    %cst_15 = arith.constant 0.000000e+00 : f32
    %20 = vector.broadcast %cst_15 : f32 to vector<512x32xf32>
    %21 = arith.maximumf %19, %20 : vector<512x32xf32>
    %22 = arith.truncf %21 : vector<512x32xf32> to vector<512x32xbf16>
    %c0_16 = arith.constant 0 : index
    %c0_17 = arith.constant 0 : index
    %c0_18 = arith.constant 0 : index
    %23 = vector.load %arg6[%c0_16, %c0_17, %c0_18] : memref<6x32x32xbf16, #tpu.memory_space<vmem>>, vector<1x32x32xbf16>
    %24 = vector.shape_cast %23 : vector<1x32x32xbf16> to vector<32x32xbf16>
    %cst_19 = arith.constant dense<0.000000e+00> : vector<512x32xf32>
    %25 = tpu.matmul %22, %24, %cst_19 {dimension_numbers = #tpu.dot_dimension_numbers<[1], [0], [0], [1], [0, 0, 1, 1], [], []>} : vector<512x32xbf16>, vector<32x32xbf16>, vector<512x32xf32> -> vector<512x32xf32>
    %c0_20 = arith.constant 0 : index
    %c0_21 = arith.constant 0 : index
    %c0_22 = arith.constant 0 : index
    %26 = vector.load %arg2[%c0_20, %c0_21, %c0_22] : memref<1x512x512xbf16, #tpu.memory_space<vmem>>, vector<1x512x512xbf16>
    %27 = vector.shape_cast %26 : vector<1x512x512xbf16> to vector<512x512xbf16>
    %28 = arith.truncf %25 : vector<512x32xf32> to vector<512x32xbf16>
    %cst_23 = arith.constant dense<0.000000e+00> : vector<512x32xf32>
    %29 = tpu.matmul %27, %28, %cst_23 {dimension_numbers = #tpu.dot_dimension_numbers<[1], [0], [0], [1], [0, 0, 1, 1], [], []>} : vector<512x512xbf16>, vector<512x32xbf16>, vector<512x32xf32> -> vector<512x32xf32>
    %c0_24 = arith.constant 0 : index
    %c0_25 = arith.constant 0 : index
    %c0_26 = arith.constant 0 : index
    %30 = vector.load %arg7[%c0_24, %c0_25, %c0_26] : memref<6x1x32xf32, #tpu.memory_space<vmem>>, vector<1x1x32xf32>
    %31 = vector.shape_cast %30 : vector<1x1x32xf32> to vector<1x32xf32>
    %32 = vector.broadcast %31 : vector<1x32xf32> to vector<512x32xf32>
    %33 = arith.addf %29, %32 : vector<512x32xf32>
    %cst_27 = arith.constant 0.000000e+00 : f32
    %34 = vector.broadcast %cst_27 : f32 to vector<512x32xf32>
    %35 = arith.maximumf %33, %34 : vector<512x32xf32>
    %36 = arith.truncf %35 : vector<512x32xf32> to vector<512x32xbf16>
    %c1_28 = arith.constant 1 : index
    %c0_29 = arith.constant 0 : index
    %c0_30 = arith.constant 0 : index
    %37 = vector.load %arg6[%c1_28, %c0_29, %c0_30] : memref<6x32x32xbf16, #tpu.memory_space<vmem>>, vector<1x32x32xbf16>
    %38 = vector.shape_cast %37 : vector<1x32x32xbf16> to vector<32x32xbf16>
    %cst_31 = arith.constant dense<0.000000e+00> : vector<512x32xf32>
    %39 = tpu.matmul %36, %38, %cst_31 {dimension_numbers = #tpu.dot_dimension_numbers<[1], [0], [0], [1], [0, 0, 1, 1], [], []>} : vector<512x32xbf16>, vector<32x32xbf16>, vector<512x32xf32> -> vector<512x32xf32>
    %c0_32 = arith.constant 0 : index
    %c0_33 = arith.constant 0 : index
    %c0_34 = arith.constant 0 : index
    %40 = vector.load %arg2[%c0_32, %c0_33, %c0_34] : memref<1x512x512xbf16, #tpu.memory_space<vmem>>, vector<1x512x512xbf16>
    %41 = vector.shape_cast %40 : vector<1x512x512xbf16> to vector<512x512xbf16>
    %42 = arith.truncf %39 : vector<512x32xf32> to vector<512x32xbf16>
    %cst_35 = arith.constant dense<0.000000e+00> : vector<512x32xf32>
    %43 = tpu.matmul %41, %42, %cst_35 {dimension_numbers = #tpu.dot_dimension_numbers<[1], [0], [0], [1], [0, 0, 1, 1], [], []>} : vector<512x512xbf16>, vector<512x32xbf16>, vector<512x32xf32> -> vector<512x32xf32>
    %c1_36 = arith.constant 1 : index
    %c0_37 = arith.constant 0 : index
    %c0_38 = arith.constant 0 : index
    %44 = vector.load %arg7[%c1_36, %c0_37, %c0_38] : memref<6x1x32xf32, #tpu.memory_space<vmem>>, vector<1x1x32xf32>
    %45 = vector.shape_cast %44 : vector<1x1x32xf32> to vector<1x32xf32>
    %46 = vector.broadcast %45 : vector<1x32xf32> to vector<512x32xf32>
    %47 = arith.addf %43, %46 : vector<512x32xf32>
    %cst_39 = arith.constant 0.000000e+00 : f32
    %48 = vector.broadcast %cst_39 : f32 to vector<512x32xf32>
    %49 = arith.maximumf %47, %48 : vector<512x32xf32>
    %50 = arith.truncf %49 : vector<512x32xf32> to vector<512x32xbf16>
    %c2 = arith.constant 2 : index
    %c0_40 = arith.constant 0 : index
    %c0_41 = arith.constant 0 : index
    %51 = vector.load %arg6[%c2, %c0_40, %c0_41] : memref<6x32x32xbf16, #tpu.memory_space<vmem>>, vector<1x32x32xbf16>
    %52 = vector.shape_cast %51 : vector<1x32x32xbf16> to vector<32x32xbf16>
    %cst_42 = arith.constant dense<0.000000e+00> : vector<512x32xf32>
    %53 = tpu.matmul %50, %52, %cst_42 {dimension_numbers = #tpu.dot_dimension_numbers<[1], [0], [0], [1], [0, 0, 1, 1], [], []>} : vector<512x32xbf16>, vector<32x32xbf16>, vector<512x32xf32> -> vector<512x32xf32>
    %c0_43 = arith.constant 0 : index
    %c0_44 = arith.constant 0 : index
    %c0_45 = arith.constant 0 : index
    %54 = vector.load %arg2[%c0_43, %c0_44, %c0_45] : memref<1x512x512xbf16, #tpu.memory_space<vmem>>, vector<1x512x512xbf16>
    %55 = vector.shape_cast %54 : vector<1x512x512xbf16> to vector<512x512xbf16>
    %56 = arith.truncf %53 : vector<512x32xf32> to vector<512x32xbf16>
    %cst_46 = arith.constant dense<0.000000e+00> : vector<512x32xf32>
    %57 = tpu.matmul %55, %56, %cst_46 {dimension_numbers = #tpu.dot_dimension_numbers<[1], [0], [0], [1], [0, 0, 1, 1], [], []>} : vector<512x512xbf16>, vector<512x32xbf16>, vector<512x32xf32> -> vector<512x32xf32>
    %c2_47 = arith.constant 2 : index
    %c0_48 = arith.constant 0 : index
    %c0_49 = arith.constant 0 : index
    %58 = vector.load %arg7[%c2_47, %c0_48, %c0_49] : memref<6x1x32xf32, #tpu.memory_space<vmem>>, vector<1x1x32xf32>
    %59 = vector.shape_cast %58 : vector<1x1x32xf32> to vector<1x32xf32>
    %60 = vector.broadcast %59 : vector<1x32xf32> to vector<512x32xf32>
    %61 = arith.addf %57, %60 : vector<512x32xf32>
    %cst_50 = arith.constant 0.000000e+00 : f32
    %62 = vector.broadcast %cst_50 : f32 to vector<512x32xf32>
    %63 = arith.maximumf %61, %62 : vector<512x32xf32>
    %64 = arith.truncf %63 : vector<512x32xf32> to vector<512x32xbf16>
    %c3 = arith.constant 3 : index
    %c0_51 = arith.constant 0 : index
    %c0_52 = arith.constant 0 : index
    %65 = vector.load %arg6[%c3, %c0_51, %c0_52] : memref<6x32x32xbf16, #tpu.memory_space<vmem>>, vector<1x32x32xbf16>
    %66 = vector.shape_cast %65 : vector<1x32x32xbf16> to vector<32x32xbf16>
    %cst_53 = arith.constant dense<0.000000e+00> : vector<512x32xf32>
    %67 = tpu.matmul %64, %66, %cst_53 {dimension_numbers = #tpu.dot_dimension_numbers<[1], [0], [0], [1], [0, 0, 1, 1], [], []>} : vector<512x32xbf16>, vector<32x32xbf16>, vector<512x32xf32> -> vector<512x32xf32>
    %c0_54 = arith.constant 0 : index
    %c0_55 = arith.constant 0 : index
    %c0_56 = arith.constant 0 : index
    %68 = vector.load %arg2[%c0_54, %c0_55, %c0_56] : memref<1x512x512xbf16, #tpu.memory_space<vmem>>, vector<1x512x512xbf16>
    %69 = vector.shape_cast %68 : vector<1x512x512xbf16> to vector<512x512xbf16>
    %70 = arith.truncf %67 : vector<512x32xf32> to vector<512x32xbf16>
    %cst_57 = arith.constant dense<0.000000e+00> : vector<512x32xf32>
    %71 = tpu.matmul %69, %70, %cst_57 {dimension_numbers = #tpu.dot_dimension_numbers<[1], [0], [0], [1], [0, 0, 1, 1], [], []>} : vector<512x512xbf16>, vector<512x32xbf16>, vector<512x32xf32> -> vector<512x32xf32>
    %c3_58 = arith.constant 3 : index
    %c0_59 = arith.constant 0 : index
    %c0_60 = arith.constant 0 : index
    %72 = vector.load %arg7[%c3_58, %c0_59, %c0_60] : memref<6x1x32xf32, #tpu.memory_space<vmem>>, vector<1x1x32xf32>
    %73 = vector.shape_cast %72 : vector<1x1x32xf32> to vector<1x32xf32>
    %74 = vector.broadcast %73 : vector<1x32xf32> to vector<512x32xf32>
    %75 = arith.addf %71, %74 : vector<512x32xf32>
    %cst_61 = arith.constant 0.000000e+00 : f32
    %76 = vector.broadcast %cst_61 : f32 to vector<512x32xf32>
    %77 = arith.maximumf %75, %76 : vector<512x32xf32>
    %78 = arith.truncf %77 : vector<512x32xf32> to vector<512x32xbf16>
    %c4 = arith.constant 4 : index
    %c0_62 = arith.constant 0 : index
    %c0_63 = arith.constant 0 : index
    %79 = vector.load %arg6[%c4, %c0_62, %c0_63] : memref<6x32x32xbf16, #tpu.memory_space<vmem>>, vector<1x32x32xbf16>
    %80 = vector.shape_cast %79 : vector<1x32x32xbf16> to vector<32x32xbf16>
    %cst_64 = arith.constant dense<0.000000e+00> : vector<512x32xf32>
    %81 = tpu.matmul %78, %80, %cst_64 {dimension_numbers = #tpu.dot_dimension_numbers<[1], [0], [0], [1], [0, 0, 1, 1], [], []>} : vector<512x32xbf16>, vector<32x32xbf16>, vector<512x32xf32> -> vector<512x32xf32>
    %c0_65 = arith.constant 0 : index
    %c0_66 = arith.constant 0 : index
    %c0_67 = arith.constant 0 : index
    %82 = vector.load %arg2[%c0_65, %c0_66, %c0_67] : memref<1x512x512xbf16, #tpu.memory_space<vmem>>, vector<1x512x512xbf16>
    %83 = vector.shape_cast %82 : vector<1x512x512xbf16> to vector<512x512xbf16>
    %84 = arith.truncf %81 : vector<512x32xf32> to vector<512x32xbf16>
    %cst_68 = arith.constant dense<0.000000e+00> : vector<512x32xf32>
    %85 = tpu.matmul %83, %84, %cst_68 {dimension_numbers = #tpu.dot_dimension_numbers<[1], [0], [0], [1], [0, 0, 1, 1], [], []>} : vector<512x512xbf16>, vector<512x32xbf16>, vector<512x32xf32> -> vector<512x32xf32>
    %c4_69 = arith.constant 4 : index
    %c0_70 = arith.constant 0 : index
    %c0_71 = arith.constant 0 : index
    %86 = vector.load %arg7[%c4_69, %c0_70, %c0_71] : memref<6x1x32xf32, #tpu.memory_space<vmem>>, vector<1x1x32xf32>
    %87 = vector.shape_cast %86 : vector<1x1x32xf32> to vector<1x32xf32>
    %88 = vector.broadcast %87 : vector<1x32xf32> to vector<512x32xf32>
    %89 = arith.addf %85, %88 : vector<512x32xf32>
    %cst_72 = arith.constant 0.000000e+00 : f32
    %90 = vector.broadcast %cst_72 : f32 to vector<512x32xf32>
    %91 = arith.maximumf %89, %90 : vector<512x32xf32>
    %92 = arith.truncf %91 : vector<512x32xf32> to vector<512x32xbf16>
    %c5 = arith.constant 5 : index
    %c0_73 = arith.constant 0 : index
    %c0_74 = arith.constant 0 : index
    %93 = vector.load %arg6[%c5, %c0_73, %c0_74] : memref<6x32x32xbf16, #tpu.memory_space<vmem>>, vector<1x32x32xbf16>
    %94 = vector.shape_cast %93 : vector<1x32x32xbf16> to vector<32x32xbf16>
    %cst_75 = arith.constant dense<0.000000e+00> : vector<512x32xf32>
    %95 = tpu.matmul %92, %94, %cst_75 {dimension_numbers = #tpu.dot_dimension_numbers<[1], [0], [0], [1], [0, 0, 1, 1], [], []>} : vector<512x32xbf16>, vector<32x32xbf16>, vector<512x32xf32> -> vector<512x32xf32>
    %c0_76 = arith.constant 0 : index
    %c0_77 = arith.constant 0 : index
    %c0_78 = arith.constant 0 : index
    %96 = vector.load %arg2[%c0_76, %c0_77, %c0_78] : memref<1x512x512xbf16, #tpu.memory_space<vmem>>, vector<1x512x512xbf16>
    %97 = vector.shape_cast %96 : vector<1x512x512xbf16> to vector<512x512xbf16>
    %98 = arith.truncf %95 : vector<512x32xf32> to vector<512x32xbf16>
    %cst_79 = arith.constant dense<0.000000e+00> : vector<512x32xf32>
    %99 = tpu.matmul %97, %98, %cst_79 {dimension_numbers = #tpu.dot_dimension_numbers<[1], [0], [0], [1], [0, 0, 1, 1], [], []>} : vector<512x512xbf16>, vector<512x32xbf16>, vector<512x32xf32> -> vector<512x32xf32>
    %c5_80 = arith.constant 5 : index
    %c0_81 = arith.constant 0 : index
    %c0_82 = arith.constant 0 : index
    %100 = vector.load %arg7[%c5_80, %c0_81, %c0_82] : memref<6x1x32xf32, #tpu.memory_space<vmem>>, vector<1x1x32xf32>
    %101 = vector.shape_cast %100 : vector<1x1x32xf32> to vector<1x32xf32>
    %102 = vector.broadcast %101 : vector<1x32xf32> to vector<512x32xf32>
    %103 = arith.addf %99, %102 : vector<512x32xf32>
    %cst_83 = arith.constant 0.000000e+00 : f32
    %104 = vector.broadcast %cst_83 : f32 to vector<512x32xf32>
    %105 = arith.maximumf %103, %104 : vector<512x32xf32>
    %c0_84 = arith.constant 0 : index
    %c0_85 = arith.constant 0 : index
    %c0_86 = arith.constant 0 : index
    %106 = vector.load %arg3[%c0_84, %c0_85, %c0_86] : memref<1x64x512xbf16, #tpu.memory_space<vmem>>, vector<1x64x512xbf16>
    %107 = vector.shape_cast %106 : vector<1x64x512xbf16> to vector<64x512xbf16>
    %108 = arith.truncf %105 : vector<512x32xf32> to vector<512x32xbf16>
    %cst_87 = arith.constant dense<0.000000e+00> : vector<64x32xf32>
    %109 = tpu.matmul %107, %108, %cst_87 {dimension_numbers = #tpu.dot_dimension_numbers<[1], [0], [0], [1], [0, 0, 1, 1], [], []>} : vector<64x512xbf16>, vector<512x32xbf16>, vector<64x32xf32> -> vector<64x32xf32>
    %110 = arith.truncf %109 : vector<64x32xf32> to vector<64x32xbf16>
    %c0_88 = arith.constant 0 : index
    %c0_89 = arith.constant 0 : index
    %c0_90 = arith.constant 0 : index
    %111 = vector.load %arg8[%c0_88, %c0_89, %c0_90] : memref<2x32x32xbf16, #tpu.memory_space<vmem>>, vector<1x32x32xbf16>
    %112 = vector.shape_cast %111 : vector<1x32x32xbf16> to vector<32x32xbf16>
    %cst_91 = arith.constant dense<0.000000e+00> : vector<64x32xf32>
    %113 = tpu.matmul %110, %112, %cst_91 {dimension_numbers = #tpu.dot_dimension_numbers<[1], [0], [0], [1], [0, 0, 1, 1], [], []>} : vector<64x32xbf16>, vector<32x32xbf16>, vector<64x32xf32> -> vector<64x32xf32>
    %c0_92 = arith.constant 0 : index
    %c0_93 = arith.constant 0 : index
    %c0_94 = arith.constant 0 : index
    %114 = vector.load %arg9[%c0_92, %c0_93, %c0_94] : memref<2x1x32xf32, #tpu.memory_space<vmem>>, vector<1x1x32xf32>
    %115 = vector.shape_cast %114 : vector<1x1x32xf32> to vector<1x32xf32>
    %116 = vector.broadcast %115 : vector<1x32xf32> to vector<64x32xf32>
    %117 = arith.addf %113, %116 : vector<64x32xf32>
    %cst_95 = arith.constant 0.000000e+00 : f32
    %118 = vector.broadcast %cst_95 : f32 to vector<64x32xf32>
    %119 = arith.maximumf %117, %118 : vector<64x32xf32>
    %120 = arith.truncf %119 : vector<64x32xf32> to vector<64x32xbf16>
    %c1_96 = arith.constant 1 : index
    %c0_97 = arith.constant 0 : index
    %c0_98 = arith.constant 0 : index
    %121 = vector.load %arg8[%c1_96, %c0_97, %c0_98] : memref<2x32x32xbf16, #tpu.memory_space<vmem>>, vector<1x32x32xbf16>
    %122 = vector.shape_cast %121 : vector<1x32x32xbf16> to vector<32x32xbf16>
    %cst_99 = arith.constant dense<0.000000e+00> : vector<64x32xf32>
    %123 = tpu.matmul %120, %122, %cst_99 {dimension_numbers = #tpu.dot_dimension_numbers<[1], [0], [0], [1], [0, 0, 1, 1], [], []>} : vector<64x32xbf16>, vector<32x32xbf16>, vector<64x32xf32> -> vector<64x32xf32>
    %c1_100 = arith.constant 1 : index
    %c0_101 = arith.constant 0 : index
    %c0_102 = arith.constant 0 : index
    %124 = vector.load %arg9[%c1_100, %c0_101, %c0_102] : memref<2x1x32xf32, #tpu.memory_space<vmem>>, vector<1x1x32xf32>
    %125 = vector.shape_cast %124 : vector<1x1x32xf32> to vector<1x32xf32>
    %126 = vector.broadcast %125 : vector<1x32xf32> to vector<64x32xf32>
    %127 = arith.addf %123, %126 : vector<64x32xf32>
    %cst_103 = arith.constant 0.000000e+00 : f32
    %128 = vector.broadcast %cst_103 : f32 to vector<64x32xf32>
    %129 = arith.maximumf %127, %128 : vector<64x32xf32>
    %130 = arith.truncf %129 : vector<64x32xf32> to vector<64x32xbf16>
    %c0_104 = arith.constant 0 : index
    %c0_105 = arith.constant 0 : index
    %131 = vector.load %arg10[%c0_104, %c0_105] : memref<32x128xbf16, #tpu.memory_space<vmem>>, vector<32x128xbf16>
    %cst_106 = arith.constant dense<0.000000e+00> : vector<64x128xf32>
    %132 = tpu.matmul %130, %131, %cst_106 {dimension_numbers = #tpu.dot_dimension_numbers<[1], [0], [0], [1], [0, 0, 1, 1], [], []>} : vector<64x32xbf16>, vector<32x128xbf16>, vector<64x128xf32> -> vector<64x128xf32>
    %c0_107 = arith.constant 0 : index
    %c0_108 = arith.constant 0 : index
    %133 = vector.load %arg11[%c0_107, %c0_108] : memref<1x128xf32, #tpu.memory_space<vmem>>, vector<1x128xf32>
    %134 = vector.broadcast %133 : vector<1x128xf32> to vector<64x128xf32>
    %135 = arith.addf %132, %134 : vector<64x128xf32>
    %c0_109 = arith.constant 0 : index
    %c0_110 = arith.constant 0 : index
    %c0_111 = arith.constant 0 : index
    %136 = vector.load %arg12[%c0_109, %c0_110, %c0_111] : memref<1x64x128xf32, #tpu.memory_space<vmem>>, vector<1x64x128xf32>
    %137 = vector.shape_cast %136 : vector<1x64x128xf32> to vector<64x128xf32>
    %138 = vector.shape_cast %135 : vector<64x128xf32> to vector<1x64x128xf32>
    tpu.vector_store %arg12[%c0_109, %c0_110, %c0_111], %138 {strides = array<i32>} : memref<1x64x128xf32, #tpu.memory_space<vmem>>, vector<1x64x128xf32>,
    return
  }
  func.func @transform_0(%arg0: i32) -> (i32, i32, i32) {
    %c0_i32 = arith.constant 0 : i32
    %c0_i32_0 = arith.constant 0 : i32
    %c0_i32_1 = arith.constant 0 : i32
    return %arg0, %c0_i32, %c0_i32_0 : i32, i32, i32
  }
  func.func @transform_1(%arg0: i32) -> (i32, i32, i32) {
    %c0_i32 = arith.constant 0 : i32
    %c0_i32_0 = arith.constant 0 : i32
    %c0_i32_1 = arith.constant 0 : i32
    return %arg0, %c0_i32, %c0_i32_0 : i32, i32, i32
  }
  func.func @transform_2(%arg0: i32) -> (i32, i32, i32) {
    %c0_i32 = arith.constant 0 : i32
    %c0_i32_0 = arith.constant 0 : i32
    %c0_i32_1 = arith.constant 0 : i32
    return %arg0, %c0_i32, %c0_i32_0 : i32, i32, i32
  }
  func.func @transform_3(%arg0: i32) -> (i32, i32, i32) {
    %c0_i32 = arith.constant 0 : i32
    %c0_i32_0 = arith.constant 0 : i32
    %c0_i32_1 = arith.constant 0 : i32
    %c0_i32_2 = arith.constant 0 : i32
    return %c0_i32, %c0_i32_0, %c0_i32_1 : i32, i32, i32
  }
  func.func @transform_4(%arg0: i32) -> (i32, i32, i32) {
    %c0_i32 = arith.constant 0 : i32
    %c0_i32_0 = arith.constant 0 : i32
    %c0_i32_1 = arith.constant 0 : i32
    %c0_i32_2 = arith.constant 0 : i32
    return %c0_i32, %c0_i32_0, %c0_i32_1 : i32, i32, i32
  }
  func.func @transform_5(%arg0: i32) -> (i32, i32, i32) {
    %c0_i32 = arith.constant 0 : i32
    %c0_i32_0 = arith.constant 0 : i32
    %c0_i32_1 = arith.constant 0 : i32
    %c0_i32_2 = arith.constant 0 : i32
    return %c0_i32, %c0_i32_0, %c0_i32_1 : i32, i32, i32
  }
  func.func @transform_6(%arg0: i32) -> (i32, i32, i32) {
    %c0_i32 = arith.constant 0 : i32
    %c0_i32_0 = arith.constant 0 : i32
    %c0_i32_1 = arith.constant 0 : i32
    %c0_i32_2 = arith.constant 0 : i32
    return %c0_i32, %c0_i32_0, %c0_i32_1 : i32, i32, i32
  }
  func.func @transform_7(%arg0: i32) -> (i32, i32, i32) {
    %c0_i32 = arith.constant 0 : i32
    %c0_i32_0 = arith.constant 0 : i32
    %c0_i32_1 = arith.constant 0 : i32
    %c0_i32_2 = arith.constant 0 : i32
    return %c0_i32, %c0_i32_0, %c0_i32_1 : i32, i32, i32
  }
  func.func @transform_8(%arg0: i32) -> (i32, i32, i32) {
    %c0_i32 = arith.constant 0 : i32
    %c0_i32_0 = arith.constant 0 : i32
    %c0_i32_1 = arith.constant 0 : i32
    %c0_i32_2 = arith.constant 0 : i32
    return %c0_i32, %c0_i32_0, %c0_i32_1 : i32, i32, i32
  }
  func.func @transform_9(%arg0: i32) -> (i32, i32) {
    %c0_i32 = arith.constant 0 : i32
    %c0_i32_0 = arith.constant 0 : i32
    %c0_i32_1 = arith.constant 0 : i32
    return %c0_i32, %c0_i32_0 : i32, i32
  }
  func.func @transform_10(%arg0: i32) -> (i32, i32) {
    %c0_i32 = arith.constant 0 : i32
    %c0_i32_0 = arith.constant 0 : i32
    %c0_i32_1 = arith.constant 0 : i32
    return %c0_i32, %c0_i32_0 : i32, i32
  }
  func.func @transform_11(%arg0: i32) -> (i32, i32, i32) {
    %c0_i32 = arith.constant 0 : i32
    %c0_i32_0 = arith.constant 0 : i32
    %c0_i32_1 = arith.constant 0 : i32
    return %arg0, %c0_i32, %c0_i32_0 : i32, i32, i32
  }
}

</mosaic_0001>

<bundles_post_ra>
// kernel: tpu_custom_call.1
= control target key start
LH: loop header
LB: loop body
LE: loop exit
PB: predicated region body
PF: predicated region fallthrough
CT: control target
= control target key end

     0   :  { %16 = vsyncpa [#allocation3], 0  ;;  %s14443_s0 = inlined_call_operand.vmem [shape: f32[1,512,32], index: 0, kind: input, shape index: {}]   ;;  %s14444_s1 = inlined_call_operand.hbm [shape: bf16[1,512,512], index: 1, kind: input, shape index: {}]   ;;  %s14445_s2 = inlined_call_operand.vmem [shape: bf16[1,64,512], index: 2, kind: input, shape index: {}]   ;;  %s14446_s3 = inlined_call_operand.vmem [shape: bf16[2,32,32], index: 3, kind: input, shape index: {}]   ;;  %s14447_s4 = inlined_call_operand.vmem [shape: f32[2,1,32], index: 4, kind: input, shape index: {}]   ;;  %s14448_s5 = inlined_call_operand.vmem [shape: bf16[6,32,32], index: 5, kind: input, shape index: {}]   ;;  %s14449_s6 = inlined_call_operand.vmem [shape: f32[6,1,32], index: 6, kind: input, shape index: {}]   ;;  %s14450_s7 = inlined_call_operand.vmem [shape: bf16[2,32,32], index: 7, kind: input, shape index: {}]   ;;  %s14451_s8 = inlined_call_operand.vmem [shape: f32[2,1,32], index: 8, kind: input, shape index: {}]   ;;  %s14452_s9 = inlined_call_operand.vmem [shape: bf16[32,128], index: 9, kind: input, shape index: {}]   ;;  %s14453_s10 = inlined_call_operand.vmem [shape: f32[1,128], index: 10, kind: input, shape index: {}]   ;;  %s14454_s11 = inlined_call_operand.hbm [shape: f32[1,64,128], index: 11, kind: output, shape index: {}]  }
   0x1   :  { %17 = vsyncpa [#allocation4], 0  ;;  %s11568_s17 = smov [#allocation2]  }
   0x2   :  { %s25_s18 = sshll.u32 %s11568_s17, 4  ;;  %s26_s18 = int_to_ptr.vmem [resolvable:$true] %s25_s18 }
   0x3   :  { %s11532_s19 = scalar_lea.vmem %s26_s18, 16384  ;;  %p11537_p1 = scmp.lt.s32.totalorder %s26_s18, %s26_s18 }
   0x4   :  { %p11533_p0 = scmp.ne.s32.totalorder %s26_s18, %s11532_s19  ;;  %p11538_p2 = scmp.lt.s32.totalorder %s11532_s19, %s11532_s19 }
   0x6   :  { %p11539_p3 = por %p11538_p2, %p11537_p1 }
   0x8   :  { %p11540_p4 = pnand %p11539_p3, %p11533_p0 }
   0xa   :  { %11543 = shalt.err (!%p11540_p4)
}
   0xb   :  { %s11569_s20 = smov 256   ;;  %s11570_s21 = smov 16  }
   0xc   :  { %31 = dma.hbm_to_vmem [thread:$0]  %s14444_s1, 16384, %s26_s18, [#allocation3], %s11569_s20, %s11569_s20, %s11570_s21  }
   0xd   :  { %11564 = dma.done.wait [#allocation3], 16384  }
   0xe   :  { %11565 = vsyncadd [#allocation3], 4294950912  ;;  %v10645_v0 = vld [vmem:[%s14446_s3 + $0x8] sm:$0xff]   ;;  %v10646_v1 = vld [vmem:[%s14446_s3] sm:$0xff]   ;;  %vm173_vm0 = vcmask 261120  }
   0xf   :  { %10054 = vmatprep.subr.bf16.mxu0 %v10645_v0  ;;  %v54_v2 = vld [vmem:[%s14443_s0] sm:$0xff]  ;;  %v55_v3 = vld [vmem:[%s14443_s0 + $0x8] sm:$0xff]  ;;  %10634 = vmatprep.subr.bf16.mxu1 %v10645_v0  ;;  %v56_v5 = vld [vmem:[%s14443_s0 + $0x10] sm:$0xff] }
  0x10   :  { %10055 = vmatpush3.bf16.msra.mxu0 %v10645_v0  ;;  %v118_v4 = vpack.c.bf16 %v55_v3, %v54_v2  ;;  %v57_v6 = vld [vmem:[%s14443_s0 + $0x18] sm:$0xff]  ;;  %10636 = vmatpush3.bf16.msra.mxu1 %v10645_v0  ;;  %v58_v7 = vld [vmem:[%s14443_s0 + $0x20] sm:$0xff]  ;;  %v59_v8 = vld [vmem:[%s14443_s0 + $0x28] sm:$0xff] }
  0x11   :  { %10056 = vmatprep.subr.bf16.mxu0 %v10646_v1  ;;  %10635 = vmatprep.subr.bf16.mxu1 %v10646_v1  ;;  %v119_v9 = vpack.c.bf16 %v57_v6, %v56_v5  ;;  %v120_v10 = vpack.c.bf16 %v59_v8, %v58_v7  ;;  %v60_v11 = vld [vmem:[%s14443_s0 + $0x30] sm:$0xff]  ;;  %v61_v12 = vld [vmem:[%s14443_s0 + $0x38] sm:$0xff]  ;;  %v62_v13 = vld [vmem:[%s14443_s0 + $0x40] sm:$0xff] }
  0x12   :  { %10058 = vmatprep.mubr.msk.bf16.mxu0 %vm173_vm0, %v118_v4  ;;  %v63_v14 = vld [vmem:[%s14443_s0 + $0x48] sm:$0xff]  ;;  %v121_v15 = vpack.c.bf16 %v61_v12, %v60_v11  ;;  %v64_v17 = vld [vmem:[%s14443_s0 + $0x50] sm:$0xff]  ;;  %v65_v18 = vld [vmem:[%s14443_s0 + $0x58] sm:$0xff] }
  0x13   :  { %v122_v16 = vpack.c.bf16 %v63_v14, %v62_v13  ;;  %v66_v19 = vld [vmem:[%s14443_s0 + $0x60] sm:$0xff]  ;;  %v67_v20 = vld [vmem:[%s14443_s0 + $0x68] sm:$0xff]  ;;  %v123_v21 = vpack.c.bf16 %v65_v18, %v64_v17  ;;  %v116_v24 = vld [vmem:[%s14443_s0 + $0x1f0] sm:$0xff] }
  0x14   :  { %10057 = vmatpush3.bf16.msra.mxu0 %v10646_v1  ;;  %10637 = vmatpush3.bf16.msra.mxu1 %v10646_v1  ;;  %v114_v22 = vld [vmem:[%s14443_s0 + $0x1e0] sm:$0xff]  ;;  %v115_v23 = vld [vmem:[%s14443_s0 + $0x1e8] sm:$0xff]  ;;  %v124_v25 = vpack.c.bf16 %v67_v20, %v66_v19  ;;  %v117_v27 = vld [vmem:[%s14443_s0 + $0x1f8] sm:$0xff] }
  0x15   :  { %v148_v26 = vpack.c.bf16 %v115_v23, %v114_v22  ;;  %v149_v28 = vpack.c.bf16 %v117_v27, %v116_v24  ;;  %v68_v29 = vld [vmem:[%s14443_s0 + $0x70] sm:$0xff]  ;;  %v69_v30 = vld [vmem:[%s14443_s0 + $0x78] sm:$0xff]  ;;  %v70_v31 = vld [vmem:[%s14443_s0 + $0x80] sm:$0xff] }
  0x16   :  { %v71_v32 = vld [vmem:[%s14443_s0 + $0x88] sm:$0xff]  ;;  %v125_v33 = vpack.c.bf16 %v69_v30, %v68_v29  ;;  %v72_v35 = vld [vmem:[%s14443_s0 + $0x90] sm:$0xff]  ;;  %v73_v36 = vld [vmem:[%s14443_s0 + $0x98] sm:$0xff] }
  0x17   :  { %10059 = vmatmul.mubr.msk.bf16.vlgmr.msra.gmra.mxu0 %vm173_vm0, %v119_v9  ;;  %10118 = vmatprep.mubr.msk.bf16.mxu1 %vm173_vm0, %v148_v26  ;;  %v126_v34 = vpack.c.bf16 %v71_v32, %v70_v31  ;;  %v74_v37 = vld [vmem:[%s14443_s0 + $0xa0] sm:$0xff]  ;;  %v75_v38 = vld [vmem:[%s14443_s0 + $0xa8] sm:$0xff]  ;;  %v127_v39 = vpack.c.bf16 %v73_v36, %v72_v35  ;;  %v76_v41 = vld [vmem:[%s14443_s0 + $0xb0] sm:$0xff] }
  0x18   :  { %10062 = vmatprep.mubr.msk.bf16.mxu0 %vm173_vm0, %v120_v10  ;;  %10119 = vmatmul.mubr.msk.bf16.vlgmr.msra.gmra.mxu1 %vm173_vm0, %v149_v28  ;;  %v128_v40 = vpack.c.bf16 %v75_v38, %v74_v37  ;;  %v77_v42 = vld [vmem:[%s14443_s0 + $0xb8] sm:$0xff]  ;;  %v78_v43 = vld [vmem:[%s14443_s0 + $0xc0] sm:$0xff]  ;;  %v79_v44 = vld [vmem:[%s14443_s0 + $0xc8] sm:$0xff] }
  0x19   :  { %v129_v45 = vpack.c.bf16 %v77_v42, %v76_v41  ;;  %v130_v46 = vpack.c.bf16 %v79_v44, %v78_v43  ;;  %v80_v47 = vld [vmem:[%s14443_s0 + $0xd0] sm:$0xff]  ;;  %v81_v48 = vld [vmem:[%s14443_s0 + $0xd8] sm:$0xff]  ;;  %v82_v49 = vld [vmem:[%s14443_s0 + $0xe0] sm:$0xff] }
  0x1a   :  { %v83_v50 = vld [vmem:[%s14443_s0 + $0xe8] sm:$0xff]  ;;  %v131_v51 = vpack.c.bf16 %v81_v48, %v80_v47  ;;  %v84_v53 = vld [vmem:[%s14443_s0 + $0xf0] sm:$0xff]  ;;  %v85_v54 = vld [vmem:[%s14443_s0 + $0xf8] sm:$0xff] }
  0x1b   :  { %v132_v52 = vpack.c.bf16 %v83_v50, %v82_v49  ;;  %v86_v55 = vld [vmem:[%s14443_s0 + $0x100] sm:$0xff]  ;;  %v87_v56 = vld [vmem:[%s14443_s0 + $0x108] sm:$0xff]  ;;  %v133_v57 = vpack.c.bf16 %v85_v54, %v84_v53  ;;  %v88_v59 = vld [vmem:[%s14443_s0 + $0x110] sm:$0xff] }
  0x1c   :  { %v134_v58 = vpack.c.bf16 %v87_v56, %v86_v55  ;;  %v89_v60 = vld [vmem:[%s14443_s0 + $0x118] sm:$0xff]  ;;  %v90_v61 = vld [vmem:[%s14443_s0 + $0x120] sm:$0xff]  ;;  %v91_v62 = vld [vmem:[%s14443_s0 + $0x128] sm:$0xff] }
  0x1d   :  { %v135_v63 = vpack.c.bf16 %v89_v60, %v88_v59  ;;  %v136_v0 = vpack.c.bf16 %v91_v62, %v90_v61  ;;  %v92_v1 = vld [vmem:[%s14443_s0 + $0x130] sm:$0xff]  ;;  %v93_v2 = vld [vmem:[%s14443_s0 + $0x138] sm:$0xff]  ;;  %v94_v3 = vld [vmem:[%s14443_s0 + $0x140] sm:$0xff] }
  0x1e   :  { %v95_v4 = vld [vmem:[%s14443_s0 + $0x148] sm:$0xff]  ;;  %v137_v5 = vpack.c.bf16 %v93_v2, %v92_v1  ;;  %v10647_v6 = vld [vmem:[%s14446_s3 + $0x18] sm:$0xff]   ;;  %v96_v8 = vld [vmem:[%s14443_s0 + $0x150] sm:$0xff] }
  0x1f   :  { %10063 = vmatmul.mubr.msk.bf16.gmra.mxu0 %vm173_vm0, %v121_v15  ;;  %v138_v7 = vpack.c.bf16 %v95_v4, %v94_v3  ;;  %10122 = vmatprep.subr.bf16.mxu1 %v10647_v6  ;;  %v97_v9 = vld [vmem:[%s14443_s0 + $0x158] sm:$0xff]  ;;  %v98_v10 = vld [vmem:[%s14443_s0 + $0x160] sm:$0xff]  ;;  %v99_v11 = vld [vmem:[%s14443_s0 + $0x168] sm:$0xff] }
  0x20   :  { %10066 = vmatprep.mubr.msk.bf16.mxu0 %vm173_vm0, %v122_v16  ;;  %10123 = vmatpush3.bf16.msra.mxu1 %v10647_v6  ;;  %v10648_v12 = vld [vmem:[%s14446_s3 + $0x10] sm:$0xff]   ;;  %v139_v13 = vpack.c.bf16 %v97_v9, %v96_v8  ;;  %v140_v14 = vpack.c.bf16 %v99_v11, %v98_v10  ;;  %v101_v16 = vld [vmem:[%s14443_s0 + $0x178] sm:$0xff]  ;;  %v102_v17 = vld [vmem:[%s14443_s0 + $0x180] sm:$0xff] }
  0x21   :  { %10124 = vmatprep.subr.bf16.mxu1 %v10648_v12  ;;  %v100_v15 = vld [vmem:[%s14443_s0 + $0x170] sm:$0xff]  ;;  %v103_v18 = vld [vmem:[%s14443_s0 + $0x188] sm:$0xff]  ;;  %v105_v22 = vld [vmem:[%s14443_s0 + $0x198] sm:$0xff] }
  0x22   :  { %v141_v19 = vpack.c.bf16 %v101_v16, %v100_v15  ;;  %v142_v20 = vpack.c.bf16 %v103_v18, %v102_v17  ;;  %v106_v23 = vld [vmem:[%s14443_s0 + $0x1a0] sm:$0xff]  ;;  %v107_v24 = vld [vmem:[%s14443_s0 + $0x1a8] sm:$0xff]  ;;  %v108_v27 = vld [vmem:[%s14443_s0 + $0x1b0] sm:$0xff] }
  0x23   :  { %v144_v26 = vpack.c.bf16 %v107_v24, %v106_v23  ;;  %v109_v28 = vld [vmem:[%s14443_s0 + $0x1b8] sm:$0xff]  ;;  %v110_v29 = vld [vmem:[%s14443_s0 + $0x1c0] sm:$0xff]  ;;  %v111_v30 = vld [vmem:[%s14443_s0 + $0x1c8] sm:$0xff] }
  0x24   :  { %10125 = vmatpush3.bf16.msra.mxu1 %v10648_v12  ;;  %v145_v31 = vpack.c.bf16 %v109_v28, %v108_v27  ;;  %v146_v32 = vpack.c.bf16 %v111_v30, %v110_v29  ;;  %v11877_v38 = vld [vmem:[%s14447_s4] ss:$0 sm:$0xff] }
  0x27   :  { %10067 = vmatmul.mubr.msk.bf16.gmra.mxu0 %vm173_vm0, %v123_v21  ;;  %v104_v21 = vld [vmem:[%s14443_s0 + $0x190] sm:$0xff] }
  0x28   :  { %10070 = vmatprep.mubr.msk.bf16.mxu0 %vm173_vm0, %v124_v25  ;;  %v143_v25 = vpack.c.bf16 %v105_v22, %v104_v21 }
  0x2f   :  { %10071 = vmatmul.mubr.msk.bf16.gmra.mxu0 %vm173_vm0, %v125_v33  ;;  %v112_v33 = vld [vmem:[%s14443_s0 + $0x1d0] sm:$0xff] }
  0x30   :  { %10074 = vmatprep.mubr.msk.bf16.mxu0 %vm173_vm0, %v126_v34  ;;  %v113_v34 = vld [vmem:[%s14443_s0 + $0x1d8] sm:$0xff] }
  0x31   :  { %v147_v35 = vpack.c.bf16 %v113_v34, %v112_v33 }
  0x37   :  { %10075 = vmatmul.mubr.msk.bf16.gmra.mxu0 %vm173_vm0, %v127_v39 }
  0x38   :  { %10078 = vmatprep.mubr.msk.bf16.mxu0 %vm173_vm0, %v128_v40 }
  0x3f   :  { %10079 = vmatmul.mubr.msk.bf16.gmra.mxu0 %vm173_vm0, %v129_v45 }
  0x40   :  { %10082 = vmatprep.mubr.msk.bf16.mxu0 %vm173_vm0, %v130_v46 }
  0x47   :  { %10083 = vmatmul.mubr.msk.bf16.gmra.mxu0 %vm173_vm0, %v131_v51 }
  0x48   :  { %10086 = vmatprep.mubr.msk.bf16.mxu0 %vm173_vm0, %v132_v52 }
  0x4f   :  { %10087 = vmatmul.mubr.msk.bf16.gmra.mxu0 %vm173_vm0, %v133_v57 }
  0x50   :  { %10090 = vmatprep.mubr.msk.bf16.mxu0 %vm173_vm0, %v134_v58 }
  0x57   :  { %10091 = vmatmul.mubr.msk.bf16.gmra.mxu0 %vm173_vm0, %v135_v63 }
  0x58   :  { %10094 = vmatprep.mubr.msk.bf16.mxu0 %vm173_vm0, %v136_v0 }
  0x5f   :  { %10095 = vmatmul.mubr.msk.bf16.gmra.mxu0 %vm173_vm0, %v137_v5 }
  0x60   :  { %10098 = vmatprep.mubr.msk.bf16.mxu0 %vm173_vm0, %v138_v7 }
  0x67   :  { %10099 = vmatmul.mubr.msk.bf16.gmra.mxu0 %vm173_vm0, %v139_v13 }
  0x68   :  { %10102 = vmatprep.mubr.msk.bf16.mxu0 %vm173_vm0, %v140_v14 }
  0x6f   :  { %10103 = vmatmul.mubr.msk.bf16.gmra.mxu0 %vm173_vm0, %v141_v19 }
  0x70   :  { %10106 = vmatprep.mubr.msk.bf16.mxu0 %vm173_vm0, %v142_v20 }
  0x77   :  { %10107 = vmatmul.mubr.msk.bf16.gmra.mxu0 %vm173_vm0, %v143_v25 }
  0x78   :  { %10110 = vmatprep.mubr.msk.bf16.mxu0 %vm173_vm0, %v144_v26 }
  0x7f   :  { %10111 = vmatmul.mubr.msk.bf16.gmra.mxu0 %vm173_vm0, %v145_v31 }
  0x80   :  { %10114 = vmatprep.mubr.msk.bf16.mxu0 %vm173_vm0, %v146_v32 }
  0x87   :  { %10115 = vmatmul.mubr.msk.bf16.gmra.mxu0 %vm173_vm0, %v147_v35 }
  0xd7   :  { %v10060_v36 = vpop.f32.mrf.mxu0 }
  0xd8   :  { %v313_v42 = vadd.f32 %v10060_v36, %v11877_v38 }
  0xd9   :  { %v304_v37 = vpop.f32.mrf.mxu0 }
  0xda   :  { %v305_v40 = vadd.f32 %v11877_v38, %v304_v37  ;;  %v561_v49 = vmax.f32 %v313_v42, 0.0 }
  0xdb   :  { %v10061_v39 = vpop.f32.mrf.mxu0 }
  0xdc   :  { %v316_v41 = vadd.f32 %v10061_v39, %v11877_v38  ;;  %v559_v47 = vmax.f32 %v305_v40, 0.0 }
  0xdd   :  { %v307_v43 = vpop.f32.mrf.mxu0 }
  0xde   :  { %v308_v44 = vadd.f32 %v11877_v38, %v307_v43  ;;  %v562_v45 = vmax.f32 %v316_v41, 0.0 }
  0xdf   :  { %v10064_v46 = vpop.f32.mrf.mxu0 }
  0xe0   :  { %v560_v48 = vmax.f32 %v308_v44, 0.0  ;;  %v624_v52 = vpack.c.bf16 %v562_v45, %v561_v49  ;;  %v329_v56 = vadd.f32 %v10064_v46, %v11877_v38 }
  0xe1   :  { %v320_v50 = vpop.f32.mrf.mxu0 }
  0xe2   :  { %v623_v51 = vpack.c.bf16 %v560_v48, %v559_v47  ;;  %v321_v54 = vadd.f32 %v11877_v38, %v320_v50  ;;  %v565_v63 = vmax.f32 %v329_v56, 0.0 }
  0xe3   :  { %v10065_v53 = vpop.f32.mrf.mxu0 }
  0xe4   :  { %v332_v55 = vadd.f32 %v10065_v53, %v11877_v38  ;;  %10126 = vmatprep.mubr.msk.bf16.mxu1 %vm173_vm0, %v623_v51  ;;  %v563_v61 = vmax.f32 %v321_v54, 0.0 }
  0xe5   :  { %v323_v57 = vpop.f32.mrf.mxu0  ;;  %10127 = vmatmul.mubr.msk.bf16.vlgmr.msra.gmra.mxu1 %vm173_vm0, %v624_v52 }
  0xe6   :  { %v324_v58 = vadd.f32 %v11877_v38, %v323_v57  ;;  %v566_v59 = vmax.f32 %v332_v55, 0.0 }
  0xe7   :  { %v10068_v60 = vpop.f32.mrf.mxu0 }
  0xe8   :  { %v564_v62 = vmax.f32 %v324_v58, 0.0  ;;  %v626_v2 = vpack.c.bf16 %v566_v59, %v565_v63  ;;  %v345_v6 = vadd.f32 %v10068_v60, %v11877_v38 }
  0xe9   :  { %v336_v0 = vpop.f32.mrf.mxu0 }
  0xea   :  { %v625_v1 = vpack.c.bf16 %v564_v62, %v563_v61  ;;  %v337_v4 = vadd.f32 %v11877_v38, %v336_v0  ;;  %v569_v13 = vmax.f32 %v345_v6, 0.0 }
  0xeb   :  { %v10069_v3 = vpop.f32.mrf.mxu0 }
  0xec   :  { %v348_v5 = vadd.f32 %v10069_v3, %v11877_v38  ;;  %10130 = vmatprep.mubr.msk.bf16.mxu1 %vm173_vm0, %v625_v1  ;;  %v567_v11 = vmax.f32 %v337_v4, 0.0 }
  0xed   :  { %v339_v7 = vpop.f32.mrf.mxu0  ;;  %10131 = vmatmul.mubr.msk.bf16.gmra.mxu1 %vm173_vm0, %v626_v2 }
  0xee   :  { %v340_v8 = vadd.f32 %v11877_v38, %v339_v7  ;;  %v570_v9 = vmax.f32 %v348_v5, 0.0 }
  0xef   :  { %v10072_v10 = vpop.f32.mrf.mxu0 }
  0xf0   :  { %v568_v12 = vmax.f32 %v340_v8, 0.0  ;;  %v628_v16 = vpack.c.bf16 %v570_v9, %v569_v13  ;;  %v361_v20 = vadd.f32 %v10072_v10, %v11877_v38 }
  0xf1   :  { %v352_v14 = vpop.f32.mrf.mxu0 }
  0xf2   :  { %v627_v15 = vpack.c.bf16 %v568_v12, %v567_v11  ;;  %v353_v18 = vadd.f32 %v11877_v38, %v352_v14  ;;  %v573_v27 = vmax.f32 %v361_v20, 0.0 }
  0xf3   :  { %v10073_v17 = vpop.f32.mrf.mxu0 }
  0xf4   :  { %v364_v19 = vadd.f32 %v10073_v17, %v11877_v38  ;;  %10134 = vmatprep.mubr.msk.bf16.mxu1 %vm173_vm0, %v627_v15  ;;  %v571_v25 = vmax.f32 %v353_v18, 0.0 }
  0xf5   :  { %v355_v21 = vpop.f32.mrf.mxu0  ;;  %10135 = vmatmul.mubr.msk.bf16.gmra.mxu1 %vm173_vm0, %v628_v16 }
  0xf6   :  { %v356_v22 = vadd.f32 %v11877_v38, %v355_v21  ;;  %v574_v23 = vmax.f32 %v364_v19, 0.0 }
  0xf7   :  { %v10076_v24 = vpop.f32.mrf.mxu0 }
  0xf8   :  { %v572_v26 = vmax.f32 %v356_v22, 0.0  ;;  %v630_v30 = vpack.c.bf16 %v574_v23, %v573_v27  ;;  %v377_v34 = vadd.f32 %v10076_v24, %v11877_v38 }
  0xf9   :  { %v368_v28 = vpop.f32.mrf.mxu0 }
  0xfa   :  { %v629_v29 = vpack.c.bf16 %v572_v26, %v571_v25  ;;  %v369_v32 = vadd.f32 %v11877_v38, %v368_v28  ;;  %v577_v42 = vmax.f32 %v377_v34, 0.0 }
  0xfb   :  { %v10077_v31 = vpop.f32.mrf.mxu0 }
  0xfc   :  { %v380_v33 = vadd.f32 %v10077_v31, %v11877_v38  ;;  %10138 = vmatprep.mubr.msk.bf16.mxu1 %vm173_vm0, %v629_v29  ;;  %v575_v40 = vmax.f32 %v369_v32, 0.0 }
  0xfd   :  { %v371_v35 = vpop.f32.mrf.mxu0  ;;  %10139 = vmatmul.mubr.msk.bf16.gmra.mxu1 %vm173_vm0, %v630_v30 }
  0xfe   :  { %v372_v36 = vadd.f32 %v11877_v38, %v371_v35  ;;  %v578_v37 = vmax.f32 %v380_v33, 0.0 }
  0xff   :  { %v10080_v39 = vpop.f32.mrf.mxu0 }
 0x100   :  { %v576_v41 = vmax.f32 %v372_v36, 0.0  ;;  %v632_v45 = vpack.c.bf16 %v578_v37, %v577_v42  ;;  %v393_v49 = vadd.f32 %v10080_v39, %v11877_v38 }
 0x101   :  { %v384_v43 = vpop.f32.mrf.mxu0 }
 0x102   :  { %v631_v44 = vpack.c.bf16 %v576_v41, %v575_v40  ;;  %v385_v47 = vadd.f32 %v11877_v38, %v384_v43  ;;  %v581_v56 = vmax.f32 %v393_v49, 0.0 }
 0x103   :  { %v10081_v46 = vpop.f32.mrf.mxu0 }
 0x104   :  { %v396_v48 = vadd.f32 %v10081_v46, %v11877_v38  ;;  %10142 = vmatprep.mubr.msk.bf16.mxu1 %vm173_vm0, %v631_v44  ;;  %v579_v54 = vmax.f32 %v385_v47, 0.0 }
 0x105   :  { %v387_v50 = vpop.f32.mrf.mxu0  ;;  %10143 = vmatmul.mubr.msk.bf16.gmra.mxu1 %vm173_vm0, %v632_v45 }
 0x106   :  { %v388_v51 = vadd.f32 %v11877_v38, %v387_v50  ;;  %v582_v52 = vmax.f32 %v396_v48, 0.0 }
 0x107   :  { %v10084_v53 = vpop.f32.mrf.mxu0 }
 0x108   :  { %v580_v55 = vmax.f32 %v388_v51, 0.0  ;;  %v634_v59 = vpack.c.bf16 %v582_v52, %v581_v56  ;;  %v409_v63 = vadd.f32 %v10084_v53, %v11877_v38  ;;  %v10649_v51 = vld [vmem:[%s14448_s5 + $0x8] sm:$0xff]  }
 0x109   :  { %v400_v57 = vpop.f32.mrf.mxu0  ;;  %10190 = vmatprep.subr.bf16.mxu0 %v10649_v51 }
 0x10a   :  { %v633_v58 = vpack.c.bf16 %v580_v55, %v579_v54  ;;  %v401_v61 = vadd.f32 %v11877_v38, %v400_v57  ;;  %v585_v6 = vmax.f32 %v409_v63, 0.0  ;;  %10191 = vmatpush3.bf16.msra.mxu0 %v10649_v51 }
 0x10b   :  { %v10085_v60 = vpop.f32.mrf.mxu0 }
 0x10c   :  { %v412_v62 = vadd.f32 %v10085_v60, %v11877_v38  ;;  %10146 = vmatprep.mubr.msk.bf16.mxu1 %vm173_vm0, %v633_v58  ;;  %v583_v4 = vmax.f32 %v401_v61, 0.0 }
 0x10d   :  { %v403_v0 = vpop.f32.mrf.mxu0  ;;  %10147 = vmatmul.mubr.msk.bf16.gmra.mxu1 %vm173_vm0, %v634_v59  ;;  %v10650_v59 = vld [vmem:[%s14448_s5] sm:$0xff]  }
 0x10e   :  { %v404_v1 = vadd.f32 %v11877_v38, %v403_v0  ;;  %v586_v2 = vmax.f32 %v412_v62, 0.0  ;;  %10192 = vmatprep.subr.bf16.mxu0 %v10650_v59 }
 0x10f   :  { %v10088_v3 = vpop.f32.mrf.mxu0  ;;  %10193 = vmatpush3.bf16.msra.mxu0 %v10650_v59 }
 0x110   :  { %v584_v5 = vmax.f32 %v404_v1, 0.0  ;;  %v636_v9 = vpack.c.bf16 %v586_v2, %v585_v6  ;;  %v425_v13 = vadd.f32 %v10088_v3, %v11877_v38 }
 0x111   :  { %v416_v7 = vpop.f32.mrf.mxu0 }
 0x112   :  { %v635_v8 = vpack.c.bf16 %v584_v5, %v583_v4  ;;  %v417_v11 = vadd.f32 %v11877_v38, %v416_v7  ;;  %v589_v20 = vmax.f32 %v425_v13, 0.0 }
 0x113   :  { %v10089_v10 = vpop.f32.mrf.mxu0 }
 0x114   :  { %v428_v12 = vadd.f32 %v10089_v10, %v11877_v38  ;;  %10150 = vmatprep.mubr.msk.bf16.mxu1 %vm173_vm0, %v635_v8  ;;  %v587_v18 = vmax.f32 %v417_v11, 0.0 }
 0x115   :  { %v419_v14 = vpop.f32.mrf.mxu0  ;;  %10151 = vmatmul.mubr.msk.bf16.gmra.mxu1 %vm173_vm0, %v636_v9 }
 0x116   :  { %v420_v15 = vadd.f32 %v11877_v38, %v419_v14  ;;  %v590_v16 = vmax.f32 %v428_v12, 0.0 }
 0x117   :  { %v10092_v17 = vpop.f32.mrf.mxu0 }
 0x118   :  { %v588_v19 = vmax.f32 %v420_v15, 0.0  ;;  %v638_v23 = vpack.c.bf16 %v590_v16, %v589_v20  ;;  %v441_v27 = vadd.f32 %v10092_v17, %v11877_v38  ;;  %v10120_v20 = vpop.f32.mrf.mxu1 }
 0x119   :  { %v432_v21 = vpop.f32.mrf.mxu0 }
 0x11a   :  { %v637_v22 = vpack.c.bf16 %v588_v19, %v587_v18  ;;  %v433_v25 = vadd.f32 %v11877_v38, %v432_v21  ;;  %v593_v34 = vmax.f32 %v441_v27, 0.0 }
 0x11b   :  { %v10093_v24 = vpop.f32.mrf.mxu0 }
 0x11c   :  { %v444_v26 = vadd.f32 %v10093_v24, %v11877_v38  ;;  %10154 = vmatprep.mubr.msk.bf16.mxu1 %vm173_vm0, %v637_v22  ;;  %v591_v32 = vmax.f32 %v433_v25, 0.0 }
 0x11d   :  { %v435_v28 = vpop.f32.mrf.mxu0  ;;  %10155 = vmatmul.mubr.msk.bf16.gmra.mxu1 %vm173_vm0, %v638_v23 }
 0x11e   :  { %v436_v29 = vadd.f32 %v11877_v38, %v435_v28  ;;  %v594_v30 = vmax.f32 %v444_v26, 0.0  ;;  %v544_v28 = vpop.f32.mrf.mxu1 }
 0x11f   :  { %v10096_v31 = vpop.f32.mrf.mxu0  ;;  %v545_v51 = vadd.f32 %v11877_v38, %v544_v28 }
 0x120   :  { %v592_v33 = vmax.f32 %v436_v29, 0.0  ;;  %v640_v37 = vpack.c.bf16 %v594_v30, %v593_v34  ;;  %v457_v42 = vadd.f32 %v10096_v31, %v11877_v38 }
 0x121   :  { %v448_v35 = vpop.f32.mrf.mxu0  ;;  %v619_v59 = vmax.f32 %v545_v51, 0.0 }
 0x122   :  { %v639_v36 = vpack.c.bf16 %v592_v33, %v591_v32  ;;  %v449_v40 = vadd.f32 %v11877_v38, %v448_v35  ;;  %v597_v49 = vmax.f32 %v457_v42, 0.0 }
 0x123   :  { %v10097_v39 = vpop.f32.mrf.mxu0 }
 0x124   :  { %v460_v41 = vadd.f32 %v10097_v39, %v11877_v38  ;;  %10158 = vmatprep.mubr.msk.bf16.mxu1 %vm173_vm0, %v639_v36  ;;  %v595_v47 = vmax.f32 %v449_v40, 0.0  ;;  %v10121_v36 = vpop.f32.mrf.mxu1 }
 0x125   :  { %v451_v43 = vpop.f32.mrf.mxu0  ;;  %10159 = vmatmul.mubr.msk.bf16.gmra.mxu1 %vm173_vm0, %v640_v37 }
 0x126   :  { %v452_v44 = vadd.f32 %v11877_v38, %v451_v43  ;;  %v598_v45 = vmax.f32 %v460_v41, 0.0 }
 0x127   :  { %v10100_v46 = vpop.f32.mrf.mxu0 }
 0x128   :  { %v596_v48 = vmax.f32 %v452_v44, 0.0  ;;  %v642_v53 = vpack.c.bf16 %v598_v45, %v597_v49  ;;  %v473_v57 = vadd.f32 %v10100_v46, %v11877_v38  ;;  %v547_v45 = vpop.f32.mrf.mxu1 }
 0x129   :  { %v464_v50 = vpop.f32.mrf.mxu0 }
 0x12a   :  { %v641_v52 = vpack.c.bf16 %v596_v48, %v595_v47  ;;  %v465_v55 = vadd.f32 %v11877_v38, %v464_v50  ;;  %v601_v1 = vmax.f32 %v473_v57, 0.0 }
 0x12b   :  { %v10101_v54 = vpop.f32.mrf.mxu0 }
 0x12c   :  { %v476_v56 = vadd.f32 %v10101_v54, %v11877_v38  ;;  %10162 = vmatprep.mubr.msk.bf16.mxu1 %vm173_vm0, %v641_v52  ;;  %v599_v63 = vmax.f32 %v465_v55, 0.0  ;;  %v548_v52 = vadd.f32 %v11877_v38, %v547_v45 }
 0x12d   :  { %v467_v58 = vpop.f32.mrf.mxu0  ;;  %10163 = vmatmul.mubr.msk.bf16.gmra.mxu1 %vm173_vm0, %v642_v53 }
 0x12e   :  { %v468_v60 = vadd.f32 %v11877_v38, %v467_v58  ;;  %v602_v61 = vmax.f32 %v476_v56, 0.0 }
 0x12f   :  { %v10104_v62 = vpop.f32.mrf.mxu0 }
 0x130   :  { %v600_v0 = vmax.f32 %v468_v60, 0.0  ;;  %v644_v4 = vpack.c.bf16 %v602_v61, %v601_v1  ;;  %v489_v8 = vadd.f32 %v10104_v62, %v11877_v38  ;;  %v620_v61 = vmax.f32 %v548_v52, 0.0 }
 0x131   :  { %v480_v2 = vpop.f32.mrf.mxu0 }
 0x132   :  { %v643_v3 = vpack.c.bf16 %v600_v0, %v599_v63  ;;  %v481_v6 = vadd.f32 %v11877_v38, %v480_v2  ;;  %v605_v15 = vmax.f32 %v489_v8, 0.0 }
 0x133   :  { %v10105_v5 = vpop.f32.mrf.mxu0 }
 0x134   :  { %v492_v7 = vadd.f32 %v10105_v5, %v11877_v38  ;;  %10166 = vmatprep.mubr.msk.bf16.mxu1 %vm173_vm0, %v643_v3  ;;  %v603_v13 = vmax.f32 %v481_v6, 0.0  ;;  %v653_v3 = vpack.c.bf16 %v620_v61, %v619_v59  ;;  %v556_v6 = vadd.f32 %v10121_v36, %v11877_v38 }
 0x135   :  { %v483_v9 = vpop.f32.mrf.mxu0  ;;  %10167 = vmatmul.mubr.msk.bf16.gmra.mxu1 %vm173_vm0, %v644_v4  ;;  %v553_v4 = vadd.f32 %v10120_v20, %v11877_v38 }
 0x136   :  { %v484_v10 = vadd.f32 %v11877_v38, %v483_v9  ;;  %v606_v11 = vmax.f32 %v492_v7, 0.0  ;;  %v622_v8 = vmax.f32 %v556_v6, 0.0 }
 0x137   :  { %v10108_v12 = vpop.f32.mrf.mxu0  ;;  %v621_v7 = vmax.f32 %v553_v4, 0.0 }
 0x138   :  { %v604_v14 = vmax.f32 %v484_v10, 0.0  ;;  %v646_v18 = vpack.c.bf16 %v606_v11, %v605_v15  ;;  %v505_v23 = vadd.f32 %v10108_v12, %v11877_v38  ;;  %v11984_v12 = vld [vmem:[%s14447_s4 + $0x1] ss:$0 sm:$0xff] }
 0x139   :  { %v496_v16 = vpop.f32.mrf.mxu0  ;;  %v654_v9 = vpack.c.bf16 %v622_v8, %v621_v7 }
 0x13a   :  { %v645_v17 = vpack.c.bf16 %v604_v14, %v603_v13  ;;  %v497_v21 = vadd.f32 %v11877_v38, %v496_v16  ;;  %v609_v31 = vmax.f32 %v505_v23, 0.0 }
 0x13b   :  { %v10109_v19 = vpop.f32.mrf.mxu0 }
 0x13c   :  { %v508_v22 = vadd.f32 %v10109_v19, %v11877_v38  ;;  %10170 = vmatprep.mubr.msk.bf16.mxu1 %vm173_vm0, %v645_v17  ;;  %v607_v29 = vmax.f32 %v497_v21, 0.0 }
 0x13d   :  { %v499_v24 = vpop.f32.mrf.mxu0  ;;  %10171 = vmatmul.mubr.msk.bf16.gmra.mxu1 %vm173_vm0, %v646_v18 }
 0x13e   :  { %v500_v25 = vadd.f32 %v11877_v38, %v499_v24  ;;  %v610_v26 = vmax.f32 %v508_v22, 0.0 }
 0x13f   :  { %v10112_v27 = vpop.f32.mrf.mxu0 }
 0x140   :  { %v608_v30 = vmax.f32 %v500_v25, 0.0  ;;  %v648_v34 = vpack.c.bf16 %v610_v26, %v609_v31  ;;  %v521_v40 = vadd.f32 %v10112_v27, %v11877_v38 }
 0x141   :  { %v512_v32 = vpop.f32.mrf.mxu0 }
 0x142   :  { %v647_v33 = vpack.c.bf16 %v608_v30, %v607_v29  ;;  %v513_v37 = vadd.f32 %v11877_v38, %v512_v32  ;;  %v613_v48 = vmax.f32 %v521_v40, 0.0 }
 0x143   :  { %v10113_v35 = vpop.f32.mrf.mxu0 }
 0x144   :  { %v524_v39 = vadd.f32 %v10113_v35, %v11877_v38  ;;  %10174 = vmatprep.mubr.msk.bf16.mxu1 %vm173_vm0, %v647_v33  ;;  %v611_v46 = vmax.f32 %v513_v37, 0.0 }
 0x145   :  { %v515_v41 = vpop.f32.mrf.mxu0  ;;  %10175 = vmatmul.mubr.msk.bf16.gmra.mxu1 %vm173_vm0, %v648_v34 }
 0x146   :  { %v516_v42 = vadd.f32 %v11877_v38, %v515_v41  ;;  %v614_v43 = vmax.f32 %v524_v39, 0.0 }
 0x147   :  { %v10116_v44 = vpop.f32.mrf.mxu0 }
 0x148   :  { %v612_v47 = vmax.f32 %v516_v42, 0.0  ;;  %v650_v53 = vpack.c.bf16 %v614_v43, %v613_v48  ;;  %v537_v57 = vadd.f32 %v10116_v44, %v11877_v38 }
 0x149   :  { %v528_v49 = vpop.f32.mrf.mxu0 }
 0x14a   :  { %v649_v50 = vpack.c.bf16 %v612_v47, %v611_v46  ;;  %v529_v55 = vadd.f32 %v11877_v38, %v528_v49  ;;  %v617_v1 = vmax.f32 %v537_v57, 0.0 }
 0x14b   :  { %v10117_v54 = vpop.f32.mrf.mxu0 }
 0x14c   :  { %v540_v56 = vadd.f32 %v10117_v54, %v11877_v38  ;;  %10178 = vmatprep.mubr.msk.bf16.mxu1 %vm173_vm0, %v649_v50  ;;  %v615_v63 = vmax.f32 %v529_v55, 0.0 }
 0x14d   :  { %v531_v58 = vpop.f32.mrf.mxu0  ;;  %10179 = vmatmul.mubr.msk.bf16.gmra.mxu1 %vm173_vm0, %v650_v53 }
 0x14e   :  { %v532_v60 = vadd.f32 %v11877_v38, %v531_v58  ;;  %v618_v62 = vmax.f32 %v540_v56, 0.0 }
 0x150   :  { %v616_v0 = vmax.f32 %v532_v60, 0.0  ;;  %v652_v5 = vpack.c.bf16 %v618_v62, %v617_v1 }
 0x152   :  { %v651_v2 = vpack.c.bf16 %v616_v0, %v615_v63 }
 0x154   :  { %10182 = vmatprep.mubr.msk.bf16.mxu1 %vm173_vm0, %v651_v2 }
 0x155   :  { %10183 = vmatmul.mubr.msk.bf16.gmra.mxu1 %vm173_vm0, %v652_v5 }
 0x156   :  { %10186 = vmatprep.mubr.msk.bf16.mxu1 %vm173_vm0, %v653_v3 }
 0x15d   :  { %10187 = vmatmul.mubr.msk.bf16.gmra.mxu1 %vm173_vm0, %v654_v9 }
 0x1a5   :  { %v10128_v10 = vpop.f32.mrf.mxu1 }
 0x1a6   :  { %v819_v15 = vadd.f32 %v10128_v10, %v11984_v12 }
 0x1a7   :  { %v810_v11 = vpop.f32.mrf.mxu1 }
 0x1a8   :  { %v811_v38 = vadd.f32 %v11984_v12, %v810_v11  ;;  %v1067_v22 = vmax.f32 %v819_v15, 0.0 }
 0x1a9   :  { %v10129_v13 = vpop.f32.mrf.mxu1 }
 0x1aa   :  { %v822_v14 = vadd.f32 %v10129_v13, %v11984_v12  ;;  %v1065_v20 = vmax.f32 %v811_v38, 0.0 }
 0x1ab   :  { %v813_v16 = vpop.f32.mrf.mxu1 }
 0x1ac   :  { %v814_v17 = vadd.f32 %v11984_v12, %v813_v16  ;;  %v1068_v18 = vmax.f32 %v822_v14, 0.0 }
 0x1ad   :  { %v10132_v19 = vpop.f32.mrf.mxu1 }
 0x1ae   :  { %v1066_v21 = vmax.f32 %v814_v17, 0.0  ;;  %v1130_v25 = vpack.c.bf16 %v1068_v18, %v1067_v22  ;;  %v835_v29 = vadd.f32 %v10132_v19, %v11984_v12 }
 0x1af   :  { %v826_v23 = vpop.f32.mrf.mxu1 }
 0x1b0   :  { %v1129_v24 = vpack.c.bf16 %v1066_v21, %v1065_v20  ;;  %v827_v27 = vadd.f32 %v11984_v12, %v826_v23  ;;  %v1071_v36 = vmax.f32 %v835_v29, 0.0 }
 0x1b1   :  { %v10133_v26 = vpop.f32.mrf.mxu1 }
 0x1b2   :  { %v838_v28 = vadd.f32 %v10133_v26, %v11984_v12  ;;  %10194 = vmatprep.mubr.msk.bf16.mxu0 %vm173_vm0, %v1129_v24  ;;  %v1069_v34 = vmax.f32 %v827_v27, 0.0 }
 0x1b3   :  { %v829_v30 = vpop.f32.mrf.mxu1  ;;  %10195 = vmatmul.mubr.msk.bf16.vlgmr.msra.gmra.mxu0 %vm173_vm0, %v1130_v25 }
 0x1b4   :  { %v830_v31 = vadd.f32 %v11984_v12, %v829_v30  ;;  %v1072_v32 = vmax.f32 %v838_v28, 0.0 }
 0x1b5   :  { %v10136_v33 = vpop.f32.mrf.mxu1 }
 0x1b6   :  { %v1070_v35 = vmax.f32 %v830_v31, 0.0  ;;  %v1132_v40 = vpack.c.bf16 %v1072_v32, %v1071_v36  ;;  %v851_v44 = vadd.f32 %v10136_v33, %v11984_v12 }
 0x1b7   :  { %v842_v37 = vpop.f32.mrf.mxu1 }
 0x1b8   :  { %v1131_v39 = vpack.c.bf16 %v1070_v35, %v1069_v34  ;;  %v843_v42 = vadd.f32 %v11984_v12, %v842_v37  ;;  %v1075_v51 = vmax.f32 %v851_v44, 0.0 }
 0x1b9   :  { %v10137_v41 = vpop.f32.mrf.mxu1 }
 0x1ba   :  { %v854_v43 = vadd.f32 %v10137_v41, %v11984_v12  ;;  %10198 = vmatprep.mubr.msk.bf16.mxu0 %vm173_vm0, %v1131_v39  ;;  %v1073_v49 = vmax.f32 %v843_v42, 0.0 }
 0x1bb   :  { %v845_v45 = vpop.f32.mrf.mxu1  ;;  %10199 = vmatmul.mubr.msk.bf16.gmra.mxu0 %vm173_vm0, %v1132_v40 }
 0x1bc   :  { %v846_v46 = vadd.f32 %v11984_v12, %v845_v45  ;;  %v1076_v47 = vmax.f32 %v854_v43, 0.0 }
 0x1bd   :  { %v10140_v48 = vpop.f32.mrf.mxu1 }
 0x1be   :  { %v1074_v50 = vmax.f32 %v846_v46, 0.0  ;;  %v1134_v54 = vpack.c.bf16 %v1076_v47, %v1075_v51  ;;  %v867_v58 = vadd.f32 %v10140_v48, %v11984_v12 }
 0x1bf   :  { %v858_v52 = vpop.f32.mrf.mxu1 }
 0x1c0   :  { %v1133_v53 = vpack.c.bf16 %v1074_v50, %v1073_v49  ;;  %v859_v56 = vadd.f32 %v11984_v12, %v858_v52  ;;  %v1079_v1 = vmax.f32 %v867_v58, 0.0 }
 0x1c1   :  { %v10141_v55 = vpop.f32.mrf.mxu1 }
 0x1c2   :  { %v870_v57 = vadd.f32 %v10141_v55, %v11984_v12  ;;  %10202 = vmatprep.mubr.msk.bf16.mxu0 %vm173_vm0, %v1133_v53  ;;  %v1077_v63 = vmax.f32 %v859_v56, 0.0 }
 0x1c3   :  { %v861_v59 = vpop.f32.mrf.mxu1  ;;  %10203 = vmatmul.mubr.msk.bf16.gmra.mxu0 %vm173_vm0, %v1134_v54 }
 0x1c4   :  { %v862_v60 = vadd.f32 %v11984_v12, %v861_v59  ;;  %v1080_v61 = vmax.f32 %v870_v57, 0.0 }
 0x1c5   :  { %v10144_v62 = vpop.f32.mrf.mxu1 }
 0x1c6   :  { %v1078_v0 = vmax.f32 %v862_v60, 0.0  ;;  %v1136_v4 = vpack.c.bf16 %v1080_v61, %v1079_v1  ;;  %v883_v8 = vadd.f32 %v10144_v62, %v11984_v12 }
 0x1c7   :  { %v874_v2 = vpop.f32.mrf.mxu1 }
 0x1c8   :  { %v1135_v3 = vpack.c.bf16 %v1078_v0, %v1077_v63  ;;  %v875_v6 = vadd.f32 %v11984_v12, %v874_v2  ;;  %v1083_v15 = vmax.f32 %v883_v8, 0.0 }
 0x1c9   :  { %v10145_v5 = vpop.f32.mrf.mxu1 }
 0x1ca   :  { %v886_v7 = vadd.f32 %v10145_v5, %v11984_v12  ;;  %10206 = vmatprep.mubr.msk.bf16.mxu0 %vm173_vm0, %v1135_v3  ;;  %v1081_v38 = vmax.f32 %v875_v6, 0.0 }
 0x1cb   :  { %v877_v9 = vpop.f32.mrf.mxu1  ;;  %10207 = vmatmul.mubr.msk.bf16.gmra.mxu0 %vm173_vm0, %v1136_v4 }
 0x1cc   :  { %v878_v10 = vadd.f32 %v11984_v12, %v877_v9  ;;  %v1084_v11 = vmax.f32 %v886_v7, 0.0 }
 0x1cd   :  { %v10148_v13 = vpop.f32.mrf.mxu1 }
 0x1ce   :  { %v1082_v14 = vmax.f32 %v878_v10, 0.0  ;;  %v1138_v18 = vpack.c.bf16 %v1084_v11, %v1083_v15  ;;  %v899_v22 = vadd.f32 %v10148_v13, %v11984_v12 }
 0x1cf   :  { %v890_v16 = vpop.f32.mrf.mxu1 }
 0x1d0   :  { %v1137_v17 = vpack.c.bf16 %v1082_v14, %v1081_v38  ;;  %v891_v20 = vadd.f32 %v11984_v12, %v890_v16  ;;  %v1087_v29 = vmax.f32 %v899_v22, 0.0 }
 0x1d1   :  { %v10149_v19 = vpop.f32.mrf.mxu1 }
 0x1d2   :  { %v902_v21 = vadd.f32 %v10149_v19, %v11984_v12  ;;  %10210 = vmatprep.mubr.msk.bf16.mxu0 %vm173_vm0, %v1137_v17  ;;  %v1085_v27 = vmax.f32 %v891_v20, 0.0 }
 0x1d3   :  { %v893_v23 = vpop.f32.mrf.mxu1  ;;  %10211 = vmatmul.mubr.msk.bf16.gmra.mxu0 %vm173_vm0, %v1138_v18 }
 0x1d4   :  { %v894_v24 = vadd.f32 %v11984_v12, %v893_v23  ;;  %v1088_v25 = vmax.f32 %v902_v21, 0.0 }
 0x1d5   :  { %v10152_v26 = vpop.f32.mrf.mxu1 }
 0x1d6   :  { %v1086_v28 = vmax.f32 %v894_v24, 0.0  ;;  %v1140_v32 = vpack.c.bf16 %v1088_v25, %v1087_v29  ;;  %v915_v36 = vadd.f32 %v10152_v26, %v11984_v12 }
 0x1d7   :  { %v906_v30 = vpop.f32.mrf.mxu1 }
 0x1d8   :  { %v1139_v31 = vpack.c.bf16 %v1086_v28, %v1085_v27  ;;  %v907_v34 = vadd.f32 %v11984_v12, %v906_v30  ;;  %v1091_v44 = vmax.f32 %v915_v36, 0.0 }
 0x1d9   :  { %v10153_v33 = vpop.f32.mrf.mxu1 }
 0x1da   :  { %v918_v35 = vadd.f32 %v10153_v33, %v11984_v12  ;;  %10214 = vmatprep.mubr.msk.bf16.mxu0 %vm173_vm0, %v1139_v31  ;;  %v1089_v42 = vmax.f32 %v907_v34, 0.0 }
 0x1db   :  { %v909_v37 = vpop.f32.mrf.mxu1  ;;  %10215 = vmatmul.mubr.msk.bf16.gmra.mxu0 %vm173_vm0, %v1140_v32 }
 0x1dc   :  { %v910_v39 = vadd.f32 %v11984_v12, %v909_v37  ;;  %v1092_v40 = vmax.f32 %v918_v35, 0.0 }
 0x1dd   :  { %v10156_v41 = vpop.f32.mrf.mxu1 }
 0x1de   :  { %v1090_v43 = vmax.f32 %v910_v39, 0.0  ;;  %v1142_v47 = vpack.c.bf16 %v1092_v40, %v1091_v44  ;;  %v931_v51 = vadd.f32 %v10156_v41, %v11984_v12 }
 0x1df   :  { %v922_v45 = vpop.f32.mrf.mxu1 }
 0x1e0   :  { %v1141_v46 = vpack.c.bf16 %v1090_v43, %v1089_v42  ;;  %v923_v49 = vadd.f32 %v11984_v12, %v922_v45  ;;  %v1095_v58 = vmax.f32 %v931_v51, 0.0 }
 0x1e1   :  { %v10157_v48 = vpop.f32.mrf.mxu1 }
 0x1e2   :  { %v934_v50 = vadd.f32 %v10157_v48, %v11984_v12  ;;  %10218 = vmatprep.mubr.msk.bf16.mxu0 %vm173_vm0, %v1141_v46  ;;  %v1093_v56 = vmax.f32 %v923_v49, 0.0 }
 0x1e3   :  { %v925_v52 = vpop.f32.mrf.mxu1  ;;  %10219 = vmatmul.mubr.msk.bf16.gmra.mxu0 %vm173_vm0, %v1142_v47 }
 0x1e4   :  { %v926_v53 = vadd.f32 %v11984_v12, %v925_v52  ;;  %v1096_v54 = vmax.f32 %v934_v50, 0.0 }
 0x1e5   :  { %v10160_v55 = vpop.f32.mrf.mxu1 }
 0x1e6   :  { %v1094_v57 = vmax.f32 %v926_v53, 0.0  ;;  %v1144_v61 = vpack.c.bf16 %v1096_v54, %v1095_v58  ;;  %v947_v1 = vadd.f32 %v10160_v55, %v11984_v12 }
 0x1e7   :  { %v938_v59 = vpop.f32.mrf.mxu1 }
 0x1e8   :  { %v1143_v60 = vpack.c.bf16 %v1094_v57, %v1093_v56  ;;  %v939_v63 = vadd.f32 %v11984_v12, %v938_v59  ;;  %v1099_v8 = vmax.f32 %v947_v1, 0.0 }
 0x1e9   :  { %v10161_v62 = vpop.f32.mrf.mxu1 }
 0x1ea   :  { %v950_v0 = vadd.f32 %v10161_v62, %v11984_v12  ;;  %10222 = vmatprep.mubr.msk.bf16.mxu0 %vm173_vm0, %v1143_v60  ;;  %v1097_v6 = vmax.f32 %v939_v63, 0.0 }
 0x1eb   :  { %v941_v2 = vpop.f32.mrf.mxu1  ;;  %10223 = vmatmul.mubr.msk.bf16.gmra.mxu0 %vm173_vm0, %v1144_v61 }
 0x1ec   :  { %v942_v3 = vadd.f32 %v11984_v12, %v941_v2  ;;  %v1100_v4 = vmax.f32 %v950_v0, 0.0 }
 0x1ed   :  { %v10164_v5 = vpop.f32.mrf.mxu1 }
 0x1ee   :  { %v1098_v7 = vmax.f32 %v942_v3, 0.0  ;;  %v1146_v11 = vpack.c.bf16 %v1100_v4, %v1099_v8  ;;  %v963_v15 = vadd.f32 %v10164_v5, %v11984_v12 }
 0x1ef   :  { %v954_v9 = vpop.f32.mrf.mxu1 }
 0x1f0   :  { %v1145_v10 = vpack.c.bf16 %v1098_v7, %v1097_v6  ;;  %v955_v38 = vadd.f32 %v11984_v12, %v954_v9  ;;  %v1103_v22 = vmax.f32 %v963_v15, 0.0  ;;  %v11571_v6 = vmov 0  }
 0x1f1   :  { %v10165_v13 = vpop.f32.mrf.mxu1  ;;  %2369 = vmatprep.subr.bf16.mxu1 %v11571_v6  ;;  %2658 = vmatprep.subr.bf16.mxu0 %v11571_v6 }
 0x1f2   :  { %v966_v14 = vadd.f32 %v10165_v13, %v11984_v12  ;;  %10226 = vmatprep.mubr.msk.bf16.mxu0 %vm173_vm0, %v1145_v10  ;;  %v1101_v20 = vmax.f32 %v955_v38, 0.0 }
 0x1f3   :  { %v957_v16 = vpop.f32.mrf.mxu1  ;;  %10227 = vmatmul.mubr.msk.bf16.gmra.mxu0 %vm173_vm0, %v1146_v11 }
 0x1f4   :  { %v958_v17 = vadd.f32 %v11984_v12, %v957_v16  ;;  %v1104_v18 = vmax.f32 %v966_v14, 0.0 }
 0x1f5   :  { %v10168_v19 = vpop.f32.mrf.mxu1 }
 0x1f6   :  { %v1102_v21 = vmax.f32 %v958_v17, 0.0  ;;  %v1148_v25 = vpack.c.bf16 %v1104_v18, %v1103_v22  ;;  %v979_v29 = vadd.f32 %v10168_v19, %v11984_v12 }
 0x1f7   :  { %v970_v23 = vpop.f32.mrf.mxu1 }
 0x1f8   :  { %v1147_v24 = vpack.c.bf16 %v1102_v21, %v1101_v20  ;;  %v971_v27 = vadd.f32 %v11984_v12, %v970_v23  ;;  %v1107_v36 = vmax.f32 %v979_v29, 0.0 }
 0x1f9   :  { %v10169_v26 = vpop.f32.mrf.mxu1 }
 0x1fa   :  { %v982_v28 = vadd.f32 %v10169_v26, %v11984_v12  ;;  %10230 = vmatprep.mubr.msk.bf16.mxu0 %vm173_vm0, %v1147_v24  ;;  %v1105_v34 = vmax.f32 %v971_v27, 0.0 }
 0x1fb   :  { %v973_v30 = vpop.f32.mrf.mxu1  ;;  %10231 = vmatmul.mubr.msk.bf16.gmra.mxu0 %vm173_vm0, %v1148_v25 }
 0x1fc   :  { %v974_v31 = vadd.f32 %v11984_v12, %v973_v30  ;;  %v1108_v32 = vmax.f32 %v982_v28, 0.0 }
 0x1fd   :  { %v10172_v33 = vpop.f32.mrf.mxu1 }
 0x1fe   :  { %v1106_v35 = vmax.f32 %v974_v31, 0.0  ;;  %v1150_v40 = vpack.c.bf16 %v1108_v32, %v1107_v36  ;;  %v995_v44 = vadd.f32 %v10172_v33, %v11984_v12 }
 0x1ff   :  { %v986_v37 = vpop.f32.mrf.mxu1 }
 0x200   :  { %v1149_v39 = vpack.c.bf16 %v1106_v35, %v1105_v34  ;;  %v987_v42 = vadd.f32 %v11984_v12, %v986_v37  ;;  %v1111_v51 = vmax.f32 %v995_v44, 0.0 }
 0x201   :  { %v10173_v41 = vpop.f32.mrf.mxu1 }
 0x202   :  { %v998_v43 = vadd.f32 %v10173_v41, %v11984_v12  ;;  %10234 = vmatprep.mubr.msk.bf16.mxu0 %vm173_vm0, %v1149_v39  ;;  %v1109_v49 = vmax.f32 %v987_v42, 0.0 }
 0x203   :  { %v989_v45 = vpop.f32.mrf.mxu1  ;;  %10235 = vmatmul.mubr.msk.bf16.gmra.mxu0 %vm173_vm0, %v1150_v40 }
 0x204   :  { %v990_v46 = vadd.f32 %v11984_v12, %v989_v45  ;;  %v1112_v47 = vmax.f32 %v998_v43, 0.0 }
 0x205   :  { %v10176_v48 = vpop.f32.mrf.mxu1 }
 0x206   :  { %v1110_v50 = vmax.f32 %v990_v46, 0.0  ;;  %v1152_v54 = vpack.c.bf16 %v1112_v47, %v1111_v51  ;;  %v1011_v58 = vadd.f32 %v10176_v48, %v11984_v12  ;;  %v10651_v47 = vld [vmem:[#allocation2 + $0x4] ss:$16 sps:$4 sm:$0xff]  }
 0x207   :  { %v1002_v52 = vpop.f32.mrf.mxu1  ;;  %2401 = vmatprep.mubr.bf16.mxu1 %v10651_v47 }
 0x208   :  { %v1151_v53 = vpack.c.bf16 %v1110_v50, %v1109_v49  ;;  %v1003_v56 = vadd.f32 %v11984_v12, %v1002_v52  ;;  %v1115_v1 = vmax.f32 %v1011_v58, 0.0 }
 0x209   :  { %v10177_v55 = vpop.f32.mrf.mxu1 }
 0x20a   :  { %v1014_v57 = vadd.f32 %v10177_v55, %v11984_v12  ;;  %10238 = vmatprep.mubr.msk.bf16.mxu0 %vm173_vm0, %v1151_v53  ;;  %v1113_v63 = vmax.f32 %v1003_v56, 0.0 }
 0x20b   :  { %v1005_v59 = vpop.f32.mrf.mxu1  ;;  %10239 = vmatmul.mubr.msk.bf16.gmra.mxu0 %vm173_vm0, %v1152_v54 }
 0x20c   :  { %v1006_v60 = vadd.f32 %v11984_v12, %v1005_v59  ;;  %v1116_v61 = vmax.f32 %v1014_v57, 0.0 }
 0x20d   :  { %v10180_v62 = vpop.f32.mrf.mxu1 }
 0x20e   :  { %v1114_v0 = vmax.f32 %v1006_v60, 0.0  ;;  %v1154_v4 = vpack.c.bf16 %v1116_v61, %v1115_v1  ;;  %v1027_v9 = vadd.f32 %v10180_v62, %v11984_v12  ;;  %v10669_v61 = vld [vmem:[#allocation2 + $0xc] ss:$16 sps:$4 sm:$0xff]  }
 0x20f   :  { %v1018_v2 = vpop.f32.mrf.mxu1 }
 0x210   :  { %v1153_v3 = vpack.c.bf16 %v1114_v0, %v1113_v63  ;;  %v1019_v7 = vadd.f32 %v11984_v12, %v1018_v2  ;;  %v1119_v16 = vmax.f32 %v1027_v9, 0.0 }
 0x211   :  { %v10181_v5 = vpop.f32.mrf.mxu1 }
 0x212   :  { %v1030_v8 = vadd.f32 %v10181_v5, %v11984_v12  ;;  %10242 = vmatprep.mubr.msk.bf16.mxu0 %vm173_vm0, %v1153_v3  ;;  %v1117_v14 = vmax.f32 %v1019_v7, 0.0 }
 0x213   :  { %v1021_v10 = vpop.f32.mrf.mxu1  ;;  %10243 = vmatmul.mubr.msk.bf16.gmra.mxu0 %vm173_vm0, %v1154_v4 }
 0x214   :  { %v1022_v11 = vadd.f32 %v11984_v12, %v1021_v10  ;;  %v1120_v13 = vmax.f32 %v1030_v8, 0.0 }
 0x215   :  { %v10184_v38 = vpop.f32.mrf.mxu1 }
 0x216   :  { %v1118_v15 = vmax.f32 %v1022_v11, 0.0  ;;  %v1156_v19 = vpack.c.bf16 %v1120_v13, %v1119_v16  ;;  %v1043_v23 = vadd.f32 %v10184_v38, %v11984_v12 }
 0x217   :  { %v1034_v17 = vpop.f32.mrf.mxu1 }
 0x218   :  { %v1155_v18 = vpack.c.bf16 %v1118_v15, %v1117_v14  ;;  %v1035_v21 = vadd.f32 %v11984_v12, %v1034_v17  ;;  %v1123_v30 = vmax.f32 %v1043_v23, 0.0 }
 0x219   :  { %v10185_v20 = vpop.f32.mrf.mxu1 }
 0x21a   :  { %v1046_v22 = vadd.f32 %v10185_v20, %v11984_v12  ;;  %10246 = vmatprep.mubr.msk.bf16.mxu0 %vm173_vm0, %v1155_v18  ;;  %v1121_v28 = vmax.f32 %v1035_v21, 0.0 }
 0x21b   :  { %v1037_v24 = vpop.f32.mrf.mxu1  ;;  %10247 = vmatmul.mubr.msk.bf16.gmra.mxu0 %vm173_vm0, %v1156_v19 }
 0x21c   :  { %v1038_v25 = vadd.f32 %v11984_v12, %v1037_v24  ;;  %v1124_v26 = vmax.f32 %v1046_v22, 0.0 }
 0x21d   :  { %v10188_v27 = vpop.f32.mrf.mxu1 }
 0x21e   :  { %v1122_v29 = vmax.f32 %v1038_v25, 0.0  ;;  %v1158_v33 = vpack.c.bf16 %v1124_v26, %v1123_v30  ;;  %v1059_v37 = vadd.f32 %v10188_v27, %v11984_v12 }
 0x21f   :  { %v1050_v31 = vpop.f32.mrf.mxu1 }
 0x220   :  { %v1157_v32 = vpack.c.bf16 %v1122_v29, %v1121_v28  ;;  %v1051_v35 = vadd.f32 %v11984_v12, %v1050_v31  ;;  %v1127_v44 = vmax.f32 %v1059_v37, 0.0 }
 0x221   :  { %v10189_v34 = vpop.f32.mrf.mxu1 }
 0x222   :  { %v1062_v36 = vadd.f32 %v10189_v34, %v11984_v12  ;;  %10250 = vmatprep.mubr.msk.bf16.mxu0 %vm173_vm0, %v1157_v32  ;;  %v1125_v42 = vmax.f32 %v1051_v35, 0.0 }
 0x223   :  { %v1053_v39 = vpop.f32.mrf.mxu1  ;;  %10251 = vmatmul.mubr.msk.bf16.gmra.mxu0 %vm173_vm0, %v1158_v33 }
 0x224   :  { %v1054_v40 = vadd.f32 %v11984_v12, %v1053_v39  ;;  %v1128_v41 = vmax.f32 %v1062_v36, 0.0 }
 0x226   :  { %v1126_v43 = vmax.f32 %v1054_v40, 0.0  ;;  %v1160_v46 = vpack.c.bf16 %v1128_v41, %v1127_v44 }
 0x228   :  { %v1159_v45 = vpack.c.bf16 %v1126_v43, %v1125_v42 }
 0x22a   :  { %10254 = vmatprep.mubr.msk.bf16.mxu0 %vm173_vm0, %v1159_v45 }
 0x22b   :  { %10255 = vmatmul.mubr.msk.bf16.gmra.mxu0 %vm173_vm0, %v1160_v46 }
 0x22c   :  { %2690 = vmatprep.mubr.bf16.mxu0 %v10669_v61 }
 0x273   :  { %v10196_v48 = vpop.f32.mrf.mxu0 }
 0x275   :  { %v1307_v49 = vpop.f32.mrf.mxu0 }
 0x277   :  { %v10197_v50 = vpop.f32.mrf.mxu0 }
 0x278   :  { %v1691_v18 = vpack.c.bf16 %v10197_v50, %v10196_v48  ;;  %v10653_v48 = vld [vmem:[#allocation2] ss:$16 sps:$4 sm:$0xff]  }
 0x279   :  { %v1310_v51 = vpop.f32.mrf.mxu0 }
 0x27a   :  { %v1690_v21 = vpack.c.bf16 %v1310_v51, %v1307_v49  ;;  %v10654_v49 = vld [vmem:[#allocation2 + $0x24] ss:$16 sps:$4 sm:$0xff]  }
 0x27b   :  { %v10200_v52 = vpop.f32.mrf.mxu0 }
 0x27d   :  { %v1323_v53 = vpop.f32.mrf.mxu0 }
 0x27f   :  { %v10201_v54 = vpop.f32.mrf.mxu0 }
 0x280   :  { %v1693_v13 = vpack.c.bf16 %v10201_v54, %v10200_v52 }
 0x281   :  { %v1326_v12 = vpop.f32.mrf.mxu0 }
 0x282   :  { %v1692_v15 = vpack.c.bf16 %v1326_v12, %v1323_v53 }
 0x283   :  { %v10204_v55 = vpop.f32.mrf.mxu0 }
 0x285   :  { %v1339_v56 = vpop.f32.mrf.mxu0 }
 0x287   :  { %v10205_v57 = vpop.f32.mrf.mxu0 }
 0x288   :  { %v1695_v5 = vpack.c.bf16 %v10205_v57, %v10204_v55  ;;  %v10656_v55 = vld [vmem:[#allocation2 + $0x20] ss:$16 sps:$4 sm:$0xff]  }
 0x289   :  { %v1342_v58 = vpop.f32.mrf.mxu0 }
 0x28a   :  { %v1694_v9 = vpack.c.bf16 %v1342_v58, %v1339_v56  ;;  %v10657_v56 = vld [vmem:[#allocation2 + $0x44] ss:$16 sps:$4 sm:$0xff]  }
 0x28b   :  { %v10208_v59 = vpop.f32.mrf.mxu0 }
 0x28d   :  { %v1355_v60 = vpop.f32.mrf.mxu0 }
 0x28f   :  { %v10209_v62 = vpop.f32.mrf.mxu0 }
 0x290   :  { %v1697_v63 = vpack.c.bf16 %v10209_v62, %v10208_v59 }
 0x291   :  { %v1358_v0 = vpop.f32.mrf.mxu0 }
 0x292   :  { %2370 = vmatpush1.bf16.msra.mxu1 %v1697_v63  ;;  %v1696_v2 = vpack.c.bf16 %v1358_v0, %v1355_v60  ;;  %v10659_v63 = vld [vmem:[#allocation2 + $0x40] ss:$16 sps:$4 sm:$0xff]   ;;  %v10660_v0 = vld [vmem:[#allocation2 + $0x64] ss:$16 sps:$4 sm:$0xff]  }
 0x293   :  { %v12084_v1 = vpop.f32.mrf.mxu0  ;;  %2371 = vmatprep.subr.bf16.mxu1 %v11571_v6 }
 0x295   :  { %v12087_v3 = vpop.f32.mrf.mxu0 }
 0x296   :  { %2372 = vmatpush1.bf16.msra.mxu1 %v1696_v2 }
 0x297   :  { %v12089_v4 = vpop.f32.mrf.mxu0  ;;  %2373 = vmatprep.subr.bf16.mxu1 %v11571_v6 }
 0x298   :  { %v1699_v43 = vpack.c.bf16 %v12089_v4, %v12084_v1 }
 0x299   :  { %v12092_v7 = vpop.f32.mrf.mxu0 }
 0x29a   :  { %2374 = vmatpush1.bf16.msra.mxu1 %v1695_v5  ;;  %v1698_v46 = vpack.c.bf16 %v12092_v7, %v12087_v3 }
 0x29b   :  { %v10216_v8 = vpop.f32.mrf.mxu0  ;;  %2375 = vmatprep.subr.bf16.mxu1 %v11571_v6 }
 0x29d   :  { %v1387_v10 = vpop.f32.mrf.mxu0 }
 0x29e   :  { %2376 = vmatpush1.bf16.msra.mxu1 %v1694_v9  ;;  %v10663_v9 = vld [vmem:[#allocation2 + $0x84] ss:$16 sps:$4 sm:$0xff]  }
 0x29f   :  { %v10217_v11 = vpop.f32.mrf.mxu0  ;;  %2377 = vmatprep.subr.bf16.mxu1 %v11571_v6 }
 0x2a0   :  { %v1701_v36 = vpack.c.bf16 %v10217_v11, %v10216_v8  ;;  %v10662_v8 = vld [vmem:[#allocation2 + $0x60] ss:$16 sps:$4 sm:$0xff]  }
 0x2a1   :  { %v1390_v38 = vpop.f32.mrf.mxu0 }
 0x2a2   :  { %2378 = vmatpush1.bf16.msra.mxu1 %v1693_v13  ;;  %v1700_v40 = vpack.c.bf16 %v1390_v38, %v1387_v10 }
 0x2a3   :  { %v10220_v14 = vpop.f32.mrf.mxu0  ;;  %2379 = vmatprep.subr.bf16.mxu1 %v11571_v6 }
 0x2a5   :  { %v1403_v16 = vpop.f32.mrf.mxu0 }
 0x2a6   :  { %2380 = vmatpush1.bf16.msra.mxu1 %v1692_v15 }
 0x2a7   :  { %v10221_v17 = vpop.f32.mrf.mxu0  ;;  %2381 = vmatprep.subr.bf16.mxu1 %v11571_v6 }
 0x2a8   :  { %v1703_v30 = vpack.c.bf16 %v10221_v17, %v10220_v14  ;;  %v10666_v17 = vld [vmem:[#allocation2 + $0xa4] ss:$16 sps:$4 sm:$0xff]  }
 0x2a9   :  { %v1406_v19 = vpop.f32.mrf.mxu0 }
 0x2aa   :  { %2382 = vmatpush1.bf16.msra.mxu1 %v1691_v18  ;;  %v1702_v33 = vpack.c.bf16 %v1406_v19, %v1403_v16  ;;  %v10665_v16 = vld [vmem:[#allocation2 + $0x80] ss:$16 sps:$4 sm:$0xff]  }
 0x2ab   :  { %v10224_v20 = vpop.f32.mrf.mxu0  ;;  %2383 = vmatprep.subr.bf16.mxu1 %v11571_v6 }
 0x2ad   :  { %v1419_v22 = vpop.f32.mrf.mxu0 }
 0x2ae   :  { %2384 = vmatpush1.bf16.msra.mxu1 %v1690_v21 }
 0x2af   :  { %v10225_v23 = vpop.f32.mrf.mxu0  ;;  %2385 = vmatprep.subr.bf16.mxu1 %v11571_v6 }
 0x2b0   :  { %v1705_v24 = vpack.c.bf16 %v10225_v23, %v10224_v20  ;;  %v10672_v23 = vld [vmem:[#allocation2 + $0xc4] ss:$16 sps:$4 sm:$0xff]  }
 0x2b1   :  { %v1422_v25 = vpop.f32.mrf.mxu0 }
 0x2b2   :  { %2386 = vmatpush2.bf16.msra.mxu1 %v1705_v24  ;;  %v1704_v27 = vpack.c.bf16 %v1422_v25, %v1419_v22  ;;  %v10668_v22 = vld [vmem:[#allocation2 + $0xa0] ss:$16 sps:$4 sm:$0xff]  }
 0x2b3   :  { %v12100_v26 = vpop.f32.mrf.mxu0  ;;  %2387 = vmatprep.subr.bf16.mxu1 %v11571_v6 }
 0x2b5   :  { %v12103_v28 = vpop.f32.mrf.mxu0 }
 0x2b6   :  { %2388 = vmatpush2.bf16.msra.mxu1 %v1704_v27  ;;  %v10678_v27 = vld [vmem:[#allocation2 + $0xe4] ss:$16 sps:$4 sm:$0xff]  }
 0x2b7   :  { %v12105_v29 = vpop.f32.mrf.mxu0  ;;  %2389 = vmatprep.subr.bf16.mxu1 %v11571_v6 }
 0x2b8   :  { %v1707_v11 = vpack.c.bf16 %v12105_v29, %v12100_v26  ;;  %v10674_v26 = vld [vmem:[#allocation2 + $0xc0] ss:$16 sps:$4 sm:$0xff]  }
 0x2b9   :  { %v12108_v31 = vpop.f32.mrf.mxu0 }
 0x2ba   :  { %2390 = vmatpush2.bf16.msra.mxu1 %v1703_v30  ;;  %v1706_v14 = vpack.c.bf16 %v12108_v31, %v12103_v28  ;;  %v10680_v30 = vld [vmem:[#allocation2 + $0xe0] ss:$16 sps:$4 sm:$0xff]   ;;  %v10684_v31 = vld [vmem:[#allocation2 + $0x104] ss:$16 sps:$4 sm:$0xff]  }
 0x2bb   :  { %v10232_v32 = vpop.f32.mrf.mxu0  ;;  %2391 = vmatprep.subr.bf16.mxu1 %v11571_v6 }
 0x2bd   :  { %v12111_v34 = vpop.f32.mrf.mxu0 }
 0x2be   :  { %2392 = vmatpush2.bf16.msra.mxu1 %v1702_v33 }
 0x2bf   :  { %v10233_v35 = vpop.f32.mrf.mxu0  ;;  %2393 = vmatprep.subr.bf16.mxu1 %v11571_v6 }
 0x2c0   :  { %v1709_v2 = vpack.c.bf16 %v10233_v35, %v10232_v32  ;;  %v10686_v35 = vld [vmem:[#allocation2 + $0x100] ss:$16 sps:$4 sm:$0xff]  }
 0x2c1   :  { %v1454_v37 = vpop.f32.mrf.mxu0 }
 0x2c2   :  { %2394 = vmatpush2.bf16.msra.mxu1 %v1701_v36  ;;  %v1708_v5 = vpack.c.bf16 %v1454_v37, %v12111_v34  ;;  %v10671_v34 = vld [vmem:[#allocation2 + $0x8] ss:$16 sps:$4 sm:$0xff]   ;;  %v10675_v36 = vld [vmem:[#allocation2 + $0x2c] ss:$16 sps:$4 sm:$0xff]   ;;  %v10690_v37 = vld [vmem:[#allocation2 + $0x124] ss:$16 sps:$4 sm:$0xff]  }
 0x2c3   :  { %v10236_v39 = vpop.f32.mrf.mxu0  ;;  %2395 = vmatprep.subr.bf16.mxu1 %v11571_v6 }
 0x2c5   :  { %v1467_v41 = vpop.f32.mrf.mxu0 }
 0x2c6   :  { %2396 = vmatpush2.bf16.msra.mxu1 %v1700_v40  ;;  %v10692_v40 = vld [vmem:[#allocation2 + $0x120] ss:$16 sps:$4 sm:$0xff]  }
 0x2c7   :  { %v10237_v42 = vpop.f32.mrf.mxu0  ;;  %2397 = vmatprep.subr.bf16.mxu1 %v11571_v6 }
 0x2c8   :  { %v1711_v58 = vpack.c.bf16 %v10237_v42, %v10236_v39  ;;  %v10677_v39 = vld [vmem:[#allocation2 + $0x28] ss:$16 sps:$4 sm:$0xff]   ;;  %v10696_v42 = vld [vmem:[#allocation2 + $0x144] ss:$16 sps:$4 sm:$0xff]  }
 0x2c9   :  { %v1470_v44 = vpop.f32.mrf.mxu0 }
 0x2ca   :  { %2398 = vmatpush2.bf16.msra.mxu1 %v1699_v43  ;;  %v1710_v61 = vpack.c.bf16 %v1470_v44, %v1467_v41  ;;  %v10681_v41 = vld [vmem:[#allocation2 + $0x4c] ss:$16 sps:$4 sm:$0xff]   ;;  %v10683_v43 = vld [vmem:[#allocation2 + $0x48] ss:$16 sps:$4 sm:$0xff]   ;;  %v10698_v44 = vld [vmem:[#allocation2 + $0x140] ss:$16 sps:$4 sm:$0xff]  }
 0x2cb   :  { %v10240_v45 = vpop.f32.mrf.mxu0  ;;  %2399 = vmatprep.subr.bf16.mxu1 %v11571_v6 }
 0x2cd   :  { %v1483_v47 = vpop.f32.mrf.mxu0 }
 0x2ce   :  { %2400 = vmatpush2.bf16.msra.mxu1 %v1698_v46  ;;  %v10702_v46 = vld [vmem:[#allocation2 + $0x164] ss:$16 sps:$4 sm:$0xff]  }
 0x2cf   :  { %v10241_v50 = vpop.f32.mrf.mxu0 }
 0x2d0   :  { %v1713_v51 = vpack.c.bf16 %v10241_v50, %v10240_v45  ;;  %v10687_v45 = vld [vmem:[#allocation2 + $0x6c] ss:$16 sps:$4 sm:$0xff]   ;;  %v10708_v50 = vld [vmem:[#allocation2 + $0x184] ss:$16 sps:$4 sm:$0xff]  }
 0x2d1   :  { %v1486_v52 = vpop.f32.mrf.mxu0  ;;  %2402 = vmatmul.mubr.bf16.vlgmr.msra.gmra.mxu1 %v10653_v48  ;;  %v10704_v48 = vld [vmem:[#allocation2 + $0x160] ss:$16 sps:$4 sm:$0xff]  }
 0x2d2   :  { %2659 = vmatpush1.bf16.msra.mxu0 %v1713_v51  ;;  %2409 = vmatprep.mubr.bf16.mxu1 %v10654_v49  ;;  %v1712_v54 = vpack.c.bf16 %v1486_v52, %v1483_v47  ;;  %v10689_v47 = vld [vmem:[#allocation2 + $0x68] ss:$16 sps:$4 sm:$0xff]   ;;  %v10693_v49 = vld [vmem:[#allocation2 + $0x8c] ss:$16 sps:$4 sm:$0xff]   ;;  %v10710_v52 = vld [vmem:[#allocation2 + $0x180] ss:$16 sps:$4 sm:$0xff]  }
 0x2d3   :  { %v12121_v53 = vpop.f32.mrf.mxu0  ;;  %2660 = vmatprep.subr.bf16.mxu0 %v11571_v6  ;;  %v10695_v51 = vld [vmem:[#allocation2 + $0x88] ss:$16 sps:$4 sm:$0xff]  }
 0x2d5   :  { %v12124_v12 = vpop.f32.mrf.mxu0 }
 0x2d6   :  { %2661 = vmatpush1.bf16.msra.mxu0 %v1712_v54  ;;  %v10714_v54 = vld [vmem:[#allocation2 + $0x1a4] ss:$16 sps:$4 sm:$0xff]  }
 0x2d7   :  { %v12126_v57 = vpop.f32.mrf.mxu0  ;;  %2662 = vmatprep.subr.bf16.mxu0 %v11571_v6 }
 0x2d8   :  { %v1715_v32 = vpack.c.bf16 %v12126_v57, %v12121_v53  ;;  %v10699_v53 = vld [vmem:[#allocation2 + $0xac] ss:$16 sps:$4 sm:$0xff]   ;;  %v10720_v57 = vld [vmem:[#allocation2 + $0x1c4] ss:$16 sps:$4 sm:$0xff]  }
 0x2d9   :  { %v12129_v59 = vpop.f32.mrf.mxu0  ;;  %2410 = vmatmul.mubr.bf16.gmra.mxu1 %v10656_v55  ;;  %v10716_v55 = vld [vmem:[#allocation2 + $0x1a0] ss:$16 sps:$4 sm:$0xff]  }
 0x2da   :  { %2663 = vmatpush1.bf16.msra.mxu0 %v1711_v58  ;;  %2417 = vmatprep.mubr.bf16.mxu1 %v10657_v56  ;;  %v1714_v33 = vpack.c.bf16 %v12129_v59, %v12124_v12  ;;  %v10701_v12 = vld [vmem:[#allocation2 + $0xa8] ss:$16 sps:$4 sm:$0xff]   ;;  %v10705_v56 = vld [vmem:[#allocation2 + $0xcc] ss:$16 sps:$4 sm:$0xff]   ;;  %v10722_v59 = vld [vmem:[#allocation2 + $0x1c0] ss:$16 sps:$4 sm:$0xff]  }
 0x2db   :  { %v10248_v60 = vpop.f32.mrf.mxu0  ;;  %2664 = vmatprep.subr.bf16.mxu0 %v11571_v6  ;;  %v10707_v58 = vld [vmem:[#allocation2 + $0xc8] ss:$16 sps:$4 sm:$0xff]  }
 0x2dd   :  { %v1515_v62 = vpop.f32.mrf.mxu0 }
 0x2de   :  { %2665 = vmatpush1.bf16.msra.mxu0 %v1710_v61  ;;  %v10726_v61 = vld [vmem:[#allocation2 + $0x1e4] ss:$16 sps:$4 sm:$0xff]  }
 0x2df   :  { %v10249_v1 = vpop.f32.mrf.mxu0  ;;  %2666 = vmatprep.subr.bf16.mxu0 %v11571_v6 }
 0x2e0   :  { %v1717_v28 = vpack.c.bf16 %v10249_v1, %v10248_v60  ;;  %v10711_v60 = vld [vmem:[#allocation2 + $0xec] ss:$16 sps:$4 sm:$0xff]   ;;  %v10732_v1 = vld [vmem:[#allocation2 + $0x204] ss:$16 sps:$4 sm:$0xff]  }
 0x2e1   :  { %v1518_v3 = vpop.f32.mrf.mxu0  ;;  %2418 = vmatmul.mubr.bf16.gmra.mxu1 %v10659_v63  ;;  %v10728_v63 = vld [vmem:[#allocation2 + $0x1e0] ss:$16 sps:$4 sm:$0xff]  }
 0x2e2   :  { %2667 = vmatpush1.bf16.msra.mxu0 %v1709_v2  ;;  %2425 = vmatprep.mubr.bf16.mxu1 %v10660_v0  ;;  %v1716_v29 = vpack.c.bf16 %v1518_v3, %v1515_v62  ;;  %v10713_v62 = vld [vmem:[#allocation2 + $0xe8] ss:$16 sps:$4 sm:$0xff]   ;;  %v10717_v0 = vld [vmem:[#allocation2 + $0x10c] ss:$16 sps:$4 sm:$0xff]   ;;  %v10734_v3 = vld [vmem:[#allocation2 + $0x200] ss:$16 sps:$4 sm:$0xff]  }
 0x2e3   :  { %v10252_v4 = vpop.f32.mrf.mxu0  ;;  %2668 = vmatprep.subr.bf16.mxu0 %v11571_v6  ;;  %v10719_v2 = vld [vmem:[#allocation2 + $0x108] ss:$16 sps:$4 sm:$0xff]  }
 0x2e5   :  { %v1531_v7 = vpop.f32.mrf.mxu0 }
 0x2e6   :  { %2669 = vmatpush1.bf16.msra.mxu0 %v1708_v5  ;;  %v10738_v5 = vld [vmem:[#allocation2 + $0x224] ss:$16 sps:$4 sm:$0xff]  }
 0x2e7   :  { %v10253_v10 = vpop.f32.mrf.mxu0  ;;  %2670 = vmatprep.subr.bf16.mxu0 %v11571_v6 }
 0x2e8   :  { %v1719_v24 = vpack.c.bf16 %v10253_v10, %v10252_v4  ;;  %v10723_v4 = vld [vmem:[#allocation2 + $0x12c] ss:$16 sps:$4 sm:$0xff]   ;;  %v10744_v10 = vld [vmem:[#allocation2 + $0x244] ss:$16 sps:$4 sm:$0xff]  }
 0x2e9   :  { %v1534_v13 = vpop.f32.mrf.mxu0  ;;  %2426 = vmatmul.mubr.bf16.gmra.mxu1 %v10662_v8  ;;  %v10740_v8 = vld [vmem:[#allocation2 + $0x220] ss:$16 sps:$4 sm:$0xff]  }
 0x2ea   :  { %2671 = vmatpush1.bf16.msra.mxu0 %v1707_v11  ;;  %2433 = vmatprep.mubr.bf16.mxu1 %v10663_v9  ;;  %v1718_v25 = vpack.c.bf16 %v1534_v13, %v1531_v7  ;;  %v10725_v7 = vld [vmem:[#allocation2 + $0x128] ss:$16 sps:$4 sm:$0xff]   ;;  %v10729_v9 = vld [vmem:[#allocation2 + $0x14c] ss:$16 sps:$4 sm:$0xff]  }
 0x2eb   :  { %v10256_v38 = vpop.f32.mrf.mxu0  ;;  %2672 = vmatprep.subr.bf16.mxu0 %v11571_v6  ;;  %v10825_v11 = vld [vmem:[%s14448_s5 + $0x18] sm:$0xff]  }
 0x2ec   :  { %10258 = vmatprep.subr.bf16.mxu1 %v10825_v11  ;;  %v10731_v13 = vld [vmem:[#allocation2 + $0x148] ss:$16 sps:$4 sm:$0xff]  }
 0x2ed   :  { %v1547_v15 = vpop.f32.mrf.mxu0  ;;  %10259 = vmatpush3.bf16.msra.mxu1 %v10825_v11 }
 0x2ee   :  { %2673 = vmatpush1.bf16.msra.mxu0 %v1706_v14  ;;  %v10735_v14 = vld [vmem:[#allocation2 + $0x16c] ss:$16 sps:$4 sm:$0xff]  }
 0x2ef   :  { %v10257_v18 = vpop.f32.mrf.mxu0  ;;  %2674 = vmatprep.subr.bf16.mxu0 %v11571_v6 }
 0x2f0   :  { %v1721_v19 = vpack.c.bf16 %v10257_v18, %v10256_v38  ;;  %v10746_v38 = vld [vmem:[#allocation2 + $0x240] ss:$16 sps:$4 sm:$0xff]  }
 0x2f1   :  { %v1550_v20 = vpop.f32.mrf.mxu0  ;;  %2434 = vmatmul.mubr.bf16.gmra.mxu1 %v10665_v16  ;;  %v10828_v16 = vld [vmem:[%s14448_s5 + $0x10] sm:$0xff]  }
 0x2f2   :  { %2675 = vmatpush2.bf16.msra.mxu0 %v1721_v19  ;;  %2441 = vmatprep.mubr.bf16.mxu1 %v10666_v17  ;;  %v1720_v21 = vpack.c.bf16 %v1550_v20, %v1547_v15  ;;  %v10750_v15 = vld [vmem:[#allocation2 + $0x264] ss:$16 sps:$4 sm:$0xff]   ;;  %v10737_v17 = vld [vmem:[#allocation2 + $0x168] ss:$16 sps:$4 sm:$0xff]   ;;  %v10752_v18 = vld [vmem:[#allocation2 + $0x260] ss:$16 sps:$4 sm:$0xff]  }
 0x2f3   :  { %2676 = vmatprep.subr.bf16.mxu0 %v11571_v6  ;;  %10260 = vmatprep.subr.bf16.mxu1 %v10828_v16  ;;  %v10741_v19 = vld [vmem:[#allocation2 + $0x18c] ss:$16 sps:$4 sm:$0xff]   ;;  %v10756_v20 = vld [vmem:[#allocation2 + $0x284] ss:$16 sps:$4 sm:$0xff]  }
 0x2f4   :  { %10261 = vmatpush3.bf16.msra.mxu1 %v10828_v16  ;;  %v10816_v16 = vld [vmem:[#allocation2 + $0x3c4] ss:$16 sps:$4 sm:$0xff]  }
 0x2f5   :  { %3774 = vmatprep.subr.bf16.mxu1 %v11571_v6 }
 0x2f6   :  { %2677 = vmatpush2.bf16.msra.mxu0 %v1720_v21  ;;  %v10743_v21 = vld [vmem:[#allocation2 + $0x188] ss:$16 sps:$4 sm:$0xff]  }
 0x2f7   :  { %2678 = vmatprep.subr.bf16.mxu0 %v11571_v6 }
 0x2f9   :  { %2442 = vmatmul.mubr.bf16.gmra.mxu1 %v10668_v22  ;;  %v10758_v22 = vld [vmem:[#allocation2 + $0x280] ss:$16 sps:$4 sm:$0xff]  }
 0x2fa   :  { %2679 = vmatpush2.bf16.msra.mxu0 %v1719_v24  ;;  %2449 = vmatprep.mubr.bf16.mxu1 %v10672_v23  ;;  %v10747_v23 = vld [vmem:[#allocation2 + $0x1ac] ss:$16 sps:$4 sm:$0xff]   ;;  %v10762_v24 = vld [vmem:[#allocation2 + $0x2a4] ss:$16 sps:$4 sm:$0xff]  }
 0x2fb   :  { %2680 = vmatprep.subr.bf16.mxu0 %v11571_v6 }
 0x2fe   :  { %2681 = vmatpush2.bf16.msra.mxu0 %v1718_v25  ;;  %v10749_v25 = vld [vmem:[#allocation2 + $0x1a8] ss:$16 sps:$4 sm:$0xff]  }
 0x2ff   :  { %2682 = vmatprep.subr.bf16.mxu0 %v11571_v6 }
 0x301   :  { %2450 = vmatmul.mubr.bf16.gmra.mxu1 %v10674_v26  ;;  %v10764_v26 = vld [vmem:[#allocation2 + $0x2a0] ss:$16 sps:$4 sm:$0xff]  }
 0x302   :  { %2683 = vmatpush2.bf16.msra.mxu0 %v1717_v28  ;;  %2457 = vmatprep.mubr.bf16.mxu1 %v10678_v27  ;;  %v10753_v27 = vld [vmem:[#allocation2 + $0x1cc] ss:$16 sps:$4 sm:$0xff]   ;;  %v10768_v28 = vld [vmem:[#allocation2 + $0x2c4] ss:$16 sps:$4 sm:$0xff]  }
 0x303   :  { %2684 = vmatprep.subr.bf16.mxu0 %v11571_v6 }
 0x306   :  { %2685 = vmatpush2.bf16.msra.mxu0 %v1716_v29  ;;  %v10755_v29 = vld [vmem:[#allocation2 + $0x1c8] ss:$16 sps:$4 sm:$0xff]  }
 0x307   :  { %2686 = vmatprep.subr.bf16.mxu0 %v11571_v6 }
 0x309   :  { %2458 = vmatmul.mubr.bf16.gmra.mxu1 %v10680_v30  ;;  %v10770_v30 = vld [vmem:[#allocation2 + $0x2c0] ss:$16 sps:$4 sm:$0xff]  }
 0x30a   :  { %2687 = vmatpush2.bf16.msra.mxu0 %v1715_v32  ;;  %2465 = vmatprep.mubr.bf16.mxu1 %v10684_v31  ;;  %v10759_v31 = vld [vmem:[#allocation2 + $0x1ec] ss:$16 sps:$4 sm:$0xff]   ;;  %v10774_v32 = vld [vmem:[#allocation2 + $0x2e4] ss:$16 sps:$4 sm:$0xff]  }
 0x30b   :  { %2688 = vmatprep.subr.bf16.mxu0 %v11571_v6 }
 0x30e   :  { %2689 = vmatpush2.bf16.msra.mxu0 %v1714_v33  ;;  %v10761_v33 = vld [vmem:[#allocation2 + $0x1e8] ss:$16 sps:$4 sm:$0xff]  }
 0x30f   :  { %3485 = vmatprep.subr.bf16.mxu0 %v11571_v6 }
 0x311   :  { %2691 = vmatmul.mubr.bf16.vlgmr.msra.gmra.mxu0 %v10671_v34  ;;  %2466 = vmatmul.mubr.bf16.gmra.mxu1 %v10686_v35  ;;  %v10776_v34 = vld [vmem:[#allocation2 + $0x2e0] ss:$16 sps:$4 sm:$0xff]   ;;  %v10765_v35 = vld [vmem:[#allocation2 + $0x20c] ss:$16 sps:$4 sm:$0xff]  }
 0x312   :  { %2698 = vmatprep.mubr.bf16.mxu0 %v10675_v36  ;;  %2473 = vmatprep.mubr.bf16.mxu1 %v10690_v37  ;;  %v10780_v36 = vld [vmem:[#allocation2 + $0x304] ss:$16 sps:$4 sm:$0xff]   ;;  %v10767_v37 = vld [vmem:[#allocation2 + $0x208] ss:$16 sps:$4 sm:$0xff]  }
 0x319   :  { %2699 = vmatmul.mubr.bf16.gmra.mxu0 %v10677_v39  ;;  %2474 = vmatmul.mubr.bf16.gmra.mxu1 %v10692_v40  ;;  %v10782_v39 = vld [vmem:[#allocation2 + $0x300] ss:$16 sps:$4 sm:$0xff]   ;;  %v10771_v40 = vld [vmem:[#allocation2 + $0x22c] ss:$16 sps:$4 sm:$0xff]  }
 0x31a   :  { %2706 = vmatprep.mubr.bf16.mxu0 %v10681_v41  ;;  %2481 = vmatprep.mubr.bf16.mxu1 %v10696_v42  ;;  %v10786_v41 = vld [vmem:[#allocation2 + $0x324] ss:$16 sps:$4 sm:$0xff]  }
 0x321   :  { %2707 = vmatmul.mubr.bf16.gmra.mxu0 %v10683_v43  ;;  %2482 = vmatmul.mubr.bf16.gmra.mxu1 %v10698_v44  ;;  %v10773_v44 = vld [vmem:[#allocation2 + $0x228] ss:$16 sps:$4 sm:$0xff]  }
 0x322   :  { %2714 = vmatprep.mubr.bf16.mxu0 %v10687_v45  ;;  %2489 = vmatprep.mubr.bf16.mxu1 %v10702_v46  ;;  %v10788_v46 = vld [vmem:[#allocation2 + $0x320] ss:$16 sps:$4 sm:$0xff]  }
 0x329   :  { %2715 = vmatmul.mubr.bf16.gmra.mxu0 %v10689_v47  ;;  %2490 = vmatmul.mubr.bf16.gmra.mxu1 %v10704_v48  ;;  %v10777_v47 = vld [vmem:[#allocation2 + $0x24c] ss:$16 sps:$4 sm:$0xff]   ;;  %v10792_v48 = vld [vmem:[#allocation2 + $0x344] ss:$16 sps:$4 sm:$0xff]  }
 0x32a   :  { %2722 = vmatprep.mubr.bf16.mxu0 %v10693_v49  ;;  %2497 = vmatprep.mubr.bf16.mxu1 %v10708_v50 }
 0x331   :  { %2723 = vmatmul.mubr.bf16.gmra.mxu0 %v10695_v51  ;;  %2498 = vmatmul.mubr.bf16.gmra.mxu1 %v10710_v52  ;;  %v10779_v52 = vld [vmem:[#allocation2 + $0x248] ss:$16 sps:$4 sm:$0xff]  }
 0x332   :  { %2730 = vmatprep.mubr.bf16.mxu0 %v10699_v53  ;;  %2505 = vmatprep.mubr.bf16.mxu1 %v10714_v54  ;;  %v10794_v54 = vld [vmem:[#allocation2 + $0x340] ss:$16 sps:$4 sm:$0xff]  }
 0x339   :  { %2731 = vmatmul.mubr.bf16.gmra.mxu0 %v10701_v12  ;;  %2506 = vmatmul.mubr.bf16.gmra.mxu1 %v10716_v55  ;;  %v10783_v12 = vld [vmem:[#allocation2 + $0x26c] ss:$16 sps:$4 sm:$0xff]   ;;  %v10798_v55 = vld [vmem:[#allocation2 + $0x364] ss:$16 sps:$4 sm:$0xff]  }
 0x33a   :  { %2738 = vmatprep.mubr.bf16.mxu0 %v10705_v56  ;;  %2513 = vmatprep.mubr.bf16.mxu1 %v10720_v57 }
 0x341   :  { %2739 = vmatmul.mubr.bf16.gmra.mxu0 %v10707_v58  ;;  %2514 = vmatmul.mubr.bf16.gmra.mxu1 %v10722_v59  ;;  %v10785_v59 = vld [vmem:[#allocation2 + $0x268] ss:$16 sps:$4 sm:$0xff]  }
 0x342   :  { %2746 = vmatprep.mubr.bf16.mxu0 %v10711_v60  ;;  %2521 = vmatprep.mubr.bf16.mxu1 %v10726_v61  ;;  %v10800_v61 = vld [vmem:[#allocation2 + $0x360] ss:$16 sps:$4 sm:$0xff]  }
 0x349   :  { %2747 = vmatmul.mubr.bf16.gmra.mxu0 %v10713_v62  ;;  %2522 = vmatmul.mubr.bf16.gmra.mxu1 %v10728_v63  ;;  %v10789_v62 = vld [vmem:[#allocation2 + $0x28c] ss:$16 sps:$4 sm:$0xff]   ;;  %v10804_v63 = vld [vmem:[#allocation2 + $0x384] ss:$16 sps:$4 sm:$0xff]  }
 0x34a   :  { %2754 = vmatprep.mubr.bf16.mxu0 %v10717_v0  ;;  %2529 = vmatprep.mubr.bf16.mxu1 %v10732_v1 }
 0x351   :  { %2755 = vmatmul.mubr.bf16.gmra.mxu0 %v10719_v2  ;;  %2530 = vmatmul.mubr.bf16.gmra.mxu1 %v10734_v3  ;;  %v10791_v3 = vld [vmem:[#allocation2 + $0x288] ss:$16 sps:$4 sm:$0xff]  }
 0x352   :  { %2762 = vmatprep.mubr.bf16.mxu0 %v10723_v4  ;;  %2537 = vmatprep.mubr.bf16.mxu1 %v10738_v5  ;;  %v10806_v5 = vld [vmem:[#allocation2 + $0x380] ss:$16 sps:$4 sm:$0xff]  }
 0x359   :  { %2763 = vmatmul.mubr.bf16.gmra.mxu0 %v10725_v7  ;;  %2538 = vmatmul.mubr.bf16.gmra.mxu1 %v10740_v8  ;;  %v10795_v7 = vld [vmem:[#allocation2 + $0x2ac] ss:$16 sps:$4 sm:$0xff]   ;;  %v10810_v8 = vld [vmem:[#allocation2 + $0x3a4] ss:$16 sps:$4 sm:$0xff]  }
 0x35a   :  { %2770 = vmatprep.mubr.bf16.mxu0 %v10729_v9  ;;  %2545 = vmatprep.mubr.bf16.mxu1 %v10744_v10 }
 0x361   :  { %2771 = vmatmul.mubr.bf16.gmra.mxu0 %v10731_v13  ;;  %2546 = vmatmul.mubr.bf16.gmra.mxu1 %v10746_v38  ;;  %v10797_v13 = vld [vmem:[#allocation2 + $0x2a8] ss:$16 sps:$4 sm:$0xff]  }
 0x362   :  { %2778 = vmatprep.mubr.bf16.mxu0 %v10735_v14  ;;  %2553 = vmatprep.mubr.bf16.mxu1 %v10750_v15  ;;  %v10812_v14 = vld [vmem:[#allocation2 + $0x3a0] ss:$16 sps:$4 sm:$0xff]   ;;  %v10801_v15 = vld [vmem:[#allocation2 + $0x2cc] ss:$16 sps:$4 sm:$0xff]  }
 0x369   :  { %2779 = vmatmul.mubr.bf16.gmra.mxu0 %v10737_v17  ;;  %2554 = vmatmul.mubr.bf16.gmra.mxu1 %v10752_v18 }
 0x36a   :  { %2786 = vmatprep.mubr.bf16.mxu0 %v10741_v19  ;;  %2561 = vmatprep.mubr.bf16.mxu1 %v10756_v20  ;;  %v10803_v20 = vld [vmem:[#allocation2 + $0x2c8] ss:$16 sps:$4 sm:$0xff]  }
 0x371   :  { %2787 = vmatmul.mubr.bf16.gmra.mxu0 %v10743_v21  ;;  %2562 = vmatmul.mubr.bf16.gmra.mxu1 %v10758_v22  ;;  %v10818_v22 = vld [vmem:[#allocation2 + $0x3c0] ss:$16 sps:$4 sm:$0xff]  }
 0x372   :  { %2794 = vmatprep.mubr.bf16.mxu0 %v10747_v23  ;;  %2569 = vmatprep.mubr.bf16.mxu1 %v10762_v24  ;;  %v10807_v23 = vld [vmem:[#allocation2 + $0x2ec] ss:$16 sps:$4 sm:$0xff]   ;;  %v10822_v24 = vld [vmem:[#allocation2 + $0x3e4] ss:$16 sps:$4 sm:$0xff]  }
 0x379   :  { %2795 = vmatmul.mubr.bf16.gmra.mxu0 %v10749_v25  ;;  %2570 = vmatmul.mubr.bf16.gmra.mxu1 %v10764_v26 }
 0x37a   :  { %2802 = vmatprep.mubr.bf16.mxu0 %v10753_v27  ;;  %2577 = vmatprep.mubr.bf16.mxu1 %v10768_v28  ;;  %v10809_v28 = vld [vmem:[#allocation2 + $0x2e8] ss:$16 sps:$4 sm:$0xff]  }
 0x381   :  { %2803 = vmatmul.mubr.bf16.gmra.mxu0 %v10755_v29  ;;  %2578 = vmatmul.mubr.bf16.gmra.mxu1 %v10770_v30  ;;  %v10824_v30 = vld [vmem:[#allocation2 + $0x3e0] ss:$16 sps:$4 sm:$0xff]  }
 0x382   :  { %2810 = vmatprep.mubr.bf16.mxu0 %v10759_v31  ;;  %2585 = vmatprep.mubr.bf16.mxu1 %v10774_v32  ;;  %v10813_v31 = vld [vmem:[#allocation2 + $0x30c] ss:$16 sps:$4 sm:$0xff]  }
 0x389   :  { %2811 = vmatmul.mubr.bf16.gmra.mxu0 %v10761_v33  ;;  %2586 = vmatmul.mubr.bf16.gmra.mxu1 %v10776_v34 }
 0x38a   :  { %2818 = vmatprep.mubr.bf16.mxu0 %v10765_v35  ;;  %2593 = vmatprep.mubr.bf16.mxu1 %v10780_v36  ;;  %v12194_v35 = vld [vmem:[%s14449_s6] ss:$0 sm:$0xff]  ;;  %v10815_v36 = vld [vmem:[#allocation2 + $0x308] ss:$16 sps:$4 sm:$0xff]  }
 0x391   :  { %2819 = vmatmul.mubr.bf16.gmra.mxu0 %v10767_v37  ;;  %2594 = vmatmul.mubr.bf16.gmra.mxu1 %v10782_v39  ;;  %v12161_v42 = vpop.f32.mrf.mxu1  ;;  %v10819_v39 = vld [vmem:[#allocation2 + $0x32c] ss:$16 sps:$4 sm:$0xff]  }
 0x392   :  { %2826 = vmatprep.mubr.bf16.mxu0 %v10771_v40  ;;  %2601 = vmatprep.mubr.bf16.mxu1 %v10786_v41  ;;  %v2404_v41 = vadd.f32 %v12194_v35, %v12161_v42 }
 0x393   :  { %v2405_v43 = vpop.f32.mrf.mxu1 }
 0x395   :  { %v12163_v45 = vpop.f32.mrf.mxu1 }
 0x397   :  { %v2408_v49 = vpop.f32.mrf.mxu1 }
 0x399   :  { %2827 = vmatmul.mubr.bf16.gmra.mxu0 %v10773_v44  ;;  %2602 = vmatmul.mubr.bf16.gmra.mxu1 %v10788_v46  ;;  %v12165_v50 = vpop.f32.mrf.mxu1 }
 0x39a   :  { %2834 = vmatprep.mubr.bf16.mxu0 %v10777_v47  ;;  %2609 = vmatprep.mubr.bf16.mxu1 %v10792_v48  ;;  %v2407_v48 = vadd.f32 %v12194_v35, %v12163_v45  ;;  %v2412_v42 = vadd.f32 %v12194_v35, %v12165_v50 }
 0x39b   :  { %v2413_v51 = vpop.f32.mrf.mxu1 }
 0x39d   :  { %v12167_v53 = vpop.f32.mrf.mxu1 }
 0x39f   :  { %v2416_v56 = vpop.f32.mrf.mxu1 }
 0x3a1   :  { %2835 = vmatmul.mubr.bf16.gmra.mxu0 %v10779_v52  ;;  %2610 = vmatmul.mubr.bf16.gmra.mxu1 %v10794_v54  ;;  %v12169_v57 = vpop.f32.mrf.mxu1  ;;  %v10821_v52 = vld [vmem:[#allocation2 + $0x328] ss:$16 sps:$4 sm:$0xff]  }
 0x3a2   :  { %2842 = vmatprep.mubr.bf16.mxu0 %v10783_v12  ;;  %2617 = vmatprep.mubr.bf16.mxu1 %v10798_v55  ;;  %v10826_v55 = vld [vmem:[#allocation2 + $0x34c] ss:$16 sps:$4 sm:$0xff]  }
 0x3a3   :  { %v2421_v58 = vpop.f32.mrf.mxu1 }
 0x3a5   :  { %v12171_v60 = vpop.f32.mrf.mxu1 }
 0x3a7   :  { %v2424_v0 = vpop.f32.mrf.mxu1 }
 0x3a9   :  { %2843 = vmatmul.mubr.bf16.gmra.mxu0 %v10785_v59  ;;  %2618 = vmatmul.mubr.bf16.gmra.mxu1 %v10800_v61  ;;  %v12173_v1 = vpop.f32.mrf.mxu1 }
 0x3aa   :  { %2850 = vmatprep.mubr.bf16.mxu0 %v10789_v62  ;;  %2625 = vmatprep.mubr.bf16.mxu1 %v10804_v63 }
 0x3ab   :  { %v2429_v2 = vpop.f32.mrf.mxu1 }
 0x3ad   :  { %v12175_v4 = vpop.f32.mrf.mxu1 }
 0x3af   :  { %v2432_v9 = vpop.f32.mrf.mxu1 }
 0x3b1   :  { %2851 = vmatmul.mubr.bf16.gmra.mxu0 %v10791_v3  ;;  %2626 = vmatmul.mubr.bf16.gmra.mxu1 %v10806_v5  ;;  %v12177_v10 = vpop.f32.mrf.mxu1  ;;  %v2415_v3 = vadd.f32 %v12194_v35, %v12167_v53 }
 0x3b2   :  { %2858 = vmatprep.mubr.bf16.mxu0 %v10795_v7  ;;  %2633 = vmatprep.mubr.bf16.mxu1 %v10810_v8  ;;  %v10829_v8 = vld [vmem:[#allocation2 + $0x348] ss:$16 sps:$4 sm:$0xff]  }
 0x3b3   :  { %v2437_v11 = vpop.f32.mrf.mxu1 }
 0x3b4   :  { %v10830_v11 = vld [vmem:[#allocation2 + $0x36c] ss:$16 sps:$4 sm:$0xff]  }
 0x3b5   :  { %v12179_v38 = vpop.f32.mrf.mxu1 }
 0x3b7   :  { %v2440_v17 = vpop.f32.mrf.mxu1 }
 0x3b9   :  { %2859 = vmatmul.mubr.bf16.gmra.mxu0 %v10797_v13  ;;  %2634 = vmatmul.mubr.bf16.gmra.mxu1 %v10812_v14  ;;  %v12181_v18 = vpop.f32.mrf.mxu1 }
 0x3ba   :  { %2866 = vmatprep.mubr.bf16.mxu0 %v10801_v15  ;;  %2641 = vmatprep.mubr.bf16.mxu1 %v10816_v16  ;;  %v2420_v15 = vadd.f32 %v12194_v35, %v12169_v57 }
 0x3bb   :  { %v2445_v19 = vpop.f32.mrf.mxu1 }
 0x3bd   :  { %v12183_v21 = vpop.f32.mrf.mxu1 }
 0x3bf   :  { %v2448_v25 = vpop.f32.mrf.mxu1 }
 0x3c1   :  { %2867 = vmatmul.mubr.bf16.gmra.mxu0 %v10803_v20  ;;  %2642 = vmatmul.mubr.bf16.gmra.mxu1 %v10818_v22  ;;  %v12185_v26 = vpop.f32.mrf.mxu1 }
 0x3c2   :  { %2874 = vmatprep.mubr.bf16.mxu0 %v10807_v23  ;;  %2649 = vmatprep.mubr.bf16.mxu1 %v10822_v24  ;;  %v2423_v24 = vadd.f32 %v12194_v35, %v12171_v60 }
 0x3c3   :  { %v2453_v27 = vpop.f32.mrf.mxu1 }
 0x3c5   :  { %v12187_v29 = vpop.f32.mrf.mxu1 }
 0x3c7   :  { %v2456_v32 = vpop.f32.mrf.mxu1 }
 0x3c9   :  { %2875 = vmatmul.mubr.bf16.gmra.mxu0 %v10809_v28  ;;  %2650 = vmatmul.mubr.bf16.gmra.mxu1 %v10824_v30  ;;  %v12189_v33 = vpop.f32.mrf.mxu1  ;;  %v10832_v28 = vld [vmem:[#allocation2 + $0x368] ss:$16 sps:$4 sm:$0xff]  }
 0x3ca   :  { %2882 = vmatprep.mubr.bf16.mxu0 %v10813_v31  ;;  %v10833_v31 = vld [vmem:[#allocation2 + $0x38c] ss:$16 sps:$4 sm:$0xff]  }
 0x3cb   :  { %v2461_v34 = vpop.f32.mrf.mxu1 }
 0x3cd   :  { %v12196_v37 = vpop.f32.mrf.mxu1 }
 0x3cf   :  { %v2464_v40 = vpop.f32.mrf.mxu1 }
 0x3d1   :  { %v2692_v43 = vpop.f32.mrf.mxu0  ;;  %2883 = vmatmul.mubr.bf16.gmra.mxu0 %v10815_v36  ;;  %v12200_v44 = vpop.f32.mrf.mxu1  ;;  %v2428_v36 = vadd.f32 %v12194_v35, %v12173_v1 }
 0x3d2   :  { %2890 = vmatprep.mubr.bf16.mxu0 %v10819_v39  ;;  %v2693_v49 = vadd.f32 %v2692_v43, %v2404_v41 }
 0x3d3   :  { %v2694_v46 = vpop.f32.mrf.mxu0  ;;  %v2469_v47 = vpop.f32.mrf.mxu1 }
 0x3d4   :  { %v2947_v59 = vmax.f32 %v2693_v49, 0.0 }
 0x3d5   :  { %v2695_v51 = vpop.f32.mrf.mxu0  ;;  %v12204_v54 = vpop.f32.mrf.mxu1 }
 0x3d6   :  { %v2696_v12 = vadd.f32 %v2695_v51, %v2407_v48  ;;  %v2431_v48 = vadd.f32 %v12194_v35, %v12175_v4 }
 0x3d7   :  { %v2697_v56 = vpop.f32.mrf.mxu0  ;;  %v2472_v58 = vpop.f32.mrf.mxu1 }
 0x3d8   :  { %v2948_v61 = vmax.f32 %v2696_v12, 0.0 }
 0x3d9   :  { %v2700_v62 = vpop.f32.mrf.mxu0  ;;  %2891 = vmatmul.mubr.bf16.gmra.mxu0 %v10821_v52  ;;  %v12208_v63 = vpop.f32.mrf.mxu1  ;;  %v10835_v52 = vld [vmem:[#allocation2 + $0x388] ss:$16 sps:$4 sm:$0xff]  }
 0x3da   :  { %v3011_v0 = vpack.c.bf16 %v2948_v61, %v2947_v59  ;;  %2898 = vmatprep.mubr.bf16.mxu0 %v10826_v55  ;;  %v2701_v5 = vadd.f32 %v2700_v62, %v2412_v42  ;;  %v10836_v55 = vld [vmem:[#allocation2 + $0x3ac] ss:$16 sps:$4 sm:$0xff]   ;;  %v2436_v42 = vadd.f32 %v12194_v35, %v12177_v10 }
 0x3db   :  { %v2702_v45 = vpop.f32.mrf.mxu0  ;;  %v2477_v2 = vpop.f32.mrf.mxu1 }
 0x3dc   :  { %10262 = vmatprep.mubr.msk.bf16.mxu1 %vm173_vm0, %v3011_v0  ;;  %v2949_v16 = vmax.f32 %v2701_v5, 0.0 }
 0x3dd   :  { %v2703_v7 = vpop.f32.mrf.mxu0  ;;  %v12213_v9 = vpop.f32.mrf.mxu1 }
 0x3de   :  { %v2704_v50 = vadd.f32 %v2703_v7, %v2415_v3  ;;  %v2439_v3 = vadd.f32 %v12194_v35, %v12179_v38 }
 0x3df   :  { %v2705_v13 = vpop.f32.mrf.mxu0  ;;  %v2480_v14 = vpop.f32.mrf.mxu1 }
 0x3e0   :  { %v2950_v17 = vmax.f32 %v2704_v50, 0.0 }
 0x3e1   :  { %v2708_v19 = vpop.f32.mrf.mxu0  ;;  %2899 = vmatmul.mubr.bf16.gmra.mxu0 %v10829_v8  ;;  %v12217_v20 = vpop.f32.mrf.mxu1  ;;  %v10838_v8 = vld [vmem:[#allocation2 + $0x3a8] ss:$16 sps:$4 sm:$0xff]  }
 0x3e2   :  { %v3012_v53 = vpack.c.bf16 %v2950_v17, %v2949_v16  ;;  %2906 = vmatprep.mubr.bf16.mxu0 %v10830_v11  ;;  %v2709_v25 = vadd.f32 %v2708_v19, %v2420_v15  ;;  %v10839_v11 = vld [vmem:[#allocation2 + $0x3cc] ss:$16 sps:$4 sm:$0xff]   ;;  %v2444_v15 = vadd.f32 %v12194_v35, %v12181_v18 }
 0x3e3   :  { %v2710_v22 = vpop.f32.mrf.mxu0  ;;  %v2485_v23 = vpop.f32.mrf.mxu1 }
 0x3e4   :  { %10263 = vmatmul.mubr.msk.bf16.vlgmr.msra.gmra.mxu1 %vm173_vm0, %v3012_v53  ;;  %v2951_v39 = vmax.f32 %v2709_v25, 0.0 }
 0x3e5   :  { %v2711_v27 = vpop.f32.mrf.mxu0  ;;  %v12222_v30 = vpop.f32.mrf.mxu1 }
 0x3e6   :  { %v2712_v57 = vadd.f32 %v2711_v27, %v2423_v24  ;;  %v2447_v24 = vadd.f32 %v12194_v35, %v12183_v21 }
 0x3e7   :  { %v2713_v32 = vpop.f32.mrf.mxu0  ;;  %v2488_v34 = vpop.f32.mrf.mxu1 }
 0x3e8   :  { %v2952_v40 = vmax.f32 %v2712_v57, 0.0 }
 0x3e9   :  { %v2716_v41 = vpop.f32.mrf.mxu0  ;;  %2907 = vmatmul.mubr.bf16.gmra.mxu0 %v10832_v28  ;;  %v12226_v43 = vpop.f32.mrf.mxu1  ;;  %v10841_v28 = vld [vmem:[#allocation2 + $0x3c8] ss:$16 sps:$4 sm:$0xff]  }
 0x3ea   :  { %v3013_v60 = vpack.c.bf16 %v2952_v40, %v2951_v39  ;;  %2914 = vmatprep.mubr.bf16.mxu0 %v10833_v31  ;;  %v2717_v49 = vadd.f32 %v2716_v41, %v2428_v36  ;;  %v10842_v31 = vld [vmem:[#allocation2 + $0x3ec] ss:$16 sps:$4 sm:$0xff]   ;;  %v2452_v36 = vadd.f32 %v12194_v35, %v12185_v26 }
 0x3eb   :  { %v2718_v46 = vpop.f32.mrf.mxu0  ;;  %v2493_v47 = vpop.f32.mrf.mxu1 }
 0x3ec   :  { %10266 = vmatprep.mubr.msk.bf16.mxu1 %vm173_vm0, %v3013_v60  ;;  %v2953_v59 = vmax.f32 %v2717_v49, 0.0 }
 0x3ed   :  { %v2719_v51 = vpop.f32.mrf.mxu0  ;;  %v12231_v12 = vpop.f32.mrf.mxu1 }
 0x3ee   :  { %v2720_v1 = vadd.f32 %v2719_v51, %v2431_v48  ;;  %v2455_v48 = vadd.f32 %v12194_v35, %v12187_v29 }
 0x3ef   :  { %v2721_v56 = vpop.f32.mrf.mxu0  ;;  %v2496_v58 = vpop.f32.mrf.mxu1 }
 0x3f0   :  { %v2954_v61 = vmax.f32 %v2720_v1, 0.0  ;;  %v2460_v58 = vadd.f32 %v12194_v35, %v12189_v33 }
 0x3f1   :  { %v2724_v62 = vpop.f32.mrf.mxu0  ;;  %2915 = vmatmul.mubr.bf16.gmra.mxu0 %v10835_v52  ;;  %v12235_v0 = vpop.f32.mrf.mxu1  ;;  %v10844_v52 = vld [vmem:[#allocation2 + $0x3e8] ss:$16 sps:$4 sm:$0xff]  }
 0x3f2   :  { %v3014_v4 = vpack.c.bf16 %v2954_v61, %v2953_v59  ;;  %2922 = vmatprep.mubr.bf16.mxu0 %v10836_v55  ;;  %v2725_v5 = vadd.f32 %v2724_v62, %v2436_v42 }
 0x3f3   :  { %v2726_v45 = vpop.f32.mrf.mxu0  ;;  %v2501_v2 = vpop.f32.mrf.mxu1 }
 0x3f4   :  { %10267 = vmatmul.mubr.msk.bf16.gmra.mxu1 %vm173_vm0, %v3014_v4  ;;  %v2955_v16 = vmax.f32 %v2725_v5, 0.0  ;;  %v10883_v4 = vld [vmem:[#allocation2 + $0x4] ss:$16 sps:$4 sm:$0xff]  }
 0x3f5   :  { %v2727_v7 = vpop.f32.mrf.mxu0  ;;  %v12240_v50 = vpop.f32.mrf.mxu1 }
 0x3f6   :  { %v2728_v10 = vadd.f32 %v2727_v7, %v2439_v3  ;;  %v2463_v3 = vadd.f32 %v12194_v35, %v12196_v37 }
 0x3f7   :  { %v2729_v13 = vpop.f32.mrf.mxu0  ;;  %v2504_v14 = vpop.f32.mrf.mxu1 }
 0x3f8   :  { %v2956_v17 = vmax.f32 %v2728_v10, 0.0  ;;  %v2468_v13 = vadd.f32 %v12194_v35, %v12200_v44 }
 0x3f9   :  { %v2732_v19 = vpop.f32.mrf.mxu0  ;;  %2923 = vmatmul.mubr.bf16.gmra.mxu0 %v10838_v8  ;;  %v12244_v53 = vpop.f32.mrf.mxu1 }
 0x3fa   :  { %v3015_v38 = vpack.c.bf16 %v2956_v17, %v2955_v16  ;;  %2930 = vmatprep.mubr.bf16.mxu0 %v10839_v11  ;;  %v2733_v25 = vadd.f32 %v2732_v19, %v2444_v15 }
 0x3fb   :  { %v2734_v22 = vpop.f32.mrf.mxu0  ;;  %v2509_v23 = vpop.f32.mrf.mxu1 }
 0x3fc   :  { %10270 = vmatprep.mubr.msk.bf16.mxu1 %vm173_vm0, %v3015_v38  ;;  %v2957_v39 = vmax.f32 %v2733_v25, 0.0  ;;  %v2471_v22 = vadd.f32 %v12194_v35, %v12204_v54 }
 0x3fd   :  { %v2735_v27 = vpop.f32.mrf.mxu0  ;;  %v12249_v57 = vpop.f32.mrf.mxu1 }
 0x3fe   :  { %v2736_v18 = vadd.f32 %v2735_v27, %v2447_v24 }
 0x3ff   :  { %v2737_v32 = vpop.f32.mrf.mxu0  ;;  %v2512_v34 = vpop.f32.mrf.mxu1 }
 0x400   :  { %v2958_v40 = vmax.f32 %v2736_v18, 0.0  ;;  %v2476_v18 = vadd.f32 %v12194_v35, %v12208_v63 }
 0x401   :  { %v2740_v41 = vpop.f32.mrf.mxu0  ;;  %2931 = vmatmul.mubr.bf16.gmra.mxu0 %v10841_v28  ;;  %v12253_v60 = vpop.f32.mrf.mxu1 }
 0x402   :  { %v3016_v21 = vpack.c.bf16 %v2958_v40, %v2957_v39  ;;  %2938 = vmatprep.mubr.bf16.mxu0 %v10842_v31  ;;  %v2741_v49 = vadd.f32 %v2740_v41, %v2452_v36  ;;  %v2479_v41 = vadd.f32 %v12194_v35, %v12213_v9 }
 0x403   :  { %v2742_v46 = vpop.f32.mrf.mxu0  ;;  %v2517_v47 = vpop.f32.mrf.mxu1 }
 0x404   :  { %10271 = vmatmul.mubr.msk.bf16.gmra.mxu1 %vm173_vm0, %v3016_v21  ;;  %v2959_v42 = vmax.f32 %v2741_v49, 0.0 }
 0x405   :  { %v2743_v51 = vpop.f32.mrf.mxu0  ;;  %v12258_v1 = vpop.f32.mrf.mxu1 }
 0x406   :  { %v2744_v26 = vadd.f32 %v2743_v51, %v2455_v48  ;;  %v2484_v51 = vadd.f32 %v12194_v35, %v12217_v20 }
 0x407   :  { %v2745_v55 = vpop.f32.mrf.mxu0  ;;  %v2520_v56 = vpop.f32.mrf.mxu1 }
 0x408   :  { %v2960_v59 = vmax.f32 %v2744_v26, 0.0 }
 0x409   :  { %v2748_v61 = vpop.f32.mrf.mxu0  ;;  %2939 = vmatmul.mubr.bf16.gmra.mxu0 %v10844_v52  ;;  %v12262_v62 = vpop.f32.mrf.mxu1 }
 0x40a   :  { %v3017_v29 = vpack.c.bf16 %v2960_v59, %v2959_v42  ;;  %3517 = vmatprep.mubr.bf16.mxu0 %v10883_v4  ;;  %v2749_v5 = vadd.f32 %v2748_v61, %v2460_v58  ;;  %v2487_v59 = vadd.f32 %v12194_v35, %v12222_v30 }
 0x40b   :  { %v2750_v45 = vpop.f32.mrf.mxu0  ;;  %v2525_v2 = vpop.f32.mrf.mxu1 }
 0x40c   :  { %10274 = vmatprep.mubr.msk.bf16.mxu1 %vm173_vm0, %v3017_v29  ;;  %v2961_v14 = vmax.f32 %v2749_v5, 0.0 }
 0x40d   :  { %v2751_v7 = vpop.f32.mrf.mxu0  ;;  %v12267_v8 = vpop.f32.mrf.mxu1 }
 0x40e   :  { %v2752_v33 = vadd.f32 %v2751_v7, %v2463_v3  ;;  %v2492_v3 = vadd.f32 %v12194_v35, %v12226_v43 }
 0x40f   :  { %v2753_v10 = vpop.f32.mrf.mxu0  ;;  %v2528_v11 = vpop.f32.mrf.mxu1 }
 0x410   :  { %v2962_v15 = vmax.f32 %v2752_v33, 0.0 }
 0x411   :  { %v2756_v16 = vpop.f32.mrf.mxu0  ;;  %v12271_v17 = vpop.f32.mrf.mxu1 }
 0x412   :  { %v3018_v19 = vpack.c.bf16 %v2962_v15, %v2961_v14  ;;  %v2757_v23 = vadd.f32 %v2756_v16, %v2468_v13  ;;  %v2495_v14 = vadd.f32 %v12194_v35, %v12231_v12 }
 0x413   :  { %v2758_v38 = vpop.f32.mrf.mxu0  ;;  %v2533_v37 = vpop.f32.mrf.mxu1 }
 0x414   :  { %10275 = vmatmul.mubr.msk.bf16.gmra.mxu1 %vm173_vm0, %v3018_v19  ;;  %v2963_v31 = vmax.f32 %v2757_v23, 0.0 }
 0x415   :  { %v2759_v24 = vpop.f32.mrf.mxu0  ;;  %v12276_v25 = vpop.f32.mrf.mxu1 }
 0x416   :  { %v2760_v27 = vadd.f32 %v2759_v24, %v2471_v22  ;;  %v2500_v22 = vadd.f32 %v12194_v35, %v12235_v0 }
 0x417   :  { %v2761_v28 = vpop.f32.mrf.mxu0  ;;  %v2536_v44 = vpop.f32.mrf.mxu1 }
 0x418   :  { %v2964_v32 = vmax.f32 %v2760_v27, 0.0 }
 0x419   :  { %v2764_v34 = vpop.f32.mrf.mxu0  ;;  %v12280_v36 = vpop.f32.mrf.mxu1 }
 0x41a   :  { %v3019_v39 = vpack.c.bf16 %v2964_v32, %v2963_v31  ;;  %v2765_v21 = vadd.f32 %v2764_v34, %v2476_v18  ;;  %v2503_v31 = vadd.f32 %v12194_v35, %v12240_v50 }
 0x41b   :  { %v2766_v40 = vpop.f32.mrf.mxu0  ;;  %v2541_v54 = vpop.f32.mrf.mxu1 }
 0x41c   :  { %10278 = vmatprep.mubr.msk.bf16.mxu1 %vm173_vm0, %v3019_v39  ;;  %v2965_v52 = vmax.f32 %v2765_v21, 0.0 }
 0x41d   :  { %v2767_v46 = vpop.f32.mrf.mxu0  ;;  %v12285_v47 = vpop.f32.mrf.mxu1 }
 0x41e   :  { %v2768_v48 = vadd.f32 %v2767_v46, %v2479_v41  ;;  %v2508_v41 = vadd.f32 %v12194_v35, %v12244_v53 }
 0x41f   :  { %v2769_v49 = vpop.f32.mrf.mxu0  ;;  %v2544_v63 = vpop.f32.mrf.mxu1 }
 0x420   :  { %v2966_v26 = vmax.f32 %v2768_v48, 0.0 }
 0x421   :  { %v2772_v55 = vpop.f32.mrf.mxu0  ;;  %v12289_v56 = vpop.f32.mrf.mxu1 }
 0x422   :  { %v3020_v58 = vpack.c.bf16 %v2966_v26, %v2965_v52  ;;  %v2773_v61 = vadd.f32 %v2772_v55, %v2484_v51  ;;  %v2511_v52 = vadd.f32 %v12194_v35, %v12249_v57 }
 0x423   :  { %v2774_v42 = vpop.f32.mrf.mxu0  ;;  %v2549_v9 = vpop.f32.mrf.mxu1 }
 0x424   :  { %10279 = vmatmul.mubr.msk.bf16.gmra.mxu1 %vm173_vm0, %v3020_v58  ;;  %v2967_v5 = vmax.f32 %v2773_v61, 0.0 }
 0x425   :  { %v2775_v29 = vpop.f32.mrf.mxu0  ;;  %v12294_v4 = vpop.f32.mrf.mxu1 }
 0x426   :  { %v2776_v45 = vadd.f32 %v2775_v29, %v2487_v59  ;;  %v2516_v59 = vadd.f32 %v12194_v35, %v12253_v60 }
 0x427   :  { %v2777_v2 = vpop.f32.mrf.mxu0  ;;  %v2552_v20 = vpop.f32.mrf.mxu1 }
 0x428   :  { %v2968_v7 = vmax.f32 %v2776_v45, 0.0 }
 0x429   :  { %v2780_v33 = vpop.f32.mrf.mxu0  ;;  %v12298_v10 = vpop.f32.mrf.mxu1 }
 0x42a   :  { %v3021_v11 = vpack.c.bf16 %v2968_v7, %v2967_v5  ;;  %v2781_v15 = vadd.f32 %v2780_v33, %v2492_v3  ;;  %v2519_v5 = vadd.f32 %v12194_v35, %v12258_v1 }
 0x42b   :  { %v2782_v13 = vpop.f32.mrf.mxu0  ;;  %v2557_v30 = vpop.f32.mrf.mxu1 }
 0x42c   :  { %10282 = vmatprep.mubr.msk.bf16.mxu1 %vm173_vm0, %v3021_v11  ;;  %v2969_v23 = vmax.f32 %v2781_v15, 0.0 }
 0x42d   :  { %v2783_v16 = vpop.f32.mrf.mxu0  ;;  %v12303_v19 = vpop.f32.mrf.mxu1 }
 0x42e   :  { %v2784_v38 = vadd.f32 %v2783_v16, %v2495_v14  ;;  %v2524_v14 = vadd.f32 %v12194_v35, %v12262_v62 }
 0x42f   :  { %v2785_v37 = vpop.f32.mrf.mxu0  ;;  %v2560_v43 = vpop.f32.mrf.mxu1 }
 0x430   :  { %v2970_v24 = vmax.f32 %v2784_v38, 0.0 }
 0x431   :  { %v2788_v27 = vpop.f32.mrf.mxu0  ;;  %v12307_v28 = vpop.f32.mrf.mxu1 }
 0x432   :  { %v3022_v44 = vpack.c.bf16 %v2970_v24, %v2969_v23  ;;  %v2789_v32 = vadd.f32 %v2788_v27, %v2500_v22  ;;  %v2527_v23 = vadd.f32 %v12194_v35, %v12267_v8 }
 0x433   :  { %v2790_v18 = vpop.f32.mrf.mxu0  ;;  %v2565_v12 = vpop.f32.mrf.mxu1 }
 0x434   :  { %10283 = vmatmul.mubr.msk.bf16.gmra.mxu1 %vm173_vm0, %v3022_v44  ;;  %v2971_v21 = vmax.f32 %v2789_v32, 0.0 }
 0x435   :  { %v2791_v34 = vpop.f32.mrf.mxu0  ;;  %v12312_v39 = vpop.f32.mrf.mxu1 }
 0x436   :  { %v2792_v40 = vadd.f32 %v2791_v34, %v2503_v31  ;;  %v2532_v31 = vadd.f32 %v12194_v35, %v12271_v17 }
 0x437   :  { %v2793_v54 = vpop.f32.mrf.mxu0  ;;  %v2568_v0 = vpop.f32.mrf.mxu1 }
 0x438   :  { %v2972_v46 = vmax.f32 %v2792_v40, 0.0 }
 0x439   :  { %v2796_v48 = vpop.f32.mrf.mxu0  ;;  %v12316_v49 = vpop.f32.mrf.mxu1 }
 0x43a   :  { %v3023_v63 = vpack.c.bf16 %v2972_v46, %v2971_v21  ;;  %v2797_v26 = vadd.f32 %v2796_v48, %v2508_v41  ;;  %v2535_v21 = vadd.f32 %v12194_v35, %v12276_v25 }
 0x43b   :  { %v2798_v51 = vpop.f32.mrf.mxu0  ;;  %v2573_v50 = vpop.f32.mrf.mxu1 }
 0x43c   :  { %10286 = vmatprep.mubr.msk.bf16.mxu1 %vm173_vm0, %v3023_v63  ;;  %v2973_v61 = vmax.f32 %v2797_v26, 0.0 }
 0x43d   :  { %v2799_v55 = vpop.f32.mrf.mxu0  ;;  %v12321_v58 = vpop.f32.mrf.mxu1 }
 0x43e   :  { %v2800_v42 = vadd.f32 %v2799_v55, %v2511_v52  ;;  %v2540_v52 = vadd.f32 %v12194_v35, %v12280_v36 }
 0x43f   :  { %v2801_v9 = vpop.f32.mrf.mxu0  ;;  %v2576_v53 = vpop.f32.mrf.mxu1 }
 0x440   :  { %v2974_v29 = vmax.f32 %v2800_v42, 0.0 }
 0x441   :  { %v2804_v45 = vpop.f32.mrf.mxu0  ;;  %v12325_v2 = vpop.f32.mrf.mxu1 }
 0x442   :  { %v3024_v20 = vpack.c.bf16 %v2974_v29, %v2973_v61  ;;  %v2805_v7 = vadd.f32 %v2804_v45, %v2516_v59  ;;  %v2543_v61 = vadd.f32 %v12194_v35, %v12285_v47 }
 0x443   :  { %v2806_v3 = vpop.f32.mrf.mxu0  ;;  %v2581_v57 = vpop.f32.mrf.mxu1 }
 0x444   :  { %10287 = vmatmul.mubr.msk.bf16.gmra.mxu1 %vm173_vm0, %v3024_v20  ;;  %v2975_v15 = vmax.f32 %v2805_v7, 0.0 }
 0x445   :  { %v2807_v33 = vpop.f32.mrf.mxu0  ;;  %v12330_v11 = vpop.f32.mrf.mxu1 }
 0x446   :  { %v2808_v13 = vadd.f32 %v2807_v33, %v2519_v5  ;;  %v2548_v5 = vadd.f32 %v12194_v35, %v12289_v56 }
 0x447   :  { %v2809_v30 = vpop.f32.mrf.mxu0  ;;  %v2584_v60 = vpop.f32.mrf.mxu1 }
 0x448   :  { %v2976_v16 = vmax.f32 %v2808_v13, 0.0 }
 0x449   :  { %v2812_v38 = vpop.f32.mrf.mxu0  ;;  %v12334_v37 = vpop.f32.mrf.mxu1 }
 0x44a   :  { %v3025_v43 = vpack.c.bf16 %v2976_v16, %v2975_v15  ;;  %v2813_v24 = vadd.f32 %v2812_v38, %v2524_v14  ;;  %v2551_v15 = vadd.f32 %v12194_v35, %v12294_v4 }
 0x44b   :  { %v2814_v22 = vpop.f32.mrf.mxu0  ;;  %v2589_v1 = vpop.f32.mrf.mxu1 }
 0x44c   :  { %10290 = vmatprep.mubr.msk.bf16.mxu1 %vm173_vm0, %v3025_v43  ;;  %v2977_v32 = vmax.f32 %v2813_v24, 0.0 }
 0x44d   :  { %v2815_v27 = vpop.f32.mrf.mxu0  ;;  %v12339_v44 = vpop.f32.mrf.mxu1 }
 0x44e   :  { %v2816_v18 = vadd.f32 %v2815_v27, %v2527_v23  ;;  %v2556_v23 = vadd.f32 %v12194_v35, %v12298_v10 }
 0x44f   :  { %v2817_v12 = vpop.f32.mrf.mxu0  ;;  %v2592_v62 = vpop.f32.mrf.mxu1 }
 0x450   :  { %v2978_v34 = vmax.f32 %v2816_v18, 0.0 }
 0x451   :  { %v2820_v40 = vpop.f32.mrf.mxu0  ;;  %v12343_v54 = vpop.f32.mrf.mxu1 }
 0x452   :  { %v3026_v0 = vpack.c.bf16 %v2978_v34, %v2977_v32  ;;  %v2821_v46 = vadd.f32 %v2820_v40, %v2532_v31  ;;  %v2559_v32 = vadd.f32 %v12194_v35, %v12303_v19 }
 0x453   :  { %v2822_v41 = vpop.f32.mrf.mxu0  ;;  %v2597_v8 = vpop.f32.mrf.mxu1 }
 0x454   :  { %10291 = vmatmul.mubr.msk.bf16.gmra.mxu1 %vm173_vm0, %v3026_v0  ;;  %v2979_v26 = vmax.f32 %v2821_v46, 0.0 }
 0x455   :  { %v2823_v48 = vpop.f32.mrf.mxu0  ;;  %v12348_v63 = vpop.f32.mrf.mxu1 }
 0x456   :  { %v2824_v51 = vadd.f32 %v2823_v48, %v2535_v21  ;;  %v2564_v21 = vadd.f32 %v12194_v35, %v12307_v28 }
 0x457   :  { %v2825_v50 = vpop.f32.mrf.mxu0  ;;  %v2600_v17 = vpop.f32.mrf.mxu1 }
 0x458   :  { %v2980_v55 = vmax.f32 %v2824_v51, 0.0 }
 0x459   :  { %v2828_v42 = vpop.f32.mrf.mxu0  ;;  %v12352_v9 = vpop.f32.mrf.mxu1 }
 0x45a   :  { %v3027_v53 = vpack.c.bf16 %v2980_v55, %v2979_v26  ;;  %v2829_v29 = vadd.f32 %v2828_v42, %v2540_v52  ;;  %v2567_v26 = vadd.f32 %v12194_v35, %v12312_v39 }
 0x45b   :  { %v2830_v59 = vpop.f32.mrf.mxu0  ;;  %v2605_v25 = vpop.f32.mrf.mxu1 }
 0x45c   :  { %10294 = vmatprep.mubr.msk.bf16.mxu1 %vm173_vm0, %v3027_v53  ;;  %v2981_v7 = vmax.f32 %v2829_v29, 0.0 }
 0x45d   :  { %v2831_v45 = vpop.f32.mrf.mxu0  ;;  %v12357_v20 = vpop.f32.mrf.mxu1 }
 0x45e   :  { %v2832_v3 = vadd.f32 %v2831_v45, %v2543_v61  ;;  %v2572_v61 = vadd.f32 %v12194_v35, %v12316_v49 }
 0x45f   :  { %v2833_v57 = vpop.f32.mrf.mxu0  ;;  %v2608_v36 = vpop.f32.mrf.mxu1 }
 0x460   :  { %v2982_v33 = vmax.f32 %v2832_v3, 0.0 }
 0x461   :  { %v2836_v13 = vpop.f32.mrf.mxu0  ;;  %v12361_v30 = vpop.f32.mrf.mxu1 }
 0x462   :  { %v3028_v60 = vpack.c.bf16 %v2982_v33, %v2981_v7  ;;  %v2837_v16 = vadd.f32 %v2836_v13, %v2548_v5  ;;  %v2575_v7 = vadd.f32 %v12194_v35, %v12321_v58 }
 0x463   :  { %v2838_v14 = vpop.f32.mrf.mxu0  ;;  %v2613_v47 = vpop.f32.mrf.mxu1 }
 0x464   :  { %10295 = vmatmul.mubr.msk.bf16.gmra.mxu1 %vm173_vm0, %v3028_v60  ;;  %v2983_v24 = vmax.f32 %v2837_v16, 0.0 }
 0x465   :  { %v2839_v38 = vpop.f32.mrf.mxu0  ;;  %v12366_v43 = vpop.f32.mrf.mxu1 }
 0x466   :  { %v2840_v22 = vadd.f32 %v2839_v38, %v2551_v15  ;;  %v2580_v15 = vadd.f32 %v12194_v35, %v12325_v2 }
 0x467   :  { %v2841_v1 = vpop.f32.mrf.mxu0  ;;  %v2616_v56 = vpop.f32.mrf.mxu1 }
 0x468   :  { %v2984_v27 = vmax.f32 %v2840_v22, 0.0 }
 0x469   :  { %v2844_v18 = vpop.f32.mrf.mxu0  ;;  %v12370_v12 = vpop.f32.mrf.mxu1 }
 0x46a   :  { %v3029_v62 = vpack.c.bf16 %v2984_v27, %v2983_v24  ;;  %v2845_v34 = vadd.f32 %v2844_v18, %v2556_v23  ;;  %v2583_v24 = vadd.f32 %v12194_v35, %v12330_v11 }
 0x46b   :  { %v2846_v31 = vpop.f32.mrf.mxu0  ;;  %v2621_v4 = vpop.f32.mrf.mxu1 }
 0x46c   :  { %10298 = vmatprep.mubr.msk.bf16.mxu1 %vm173_vm0, %v3029_v62  ;;  %v2985_v46 = vmax.f32 %v2845_v34, 0.0 }
 0x46d   :  { %v2847_v40 = vpop.f32.mrf.mxu0  ;;  %v12375_v0 = vpop.f32.mrf.mxu1 }
 0x46e   :  { %v2848_v41 = vadd.f32 %v2847_v40, %v2559_v32  ;;  %v2588_v32 = vadd.f32 %v12194_v35, %v12334_v37 }
 0x46f   :  { %v2849_v8 = vpop.f32.mrf.mxu0  ;;  %v2624_v10 = vpop.f32.mrf.mxu1 }
 0x470   :  { %v2986_v48 = vmax.f32 %v2848_v41, 0.0 }
 0x471   :  { %v2852_v51 = vpop.f32.mrf.mxu0  ;;  %v12379_v50 = vpop.f32.mrf.mxu1 }
 0x472   :  { %v3030_v17 = vpack.c.bf16 %v2986_v48, %v2985_v46  ;;  %v2853_v55 = vadd.f32 %v2852_v51, %v2564_v21  ;;  %v2591_v46 = vadd.f32 %v12194_v35, %v12339_v44  ;;  %v2599_v44 = vadd.f32 %v12194_v35, %v12348_v63 }
 0x473   :  { %v2854_v52 = vpop.f32.mrf.mxu0  ;;  %v2629_v19 = vpop.f32.mrf.mxu1 }
 0x474   :  { %10299 = vmatmul.mubr.msk.bf16.gmra.mxu1 %vm173_vm0, %v3030_v17  ;;  %v2987_v29 = vmax.f32 %v2853_v55, 0.0 }
 0x475   :  { %v2855_v42 = vpop.f32.mrf.mxu0  ;;  %v12384_v53 = vpop.f32.mrf.mxu1 }
 0x476   :  { %v2856_v59 = vadd.f32 %v2855_v42, %v2567_v26  ;;  %v2596_v26 = vadd.f32 %v12194_v35, %v12343_v54 }
 0x477   :  { %v2857_v25 = vpop.f32.mrf.mxu0  ;;  %v2632_v28 = vpop.f32.mrf.mxu1 }
 0x478   :  { %v2988_v45 = vmax.f32 %v2856_v59, 0.0 }
 0x479   :  { %v2860_v3 = vpop.f32.mrf.mxu0  ;;  %v12388_v57 = vpop.f32.mrf.mxu1 }
 0x47a   :  { %v3031_v36 = vpack.c.bf16 %v2988_v45, %v2987_v29  ;;  %v2861_v33 = vadd.f32 %v2860_v3, %v2572_v61 }
 0x47b   :  { %v2862_v5 = vpop.f32.mrf.mxu0  ;;  %v2637_v39 = vpop.f32.mrf.mxu1 }
 0x47c   :  { %10302 = vmatprep.mubr.msk.bf16.mxu1 %vm173_vm0, %v3031_v36  ;;  %v2989_v16 = vmax.f32 %v2861_v33, 0.0  ;;  %v2604_v36 = vadd.f32 %v12194_v35, %v12352_v9 }
 0x47d   :  { %v2863_v13 = vpop.f32.mrf.mxu0  ;;  %v12393_v60 = vpop.f32.mrf.mxu1 }
 0x47e   :  { %v2864_v14 = vadd.f32 %v2863_v13, %v2575_v7  ;;  %v2607_v13 = vadd.f32 %v12194_v35, %v12357_v20 }
 0x47f   :  { %v2865_v47 = vpop.f32.mrf.mxu0  ;;  %v2640_v49 = vpop.f32.mrf.mxu1 }
 0x480   :  { %v2990_v38 = vmax.f32 %v2864_v14, 0.0 }
 0x481   :  { %v2868_v22 = vpop.f32.mrf.mxu0  ;;  %v12397_v1 = vpop.f32.mrf.mxu1 }
 0x482   :  { %v3032_v56 = vpack.c.bf16 %v2990_v38, %v2989_v16  ;;  %v2869_v27 = vadd.f32 %v2868_v22, %v2580_v15  ;;  %v2612_v15 = vadd.f32 %v12194_v35, %v12361_v30 }
 0x483   :  { %v2870_v23 = vpop.f32.mrf.mxu0  ;;  %v2645_v58 = vpop.f32.mrf.mxu1 }
 0x484   :  { %10303 = vmatmul.mubr.msk.bf16.gmra.mxu1 %vm173_vm0, %v3032_v56  ;;  %v2991_v34 = vmax.f32 %v2869_v27, 0.0  ;;  %v2615_v23 = vadd.f32 %v12194_v35, %v12366_v43 }
 0x485   :  { %v2871_v18 = vpop.f32.mrf.mxu0  ;;  %v12402_v62 = vpop.f32.mrf.mxu1 }
 0x486   :  { %v2872_v31 = vadd.f32 %v2871_v18, %v2583_v24  ;;  %v2620_v18 = vadd.f32 %v12194_v35, %v12370_v12  ;;  %v2628_v12 = vadd.f32 %v12194_v35, %v12379_v50  ;;  %v2636_v50 = vadd.f32 %v12194_v35, %v12388_v57 }
 0x487   :  { %v2873_v4 = vpop.f32.mrf.mxu0  ;;  %v2648_v2 = vpop.f32.mrf.mxu1  ;;  %v2644_v57 = vadd.f32 %v12194_v35, %v12397_v1 }
 0x488   :  { %v2992_v40 = vmax.f32 %v2872_v31, 0.0 }
 0x489   :  { %v2876_v41 = vpop.f32.mrf.mxu0  ;;  %v12406_v8 = vpop.f32.mrf.mxu1 }
 0x48a   :  { %v3033_v10 = vpack.c.bf16 %v2992_v40, %v2991_v34  ;;  %v2877_v48 = vadd.f32 %v2876_v41, %v2588_v32  ;;  %v2623_v40 = vadd.f32 %v12194_v35, %v12375_v0  ;;  %v2631_v0 = vadd.f32 %v12194_v35, %v12384_v53 }
 0x48b   :  { %v2878_v21 = vpop.f32.mrf.mxu0  ;;  %v2653_v11 = vpop.f32.mrf.mxu1  ;;  %v2639_v53 = vadd.f32 %v12194_v35, %v12393_v60  ;;  %v2647_v60 = vadd.f32 %v12194_v35, %v12402_v62  ;;  %v2652_v1 = vadd.f32 %v12194_v35, %v12406_v8  ;;  %v10884_v62 = vld [vmem:[%s14449_s6] ss:$0 sm:$0xff] }
 0x48c   :  { %10306 = vmatprep.mubr.msk.bf16.mxu1 %vm173_vm0, %v3033_v10  ;;  %v2993_v55 = vmax.f32 %v2877_v48, 0.0 }
 0x48d   :  { %v2879_v51 = vpop.f32.mrf.mxu0  ;;  %v12411_v17 = vpop.f32.mrf.mxu1 }
 0x48e   :  { %v2880_v52 = vadd.f32 %v2879_v51, %v2591_v46 }
 0x48f   :  { %v2881_v19 = vpop.f32.mrf.mxu0  ;;  %v2656_v37 = vpop.f32.mrf.mxu1 }
 0x490   :  { %v2994_v42 = vmax.f32 %v2880_v52, 0.0 }
 0x491   :  { %v2884_v59 = vpop.f32.mrf.mxu0 }
 0x492   :  { %v3034_v25 = vpack.c.bf16 %v2994_v42, %v2993_v55  ;;  %v2885_v61 = vadd.f32 %v2884_v59, %v2596_v26 }
 0x493   :  { %v2886_v28 = vpop.f32.mrf.mxu0 }
 0x494   :  { %10307 = vmatmul.mubr.msk.bf16.gmra.mxu1 %vm173_vm0, %v3034_v25  ;;  %v2995_v5 = vmax.f32 %v2885_v61, 0.0 }
 0x495   :  { %v2887_v29 = vpop.f32.mrf.mxu0 }
 0x496   :  { %v2888_v45 = vadd.f32 %v2887_v29, %v2599_v44 }
 0x497   :  { %v2889_v3 = vpop.f32.mrf.mxu0 }
 0x498   :  { %v2996_v39 = vmax.f32 %v2888_v45, 0.0 }
 0x499   :  { %v2892_v54 = vpop.f32.mrf.mxu0 }
 0x49a   :  { %v3035_v7 = vpack.c.bf16 %v2996_v39, %v2995_v5  ;;  %v2893_v14 = vadd.f32 %v2892_v54, %v2604_v36 }
 0x49b   :  { %v2894_v33 = vpop.f32.mrf.mxu0 }
 0x49c   :  { %10310 = vmatprep.mubr.msk.bf16.mxu1 %vm173_vm0, %v3035_v7  ;;  %v2997_v16 = vmax.f32 %v2893_v14, 0.0 }
 0x49d   :  { %v2895_v63 = vpop.f32.mrf.mxu0 }
 0x49e   :  { %v2896_v47 = vadd.f32 %v2895_v63, %v2607_v13 }
 0x49f   :  { %v2897_v49 = vpop.f32.mrf.mxu0 }
 0x4a0   :  { %v2998_v38 = vmax.f32 %v2896_v47, 0.0 }
 0x4a1   :  { %v2900_v9 = vpop.f32.mrf.mxu0 }
 0x4a2   :  { %v3036_v22 = vpack.c.bf16 %v2998_v38, %v2997_v16  ;;  %v2901_v58 = vadd.f32 %v2900_v9, %v2612_v15 }
 0x4a3   :  { %v2902_v56 = vpop.f32.mrf.mxu0 }
 0x4a4   :  { %10311 = vmatmul.mubr.msk.bf16.gmra.mxu1 %vm173_vm0, %v3036_v22  ;;  %v2999_v31 = vmax.f32 %v2901_v58, 0.0  ;;  %v12430_v2 = vpop.f32.mrf.mxu1 }
 0x4a5   :  { %v2903_v20 = vpop.f32.mrf.mxu0 }
 0x4a6   :  { %v2904_v24 = vadd.f32 %v2903_v20, %v2615_v23  ;;  %v12435_v10 = vpop.f32.mrf.mxu1 }
 0x4a7   :  { %v2905_v27 = vpop.f32.mrf.mxu0 }
 0x4a8   :  { %v3000_v4 = vmax.f32 %v2904_v24, 0.0  ;;  %v12439_v52 = vpop.f32.mrf.mxu1 }
 0x4a9   :  { %v2908_v30 = vpop.f32.mrf.mxu0 }
 0x4aa   :  { %v3037_v32 = vpack.c.bf16 %v3000_v4, %v2999_v31  ;;  %v2909_v43 = vadd.f32 %v2908_v30, %v2620_v18  ;;  %v12444_v42 = vpop.f32.mrf.mxu1  ;;  %v2655_v31 = vadd.f32 %v10884_v62, %v12411_v17  ;;  %v10891_v62 = vld [vmem:[#allocation2 + $0x64] ss:$16 sps:$4 sm:$0xff]  }
 0x4ab   :  { %v2910_v34 = vpop.f32.mrf.mxu0 }
 0x4ac   :  { %10314 = vmatprep.mubr.msk.bf16.mxu1 %vm173_vm0, %v3037_v32  ;;  %v3001_v46 = vmax.f32 %v2909_v43, 0.0 }
 0x4ad   :  { %v2911_v41 = vpop.f32.mrf.mxu0 }
 0x4ae   :  { %v2912_v21 = vadd.f32 %v2911_v41, %v2623_v40 }
 0x4af   :  { %v2913_v11 = vpop.f32.mrf.mxu0 }
 0x4b0   :  { %v3002_v48 = vmax.f32 %v2912_v21, 0.0  ;;  %v10885_v11 = vld [vmem:[#allocation2 + $0xc] ss:$16 sps:$4 sm:$0xff]  }
 0x4b1   :  { %v2916_v51 = vpop.f32.mrf.mxu0 }
 0x4b2   :  { %v3038_v19 = vpack.c.bf16 %v3002_v48, %v3001_v46  ;;  %v2917_v26 = vadd.f32 %v2916_v51, %v2628_v12 }
 0x4b3   :  { %v2918_v37 = vpop.f32.mrf.mxu0 }
 0x4b4   :  { %10315 = vmatmul.mubr.msk.bf16.gmra.mxu1 %vm173_vm0, %v3038_v19  ;;  %v3003_v28 = vmax.f32 %v2917_v26, 0.0  ;;  %v12448_v44 = vpop.f32.mrf.mxu1 }
 0x4b5   :  { %v2919_v55 = vpop.f32.mrf.mxu0 }
 0x4b6   :  { %v2920_v59 = vadd.f32 %v2919_v55, %v2631_v0  ;;  %v12452_v36 = vpop.f32.mrf.mxu1 }
 0x4b7   :  { %v2921_v25 = vpop.f32.mrf.mxu0 }
 0x4b8   :  { %v3004_v61 = vmax.f32 %v2920_v59, 0.0  ;;  %v10269_v33 = vpop.f32.mrf.mxu1  ;;  %v3446_v25 = vpack.c.bf16 %v12439_v52, %v12430_v2 }
 0x4b9   :  { %v2924_v29 = vpop.f32.mrf.mxu0  ;;  %v3448_v0 = vpack.c.bf16 %v10269_v33, %v12448_v44 }
 0x4ba   :  { %v3039_v45 = vpack.c.bf16 %v3004_v61, %v3003_v28  ;;  %v2925_v5 = vadd.f32 %v2924_v29, %v2636_v50  ;;  %v3209_v15 = vpop.f32.mrf.mxu1  ;;  %v3445_v28 = vpack.c.bf16 %v12444_v42, %v12435_v10 }
 0x4bb   :  { %v2926_v3 = vpop.f32.mrf.mxu0  ;;  %v3447_v55 = vpack.c.bf16 %v3209_v15, %v12452_v36 }
 0x4bc   :  { %10318 = vmatprep.mubr.msk.bf16.mxu1 %vm173_vm0, %v3039_v45  ;;  %v3005_v13 = vmax.f32 %v2925_v5, 0.0 }
 0x4bd   :  { %v2927_v39 = vpop.f32.mrf.mxu0 }
 0x4be   :  { %v2928_v54 = vadd.f32 %v2927_v39, %v2639_v53 }
 0x4bf   :  { %v2929_v7 = vpop.f32.mrf.mxu0 }
 0x4c0   :  { %v3006_v14 = vmax.f32 %v2928_v54, 0.0 }
 0x4c1   :  { %v2932_v63 = vpop.f32.mrf.mxu0 }
 0x4c2   :  { %v3040_v47 = vpack.c.bf16 %v3006_v14, %v3005_v13  ;;  %v2933_v16 = vadd.f32 %v2932_v63, %v2644_v57 }
 0x4c3   :  { %v2934_v49 = vpop.f32.mrf.mxu0 }
 0x4c4   :  { %10319 = vmatmul.mubr.msk.bf16.gmra.mxu1 %vm173_vm0, %v3040_v47  ;;  %v10272_v9 = vpop.f32.mrf.mxu1  ;;  %v3007_v23 = vmax.f32 %v2933_v16, 0.0 }
 0x4c5   :  { %v2935_v38 = vpop.f32.mrf.mxu0 }
 0x4c6   :  { %v2936_v22 = vadd.f32 %v2935_v38, %v2647_v60  ;;  %v3222_v27 = vpop.f32.mrf.mxu1 }
 0x4c7   :  { %v2937_v56 = vpop.f32.mrf.mxu0 }
 0x4c8   :  { %v3008_v58 = vmax.f32 %v2936_v22, 0.0  ;;  %v10273_v32 = vpop.f32.mrf.mxu1  ;;  %v10887_v22 = vld [vmem:[#allocation2 + $0x24] ss:$16 sps:$4 sm:$0xff]  }
 0x4c9   :  { %v2940_v20 = vpop.f32.mrf.mxu0  ;;  %v3450_v19 = vpack.c.bf16 %v10273_v32, %v10272_v9  ;;  %v10886_v9 = vld [vmem:[#allocation2] ss:$16 sps:$4 sm:$0xff]   ;;  %v10893_v32 = vld [vmem:[#allocation2 + $0x84] ss:$16 sps:$4 sm:$0xff]  }
 0x4ca   :  { %v3041_v24 = vpack.c.bf16 %v3008_v58, %v3007_v23  ;;  %v2941_v4 = vadd.f32 %v2940_v20, %v2652_v1  ;;  %v3225_v43 = vpop.f32.mrf.mxu1  ;;  %v10888_v23 = vld [vmem:[#allocation2 + $0x20] ss:$16 sps:$4 sm:$0xff]   ;;  %v10889_v58 = vld [vmem:[#allocation2 + $0x44] ss:$16 sps:$4 sm:$0xff]  }
 0x4cb   :  { %v2942_v18 = vpop.f32.mrf.mxu0  ;;  %v3449_v37 = vpack.c.bf16 %v3225_v43, %v3222_v27 }
 0x4cc   :  { %10322 = vmatprep.mubr.msk.bf16.mxu1 %vm173_vm0, %v3041_v24  ;;  %v3009_v35 = vmax.f32 %v2941_v4, 0.0  ;;  %v10890_v18 = vld [vmem:[#allocation2 + $0x40] ss:$16 sps:$4 sm:$0xff]  }
 0x4cd   :  { %v2943_v30 = vpop.f32.mrf.mxu0 }
 0x4ce   :  { %v2944_v34 = vadd.f32 %v2943_v30, %v2655_v31  ;;  %v10892_v30 = vld [vmem:[#allocation2 + $0x60] ss:$16 sps:$4 sm:$0xff]  }
 0x4cf   :  { %v2945_v40 = vpop.f32.mrf.mxu0 }
 0x4d0   :  { %v3010_v8 = vmax.f32 %v2944_v34, 0.0 }
 0x4d2   :  { %v3042_v41 = vpack.c.bf16 %v3010_v8, %v3009_v35 }
 0x4d4   :  { %v10276_v21 = vpop.f32.mrf.mxu1  ;;  %10323 = vmatmul.mubr.msk.bf16.gmra.mxu1 %vm173_vm0, %v3042_v41  ;;  %v10894_v41 = vld [vmem:[#allocation2 + $0x80] ss:$16 sps:$4 sm:$0xff]  }
 0x4d5   :  { %3806 = vmatprep.mubr.bf16.mxu1 %v10885_v11 }
 0x4d6   :  { %v3238_v12 = vpop.f32.mrf.mxu1 }
 0x4d8   :  { %v10277_v46 = vpop.f32.mrf.mxu1 }
 0x4d9   :  { %v3452_v48 = vpack.c.bf16 %v10277_v46, %v10276_v21  ;;  %v10895_v21 = vld [vmem:[#allocation2 + $0xa4] ss:$16 sps:$4 sm:$0xff]   ;;  %v10896_v46 = vld [vmem:[#allocation2 + $0xa0] ss:$16 sps:$4 sm:$0xff]  }
 0x4da   :  { %v3241_v17 = vpop.f32.mrf.mxu1 }
 0x4db   :  { %3486 = vmatpush1.bf16.msra.mxu0 %v3452_v48  ;;  %v3451_v51 = vpack.c.bf16 %v3241_v17, %v3238_v12  ;;  %v10897_v48 = vld [vmem:[#allocation2 + $0xc4] ss:$16 sps:$4 sm:$0xff]  }
 0x4dc   :  { %3487 = vmatprep.subr.bf16.mxu0 %v11571_v6 }
 0x4df   :  { %3488 = vmatpush1.bf16.msra.mxu0 %v3451_v51 }
 0x4e0   :  { %3489 = vmatprep.subr.bf16.mxu0 %v11571_v6 }
 0x4e3   :  { %3490 = vmatpush1.bf16.msra.mxu0 %v3450_v19 }
 0x4e4   :  { %3491 = vmatprep.subr.bf16.mxu0 %v11571_v6  ;;  %v10280_v26 = vpop.f32.mrf.mxu1 }
 0x4e6   :  { %v3254_v59 = vpop.f32.mrf.mxu1 }
 0x4e7   :  { %3492 = vmatpush1.bf16.msra.mxu0 %v3449_v37  ;;  %v10898_v37 = vld [vmem:[#allocation2 + $0xc0] ss:$16 sps:$4 sm:$0xff]  }
 0x4e8   :  { %3493 = vmatprep.subr.bf16.mxu0 %v11571_v6  ;;  %v10281_v50 = vpop.f32.mrf.mxu1 }
 0x4e9   :  { %v3454_v49 = vpack.c.bf16 %v10281_v50, %v10280_v26  ;;  %v10900_v50 = vld [vmem:[#allocation2 + $0xe0] ss:$16 sps:$4 sm:$0xff]  }
 0x4ea   :  { %v3257_v44 = vpop.f32.mrf.mxu1 }
 0x4eb   :  { %3494 = vmatpush1.bf16.msra.mxu0 %v3448_v0  ;;  %v3453_v15 = vpack.c.bf16 %v3257_v44, %v3254_v59  ;;  %v10899_v0 = vld [vmem:[#allocation2 + $0xe4] ss:$16 sps:$4 sm:$0xff]  }
 0x4ec   :  { %3495 = vmatprep.subr.bf16.mxu0 %v11571_v6 }
 0x4ef   :  { %3496 = vmatpush1.bf16.msra.mxu0 %v3447_v55 }
 0x4f0   :  { %3497 = vmatprep.subr.bf16.mxu0 %v11571_v6 }
 0x4f3   :  { %3498 = vmatpush1.bf16.msra.mxu0 %v3446_v25 }
 0x4f4   :  { %3499 = vmatprep.subr.bf16.mxu0 %v11571_v6  ;;  %v10284_v61 = vpop.f32.mrf.mxu1 }
 0x4f6   :  { %v3270_v29 = vpop.f32.mrf.mxu1 }
 0x4f7   :  { %3500 = vmatpush1.bf16.msra.mxu0 %v3445_v28  ;;  %v10901_v28 = vld [vmem:[#allocation2 + $0x104] ss:$16 sps:$4 sm:$0xff]  }
 0x4f8   :  { %3501 = vmatprep.subr.bf16.mxu0 %v11571_v6  ;;  %v10285_v45 = vpop.f32.mrf.mxu1 }
 0x4f9   :  { %v3456_v13 = vpack.c.bf16 %v10285_v45, %v10284_v61  ;;  %v10902_v45 = vld [vmem:[#allocation2 + $0x100] ss:$16 sps:$4 sm:$0xff]  }
 0x4fa   :  { %v3273_v3 = vpop.f32.mrf.mxu1 }
 0x4fb   :  { %v3455_v63 = vpack.c.bf16 %v3273_v3, %v3270_v29  ;;  %v10903_v3 = vld [vmem:[#allocation2 + $0x124] ss:$16 sps:$4 sm:$0xff]  }
 0x504   :  { %v10288_v53 = vpop.f32.mrf.mxu1 }
 0x506   :  { %v3286_v36 = vpop.f32.mrf.mxu1 }
 0x508   :  { %v10289_v5 = vpop.f32.mrf.mxu1 }
 0x509   :  { %v3458_v42 = vpack.c.bf16 %v10289_v5, %v10288_v53  ;;  %v10904_v5 = vld [vmem:[#allocation2 + $0x120] ss:$16 sps:$4 sm:$0xff]  }
 0x50a   :  { %v3289_v39 = vpop.f32.mrf.mxu1 }
 0x50b   :  { %v3457_v33 = vpack.c.bf16 %v3289_v39, %v3286_v36  ;;  %v10905_v39 = vld [vmem:[#allocation2 + $0x144] ss:$16 sps:$4 sm:$0xff]  }
 0x514   :  { %v10292_v2 = vpop.f32.mrf.mxu1 }
 0x516   :  { %v3302_v52 = vpop.f32.mrf.mxu1 }
 0x518   :  { %v10293_v54 = vpop.f32.mrf.mxu1 }
 0x519   :  { %v3460_v7 = vpack.c.bf16 %v10293_v54, %v10292_v2 }
 0x51a   :  { %v3305_v57 = vpop.f32.mrf.mxu1 }
 0x51b   :  { %3502 = vmatpush2.bf16.msra.mxu0 %v3460_v7  ;;  %v3459_v10 = vpack.c.bf16 %v3305_v57, %v3302_v52  ;;  %v10906_v7 = vld [vmem:[#allocation2 + $0x140] ss:$16 sps:$4 sm:$0xff]   ;;  %v10907_v57 = vld [vmem:[#allocation2 + $0x164] ss:$16 sps:$4 sm:$0xff]  }
 0x51c   :  { %3503 = vmatprep.subr.bf16.mxu0 %v11571_v6 }
 0x51f   :  { %3504 = vmatpush2.bf16.msra.mxu0 %v3459_v10 }
 0x520   :  { %3505 = vmatprep.subr.bf16.mxu0 %v11571_v6 }
 0x523   :  { %3506 = vmatpush2.bf16.msra.mxu0 %v3458_v42 }
 0x524   :  { %3507 = vmatprep.subr.bf16.mxu0 %v11571_v6  ;;  %v12486_v14 = vpop.f32.mrf.mxu1 }
 0x526   :  { %v12489_v47 = vpop.f32.mrf.mxu1 }
 0x527   :  { %3508 = vmatpush2.bf16.msra.mxu0 %v3457_v33  ;;  %v10908_v33 = vld [vmem:[#allocation2 + $0x160] ss:$16 sps:$4 sm:$0xff]  }
 0x528   :  { %3509 = vmatprep.subr.bf16.mxu0 %v11571_v6  ;;  %v12492_v60 = vpop.f32.mrf.mxu1 }
 0x529   :  { %v3462_v59 = vpack.c.bf16 %v12492_v60, %v12486_v14 }
 0x52a   :  { %v12495_v16 = vpop.f32.mrf.mxu1 }
 0x52b   :  { %3510 = vmatpush2.bf16.msra.mxu0 %v3456_v13  ;;  %v3461_v44 = vpack.c.bf16 %v12495_v16, %v12489_v47  ;;  %v10909_v13 = vld [vmem:[#allocation2 + $0x184] ss:$16 sps:$4 sm:$0xff]  }
 0x52c   :  { %3511 = vmatprep.subr.bf16.mxu0 %v11571_v6  ;;  %v10911_v16 = vld [vmem:[#allocation2 + $0x1a4] ss:$16 sps:$4 sm:$0xff]  }
 0x52f   :  { %3512 = vmatpush2.bf16.msra.mxu0 %v3455_v63 }
 0x530   :  { %3513 = vmatprep.subr.bf16.mxu0 %v11571_v6 }
 0x533   :  { %3514 = vmatpush2.bf16.msra.mxu0 %v3454_v49 }
 0x534   :  { %3515 = vmatprep.subr.bf16.mxu0 %v11571_v6  ;;  %v10300_v38 = vpop.f32.mrf.mxu1 }
 0x536   :  { %v3334_v56 = vpop.f32.mrf.mxu1 }
 0x537   :  { %3516 = vmatpush2.bf16.msra.mxu0 %v3453_v15  ;;  %v10910_v15 = vld [vmem:[#allocation2 + $0x180] ss:$16 sps:$4 sm:$0xff]  }
 0x538   :  { %v10301_v1 = vpop.f32.mrf.mxu1 }
 0x539   :  { %v3464_v51 = vpack.c.bf16 %v10301_v1, %v10300_v38 }
 0x53a   :  { %3518 = vmatmul.mubr.bf16.vlgmr.msra.gmra.mxu0 %v10886_v9  ;;  %v3337_v20 = vpop.f32.mrf.mxu1 }
 0x53b   :  { %3525 = vmatprep.mubr.bf16.mxu0 %v10887_v22  ;;  %v3463_v26 = vpack.c.bf16 %v3337_v20, %v3334_v56  ;;  %v10912_v22 = vld [vmem:[#allocation2 + $0x1a0] ss:$16 sps:$4 sm:$0xff]   ;;  %v10913_v56 = vld [vmem:[#allocation2 + $0x1c4] ss:$16 sps:$4 sm:$0xff]  }
 0x53c   :  { %v10915_v20 = vld [vmem:[#allocation2 + $0x1e4] ss:$16 sps:$4 sm:$0xff]  }
 0x542   :  { %3526 = vmatmul.mubr.bf16.gmra.mxu0 %v10888_v23 }
 0x543   :  { %3533 = vmatprep.mubr.bf16.mxu0 %v10889_v58  ;;  %v10914_v58 = vld [vmem:[#allocation2 + $0x1c0] ss:$16 sps:$4 sm:$0xff]  }
 0x544   :  { %v10304_v24 = vpop.f32.mrf.mxu1 }
 0x546   :  { %v3350_v27 = vpop.f32.mrf.mxu1 }
 0x548   :  { %v10305_v31 = vpop.f32.mrf.mxu1 }
 0x549   :  { %v3466_v12 = vpack.c.bf16 %v10305_v31, %v10304_v24 }
 0x54a   :  { %3534 = vmatmul.mubr.bf16.gmra.mxu0 %v10890_v18  ;;  %v3353_v4 = vpop.f32.mrf.mxu1  ;;  %v10916_v18 = vld [vmem:[#allocation2 + $0x1e0] ss:$16 sps:$4 sm:$0xff]  }
 0x54b   :  { %3541 = vmatprep.mubr.bf16.mxu0 %v10891_v62  ;;  %v3465_v17 = vpack.c.bf16 %v3353_v4, %v3350_v27  ;;  %v10917_v62 = vld [vmem:[#allocation2 + $0x204] ss:$16 sps:$4 sm:$0xff]   ;;  %v10918_v4 = vld [vmem:[#allocation2 + $0x8] ss:$16 sps:$4 sm:$0xff]  }
 0x552   :  { %3542 = vmatmul.mubr.bf16.gmra.mxu0 %v10892_v30  ;;  %v10919_v30 = vld [vmem:[#allocation2 + $0x200] ss:$16 sps:$4 sm:$0xff]  }
 0x553   :  { %3549 = vmatprep.mubr.bf16.mxu0 %v10893_v32  ;;  %v10920_v32 = vld [vmem:[#allocation2 + $0x2c] ss:$16 sps:$4 sm:$0xff]  }
 0x554   :  { %v10308_v34 = vpop.f32.mrf.mxu1 }
 0x556   :  { %v3366_v40 = vpop.f32.mrf.mxu1 }
 0x558   :  { %v10309_v35 = vpop.f32.mrf.mxu1 }
 0x559   :  { %v3468_v8 = vpack.c.bf16 %v10309_v35, %v10308_v34  ;;  %v10921_v34 = vld [vmem:[#allocation2 + $0x224] ss:$16 sps:$4 sm:$0xff]   ;;  %v10923_v35 = vld [vmem:[#allocation2 + $0x220] ss:$16 sps:$4 sm:$0xff]  }
 0x55a   :  { %v3369_v43 = vpop.f32.mrf.mxu1  ;;  %3550 = vmatmul.mubr.bf16.gmra.mxu0 %v10894_v41  ;;  %v10926_v41 = vld [vmem:[#allocation2 + $0x48] ss:$16 sps:$4 sm:$0xff]  }
 0x55b   :  { %3775 = vmatpush1.bf16.msra.mxu1 %v3468_v8  ;;  %3557 = vmatprep.mubr.bf16.mxu0 %v10895_v21  ;;  %v3467_v11 = vpack.c.bf16 %v3369_v43, %v3366_v40  ;;  %v10922_v40 = vld [vmem:[#allocation2 + $0x28] ss:$16 sps:$4 sm:$0xff]   ;;  %v10924_v8 = vld [vmem:[#allocation2 + $0x4c] ss:$16 sps:$4 sm:$0xff]   ;;  %v10925_v43 = vld [vmem:[#allocation2 + $0x244] ss:$16 sps:$4 sm:$0xff]  }
 0x55c   :  { %3776 = vmatprep.subr.bf16.mxu1 %v11571_v6  ;;  %v10927_v21 = vld [vmem:[#allocation2 + $0x240] ss:$16 sps:$4 sm:$0xff]  }
 0x55f   :  { %3777 = vmatpush1.bf16.msra.mxu1 %v3467_v11  ;;  %v10928_v11 = vld [vmem:[#allocation2 + $0x6c] ss:$16 sps:$4 sm:$0xff]  }
 0x560   :  { %3778 = vmatprep.subr.bf16.mxu1 %v11571_v6 }
 0x562   :  { %3558 = vmatmul.mubr.bf16.gmra.mxu0 %v10896_v46  ;;  %v10930_v46 = vld [vmem:[#allocation2 + $0x68] ss:$16 sps:$4 sm:$0xff]  }
 0x563   :  { %3779 = vmatpush1.bf16.msra.mxu1 %v3466_v12  ;;  %3565 = vmatprep.mubr.bf16.mxu0 %v10897_v48  ;;  %v10929_v12 = vld [vmem:[#allocation2 + $0x264] ss:$16 sps:$4 sm:$0xff]   ;;  %v10931_v48 = vld [vmem:[#allocation2 + $0x260] ss:$16 sps:$4 sm:$0xff]  }
 0x564   :  { %3780 = vmatprep.subr.bf16.mxu1 %v11571_v6  ;;  %v12501_v19 = vpop.f32.mrf.mxu1 }
 0x566   :  { %v12504_v55 = vpop.f32.mrf.mxu1 }
 0x567   :  { %3781 = vmatpush1.bf16.msra.mxu1 %v3465_v17  ;;  %v10932_v17 = vld [vmem:[#allocation2 + $0x8c] ss:$16 sps:$4 sm:$0xff]  }
 0x568   :  { %3782 = vmatprep.subr.bf16.mxu1 %v11571_v6  ;;  %v12509_v25 = vpop.f32.mrf.mxu1 }
 0x569   :  { %v3470_v27 = vpack.c.bf16 %v12509_v25, %v12501_v19  ;;  %v10934_v19 = vld [vmem:[#allocation2 + $0x88] ss:$16 sps:$4 sm:$0xff]   ;;  %v10940_v25 = vld [vmem:[#allocation2 + $0xcc] ss:$16 sps:$4 sm:$0xff]  }
 0x56a   :  { %3566 = vmatmul.mubr.bf16.gmra.mxu0 %v10898_v37  ;;  %v12514_v61 = vpop.f32.mrf.mxu1  ;;  %v10935_v37 = vld [vmem:[#allocation2 + $0x280] ss:$16 sps:$4 sm:$0xff]  }
 0x56b   :  { %3783 = vmatpush1.bf16.msra.mxu1 %v3464_v51  ;;  %3573 = vmatprep.mubr.bf16.mxu0 %v10899_v0  ;;  %v3469_v31 = vpack.c.bf16 %v12514_v61, %v12504_v55  ;;  %v10933_v51 = vld [vmem:[#allocation2 + $0x284] ss:$16 sps:$4 sm:$0xff]   ;;  %v10936_v0 = vld [vmem:[#allocation2 + $0xac] ss:$16 sps:$4 sm:$0xff]   ;;  %v10938_v55 = vld [vmem:[#allocation2 + $0xa8] ss:$16 sps:$4 sm:$0xff]  }
 0x56c   :  { %3784 = vmatprep.subr.bf16.mxu1 %v11571_v6  ;;  %v10944_v61 = vld [vmem:[#allocation2 + $0xec] ss:$16 sps:$4 sm:$0xff]  }
 0x56f   :  { %3785 = vmatpush1.bf16.msra.mxu1 %v3463_v26  ;;  %v10937_v26 = vld [vmem:[#allocation2 + $0x2a4] ss:$16 sps:$4 sm:$0xff]  }
 0x570   :  { %3786 = vmatprep.subr.bf16.mxu1 %v11571_v6 }
 0x572   :  { %3574 = vmatmul.mubr.bf16.gmra.mxu0 %v10900_v50  ;;  %v10941_v50 = vld [vmem:[#allocation2 + $0x2c4] ss:$16 sps:$4 sm:$0xff]  }
 0x573   :  { %3787 = vmatpush1.bf16.msra.mxu1 %v3462_v59  ;;  %3581 = vmatprep.mubr.bf16.mxu0 %v10901_v28  ;;  %v10939_v59 = vld [vmem:[#allocation2 + $0x2a0] ss:$16 sps:$4 sm:$0xff]   ;;  %v10942_v28 = vld [vmem:[#allocation2 + $0xc8] ss:$16 sps:$4 sm:$0xff]  }
 0x574   :  { %3788 = vmatprep.subr.bf16.mxu1 %v11571_v6  ;;  %v10316_v29 = vpop.f32.mrf.mxu1 }
 0x576   :  { %v3398_v53 = vpop.f32.mrf.mxu1 }
 0x577   :  { %3789 = vmatpush1.bf16.msra.mxu1 %v3461_v44  ;;  %v10943_v44 = vld [vmem:[#allocation2 + $0x2c0] ss:$16 sps:$4 sm:$0xff]  }
 0x578   :  { %3790 = vmatprep.subr.bf16.mxu1 %v11571_v6  ;;  %v10317_v36 = vpop.f32.mrf.mxu1 }
 0x579   :  { %v3472_v23 = vpack.c.bf16 %v10317_v36, %v10316_v29  ;;  %v10945_v29 = vld [vmem:[#allocation2 + $0x2e4] ss:$16 sps:$4 sm:$0xff]  }
 0x57a   :  { %3582 = vmatmul.mubr.bf16.gmra.mxu0 %v10902_v45  ;;  %v3401_v2 = vpop.f32.mrf.mxu1  ;;  %v10946_v45 = vld [vmem:[#allocation2 + $0xe8] ss:$16 sps:$4 sm:$0xff]   ;;  %v10949_v36 = vld [vmem:[#allocation2 + $0x304] ss:$16 sps:$4 sm:$0xff]  }
 0x57b   :  { %3589 = vmatprep.mubr.bf16.mxu0 %v10903_v3  ;;  %v3471_v24 = vpack.c.bf16 %v3401_v2, %v3398_v53  ;;  %v10947_v3 = vld [vmem:[#allocation2 + $0x2e0] ss:$16 sps:$4 sm:$0xff]   ;;  %v10948_v53 = vld [vmem:[#allocation2 + $0x10c] ss:$16 sps:$4 sm:$0xff]  }
 0x582   :  { %3590 = vmatmul.mubr.bf16.gmra.mxu0 %v10904_v5  ;;  %v10950_v5 = vld [vmem:[#allocation2 + $0x108] ss:$16 sps:$4 sm:$0xff]  }
 0x583   :  { %3597 = vmatprep.mubr.bf16.mxu0 %v10905_v39  ;;  %v10951_v39 = vld [vmem:[#allocation2 + $0x300] ss:$16 sps:$4 sm:$0xff]  }
 0x584   :  { %v10320_v52 = vpop.f32.mrf.mxu1 }
 0x586   :  { %v3414_v54 = vpop.f32.mrf.mxu1 }
 0x588   :  { %v10321_v10 = vpop.f32.mrf.mxu1 }
 0x589   :  { %v3474_v9 = vpack.c.bf16 %v10321_v10, %v10320_v52  ;;  %v10952_v52 = vld [vmem:[#allocation2 + $0x12c] ss:$16 sps:$4 sm:$0xff]  }
 0x58a   :  { %3598 = vmatmul.mubr.bf16.gmra.mxu0 %v10906_v7  ;;  %v3417_v42 = vpop.f32.mrf.mxu1 }
 0x58b   :  { %3605 = vmatprep.mubr.bf16.mxu0 %v10907_v57  ;;  %v3473_v1 = vpack.c.bf16 %v3417_v42, %v3414_v54  ;;  %v10953_v54 = vld [vmem:[#allocation2 + $0x324] ss:$16 sps:$4 sm:$0xff]   ;;  %v10954_v42 = vld [vmem:[#allocation2 + $0x128] ss:$16 sps:$4 sm:$0xff]  }
 0x592   :  { %3606 = vmatmul.mubr.bf16.gmra.mxu0 %v10908_v33  ;;  %v10955_v33 = vld [vmem:[#allocation2 + $0x320] ss:$16 sps:$4 sm:$0xff]  }
 0x593   :  { %3613 = vmatprep.mubr.bf16.mxu0 %v10909_v13 }
 0x594   :  { %v10324_v14 = vpop.f32.mrf.mxu1 }
 0x596   :  { %v3430_v63 = vpop.f32.mrf.mxu1 }
 0x598   :  { %v10325_v47 = vpop.f32.mrf.mxu1 }
 0x599   :  { %v3476_v49 = vpack.c.bf16 %v10325_v47, %v10324_v14  ;;  %v10956_v14 = vld [vmem:[#allocation2 + $0x14c] ss:$16 sps:$4 sm:$0xff]  }
 0x59a   :  { %v3433_v60 = vpop.f32.mrf.mxu1  ;;  %3614 = vmatmul.mubr.bf16.gmra.mxu0 %v10910_v15  ;;  %v10845_v47 = vld [vmem:[%s14448_s5 + $0x28] sm:$0xff]   ;;  %v10846_v15 = vld [vmem:[%s14448_s5 + $0x20] sm:$0xff]  }
 0x59b   :  { %3791 = vmatpush2.bf16.msra.mxu1 %v3476_v49  ;;  %3621 = vmatprep.mubr.bf16.mxu0 %v10911_v16  ;;  %v3475_v38 = vpack.c.bf16 %v3433_v60, %v3430_v63  ;;  %v10957_v63 = vld [vmem:[#allocation2 + $0x344] ss:$16 sps:$4 sm:$0xff]  }
 0x59c   :  { %3792 = vmatprep.subr.bf16.mxu1 %v11571_v6  ;;  %10326 = vmatprep.subr.bf16.mxu0 %v10845_v47 }
 0x59d   :  { %10327 = vmatpush3.bf16.msra.mxu0 %v10845_v47  ;;  %v10984_v47 = vld [vmem:[#allocation2 + $0x24c] ss:$16 sps:$4 sm:$0xff]  }
 0x59e   :  { %10328 = vmatprep.subr.bf16.mxu0 %v10846_v15 }
 0x59f   :  { %3793 = vmatpush2.bf16.msra.mxu1 %v3475_v38  ;;  %v10958_v38 = vld [vmem:[#allocation2 + $0x148] ss:$16 sps:$4 sm:$0xff]  }
 0x5a0   :  { %3794 = vmatprep.subr.bf16.mxu1 %v11571_v6 }
 0x5a1   :  { %10329 = vmatpush3.bf16.msra.mxu0 %v10846_v15 }
 0x5a2   :  { %3622 = vmatmul.mubr.bf16.gmra.mxu0 %v10912_v22  ;;  %4890 = vmatprep.subr.bf16.mxu0 %v11571_v6 }
 0x5a3   :  { %3795 = vmatpush2.bf16.msra.mxu1 %v3474_v9  ;;  %3629 = vmatprep.mubr.bf16.mxu0 %v10913_v56  ;;  %v10959_v9 = vld [vmem:[#allocation2 + $0x340] ss:$16 sps:$4 sm:$0xff]   ;;  %v10960_v56 = vld [vmem:[#allocation2 + $0x16c] ss:$16 sps:$4 sm:$0xff]  }
 0x5a4   :  { %3796 = vmatprep.subr.bf16.mxu1 %v11571_v6 }
 0x5a7   :  { %3797 = vmatpush2.bf16.msra.mxu1 %v3473_v1  ;;  %v10961_v1 = vld [vmem:[#allocation2 + $0x364] ss:$16 sps:$4 sm:$0xff]  }
 0x5a8   :  { %3798 = vmatprep.subr.bf16.mxu1 %v11571_v6 }
 0x5aa   :  { %3630 = vmatmul.mubr.bf16.gmra.mxu0 %v10914_v58 }
 0x5ab   :  { %3799 = vmatpush2.bf16.msra.mxu1 %v3472_v23  ;;  %3637 = vmatprep.mubr.bf16.mxu0 %v10915_v20 }
 0x5ac   :  { %3800 = vmatprep.subr.bf16.mxu1 %v11571_v6 }
 0x5af   :  { %3801 = vmatpush2.bf16.msra.mxu1 %v3471_v24  ;;  %v10962_v24 = vld [vmem:[#allocation2 + $0x168] ss:$16 sps:$4 sm:$0xff]  }
 0x5b0   :  { %3802 = vmatprep.subr.bf16.mxu1 %v11571_v6 }
 0x5b2   :  { %3638 = vmatmul.mubr.bf16.gmra.mxu0 %v10916_v18 }
 0x5b3   :  { %3803 = vmatpush2.bf16.msra.mxu1 %v3470_v27  ;;  %3645 = vmatprep.mubr.bf16.mxu0 %v10917_v62  ;;  %v10963_v27 = vld [vmem:[#allocation2 + $0x360] ss:$16 sps:$4 sm:$0xff]   ;;  %v10964_v62 = vld [vmem:[#allocation2 + $0x18c] ss:$16 sps:$4 sm:$0xff]  }
 0x5b4   :  { %3804 = vmatprep.subr.bf16.mxu1 %v11571_v6 }
 0x5b7   :  { %3805 = vmatpush2.bf16.msra.mxu1 %v3469_v31  ;;  %v10965_v31 = vld [vmem:[#allocation2 + $0x384] ss:$16 sps:$4 sm:$0xff]  }
 0x5b8   :  { %4601 = vmatprep.subr.bf16.mxu1 %v11571_v6 }
 0x5ba   :  { %3807 = vmatmul.mubr.bf16.vlgmr.msra.gmra.mxu1 %v10918_v4  ;;  %3646 = vmatmul.mubr.bf16.gmra.mxu0 %v10919_v30 }
 0x5bb   :  { %3814 = vmatprep.mubr.bf16.mxu1 %v10920_v32  ;;  %3653 = vmatprep.mubr.bf16.mxu0 %v10921_v34  ;;  %v10966_v34 = vld [vmem:[#allocation2 + $0x188] ss:$16 sps:$4 sm:$0xff]  }
 0x5c2   :  { %3815 = vmatmul.mubr.bf16.gmra.mxu1 %v10922_v40  ;;  %3654 = vmatmul.mubr.bf16.gmra.mxu0 %v10923_v35  ;;  %v10967_v40 = vld [vmem:[#allocation2 + $0x380] ss:$16 sps:$4 sm:$0xff]  }
 0x5c3   :  { %3822 = vmatprep.mubr.bf16.mxu1 %v10924_v8  ;;  %3661 = vmatprep.mubr.bf16.mxu0 %v10925_v43  ;;  %v10968_v8 = vld [vmem:[#allocation2 + $0x1ac] ss:$16 sps:$4 sm:$0xff]   ;;  %v10969_v43 = vld [vmem:[#allocation2 + $0x3a4] ss:$16 sps:$4 sm:$0xff]  }
 0x5ca   :  { %3823 = vmatmul.mubr.bf16.gmra.mxu1 %v10926_v41  ;;  %3662 = vmatmul.mubr.bf16.gmra.mxu0 %v10927_v21 }
 0x5cb   :  { %3830 = vmatprep.mubr.bf16.mxu1 %v10928_v11  ;;  %3669 = vmatprep.mubr.bf16.mxu0 %v10929_v12  ;;  %v10970_v12 = vld [vmem:[#allocation2 + $0x1a8] ss:$16 sps:$4 sm:$0xff]  }
 0x5d2   :  { %3831 = vmatmul.mubr.bf16.gmra.mxu1 %v10930_v46  ;;  %3670 = vmatmul.mubr.bf16.gmra.mxu0 %v10931_v48  ;;  %v10971_v46 = vld [vmem:[#allocation2 + $0x3a0] ss:$16 sps:$4 sm:$0xff]  }
 0x5d3   :  { %3838 = vmatprep.mubr.bf16.mxu1 %v10932_v17  ;;  %3677 = vmatprep.mubr.bf16.mxu0 %v10933_v51  ;;  %v10972_v17 = vld [vmem:[#allocation2 + $0x1cc] ss:$16 sps:$4 sm:$0xff]   ;;  %v10973_v51 = vld [vmem:[#allocation2 + $0x3c4] ss:$16 sps:$4 sm:$0xff]  }
 0x5da   :  { %3839 = vmatmul.mubr.bf16.gmra.mxu1 %v10934_v19  ;;  %3678 = vmatmul.mubr.bf16.gmra.mxu0 %v10935_v37 }
 0x5db   :  { %3846 = vmatprep.mubr.bf16.mxu1 %v10936_v0  ;;  %3685 = vmatprep.mubr.bf16.mxu0 %v10937_v26  ;;  %v10974_v26 = vld [vmem:[#allocation2 + $0x1c8] ss:$16 sps:$4 sm:$0xff]  }
 0x5e2   :  { %3847 = vmatmul.mubr.bf16.gmra.mxu1 %v10938_v55  ;;  %3686 = vmatmul.mubr.bf16.gmra.mxu0 %v10939_v59  ;;  %v10975_v55 = vld [vmem:[#allocation2 + $0x3c0] ss:$16 sps:$4 sm:$0xff]  }
 0x5e3   :  { %3854 = vmatprep.mubr.bf16.mxu1 %v10940_v25  ;;  %3693 = vmatprep.mubr.bf16.mxu0 %v10941_v50  ;;  %v10976_v25 = vld [vmem:[#allocation2 + $0x1ec] ss:$16 sps:$4 sm:$0xff]   ;;  %v10977_v50 = vld [vmem:[#allocation2 + $0x3e4] ss:$16 sps:$4 sm:$0xff]  }
 0x5ea   :  { %3855 = vmatmul.mubr.bf16.gmra.mxu1 %v10942_v28  ;;  %3694 = vmatmul.mubr.bf16.gmra.mxu0 %v10943_v44 }
 0x5eb   :  { %3862 = vmatprep.mubr.bf16.mxu1 %v10944_v61  ;;  %3701 = vmatprep.mubr.bf16.mxu0 %v10945_v29  ;;  %v10978_v29 = vld [vmem:[#allocation2 + $0x1e8] ss:$16 sps:$4 sm:$0xff]  }
 0x5f2   :  { %3863 = vmatmul.mubr.bf16.gmra.mxu1 %v10946_v45  ;;  %3702 = vmatmul.mubr.bf16.gmra.mxu0 %v10947_v3  ;;  %v10979_v45 = vld [vmem:[#allocation2 + $0x3e0] ss:$16 sps:$4 sm:$0xff]  }
 0x5f3   :  { %3870 = vmatprep.mubr.bf16.mxu1 %v10948_v53  ;;  %3709 = vmatprep.mubr.bf16.mxu0 %v10949_v36  ;;  %v10980_v53 = vld [vmem:[#allocation2 + $0x20c] ss:$16 sps:$4 sm:$0xff]  }
 0x5fa   :  { %3871 = vmatmul.mubr.bf16.gmra.mxu1 %v10950_v5  ;;  %3710 = vmatmul.mubr.bf16.gmra.mxu0 %v10951_v39  ;;  %v12529_v2 = vpop.f32.mrf.mxu0 }
 0x5fb   :  { %3878 = vmatprep.mubr.bf16.mxu1 %v10952_v52  ;;  %3717 = vmatprep.mubr.bf16.mxu0 %v10953_v54  ;;  %v10981_v52 = vld [vmem:[#allocation2 + $0x208] ss:$16 sps:$4 sm:$0xff]  }
 0x5fc   :  { %v3521_v7 = vpop.f32.mrf.mxu0 }
 0x5fd   :  { %v10982_v7 = vld [vmem:[#allocation2 + $0x22c] ss:$16 sps:$4 sm:$0xff]  }
 0x5fe   :  { %v12531_v57 = vpop.f32.mrf.mxu0 }
 0x600   :  { %v3524_v10 = vpop.f32.mrf.mxu0 }
 0x602   :  { %3879 = vmatmul.mubr.bf16.gmra.mxu1 %v10954_v42  ;;  %3718 = vmatmul.mubr.bf16.gmra.mxu0 %v10955_v33  ;;  %v12533_v13 = vpop.f32.mrf.mxu0 }
 0x603   :  { %3886 = vmatprep.mubr.bf16.mxu1 %v10956_v14  ;;  %3725 = vmatprep.mubr.bf16.mxu0 %v10957_v63  ;;  %v10983_v14 = vld [vmem:[#allocation2 + $0x228] ss:$16 sps:$4 sm:$0xff]  }
 0x604   :  { %v3529_v49 = vpop.f32.mrf.mxu0 }
 0x606   :  { %v12538_v60 = vpop.f32.mrf.mxu0 }
 0x608   :  { %v3532_v16 = vpop.f32.mrf.mxu0 }
 0x60a   :  { %3887 = vmatmul.mubr.bf16.gmra.mxu1 %v10958_v38  ;;  %3726 = vmatmul.mubr.bf16.gmra.mxu0 %v10959_v9  ;;  %v12543_v22 = vpop.f32.mrf.mxu0  ;;  %v10985_v38 = vld [vmem:[#allocation2 + $0x248] ss:$16 sps:$4 sm:$0xff]  }
 0x60b   :  { %3894 = vmatprep.mubr.bf16.mxu1 %v10960_v56  ;;  %3733 = vmatprep.mubr.bf16.mxu0 %v10961_v1  ;;  %v10986_v56 = vld [vmem:[#allocation2 + $0x26c] ss:$16 sps:$4 sm:$0xff]  }
 0x60c   :  { %v3537_v23 = vpop.f32.mrf.mxu0 }
 0x60e   :  { %v12546_v58 = vpop.f32.mrf.mxu0 }
 0x610   :  { %v3540_v20 = vpop.f32.mrf.mxu0 }
 0x612   :  { %3895 = vmatmul.mubr.bf16.gmra.mxu1 %v10962_v24  ;;  %3734 = vmatmul.mubr.bf16.gmra.mxu0 %v10963_v27  ;;  %v12548_v18 = vpop.f32.mrf.mxu0  ;;  %v10987_v24 = vld [vmem:[#allocation2 + $0x268] ss:$16 sps:$4 sm:$0xff]  }
 0x613   :  { %3902 = vmatprep.mubr.bf16.mxu1 %v10964_v62  ;;  %3741 = vmatprep.mubr.bf16.mxu0 %v10965_v31  ;;  %v10988_v62 = vld [vmem:[#allocation2 + $0x28c] ss:$16 sps:$4 sm:$0xff]  }
 0x614   :  { %v3545_v4 = vpop.f32.mrf.mxu0 }
 0x616   :  { %v12550_v30 = vpop.f32.mrf.mxu0 }
 0x618   :  { %v3548_v32 = vpop.f32.mrf.mxu0 }
 0x61a   :  { %3903 = vmatmul.mubr.bf16.gmra.mxu1 %v10966_v34  ;;  %3742 = vmatmul.mubr.bf16.gmra.mxu0 %v10967_v40  ;;  %v12552_v35 = vpop.f32.mrf.mxu0  ;;  %v10989_v34 = vld [vmem:[#allocation2 + $0x288] ss:$16 sps:$4 sm:$0xff]  }
 0x61b   :  { %3910 = vmatprep.mubr.bf16.mxu1 %v10968_v8  ;;  %3749 = vmatprep.mubr.bf16.mxu0 %v10969_v43  ;;  %v10990_v8 = vld [vmem:[#allocation2 + $0x2ac] ss:$16 sps:$4 sm:$0xff]  }
 0x61c   :  { %v3553_v41 = vpop.f32.mrf.mxu0 }
 0x61e   :  { %v12554_v21 = vpop.f32.mrf.mxu0 }
 0x620   :  { %v3556_v11 = vpop.f32.mrf.mxu0 }
 0x622   :  { %3911 = vmatmul.mubr.bf16.gmra.mxu1 %v10970_v12  ;;  %3750 = vmatmul.mubr.bf16.gmra.mxu0 %v10971_v46  ;;  %v12556_v48 = vpop.f32.mrf.mxu0  ;;  %v10991_v12 = vld [vmem:[#allocation2 + $0x2a8] ss:$16 sps:$4 sm:$0xff]  }
 0x623   :  { %3918 = vmatprep.mubr.bf16.mxu1 %v10972_v17  ;;  %3757 = vmatprep.mubr.bf16.mxu0 %v10973_v51  ;;  %v10992_v17 = vld [vmem:[#allocation2 + $0x2cc] ss:$16 sps:$4 sm:$0xff]  }
 0x624   :  { %v3561_v19 = vpop.f32.mrf.mxu0 }
 0x626   :  { %v12558_v37 = vpop.f32.mrf.mxu0 }
 0x628   :  { %v3564_v0 = vpop.f32.mrf.mxu0 }
 0x62a   :  { %3919 = vmatmul.mubr.bf16.gmra.mxu1 %v10974_v26  ;;  %3758 = vmatmul.mubr.bf16.gmra.mxu0 %v10975_v55  ;;  %v12560_v59 = vpop.f32.mrf.mxu0  ;;  %v10993_v26 = vld [vmem:[#allocation2 + $0x2c8] ss:$16 sps:$4 sm:$0xff]  }
 0x62b   :  { %3926 = vmatprep.mubr.bf16.mxu1 %v10976_v25  ;;  %3765 = vmatprep.mubr.bf16.mxu0 %v10977_v50  ;;  %v10994_v25 = vld [vmem:[#allocation2 + $0x2ec] ss:$16 sps:$4 sm:$0xff]  }
 0x62c   :  { %v3569_v28 = vpop.f32.mrf.mxu0 }
 0x62e   :  { %v12562_v44 = vpop.f32.mrf.mxu0 }
 0x630   :  { %v3572_v61 = vpop.f32.mrf.mxu0 }
 0x632   :  { %3927 = vmatmul.mubr.bf16.gmra.mxu1 %v10978_v29  ;;  %3766 = vmatmul.mubr.bf16.gmra.mxu0 %v10979_v45  ;;  %v12564_v3 = vpop.f32.mrf.mxu0  ;;  %v10995_v29 = vld [vmem:[#allocation2 + $0x2e8] ss:$16 sps:$4 sm:$0xff]  }
 0x633   :  { %3934 = vmatprep.mubr.bf16.mxu1 %v10980_v53  ;;  %v10996_v53 = vld [vmem:[#allocation2 + $0x30c] ss:$16 sps:$4 sm:$0xff]  }
 0x634   :  { %v3577_v36 = vpop.f32.mrf.mxu0 }
 0x636   :  { %v12566_v5 = vpop.f32.mrf.mxu0 }
 0x638   :  { %v3580_v39 = vpop.f32.mrf.mxu0 }
 0x639   :  { %v12601_v39 = vld [vmem:[%s14449_s6 + $0x1] ss:$0 sm:$0xff] }
 0x63a   :  { %3935 = vmatmul.mubr.bf16.gmra.mxu1 %v10981_v52  ;;  %v12568_v54 = vpop.f32.mrf.mxu0 }
 0x63b   :  { %3942 = vmatprep.mubr.bf16.mxu1 %v10982_v7 }
 0x63c   :  { %v3585_v10 = vpop.f32.mrf.mxu0 }
 0x63d   :  { %v3520_v10 = vadd.f32 %v12601_v39, %v12529_v2  ;;  %v3528_v2 = vadd.f32 %v12601_v39, %v12533_v13 }
 0x63e   :  { %v12570_v42 = vpop.f32.mrf.mxu0 }
 0x640   :  { %v3588_v33 = vpop.f32.mrf.mxu0 }
 0x642   :  { %3943 = vmatmul.mubr.bf16.gmra.mxu1 %v10983_v14  ;;  %v12572_v63 = vpop.f32.mrf.mxu0  ;;  %v10997_v14 = vld [vmem:[#allocation2 + $0x308] ss:$16 sps:$4 sm:$0xff]  }
 0x643   :  { %3950 = vmatprep.mubr.bf16.mxu1 %v10984_v47 }
 0x644   :  { %v3593_v49 = vpop.f32.mrf.mxu0 }
 0x645   :  { %v10998_v49 = vld [vmem:[#allocation2 + $0x32c] ss:$16 sps:$4 sm:$0xff]  }
 0x646   :  { %v12574_v15 = vpop.f32.mrf.mxu0 }
 0x648   :  { %v3596_v16 = vpop.f32.mrf.mxu0 }
 0x64a   :  { %3951 = vmatmul.mubr.bf16.gmra.mxu1 %v10985_v38  ;;  %v12576_v9 = vpop.f32.mrf.mxu0 }
 0x64b   :  { %3958 = vmatprep.mubr.bf16.mxu1 %v10986_v56  ;;  %v3523_v56 = vadd.f32 %v12601_v39, %v12531_v57 }
 0x64c   :  { %v3601_v1 = vpop.f32.mrf.mxu0 }
 0x64e   :  { %v12578_v23 = vpop.f32.mrf.mxu0 }
 0x650   :  { %v3604_v20 = vpop.f32.mrf.mxu0 }
 0x652   :  { %3959 = vmatmul.mubr.bf16.gmra.mxu1 %v10987_v24  ;;  %v12580_v27 = vpop.f32.mrf.mxu0 }
 0x653   :  { %3966 = vmatprep.mubr.bf16.mxu1 %v10988_v62 }
 0x654   :  { %v3609_v31 = vpop.f32.mrf.mxu0 }
 0x656   :  { %v12582_v4 = vpop.f32.mrf.mxu0 }
 0x658   :  { %v3612_v32 = vpop.f32.mrf.mxu0 }
 0x65a   :  { %3967 = vmatmul.mubr.bf16.gmra.mxu1 %v10989_v34  ;;  %v12584_v40 = vpop.f32.mrf.mxu0 }
 0x65b   :  { %3974 = vmatprep.mubr.bf16.mxu1 %v10990_v8 }
 0x65c   :  { %v3617_v43 = vpop.f32.mrf.mxu0 }
 0x65e   :  { %v12586_v41 = vpop.f32.mrf.mxu0 }
 0x660   :  { %v3620_v11 = vpop.f32.mrf.mxu0 }
 0x661   :  { %v10999_v11 = vld [vmem:[#allocation2 + $0x328] ss:$16 sps:$4 sm:$0xff]  }
 0x662   :  { %3975 = vmatmul.mubr.bf16.gmra.mxu1 %v10991_v12  ;;  %v12588_v46 = vpop.f32.mrf.mxu0 }
 0x663   :  { %3982 = vmatprep.mubr.bf16.mxu1 %v10992_v17 }
 0x664   :  { %v3625_v51 = vpop.f32.mrf.mxu0 }
 0x665   :  { %v11000_v51 = vld [vmem:[#allocation2 + $0x34c] ss:$16 sps:$4 sm:$0xff]  }
 0x666   :  { %v12590_v19 = vpop.f32.mrf.mxu0 }
 0x668   :  { %v3628_v0 = vpop.f32.mrf.mxu0 }
 0x66a   :  { %3983 = vmatmul.mubr.bf16.gmra.mxu1 %v10993_v26  ;;  %v12592_v55 = vpop.f32.mrf.mxu0  ;;  %v3531_v26 = vadd.f32 %v12601_v39, %v12538_v60 }
 0x66b   :  { %3990 = vmatprep.mubr.bf16.mxu1 %v10994_v25 }
 0x66c   :  { %v3633_v50 = vpop.f32.mrf.mxu0 }
 0x66e   :  { %v12594_v28 = vpop.f32.mrf.mxu0 }
 0x670   :  { %v3636_v61 = vpop.f32.mrf.mxu0 }
 0x672   :  { %3991 = vmatmul.mubr.bf16.gmra.mxu1 %v10995_v29  ;;  %v12596_v45 = vpop.f32.mrf.mxu0 }
 0x673   :  { %3998 = vmatprep.mubr.bf16.mxu1 %v10996_v53 }
 0x674   :  { %v3641_v36 = vpop.f32.mrf.mxu0 }
 0x675   :  { %v3536_v36 = vadd.f32 %v12601_v39, %v12543_v22 }
 0x676   :  { %v12603_v52 = vpop.f32.mrf.mxu0 }
 0x678   :  { %v3644_v7 = vpop.f32.mrf.mxu0 }
 0x67a   :  { %v3808_v33 = vpop.f32.mrf.mxu1  ;;  %3999 = vmatmul.mubr.bf16.gmra.mxu1 %v10997_v14  ;;  %v12607_v47 = vpop.f32.mrf.mxu0  ;;  %v11001_v14 = vld [vmem:[#allocation2 + $0x348] ss:$16 sps:$4 sm:$0xff]  }
 0x67b   :  { %4006 = vmatprep.mubr.bf16.mxu1 %v10998_v49  ;;  %v3809_v1 = vadd.f32 %v3808_v33, %v3520_v10 }
 0x67c   :  { %v3810_v16 = vpop.f32.mrf.mxu1  ;;  %v3649_v38 = vpop.f32.mrf.mxu0 }
 0x67d   :  { %v4063_v34 = vmax.f32 %v3809_v1, 0.0  ;;  %v11002_v16 = vld [vmem:[#allocation2 + $0x36c] ss:$16 sps:$4 sm:$0xff]   ;;  %v3539_v1 = vadd.f32 %v12601_v39, %v12546_v58 }
 0x67e   :  { %v3811_v20 = vpop.f32.mrf.mxu1  ;;  %v12611_v24 = vpop.f32.mrf.mxu0 }
 0x67f   :  { %v3812_v62 = vadd.f32 %v3811_v20, %v3523_v56 }
 0x680   :  { %v3813_v31 = vpop.f32.mrf.mxu1  ;;  %v3652_v32 = vpop.f32.mrf.mxu0 }
 0x681   :  { %v4064_v8 = vmax.f32 %v3812_v62, 0.0 }
 0x682   :  { %v3816_v43 = vpop.f32.mrf.mxu1  ;;  %4007 = vmatmul.mubr.bf16.gmra.mxu1 %v10999_v11  ;;  %v12615_v12 = vpop.f32.mrf.mxu0 }
 0x683   :  { %v4127_v17 = vpack.c.bf16 %v4064_v8, %v4063_v34  ;;  %4014 = vmatprep.mubr.bf16.mxu1 %v11000_v51  ;;  %v3817_v25 = vadd.f32 %v3816_v43, %v3528_v2  ;;  %v3544_v34 = vadd.f32 %v12601_v39, %v12548_v18 }
 0x684   :  { %v3818_v57 = vpop.f32.mrf.mxu1  ;;  %v3657_v0 = vpop.f32.mrf.mxu0 }
 0x685   :  { %10330 = vmatprep.mubr.msk.bf16.mxu0 %vm173_vm0, %v4127_v17  ;;  %v4065_v7 = vmax.f32 %v3817_v25, 0.0  ;;  %v11003_v17 = vld [vmem:[#allocation2 + $0x368] ss:$16 sps:$4 sm:$0xff]   ;;  %v11004_v57 = vld [vmem:[#allocation2 + $0x38c] ss:$16 sps:$4 sm:$0xff]   ;;  %v3547_v25 = vadd.f32 %v12601_v39, %v12550_v30 }
 0x686   :  { %v3819_v50 = vpop.f32.mrf.mxu1  ;;  %v12620_v13 = vpop.f32.mrf.mxu0 }
 0x687   :  { %v3820_v61 = vadd.f32 %v3819_v50, %v3531_v26 }
 0x688   :  { %v3821_v29 = vpop.f32.mrf.mxu1  ;;  %v3660_v53 = vpop.f32.mrf.mxu0 }
 0x689   :  { %v4066_v10 = vmax.f32 %v3820_v61, 0.0 }
 0x68a   :  { %v3824_v33 = vpop.f32.mrf.mxu1  ;;  %4015 = vmatmul.mubr.bf16.gmra.mxu1 %v11001_v14  ;;  %v12624_v49 = vpop.f32.mrf.mxu0 }
 0x68b   :  { %v4128_v60 = vpack.c.bf16 %v4066_v10, %v4065_v7  ;;  %4022 = vmatprep.mubr.bf16.mxu1 %v11002_v16  ;;  %v3825_v20 = vadd.f32 %v3824_v33, %v3536_v36  ;;  %v3552_v7 = vadd.f32 %v12601_v39, %v12552_v35 }
 0x68c   :  { %v3826_v38 = vpop.f32.mrf.mxu1  ;;  %v3665_v56 = vpop.f32.mrf.mxu0 }
 0x68d   :  { %10331 = vmatmul.mubr.msk.bf16.vlgmr.msra.gmra.mxu0 %vm173_vm0, %v4128_v60  ;;  %v4067_v8 = vmax.f32 %v3825_v20, 0.0  ;;  %v11005_v60 = vld [vmem:[#allocation2 + $0x388] ss:$16 sps:$4 sm:$0xff]   ;;  %v11006_v38 = vld [vmem:[#allocation2 + $0x3ac] ss:$16 sps:$4 sm:$0xff]   ;;  %v3555_v20 = vadd.f32 %v12601_v39, %v12554_v21 }
 0x68e   :  { %v3827_v62 = vpop.f32.mrf.mxu1  ;;  %v12629_v22 = vpop.f32.mrf.mxu0 }
 0x68f   :  { %v3828_v31 = vadd.f32 %v3827_v62, %v3539_v1 }
 0x690   :  { %v3829_v32 = vpop.f32.mrf.mxu1  ;;  %v3668_v2 = vpop.f32.mrf.mxu0 }
 0x691   :  { %v4068_v43 = vmax.f32 %v3828_v31, 0.0 }
 0x692   :  { %v3832_v11 = vpop.f32.mrf.mxu1  ;;  %4023 = vmatmul.mubr.bf16.gmra.mxu1 %v11003_v17  ;;  %v12633_v51 = vpop.f32.mrf.mxu0 }
 0x693   :  { %v4129_v58 = vpack.c.bf16 %v4068_v43, %v4067_v8  ;;  %4030 = vmatprep.mubr.bf16.mxu1 %v11004_v57  ;;  %v3833_v50 = vadd.f32 %v3832_v11, %v3544_v34  ;;  %v3560_v8 = vadd.f32 %v12601_v39, %v12556_v48 }
 0x694   :  { %v3834_v0 = vpop.f32.mrf.mxu1  ;;  %v3673_v26 = vpop.f32.mrf.mxu0 }
 0x695   :  { %10334 = vmatprep.mubr.msk.bf16.mxu0 %vm173_vm0, %v4129_v58  ;;  %v4069_v10 = vmax.f32 %v3833_v50, 0.0  ;;  %v11007_v58 = vld [vmem:[#allocation2 + $0x3a8] ss:$16 sps:$4 sm:$0xff]   ;;  %v11008_v0 = vld [vmem:[#allocation2 + $0x3cc] ss:$16 sps:$4 sm:$0xff]   ;;  %v3563_v50 = vadd.f32 %v12601_v39, %v12558_v37 }
 0x696   :  { %v3835_v61 = vpop.f32.mrf.mxu1  ;;  %v12638_v18 = vpop.f32.mrf.mxu0 }
 0x697   :  { %v3836_v29 = vadd.f32 %v3835_v61, %v3547_v25 }
 0x698   :  { %v3837_v53 = vpop.f32.mrf.mxu1  ;;  %v3676_v36 = vpop.f32.mrf.mxu0 }
 0x699   :  { %v4070_v33 = vmax.f32 %v3836_v29, 0.0 }
 0x69a   :  { %v3840_v14 = vpop.f32.mrf.mxu1  ;;  %4031 = vmatmul.mubr.bf16.gmra.mxu1 %v11005_v60  ;;  %v12642_v16 = vpop.f32.mrf.mxu0 }
 0x69b   :  { %v4130_v30 = vpack.c.bf16 %v4070_v33, %v4069_v10  ;;  %4038 = vmatprep.mubr.bf16.mxu1 %v11006_v38  ;;  %v3841_v62 = vadd.f32 %v3840_v14, %v3552_v7  ;;  %v3568_v10 = vadd.f32 %v12601_v39, %v12560_v59 }
 0x69c   :  { %v3842_v56 = vpop.f32.mrf.mxu1  ;;  %v3681_v1 = vpop.f32.mrf.mxu0 }
 0x69d   :  { %10335 = vmatmul.mubr.msk.bf16.gmra.mxu0 %vm173_vm0, %v4130_v30  ;;  %v4071_v43 = vmax.f32 %v3841_v62, 0.0  ;;  %v11009_v30 = vld [vmem:[#allocation2 + $0x3c8] ss:$16 sps:$4 sm:$0xff]   ;;  %v11010_v56 = vld [vmem:[#allocation2 + $0x3ec] ss:$16 sps:$4 sm:$0xff]   ;;  %v3571_v62 = vadd.f32 %v12601_v39, %v12562_v44 }
 0x69e   :  { %v3843_v31 = vpop.f32.mrf.mxu1  ;;  %v12647_v35 = vpop.f32.mrf.mxu0 }
 0x69f   :  { %v3844_v32 = vadd.f32 %v3843_v31, %v3555_v20 }
 0x6a0   :  { %v3845_v2 = vpop.f32.mrf.mxu1  ;;  %v3684_v34 = vpop.f32.mrf.mxu0 }
 0x6a1   :  { %v4072_v11 = vmax.f32 %v3844_v32, 0.0 }
 0x6a2   :  { %v3848_v17 = vpop.f32.mrf.mxu1  ;;  %4039 = vmatmul.mubr.bf16.gmra.mxu1 %v11007_v58  ;;  %v12651_v57 = vpop.f32.mrf.mxu0 }
 0x6a3   :  { %v4131_v21 = vpack.c.bf16 %v4072_v11, %v4071_v43  ;;  %4046 = vmatprep.mubr.bf16.mxu1 %v11008_v0  ;;  %v3849_v61 = vadd.f32 %v3848_v17, %v3560_v8  ;;  %v3576_v43 = vadd.f32 %v12601_v39, %v12564_v3 }
 0x6a4   :  { %v3850_v26 = vpop.f32.mrf.mxu1  ;;  %v3689_v25 = vpop.f32.mrf.mxu0 }
 0x6a5   :  { %10338 = vmatprep.mubr.msk.bf16.mxu0 %vm173_vm0, %v4131_v21  ;;  %v4073_v33 = vmax.f32 %v3849_v61, 0.0  ;;  %v11011_v21 = vld [vmem:[#allocation2 + $0x3e8] ss:$16 sps:$4 sm:$0xff]   ;;  %v11012_v26 = vld [vmem:[#allocation2 + $0x4] ss:$16 sps:$4 sm:$0xff]   ;;  %v3579_v61 = vadd.f32 %v12601_v39, %v12566_v5 }
 0x6a6   :  { %v3851_v29 = vpop.f32.mrf.mxu1  ;;  %v12656_v48 = vpop.f32.mrf.mxu0 }
 0x6a7   :  { %v3852_v53 = vadd.f32 %v3851_v29, %v3563_v50 }
 0x6a8   :  { %v3853_v36 = vpop.f32.mrf.mxu1  ;;  %v3692_v7 = vpop.f32.mrf.mxu0 }
 0x6a9   :  { %v4074_v14 = vmax.f32 %v3852_v53, 0.0 }
 0x6aa   :  { %v3856_v60 = vpop.f32.mrf.mxu1  ;;  %4047 = vmatmul.mubr.bf16.gmra.mxu1 %v11009_v30  ;;  %v12660_v38 = vpop.f32.mrf.mxu0 }
 0x6ab   :  { %v4132_v37 = vpack.c.bf16 %v4074_v14, %v4073_v33  ;;  %4054 = vmatprep.mubr.bf16.mxu1 %v11010_v56  ;;  %v3857_v31 = vadd.f32 %v3856_v60, %v3568_v10  ;;  %v3584_v33 = vadd.f32 %v12601_v39, %v12568_v54 }
 0x6ac   :  { %v3858_v1 = vpop.f32.mrf.mxu1  ;;  %v3697_v20 = vpop.f32.mrf.mxu0 }
 0x6ad   :  { %10339 = vmatmul.mubr.msk.bf16.gmra.mxu0 %vm173_vm0, %v4132_v37  ;;  %v4075_v11 = vmax.f32 %v3857_v31, 0.0  ;;  %v3587_v20 = vadd.f32 %v12601_v39, %v12570_v42 }
 0x6ae   :  { %v3859_v32 = vpop.f32.mrf.mxu1  ;;  %v12665_v59 = vpop.f32.mrf.mxu0 }
 0x6af   :  { %v3860_v2 = vadd.f32 %v3859_v32, %v3571_v62 }
 0x6b0   :  { %v3861_v34 = vpop.f32.mrf.mxu1  ;;  %v3700_v8 = vpop.f32.mrf.mxu0 }
 0x6b1   :  { %v4076_v17 = vmax.f32 %v3860_v2, 0.0  ;;  %v3592_v8 = vadd.f32 %v12601_v39, %v12572_v63 }
 0x6b2   :  { %v3864_v58 = vpop.f32.mrf.mxu1  ;;  %4055 = vmatmul.mubr.bf16.gmra.mxu1 %v11011_v21  ;;  %v12669_v0 = vpop.f32.mrf.mxu0 }
 0x6b3   :  { %v4133_v44 = vpack.c.bf16 %v4076_v17, %v4075_v11  ;;  %4633 = vmatprep.mubr.bf16.mxu1 %v11012_v26  ;;  %v3865_v29 = vadd.f32 %v3864_v58, %v3576_v43  ;;  %v3595_v26 = vadd.f32 %v12601_v39, %v12574_v15 }
 0x6b4   :  { %v3866_v25 = vpop.f32.mrf.mxu1  ;;  %v3705_v50 = vpop.f32.mrf.mxu0 }
 0x6b5   :  { %10342 = vmatprep.mubr.msk.bf16.mxu0 %vm173_vm0, %v4133_v44  ;;  %v4077_v14 = vmax.f32 %v3865_v29, 0.0 }
 0x6b6   :  { %v3867_v53 = vpop.f32.mrf.mxu1  ;;  %v12674_v3 = vpop.f32.mrf.mxu0 }
 0x6b7   :  { %v3868_v36 = vadd.f32 %v3867_v53, %v3579_v61 }
 0x6b8   :  { %v3869_v7 = vpop.f32.mrf.mxu1  ;;  %v3708_v10 = vpop.f32.mrf.mxu0 }
 0x6b9   :  { %v4078_v60 = vmax.f32 %v3868_v36, 0.0  ;;  %v3600_v36 = vadd.f32 %v12601_v39, %v12576_v9 }
 0x6ba   :  { %v3872_v30 = vpop.f32.mrf.mxu1  ;;  %v12678_v37 = vpop.f32.mrf.mxu0 }
 0x6bb   :  { %v4134_v56 = vpack.c.bf16 %v4078_v60, %v4077_v14  ;;  %v3873_v62 = vadd.f32 %v3872_v30, %v3584_v33 }
 0x6bc   :  { %v3874_v1 = vpop.f32.mrf.mxu1  ;;  %v3713_v5 = vpop.f32.mrf.mxu0 }
 0x6bd   :  { %10343 = vmatmul.mubr.msk.bf16.gmra.mxu0 %vm173_vm0, %v4134_v56  ;;  %v4079_v43 = vmax.f32 %v3873_v62, 0.0  ;;  %v3603_v56 = vadd.f32 %v12601_v39, %v12578_v23 }
 0x6be   :  { %v3875_v31 = vpop.f32.mrf.mxu1  ;;  %v12683_v32 = vpop.f32.mrf.mxu0 }
 0x6bf   :  { %v3876_v2 = vadd.f32 %v3875_v31, %v3587_v20 }
 0x6c0   :  { %v3877_v34 = vpop.f32.mrf.mxu1  ;;  %v3716_v54 = vpop.f32.mrf.mxu0 }
 0x6c1   :  { %v4080_v11 = vmax.f32 %v3876_v2, 0.0  ;;  %v3608_v2 = vadd.f32 %v12601_v39, %v12580_v27 }
 0x6c2   :  { %v3880_v17 = vpop.f32.mrf.mxu1  ;;  %v12687_v58 = vpop.f32.mrf.mxu0 }
 0x6c3   :  { %v4135_v21 = vpack.c.bf16 %v4080_v11, %v4079_v43  ;;  %v3881_v25 = vadd.f32 %v3880_v17, %v3592_v8 }
 0x6c4   :  { %v3882_v44 = vpop.f32.mrf.mxu1  ;;  %v3721_v42 = vpop.f32.mrf.mxu0 }
 0x6c5   :  { %10346 = vmatprep.mubr.msk.bf16.mxu0 %vm173_vm0, %v4135_v21  ;;  %v4081_v7 = vmax.f32 %v3881_v25, 0.0  ;;  %v3611_v21 = vadd.f32 %v12601_v39, %v12582_v4 }
 0x6c6   :  { %v3883_v50 = vpop.f32.mrf.mxu1  ;;  %v12692_v61 = vpop.f32.mrf.mxu0 }
 0x6c7   :  { %v3884_v29 = vadd.f32 %v3883_v50, %v3595_v26 }
 0x6c8   :  { %v3885_v53 = vpop.f32.mrf.mxu1  ;;  %v3724_v63 = vpop.f32.mrf.mxu0 }
 0x6c9   :  { %v4082_v10 = vmax.f32 %v3884_v29, 0.0  ;;  %v3616_v29 = vadd.f32 %v12601_v39, %v12584_v40 }
 0x6ca   :  { %v3888_v33 = vpop.f32.mrf.mxu1  ;;  %v12696_v14 = vpop.f32.mrf.mxu0 }
 0x6cb   :  { %v4136_v60 = vpack.c.bf16 %v4082_v10, %v4081_v7  ;;  %v3889_v1 = vadd.f32 %v3888_v33, %v3600_v36 }
 0x6cc   :  { %v3890_v30 = vpop.f32.mrf.mxu1  ;;  %v3729_v15 = vpop.f32.mrf.mxu0 }
 0x6cd   :  { %10347 = vmatmul.mubr.msk.bf16.gmra.mxu0 %vm173_vm0, %v4136_v60  ;;  %v4083_v34 = vmax.f32 %v3889_v1, 0.0  ;;  %v3619_v60 = vadd.f32 %v12601_v39, %v12586_v41 }
 0x6ce   :  { %v3891_v5 = vpop.f32.mrf.mxu1  ;;  %v12701_v20 = vpop.f32.mrf.mxu0 }
 0x6cf   :  { %v3892_v62 = vadd.f32 %v3891_v5, %v3603_v56 }
 0x6d0   :  { %v3893_v31 = vpop.f32.mrf.mxu1  ;;  %v3732_v9 = vpop.f32.mrf.mxu0 }
 0x6d1   :  { %v4084_v54 = vmax.f32 %v3892_v62, 0.0  ;;  %v3624_v62 = vadd.f32 %v12601_v39, %v12588_v46 }
 0x6d2   :  { %v3896_v8 = vpop.f32.mrf.mxu1  ;;  %v12705_v43 = vpop.f32.mrf.mxu0 }
 0x6d3   :  { %v4137_v11 = vpack.c.bf16 %v4084_v54, %v4083_v34  ;;  %v3897_v44 = vadd.f32 %v3896_v8, %v3608_v2 }
 0x6d4   :  { %v3898_v17 = vpop.f32.mrf.mxu1  ;;  %v3737_v23 = vpop.f32.mrf.mxu0 }
 0x6d5   :  { %10350 = vmatprep.mubr.msk.bf16.mxu0 %vm173_vm0, %v4137_v11  ;;  %v4085_v53 = vmax.f32 %v3897_v44, 0.0  ;;  %v3627_v11 = vadd.f32 %v12601_v39, %v12590_v19 }
 0x6d6   :  { %v3899_v42 = vpop.f32.mrf.mxu1  ;;  %v12710_v26 = vpop.f32.mrf.mxu0 }
 0x6d7   :  { %v3900_v25 = vadd.f32 %v3899_v42, %v3611_v21 }
 0x6d8   :  { %v3901_v50 = vpop.f32.mrf.mxu1  ;;  %v3740_v27 = vpop.f32.mrf.mxu0 }
 0x6d9   :  { %v4086_v63 = vmax.f32 %v3900_v25, 0.0  ;;  %v3632_v25 = vadd.f32 %v12601_v39, %v12592_v55 }
 0x6da   :  { %v3904_v36 = vpop.f32.mrf.mxu1  ;;  %v12714_v7 = vpop.f32.mrf.mxu0 }
 0x6db   :  { %v4138_v10 = vpack.c.bf16 %v4086_v63, %v4085_v53  ;;  %v3905_v30 = vadd.f32 %v3904_v36, %v3616_v29 }
 0x6dc   :  { %v3906_v33 = vpop.f32.mrf.mxu1  ;;  %v3745_v4 = vpop.f32.mrf.mxu0 }
 0x6dd   :  { %10351 = vmatmul.mubr.msk.bf16.gmra.mxu0 %vm173_vm0, %v4138_v10  ;;  %v4087_v31 = vmax.f32 %v3905_v30, 0.0  ;;  %v3635_v10 = vadd.f32 %v12601_v39, %v12594_v28 }
 0x6de   :  { %v3907_v15 = vpop.f32.mrf.mxu1  ;;  %v12719_v56 = vpop.f32.mrf.mxu0 }
 0x6df   :  { %v3908_v1 = vadd.f32 %v3907_v15, %v3619_v60 }
 0x6e0   :  { %v3909_v5 = vpop.f32.mrf.mxu1  ;;  %v3748_v40 = vpop.f32.mrf.mxu0 }
 0x6e1   :  { %v4088_v9 = vmax.f32 %v3908_v1, 0.0  ;;  %v3640_v1 = vadd.f32 %v12601_v39, %v12596_v45 }
 0x6e2   :  { %v3912_v2 = vpop.f32.mrf.mxu1  ;;  %v12723_v34 = vpop.f32.mrf.mxu0 }
 0x6e3   :  { %v4139_v54 = vpack.c.bf16 %v4088_v9, %v4087_v31  ;;  %v3913_v17 = vadd.f32 %v3912_v2, %v3624_v62 }
 0x6e4   :  { %v3914_v8 = vpop.f32.mrf.mxu1  ;;  %v3753_v41 = vpop.f32.mrf.mxu0 }
 0x6e5   :  { %10354 = vmatprep.mubr.msk.bf16.mxu0 %vm173_vm0, %v4139_v54  ;;  %v4089_v50 = vmax.f32 %v3913_v17, 0.0  ;;  %v3643_v54 = vadd.f32 %v12601_v39, %v12603_v52  ;;  %v3651_v52 = vadd.f32 %v12601_v39, %v12611_v24 }
 0x6e6   :  { %v3915_v23 = vpop.f32.mrf.mxu1  ;;  %v12728_v21 = vpop.f32.mrf.mxu0 }
 0x6e7   :  { %v3916_v44 = vadd.f32 %v3915_v23, %v3627_v11 }
 0x6e8   :  { %v3917_v42 = vpop.f32.mrf.mxu1  ;;  %v3756_v46 = vpop.f32.mrf.mxu0 }
 0x6e9   :  { %v4090_v27 = vmax.f32 %v3916_v44, 0.0  ;;  %v3648_v44 = vadd.f32 %v12601_v39, %v12607_v47 }
 0x6ea   :  { %v3920_v29 = vpop.f32.mrf.mxu1  ;;  %v12732_v53 = vpop.f32.mrf.mxu0 }
 0x6eb   :  { %v4140_v63 = vpack.c.bf16 %v4090_v27, %v4089_v50  ;;  %v3921_v33 = vadd.f32 %v3920_v29, %v3632_v25 }
 0x6ec   :  { %v3922_v36 = vpop.f32.mrf.mxu1  ;;  %v3761_v19 = vpop.f32.mrf.mxu0 }
 0x6ed   :  { %10355 = vmatmul.mubr.msk.bf16.gmra.mxu0 %vm173_vm0, %v4140_v63  ;;  %v4091_v5 = vmax.f32 %v3921_v33, 0.0 }
 0x6ee   :  { %v3923_v4 = vpop.f32.mrf.mxu1  ;;  %v12737_v60 = vpop.f32.mrf.mxu0 }
 0x6ef   :  { %v3924_v30 = vadd.f32 %v3923_v4, %v3635_v10  ;;  %v3656_v10 = vadd.f32 %v12601_v39, %v12615_v12 }
 0x6f0   :  { %v3925_v15 = vpop.f32.mrf.mxu1  ;;  %v3764_v55 = vpop.f32.mrf.mxu0 }
 0x6f1   :  { %v4092_v40 = vmax.f32 %v3924_v30, 0.0  ;;  %v3659_v55 = vadd.f32 %v12601_v39, %v12620_v13 }
 0x6f2   :  { %v3928_v62 = vpop.f32.mrf.mxu1  ;;  %v12741_v31 = vpop.f32.mrf.mxu0 }
 0x6f3   :  { %v4141_v9 = vpack.c.bf16 %v4092_v40, %v4091_v5  ;;  %v3929_v8 = vadd.f32 %v3928_v62, %v3640_v1  ;;  %v3664_v62 = vadd.f32 %v12601_v39, %v12624_v49 }
 0x6f4   :  { %v3930_v2 = vpop.f32.mrf.mxu1  ;;  %v3769_v28 = vpop.f32.mrf.mxu0 }
 0x6f5   :  { %10358 = vmatprep.mubr.msk.bf16.mxu0 %vm173_vm0, %v4141_v9  ;;  %v4093_v42 = vmax.f32 %v3929_v8, 0.0  ;;  %v3667_v8 = vadd.f32 %v12601_v39, %v12629_v22 }
 0x6f6   :  { %v3931_v41 = vpop.f32.mrf.mxu1  ;;  %v12746_v11 = vpop.f32.mrf.mxu0 }
 0x6f7   :  { %v3932_v17 = vadd.f32 %v3931_v41, %v3643_v54 }
 0x6f8   :  { %v3933_v23 = vpop.f32.mrf.mxu1  ;;  %v3772_v45 = vpop.f32.mrf.mxu0 }
 0x6f9   :  { %v4094_v46 = vmax.f32 %v3932_v17, 0.0  ;;  %v3672_v45 = vadd.f32 %v12601_v39, %v12633_v51 }
 0x6fa   :  { %v3936_v25 = vpop.f32.mrf.mxu1 }
 0x6fb   :  { %v4142_v50 = vpack.c.bf16 %v4094_v46, %v4093_v42  ;;  %v3937_v29 = vadd.f32 %v3936_v25, %v3648_v44 }
 0x6fc   :  { %v3938_v27 = vpop.f32.mrf.mxu1 }
 0x6fd   :  { %10359 = vmatmul.mubr.msk.bf16.gmra.mxu0 %vm173_vm0, %v4142_v50  ;;  %v4095_v33 = vmax.f32 %v3937_v29, 0.0  ;;  %v3675_v50 = vadd.f32 %v12601_v39, %v12638_v18 }
 0x6fe   :  { %v3939_v63 = vpop.f32.mrf.mxu1 }
 0x6ff   :  { %v3940_v36 = vadd.f32 %v3939_v63, %v3651_v52  ;;  %v3680_v63 = vadd.f32 %v12601_v39, %v12642_v16 }
 0x700   :  { %v3941_v19 = vpop.f32.mrf.mxu1 }
 0x701   :  { %v4096_v4 = vmax.f32 %v3940_v36, 0.0 }
 0x702   :  { %v3944_v47 = vpop.f32.mrf.mxu1 }
 0x703   :  { %v4143_v30 = vpack.c.bf16 %v4096_v4, %v4095_v33  ;;  %v3945_v1 = vadd.f32 %v3944_v47, %v3656_v10  ;;  %v3683_v4 = vadd.f32 %v12601_v39, %v12647_v35 }
 0x704   :  { %v3946_v15 = vpop.f32.mrf.mxu1 }
 0x705   :  { %10362 = vmatprep.mubr.msk.bf16.mxu0 %vm173_vm0, %v4143_v30  ;;  %v4097_v9 = vmax.f32 %v3945_v1, 0.0 }
 0x706   :  { %v3947_v24 = vpop.f32.mrf.mxu1 }
 0x707   :  { %v3948_v5 = vadd.f32 %v3947_v24, %v3659_v55  ;;  %v3688_v55 = vadd.f32 %v12601_v39, %v12651_v57 }
 0x708   :  { %v3949_v40 = vpop.f32.mrf.mxu1 }
 0x709   :  { %v4098_v2 = vmax.f32 %v3948_v5, 0.0 }
 0x70a   :  { %v3952_v12 = vpop.f32.mrf.mxu1 }
 0x70b   :  { %v4144_v28 = vpack.c.bf16 %v4098_v2, %v4097_v9  ;;  %v3953_v41 = vadd.f32 %v3952_v12, %v3664_v62  ;;  %v3691_v62 = vadd.f32 %v12601_v39, %v12656_v48 }
 0x70c   :  { %v3954_v54 = vpop.f32.mrf.mxu1 }
 0x70d   :  { %10363 = vmatmul.mubr.msk.bf16.gmra.mxu0 %vm173_vm0, %v4144_v28  ;;  %v4099_v44 = vmax.f32 %v3953_v41, 0.0  ;;  %v3696_v28 = vadd.f32 %v12601_v39, %v12660_v38 }
 0x70e   :  { %v3955_v13 = vpop.f32.mrf.mxu1 }
 0x70f   :  { %v3956_v17 = vadd.f32 %v3955_v13, %v3667_v8 }
 0x710   :  { %v3957_v23 = vpop.f32.mrf.mxu1 }
 0x711   :  { %v4100_v42 = vmax.f32 %v3956_v17, 0.0  ;;  %v3699_v17 = vadd.f32 %v12601_v39, %v12665_v59 }
 0x712   :  { %v3960_v49 = vpop.f32.mrf.mxu1 }
 0x713   :  { %v4145_v46 = vpack.c.bf16 %v4100_v42, %v4099_v44  ;;  %v3961_v27 = vadd.f32 %v3960_v49, %v3672_v45  ;;  %v3704_v42 = vadd.f32 %v12601_v39, %v12669_v0 }
 0x714   :  { %v3962_v25 = vpop.f32.mrf.mxu1 }
 0x715   :  { %10366 = vmatprep.mubr.msk.bf16.mxu0 %vm173_vm0, %v4145_v46  ;;  %v4101_v36 = vmax.f32 %v3961_v27, 0.0  ;;  %v3707_v27 = vadd.f32 %v12601_v39, %v12674_v3 }
 0x716   :  { %v3963_v22 = vpop.f32.mrf.mxu1 }
 0x717   :  { %v3964_v52 = vadd.f32 %v3963_v22, %v3675_v50 }
 0x718   :  { %v3965_v29 = vpop.f32.mrf.mxu1 }
 0x719   :  { %v4102_v19 = vmax.f32 %v3964_v52, 0.0 }
 0x71a   :  { %v3968_v51 = vpop.f32.mrf.mxu1 }
 0x71b   :  { %v4146_v10 = vpack.c.bf16 %v4102_v19, %v4101_v36  ;;  %v3969_v47 = vadd.f32 %v3968_v51, %v3680_v63  ;;  %v3712_v63 = vadd.f32 %v12601_v39, %v12678_v37 }
 0x71c   :  { %v3970_v33 = vpop.f32.mrf.mxu1 }
 0x71d   :  { %10367 = vmatmul.mubr.msk.bf16.gmra.mxu0 %vm173_vm0, %v4146_v10  ;;  %v4103_v1 = vmax.f32 %v3969_v47, 0.0  ;;  %v3715_v33 = vadd.f32 %v12601_v39, %v12683_v32 }
 0x71e   :  { %v3971_v18 = vpop.f32.mrf.mxu1 }
 0x71f   :  { %v3972_v30 = vadd.f32 %v3971_v18, %v3683_v4 }
 0x720   :  { %v3973_v15 = vpop.f32.mrf.mxu1 }
 0x721   :  { %v4104_v24 = vmax.f32 %v3972_v30, 0.0  ;;  %v3720_v30 = vadd.f32 %v12601_v39, %v12687_v58 }
 0x722   :  { %v3976_v16 = vpop.f32.mrf.mxu1 }
 0x723   :  { %v4147_v5 = vpack.c.bf16 %v4104_v24, %v4103_v1  ;;  %v3977_v9 = vadd.f32 %v3976_v16, %v3688_v55  ;;  %v3723_v16 = vadd.f32 %v12601_v39, %v12692_v61 }
 0x724   :  { %v3978_v40 = vpop.f32.mrf.mxu1 }
 0x725   :  { %10370 = vmatprep.mubr.msk.bf16.mxu0 %vm173_vm0, %v4147_v5  ;;  %v4105_v54 = vmax.f32 %v3977_v9, 0.0  ;;  %v3728_v9 = vadd.f32 %v12601_v39, %v12696_v14 }
 0x726   :  { %v3979_v35 = vpop.f32.mrf.mxu1 }
 0x727   :  { %v3980_v2 = vadd.f32 %v3979_v35, %v3691_v62 }
 0x728   :  { %v3981_v12 = vpop.f32.mrf.mxu1 }
 0x729   :  { %v4106_v8 = vmax.f32 %v3980_v2, 0.0 }
 0x72a   :  { %v3984_v57 = vpop.f32.mrf.mxu1 }
 0x72b   :  { %v4148_v41 = vpack.c.bf16 %v4106_v8, %v4105_v54  ;;  %v3985_v23 = vadd.f32 %v3984_v57, %v3696_v28  ;;  %v3731_v54 = vadd.f32 %v12601_v39, %v12701_v20 }
 0x72c   :  { %v3986_v13 = vpop.f32.mrf.mxu1 }
 0x72d   :  { %10371 = vmatmul.mubr.msk.bf16.gmra.mxu0 %vm173_vm0, %v4148_v41  ;;  %v4107_v49 = vmax.f32 %v3985_v23, 0.0  ;;  %v3736_v13 = vadd.f32 %v12601_v39, %v12705_v43  ;;  %v3744_v43 = vadd.f32 %v12601_v39, %v12714_v7  ;;  %v3752_v7 = vadd.f32 %v12601_v39, %v12723_v34 }
 0x72e   :  { %v3987_v48 = vpop.f32.mrf.mxu1  ;;  %v3760_v34 = vadd.f32 %v12601_v39, %v12732_v53  ;;  %v3768_v53 = vadd.f32 %v12601_v39, %v12741_v31 }
 0x72f   :  { %v3988_v45 = vadd.f32 %v3987_v48, %v3699_v17 }
 0x730   :  { %v3989_v44 = vpop.f32.mrf.mxu1 }
 0x731   :  { %v4108_v46 = vmax.f32 %v3988_v45, 0.0 }
 0x732   :  { %v3992_v38 = vpop.f32.mrf.mxu1 }
 0x733   :  { %v4149_v25 = vpack.c.bf16 %v4108_v46, %v4107_v49  ;;  %v3993_v22 = vadd.f32 %v3992_v38, %v3704_v42  ;;  %v3739_v42 = vadd.f32 %v12601_v39, %v12710_v26  ;;  %v3747_v26 = vadd.f32 %v12601_v39, %v12719_v56 }
 0x734   :  { %v3994_v50 = vpop.f32.mrf.mxu1  ;;  %v3755_v56 = vadd.f32 %v12601_v39, %v12728_v21  ;;  %v3763_v21 = vadd.f32 %v12601_v39, %v12737_v60  ;;  %v3771_v60 = vadd.f32 %v12601_v39, %v12746_v11 }
 0x735   :  { %10374 = vmatprep.mubr.msk.bf16.mxu0 %vm173_vm0, %v4149_v25  ;;  %v4109_v36 = vmax.f32 %v3993_v22, 0.0 }
 0x736   :  { %v3995_v59 = vpop.f32.mrf.mxu1 }
 0x737   :  { %v3996_v52 = vadd.f32 %v3995_v59, %v3707_v27 }
 0x738   :  { %v3997_v29 = vpop.f32.mrf.mxu1 }
 0x739   :  { %v4110_v19 = vmax.f32 %v3996_v52, 0.0 }
 0x73a   :  { %v4000_v0 = vpop.f32.mrf.mxu1 }
 0x73b   :  { %v4150_v51 = vpack.c.bf16 %v4110_v19, %v4109_v36  ;;  %v4001_v4 = vadd.f32 %v4000_v0, %v3712_v63 }
 0x73c   :  { %v4002_v10 = vpop.f32.mrf.mxu1 }
 0x73d   :  { %10375 = vmatmul.mubr.msk.bf16.gmra.mxu0 %vm173_vm0, %v4150_v51  ;;  %v4111_v15 = vmax.f32 %v4001_v4, 0.0 }
 0x73e   :  { %v4003_v3 = vpop.f32.mrf.mxu1 }
 0x73f   :  { %v4004_v47 = vadd.f32 %v4003_v3, %v3715_v33 }
 0x740   :  { %v4005_v18 = vpop.f32.mrf.mxu1 }
 0x741   :  { %v4112_v55 = vmax.f32 %v4004_v47, 0.0 }
 0x742   :  { %v4008_v37 = vpop.f32.mrf.mxu1 }
 0x743   :  { %v4151_v1 = vpack.c.bf16 %v4112_v55, %v4111_v15  ;;  %v4009_v5 = vadd.f32 %v4008_v37, %v3720_v30 }
 0x744   :  { %v4010_v24 = vpop.f32.mrf.mxu1 }
 0x745   :  { %10378 = vmatprep.mubr.msk.bf16.mxu0 %vm173_vm0, %v4151_v1  ;;  %v4113_v35 = vmax.f32 %v4009_v5, 0.0 }
 0x746   :  { %v4011_v32 = vpop.f32.mrf.mxu1 }
 0x747   :  { %v4012_v40 = vadd.f32 %v4011_v32, %v3723_v16 }
 0x748   :  { %v4013_v62 = vpop.f32.mrf.mxu1 }
 0x749   :  { %v4114_v2 = vmax.f32 %v4012_v40, 0.0 }
 0x74a   :  { %v4016_v58 = vpop.f32.mrf.mxu1 }
 0x74b   :  { %v4152_v12 = vpack.c.bf16 %v4114_v2, %v4113_v35  ;;  %v4017_v8 = vadd.f32 %v4016_v58, %v3728_v9 }
 0x74c   :  { %v4018_v28 = vpop.f32.mrf.mxu1 }
 0x74d   :  { %10379 = vmatmul.mubr.msk.bf16.gmra.mxu0 %vm173_vm0, %v4152_v12  ;;  %v4115_v17 = vmax.f32 %v4017_v8, 0.0  ;;  %v12805_v48 = vpop.f32.mrf.mxu0 }
 0x74e   :  { %v4019_v61 = vpop.f32.mrf.mxu1 }
 0x74f   :  { %v4020_v57 = vadd.f32 %v4019_v61, %v3731_v54  ;;  %v12810_v46 = vpop.f32.mrf.mxu0 }
 0x750   :  { %v4021_v41 = vpop.f32.mrf.mxu1 }
 0x751   :  { %v4116_v23 = vmax.f32 %v4020_v57, 0.0  ;;  %v12814_v59 = vpop.f32.mrf.mxu0 }
 0x752   :  { %v4024_v14 = vpop.f32.mrf.mxu1 }
 0x753   :  { %v4153_v45 = vpack.c.bf16 %v4116_v23, %v4115_v17  ;;  %v4025_v20 = vadd.f32 %v4024_v14, %v3736_v13  ;;  %v12819_v19 = vpop.f32.mrf.mxu0 }
 0x754   :  { %v4026_v44 = vpop.f32.mrf.mxu1 }
 0x755   :  { %10382 = vmatprep.mubr.msk.bf16.mxu0 %vm173_vm0, %v4153_v45  ;;  %v4117_v50 = vmax.f32 %v4025_v20, 0.0 }
 0x756   :  { %v4027_v49 = vpop.f32.mrf.mxu1 }
 0x757   :  { %v4028_v38 = vadd.f32 %v4027_v49, %v3739_v42 }
 0x758   :  { %v4029_v25 = vpop.f32.mrf.mxu1 }
 0x759   :  { %v4118_v27 = vmax.f32 %v4028_v38, 0.0  ;;  %v11013_v25 = vld [vmem:[#allocation2 + $0xc] ss:$16 sps:$4 sm:$0xff]  }
 0x75a   :  { %v4032_v22 = vpop.f32.mrf.mxu1 }
 0x75b   :  { %v4154_v52 = vpack.c.bf16 %v4118_v27, %v4117_v50  ;;  %v4033_v63 = vadd.f32 %v4032_v22, %v3744_v43 }
 0x75c   :  { %v4034_v29 = vpop.f32.mrf.mxu1 }
 0x75d   :  { %10383 = vmatmul.mubr.msk.bf16.gmra.mxu0 %vm173_vm0, %v4154_v52  ;;  %v4119_v10 = vmax.f32 %v4033_v63, 0.0  ;;  %v12823_v33 = vpop.f32.mrf.mxu0 }
 0x75e   :  { %v4035_v36 = vpop.f32.mrf.mxu1 }
 0x75f   :  { %v4036_v0 = vadd.f32 %v4035_v36, %v3747_v26  ;;  %v12827_v30 = vpop.f32.mrf.mxu0 }
 0x760   :  { %v4037_v51 = vpop.f32.mrf.mxu1 }
 0x761   :  { %v4120_v4 = vmax.f32 %v4036_v0, 0.0  ;;  %v10337_v24 = vpop.f32.mrf.mxu0  ;;  %v4562_v0 = vpack.c.bf16 %v12814_v59, %v12805_v48 }
 0x762   :  { %v4040_v3 = vpop.f32.mrf.mxu1  ;;  %v4564_v29 = vpack.c.bf16 %v10337_v24, %v12823_v33 }
 0x763   :  { %v4155_v47 = vpack.c.bf16 %v4120_v4, %v4119_v10  ;;  %v4041_v15 = vadd.f32 %v4040_v3, %v3752_v7  ;;  %v4325_v9 = vpop.f32.mrf.mxu0  ;;  %v4561_v7 = vpack.c.bf16 %v12819_v19, %v12810_v46 }
 0x764   :  { %v4042_v18 = vpop.f32.mrf.mxu1  ;;  %v4563_v63 = vpack.c.bf16 %v4325_v9, %v12827_v30 }
 0x765   :  { %10386 = vmatprep.mubr.msk.bf16.mxu0 %vm173_vm0, %v4155_v47  ;;  %v4121_v16 = vmax.f32 %v4041_v15, 0.0 }
 0x766   :  { %v4043_v55 = vpop.f32.mrf.mxu1 }
 0x767   :  { %v4044_v37 = vadd.f32 %v4043_v55, %v3755_v56 }
 0x768   :  { %v4045_v1 = vpop.f32.mrf.mxu1 }
 0x769   :  { %v4122_v5 = vmax.f32 %v4044_v37, 0.0 }
 0x76a   :  { %v4048_v32 = vpop.f32.mrf.mxu1 }
 0x76b   :  { %v4156_v40 = vpack.c.bf16 %v4122_v5, %v4121_v16  ;;  %v4049_v35 = vadd.f32 %v4048_v32, %v3760_v34 }
 0x76c   :  { %v4050_v62 = vpop.f32.mrf.mxu1 }
 0x76d   :  { %10387 = vmatmul.mubr.msk.bf16.gmra.mxu0 %vm173_vm0, %v4156_v40  ;;  %v10340_v58 = vpop.f32.mrf.mxu0  ;;  %v4123_v54 = vmax.f32 %v4049_v35, 0.0 }
 0x76e   :  { %v4051_v2 = vpop.f32.mrf.mxu1 }
 0x76f   :  { %v4052_v12 = vadd.f32 %v4051_v2, %v3763_v21  ;;  %v4338_v41 = vpop.f32.mrf.mxu0  ;;  %v11014_v2 = vld [vmem:[#allocation2] ss:$16 sps:$4 sm:$0xff]  }
 0x770   :  { %v4053_v28 = vpop.f32.mrf.mxu1 }
 0x771   :  { %v4124_v8 = vmax.f32 %v4052_v12, 0.0  ;;  %v10341_v14 = vpop.f32.mrf.mxu0 }
 0x772   :  { %v4056_v61 = vpop.f32.mrf.mxu1  ;;  %v4566_v22 = vpack.c.bf16 %v10341_v14, %v10340_v58  ;;  %v11015_v58 = vld [vmem:[#allocation2 + $0x24] ss:$16 sps:$4 sm:$0xff]  }
 0x773   :  { %v4157_v57 = vpack.c.bf16 %v4124_v8, %v4123_v54  ;;  %v4057_v17 = vadd.f32 %v4056_v61, %v3768_v53  ;;  %v4341_v49 = vpop.f32.mrf.mxu0  ;;  %v11016_v53 = vld [vmem:[#allocation2 + $0x20] ss:$16 sps:$4 sm:$0xff]   ;;  %v11017_v54 = vld [vmem:[#allocation2 + $0x44] ss:$16 sps:$4 sm:$0xff]  }
 0x774   :  { %v4058_v13 = vpop.f32.mrf.mxu1  ;;  %v4565_v52 = vpack.c.bf16 %v4341_v49, %v4338_v41  ;;  %v11018_v41 = vld [vmem:[#allocation2 + $0x40] ss:$16 sps:$4 sm:$0xff]   ;;  %v11021_v14 = vld [vmem:[#allocation2 + $0x84] ss:$16 sps:$4 sm:$0xff]  }
 0x775   :  { %10390 = vmatprep.mubr.msk.bf16.mxu0 %vm173_vm0, %v4157_v57  ;;  %v4125_v42 = vmax.f32 %v4057_v17, 0.0  ;;  %v11019_v13 = vld [vmem:[#allocation2 + $0x64] ss:$16 sps:$4 sm:$0xff]  }
 0x776   :  { %v4059_v23 = vpop.f32.mrf.mxu1 }
 0x777   :  { %v4060_v45 = vadd.f32 %v4059_v23, %v3771_v60  ;;  %v11020_v23 = vld [vmem:[#allocation2 + $0x60] ss:$16 sps:$4 sm:$0xff]  }
 0x778   :  { %v4061_v44 = vpop.f32.mrf.mxu1 }
 0x779   :  { %v4126_v20 = vmax.f32 %v4060_v45, 0.0 }
 0x77b   :  { %v4158_v31 = vpack.c.bf16 %v4126_v20, %v4125_v42 }
 0x77d   :  { %v10344_v38 = vpop.f32.mrf.mxu0  ;;  %10391 = vmatmul.mubr.msk.bf16.gmra.mxu0 %vm173_vm0, %v4158_v31  ;;  %v11022_v31 = vld [vmem:[#allocation2 + $0x80] ss:$16 sps:$4 sm:$0xff]  }
 0x77e   :  { %4922 = vmatprep.mubr.bf16.mxu0 %v11013_v25 }
 0x77f   :  { %v4354_v43 = vpop.f32.mrf.mxu0 }
 0x781   :  { %v10345_v50 = vpop.f32.mrf.mxu0 }
 0x782   :  { %v4568_v27 = vpack.c.bf16 %v10345_v50, %v10344_v38  ;;  %v11023_v38 = vld [vmem:[#allocation2 + $0xa4] ss:$16 sps:$4 sm:$0xff]   ;;  %v11024_v50 = vld [vmem:[#allocation2 + $0xa0] ss:$16 sps:$4 sm:$0xff]  }
 0x783   :  { %v4357_v39 = vpop.f32.mrf.mxu0 }
 0x784   :  { %4602 = vmatpush1.bf16.msra.mxu1 %v4568_v27  ;;  %v4567_v11 = vpack.c.bf16 %v4357_v39, %v4354_v43  ;;  %v11025_v27 = vld [vmem:[#allocation2 + $0xc4] ss:$16 sps:$4 sm:$0xff]  }
 0x785   :  { %4603 = vmatprep.subr.bf16.mxu1 %v11571_v6 }
 0x788   :  { %4604 = vmatpush1.bf16.msra.mxu1 %v4567_v11 }
 0x789   :  { %4605 = vmatprep.subr.bf16.mxu1 %v11571_v6 }
 0x78c   :  { %4606 = vmatpush1.bf16.msra.mxu1 %v4566_v22 }
 0x78d   :  { %4607 = vmatprep.subr.bf16.mxu1 %v11571_v6  ;;  %v10348_v26 = vpop.f32.mrf.mxu0 }
 0x78f   :  { %v4370_v36 = vpop.f32.mrf.mxu0 }
 0x790   :  { %4608 = vmatpush1.bf16.msra.mxu1 %v4565_v52  ;;  %v11026_v52 = vld [vmem:[#allocation2 + $0xc0] ss:$16 sps:$4 sm:$0xff]  }
 0x791   :  { %4609 = vmatprep.subr.bf16.mxu1 %v11571_v6  ;;  %v10349_v51 = vpop.f32.mrf.mxu0 }
 0x792   :  { %v4570_v40 = vpack.c.bf16 %v10349_v51, %v10348_v26  ;;  %v11028_v51 = vld [vmem:[#allocation2 + $0xe0] ss:$16 sps:$4 sm:$0xff]  }
 0x793   :  { %v4373_v10 = vpop.f32.mrf.mxu0 }
 0x794   :  { %4610 = vmatpush1.bf16.msra.mxu1 %v4564_v29  ;;  %v4569_v21 = vpack.c.bf16 %v4373_v10, %v4370_v36  ;;  %v11027_v29 = vld [vmem:[#allocation2 + $0xe4] ss:$16 sps:$4 sm:$0xff]  }
 0x795   :  { %4611 = vmatprep.subr.bf16.mxu1 %v11571_v6 }
 0x798   :  { %4612 = vmatpush1.bf16.msra.mxu1 %v4563_v63 }
 0x799   :  { %4613 = vmatprep.subr.bf16.mxu1 %v11571_v6 }
 0x79c   :  { %4614 = vmatpush1.bf16.msra.mxu1 %v4562_v0 }
 0x79d   :  { %4615 = vmatprep.subr.bf16.mxu1 %v11571_v6  ;;  %v10352_v33 = vpop.f32.mrf.mxu0 }
 0x79f   :  { %v4386_v4 = vpop.f32.mrf.mxu0 }
 0x7a0   :  { %4616 = vmatpush1.bf16.msra.mxu1 %v4561_v7  ;;  %v11029_v7 = vld [vmem:[#allocation2 + $0x104] ss:$16 sps:$4 sm:$0xff]  }
 0x7a1   :  { %4617 = vmatprep.subr.bf16.mxu1 %v11571_v6  ;;  %v10353_v3 = vpop.f32.mrf.mxu0 }
 0x7a2   :  { %v4572_v24 = vpack.c.bf16 %v10353_v3, %v10352_v33  ;;  %v11030_v3 = vld [vmem:[#allocation2 + $0x100] ss:$16 sps:$4 sm:$0xff]  }
 0x7a3   :  { %v4389_v47 = vpop.f32.mrf.mxu0 }
 0x7a4   :  { %v4571_v5 = vpack.c.bf16 %v4389_v47, %v4386_v4  ;;  %v11031_v47 = vld [vmem:[#allocation2 + $0x124] ss:$16 sps:$4 sm:$0xff]  }
 0x7ad   :  { %v10356_v18 = vpop.f32.mrf.mxu0 }
 0x7af   :  { %v4402_v56 = vpop.f32.mrf.mxu0 }
 0x7b1   :  { %v10357_v30 = vpop.f32.mrf.mxu0 }
 0x7b2   :  { %v4574_v19 = vpack.c.bf16 %v10357_v30, %v10356_v18  ;;  %v11032_v30 = vld [vmem:[#allocation2 + $0x120] ss:$16 sps:$4 sm:$0xff]  }
 0x7b3   :  { %v4405_v15 = vpop.f32.mrf.mxu0 }
 0x7b4   :  { %v4573_v34 = vpack.c.bf16 %v4405_v15, %v4402_v56  ;;  %v11033_v15 = vld [vmem:[#allocation2 + $0x144] ss:$16 sps:$4 sm:$0xff]  }
 0x7bd   :  { %v10360_v48 = vpop.f32.mrf.mxu0 }
 0x7bf   :  { %v4418_v59 = vpop.f32.mrf.mxu0 }
 0x7c1   :  { %v10361_v55 = vpop.f32.mrf.mxu0 }
 0x7c2   :  { %v4576_v37 = vpack.c.bf16 %v10361_v55, %v10360_v48 }
 0x7c3   :  { %v4421_v1 = vpop.f32.mrf.mxu0 }
 0x7c4   :  { %4618 = vmatpush2.bf16.msra.mxu1 %v4576_v37  ;;  %v4575_v46 = vpack.c.bf16 %v4421_v1, %v4418_v59  ;;  %v11034_v37 = vld [vmem:[#allocation2 + $0x140] ss:$16 sps:$4 sm:$0xff]   ;;  %v11035_v1 = vld [vmem:[#allocation2 + $0x164] ss:$16 sps:$4 sm:$0xff]  }
 0x7c5   :  { %4619 = vmatprep.subr.bf16.mxu1 %v11571_v6 }
 0x7c8   :  { %4620 = vmatpush2.bf16.msra.mxu1 %v4575_v46 }
 0x7c9   :  { %4621 = vmatprep.subr.bf16.mxu1 %v11571_v6 }
 0x7cc   :  { %4622 = vmatpush2.bf16.msra.mxu1 %v4574_v19 }
 0x7cd   :  { %4623 = vmatprep.subr.bf16.mxu1 %v11571_v6  ;;  %v12859_v16 = vpop.f32.mrf.mxu0 }
 0x7cf   :  { %v12862_v32 = vpop.f32.mrf.mxu0 }
 0x7d0   :  { %4624 = vmatpush2.bf16.msra.mxu1 %v4573_v34  ;;  %v11036_v34 = vld [vmem:[#allocation2 + $0x160] ss:$16 sps:$4 sm:$0xff]  }
 0x7d1   :  { %4625 = vmatprep.subr.bf16.mxu1 %v11571_v6  ;;  %v12865_v62 = vpop.f32.mrf.mxu0 }
 0x7d2   :  { %v4578_v36 = vpack.c.bf16 %v12865_v62, %v12859_v16 }
 0x7d3   :  { %v12868_v9 = vpop.f32.mrf.mxu0 }
 0x7d4   :  { %4626 = vmatpush2.bf16.msra.mxu1 %v4572_v24  ;;  %v4577_v10 = vpack.c.bf16 %v12868_v9, %v12862_v32  ;;  %v11037_v24 = vld [vmem:[#allocation2 + $0x184] ss:$16 sps:$4 sm:$0xff]  }
 0x7d5   :  { %4627 = vmatprep.subr.bf16.mxu1 %v11571_v6  ;;  %v11039_v9 = vld [vmem:[#allocation2 + $0x1a4] ss:$16 sps:$4 sm:$0xff]  }
 0x7d8   :  { %4628 = vmatpush2.bf16.msra.mxu1 %v4571_v5 }
 0x7d9   :  { %4629 = vmatprep.subr.bf16.mxu1 %v11571_v6 }
 0x7dc   :  { %4630 = vmatpush2.bf16.msra.mxu1 %v4570_v40 }
 0x7dd   :  { %4631 = vmatprep.subr.bf16.mxu1 %v11571_v6  ;;  %v10368_v35 = vpop.f32.mrf.mxu0 }
 0x7df   :  { %v4450_v12 = vpop.f32.mrf.mxu0 }
 0x7e0   :  { %4632 = vmatpush2.bf16.msra.mxu1 %v4569_v21  ;;  %v11038_v21 = vld [vmem:[#allocation2 + $0x180] ss:$16 sps:$4 sm:$0xff]  }
 0x7e1   :  { %v10369_v28 = vpop.f32.mrf.mxu0 }
 0x7e2   :  { %v4580_v11 = vpack.c.bf16 %v10369_v28, %v10368_v35 }
 0x7e3   :  { %4634 = vmatmul.mubr.bf16.vlgmr.msra.gmra.mxu1 %v11014_v2  ;;  %v4453_v8 = vpop.f32.mrf.mxu0 }
 0x7e4   :  { %4641 = vmatprep.mubr.bf16.mxu1 %v11015_v58  ;;  %v4579_v26 = vpack.c.bf16 %v4453_v8, %v4450_v12  ;;  %v11040_v58 = vld [vmem:[#allocation2 + $0x1a0] ss:$16 sps:$4 sm:$0xff]   ;;  %v11041_v12 = vld [vmem:[#allocation2 + $0x1c4] ss:$16 sps:$4 sm:$0xff]  }
 0x7e5   :  { %v11043_v8 = vld [vmem:[#allocation2 + $0x1e4] ss:$16 sps:$4 sm:$0xff]  }
 0x7eb   :  { %4642 = vmatmul.mubr.bf16.gmra.mxu1 %v11016_v53 }
 0x7ec   :  { %4649 = vmatprep.mubr.bf16.mxu1 %v11017_v54  ;;  %v11042_v54 = vld [vmem:[#allocation2 + $0x1c0] ss:$16 sps:$4 sm:$0xff]  }
 0x7ed   :  { %v10372_v61 = vpop.f32.mrf.mxu0 }
 0x7ef   :  { %v4466_v57 = vpop.f32.mrf.mxu0 }
 0x7f1   :  { %v10373_v60 = vpop.f32.mrf.mxu0 }
 0x7f2   :  { %v4582_v43 = vpack.c.bf16 %v10373_v60, %v10372_v61 }
 0x7f3   :  { %4650 = vmatmul.mubr.bf16.gmra.mxu1 %v11018_v41  ;;  %v4469_v17 = vpop.f32.mrf.mxu0  ;;  %v11044_v41 = vld [vmem:[#allocation2 + $0x1e0] ss:$16 sps:$4 sm:$0xff]  }
 0x7f4   :  { %4657 = vmatprep.mubr.bf16.mxu1 %v11019_v13  ;;  %v4581_v39 = vpack.c.bf16 %v4469_v17, %v4466_v57  ;;  %v11045_v13 = vld [vmem:[#allocation2 + $0x204] ss:$16 sps:$4 sm:$0xff]   ;;  %v11046_v17 = vld [vmem:[#allocation2 + $0x8] ss:$16 sps:$4 sm:$0xff]  }
 0x7fb   :  { %4658 = vmatmul.mubr.bf16.gmra.mxu1 %v11020_v23  ;;  %v11047_v23 = vld [vmem:[#allocation2 + $0x200] ss:$16 sps:$4 sm:$0xff]  }
 0x7fc   :  { %4665 = vmatprep.mubr.bf16.mxu1 %v11021_v14  ;;  %v11048_v14 = vld [vmem:[#allocation2 + $0x2c] ss:$16 sps:$4 sm:$0xff]  }
 0x7fd   :  { %v10376_v45 = vpop.f32.mrf.mxu0 }
 0x7ff   :  { %v4482_v44 = vpop.f32.mrf.mxu0 }
 0x801   :  { %v10377_v42 = vpop.f32.mrf.mxu0 }
 0x802   :  { %v4584_v20 = vpack.c.bf16 %v10377_v42, %v10376_v45  ;;  %v11049_v45 = vld [vmem:[#allocation2 + $0x224] ss:$16 sps:$4 sm:$0xff]   ;;  %v11051_v42 = vld [vmem:[#allocation2 + $0x220] ss:$16 sps:$4 sm:$0xff]  }
 0x803   :  { %v4485_v49 = vpop.f32.mrf.mxu0  ;;  %4666 = vmatmul.mubr.bf16.gmra.mxu1 %v11022_v31  ;;  %v11054_v31 = vld [vmem:[#allocation2 + $0x48] ss:$16 sps:$4 sm:$0xff]  }
 0x804   :  { %4891 = vmatpush1.bf16.msra.mxu0 %v4584_v20  ;;  %4673 = vmatprep.mubr.bf16.mxu1 %v11023_v38  ;;  %v4583_v25 = vpack.c.bf16 %v4485_v49, %v4482_v44  ;;  %v11050_v44 = vld [vmem:[#allocation2 + $0x28] ss:$16 sps:$4 sm:$0xff]   ;;  %v11052_v20 = vld [vmem:[#allocation2 + $0x4c] ss:$16 sps:$4 sm:$0xff]   ;;  %v11053_v49 = vld [vmem:[#allocation2 + $0x244] ss:$16 sps:$4 sm:$0xff]  }
 0x805   :  { %4892 = vmatprep.subr.bf16.mxu0 %v11571_v6  ;;  %v11055_v38 = vld [vmem:[#allocation2 + $0x240] ss:$16 sps:$4 sm:$0xff]  }
 0x808   :  { %4893 = vmatpush1.bf16.msra.mxu0 %v4583_v25  ;;  %v11056_v25 = vld [vmem:[#allocation2 + $0x6c] ss:$16 sps:$4 sm:$0xff]  }
 0x809   :  { %4894 = vmatprep.subr.bf16.mxu0 %v11571_v6 }
 0x80b   :  { %4674 = vmatmul.mubr.bf16.gmra.mxu1 %v11024_v50  ;;  %v11058_v50 = vld [vmem:[#allocation2 + $0x68] ss:$16 sps:$4 sm:$0xff]  }
 0x80c   :  { %4895 = vmatpush1.bf16.msra.mxu0 %v4582_v43  ;;  %4681 = vmatprep.mubr.bf16.mxu1 %v11025_v27  ;;  %v11057_v43 = vld [vmem:[#allocation2 + $0x264] ss:$16 sps:$4 sm:$0xff]   ;;  %v11059_v27 = vld [vmem:[#allocation2 + $0x260] ss:$16 sps:$4 sm:$0xff]  }
 0x80d   :  { %4896 = vmatprep.subr.bf16.mxu0 %v11571_v6  ;;  %v12874_v22 = vpop.f32.mrf.mxu0 }
 0x80f   :  { %v12877_v63 = vpop.f32.mrf.mxu0 }
 0x810   :  { %4897 = vmatpush1.bf16.msra.mxu0 %v4581_v39  ;;  %v11060_v39 = vld [vmem:[#allocation2 + $0x8c] ss:$16 sps:$4 sm:$0xff]  }
 0x811   :  { %4898 = vmatprep.subr.bf16.mxu0 %v11571_v6  ;;  %v12882_v0 = vpop.f32.mrf.mxu0 }
 0x812   :  { %v4586_v57 = vpack.c.bf16 %v12882_v0, %v12874_v22  ;;  %v11062_v22 = vld [vmem:[#allocation2 + $0x88] ss:$16 sps:$4 sm:$0xff]   ;;  %v11068_v0 = vld [vmem:[#allocation2 + $0xcc] ss:$16 sps:$4 sm:$0xff]  }
 0x813   :  { %4682 = vmatmul.mubr.bf16.gmra.mxu1 %v11026_v52  ;;  %v12887_v33 = vpop.f32.mrf.mxu0  ;;  %v11063_v52 = vld [vmem:[#allocation2 + $0x280] ss:$16 sps:$4 sm:$0xff]  }
 0x814   :  { %4899 = vmatpush1.bf16.msra.mxu0 %v4580_v11  ;;  %4689 = vmatprep.mubr.bf16.mxu1 %v11027_v29  ;;  %v4585_v60 = vpack.c.bf16 %v12887_v33, %v12877_v63  ;;  %v11061_v11 = vld [vmem:[#allocation2 + $0x284] ss:$16 sps:$4 sm:$0xff]   ;;  %v11064_v29 = vld [vmem:[#allocation2 + $0xac] ss:$16 sps:$4 sm:$0xff]   ;;  %v11066_v63 = vld [vmem:[#allocation2 + $0xa8] ss:$16 sps:$4 sm:$0xff]  }
 0x815   :  { %4900 = vmatprep.subr.bf16.mxu0 %v11571_v6  ;;  %v11072_v33 = vld [vmem:[#allocation2 + $0xec] ss:$16 sps:$4 sm:$0xff]  }
 0x818   :  { %4901 = vmatpush1.bf16.msra.mxu0 %v4579_v26  ;;  %v11065_v26 = vld [vmem:[#allocation2 + $0x2a4] ss:$16 sps:$4 sm:$0xff]  }
 0x819   :  { %4902 = vmatprep.subr.bf16.mxu0 %v11571_v6 }
 0x81b   :  { %4690 = vmatmul.mubr.bf16.gmra.mxu1 %v11028_v51  ;;  %v11069_v51 = vld [vmem:[#allocation2 + $0x2c4] ss:$16 sps:$4 sm:$0xff]  }
 0x81c   :  { %4903 = vmatpush1.bf16.msra.mxu0 %v4578_v36  ;;  %4697 = vmatprep.mubr.bf16.mxu1 %v11029_v7  ;;  %v11067_v36 = vld [vmem:[#allocation2 + $0x2a0] ss:$16 sps:$4 sm:$0xff]   ;;  %v11070_v7 = vld [vmem:[#allocation2 + $0xc8] ss:$16 sps:$4 sm:$0xff]  }
 0x81d   :  { %4904 = vmatprep.subr.bf16.mxu0 %v11571_v6  ;;  %v10384_v4 = vpop.f32.mrf.mxu0 }
 0x81f   :  { %v4514_v18 = vpop.f32.mrf.mxu0 }
 0x820   :  { %4905 = vmatpush1.bf16.msra.mxu0 %v4577_v10  ;;  %v11071_v10 = vld [vmem:[#allocation2 + $0x2c0] ss:$16 sps:$4 sm:$0xff]  }
 0x821   :  { %4906 = vmatprep.subr.bf16.mxu0 %v11571_v6  ;;  %v10385_v56 = vpop.f32.mrf.mxu0 }
 0x822   :  { %v4588_v53 = vpack.c.bf16 %v10385_v56, %v10384_v4  ;;  %v11073_v4 = vld [vmem:[#allocation2 + $0x2e4] ss:$16 sps:$4 sm:$0xff]  }
 0x823   :  { %4698 = vmatmul.mubr.bf16.gmra.mxu1 %v11030_v3  ;;  %v4517_v48 = vpop.f32.mrf.mxu0  ;;  %v11074_v3 = vld [vmem:[#allocation2 + $0xe8] ss:$16 sps:$4 sm:$0xff]   ;;  %v11077_v56 = vld [vmem:[#allocation2 + $0x304] ss:$16 sps:$4 sm:$0xff]  }
 0x824   :  { %4705 = vmatprep.mubr.bf16.mxu1 %v11031_v47  ;;  %v4587_v61 = vpack.c.bf16 %v4517_v48, %v4514_v18  ;;  %v11075_v47 = vld [vmem:[#allocation2 + $0x2e0] ss:$16 sps:$4 sm:$0xff]   ;;  %v11076_v18 = vld [vmem:[#allocation2 + $0x10c] ss:$16 sps:$4 sm:$0xff]  }
 0x82b   :  { %4706 = vmatmul.mubr.bf16.gmra.mxu1 %v11032_v30  ;;  %v11078_v30 = vld [vmem:[#allocation2 + $0x108] ss:$16 sps:$4 sm:$0xff]  }
 0x82c   :  { %4713 = vmatprep.mubr.bf16.mxu1 %v11033_v15  ;;  %v11079_v15 = vld [vmem:[#allocation2 + $0x300] ss:$16 sps:$4 sm:$0xff]  }
 0x82d   :  { %v10388_v59 = vpop.f32.mrf.mxu0 }
 0x82f   :  { %v4530_v55 = vpop.f32.mrf.mxu0 }
 0x831   :  { %v10389_v46 = vpop.f32.mrf.mxu0 }
 0x832   :  { %v4590_v2 = vpack.c.bf16 %v10389_v46, %v10388_v59  ;;  %v11080_v59 = vld [vmem:[#allocation2 + $0x12c] ss:$16 sps:$4 sm:$0xff]  }
 0x833   :  { %4714 = vmatmul.mubr.bf16.gmra.mxu1 %v11034_v37  ;;  %v4533_v19 = vpop.f32.mrf.mxu0 }
 0x834   :  { %4721 = vmatprep.mubr.bf16.mxu1 %v11035_v1  ;;  %v4589_v28 = vpack.c.bf16 %v4533_v19, %v4530_v55  ;;  %v11081_v55 = vld [vmem:[#allocation2 + $0x324] ss:$16 sps:$4 sm:$0xff]   ;;  %v11082_v19 = vld [vmem:[#allocation2 + $0x128] ss:$16 sps:$4 sm:$0xff]  }
 0x83b   :  { %4722 = vmatmul.mubr.bf16.gmra.mxu1 %v11036_v34  ;;  %v11083_v34 = vld [vmem:[#allocation2 + $0x320] ss:$16 sps:$4 sm:$0xff]  }
 0x83c   :  { %4729 = vmatprep.mubr.bf16.mxu1 %v11037_v24 }
 0x83d   :  { %v10392_v16 = vpop.f32.mrf.mxu0 }
 0x83f   :  { %v4546_v5 = vpop.f32.mrf.mxu0 }
 0x841   :  { %v10393_v32 = vpop.f32.mrf.mxu0 }
 0x842   :  { %v4592_v40 = vpack.c.bf16 %v10393_v32, %v10392_v16  ;;  %v11084_v16 = vld [vmem:[#allocation2 + $0x14c] ss:$16 sps:$4 sm:$0xff]  }
 0x843   :  { %v4549_v62 = vpop.f32.mrf.mxu0  ;;  %4730 = vmatmul.mubr.bf16.gmra.mxu1 %v11038_v21  ;;  %v10847_v32 = vld [vmem:[%s14448_s5 + $0x38] sm:$0xff]   ;;  %v10848_v21 = vld [vmem:[%s14448_s5 + $0x30] sm:$0xff]  }
 0x844   :  { %4907 = vmatpush2.bf16.msra.mxu0 %v4592_v40  ;;  %4737 = vmatprep.mubr.bf16.mxu1 %v11039_v9  ;;  %v4591_v35 = vpack.c.bf16 %v4549_v62, %v4546_v5  ;;  %v11085_v5 = vld [vmem:[#allocation2 + $0x344] ss:$16 sps:$4 sm:$0xff]  }
 0x845   :  { %4908 = vmatprep.subr.bf16.mxu0 %v11571_v6  ;;  %10394 = vmatprep.subr.bf16.mxu1 %v10847_v32 }
 0x846   :  { %10395 = vmatpush3.bf16.msra.mxu1 %v10847_v32  ;;  %v11112_v32 = vld [vmem:[#allocation2 + $0x24c] ss:$16 sps:$4 sm:$0xff]  }
 0x847   :  { %10396 = vmatprep.subr.bf16.mxu1 %v10848_v21 }
 0x848   :  { %4909 = vmatpush2.bf16.msra.mxu0 %v4591_v35  ;;  %v11086_v35 = vld [vmem:[#allocation2 + $0x148] ss:$16 sps:$4 sm:$0xff]  }
 0x849   :  { %4910 = vmatprep.subr.bf16.mxu0 %v11571_v6 }
 0x84a   :  { %10397 = vmatpush3.bf16.msra.mxu1 %v10848_v21 }
 0x84b   :  { %4738 = vmatmul.mubr.bf16.gmra.mxu1 %v11040_v58  ;;  %6006 = vmatprep.subr.bf16.mxu1 %v11571_v6 }
 0x84c   :  { %4911 = vmatpush2.bf16.msra.mxu0 %v4590_v2  ;;  %4745 = vmatprep.mubr.bf16.mxu1 %v11041_v12  ;;  %v11087_v2 = vld [vmem:[#allocation2 + $0x340] ss:$16 sps:$4 sm:$0xff]   ;;  %v11088_v12 = vld [vmem:[#allocation2 + $0x16c] ss:$16 sps:$4 sm:$0xff]  }
 0x84d   :  { %4912 = vmatprep.subr.bf16.mxu0 %v11571_v6 }
 0x850   :  { %4913 = vmatpush2.bf16.msra.mxu0 %v4589_v28  ;;  %v11089_v28 = vld [vmem:[#allocation2 + $0x364] ss:$16 sps:$4 sm:$0xff]  }
 0x851   :  { %4914 = vmatprep.subr.bf16.mxu0 %v11571_v6 }
 0x853   :  { %4746 = vmatmul.mubr.bf16.gmra.mxu1 %v11042_v54 }
 0x854   :  { %4915 = vmatpush2.bf16.msra.mxu0 %v4588_v53  ;;  %4753 = vmatprep.mubr.bf16.mxu1 %v11043_v8 }
 0x855   :  { %4916 = vmatprep.subr.bf16.mxu0 %v11571_v6 }
 0x858   :  { %4917 = vmatpush2.bf16.msra.mxu0 %v4587_v61  ;;  %v11090_v61 = vld [vmem:[#allocation2 + $0x168] ss:$16 sps:$4 sm:$0xff]  }
 0x859   :  { %4918 = vmatprep.subr.bf16.mxu0 %v11571_v6 }
 0x85b   :  { %4754 = vmatmul.mubr.bf16.gmra.mxu1 %v11044_v41 }
 0x85c   :  { %4919 = vmatpush2.bf16.msra.mxu0 %v4586_v57  ;;  %4761 = vmatprep.mubr.bf16.mxu1 %v11045_v13  ;;  %v11091_v57 = vld [vmem:[#allocation2 + $0x360] ss:$16 sps:$4 sm:$0xff]   ;;  %v11092_v13 = vld [vmem:[#allocation2 + $0x18c] ss:$16 sps:$4 sm:$0xff]  }
 0x85d   :  { %4920 = vmatprep.subr.bf16.mxu0 %v11571_v6 }
 0x860   :  { %4921 = vmatpush2.bf16.msra.mxu0 %v4585_v60  ;;  %v11093_v60 = vld [vmem:[#allocation2 + $0x384] ss:$16 sps:$4 sm:$0xff]  }
 0x861   :  { %5717 = vmatprep.subr.bf16.mxu0 %v11571_v6 }
 0x863   :  { %4923 = vmatmul.mubr.bf16.vlgmr.msra.gmra.mxu0 %v11046_v17  ;;  %4762 = vmatmul.mubr.bf16.gmra.mxu1 %v11047_v23 }
 0x864   :  { %4930 = vmatprep.mubr.bf16.mxu0 %v11048_v14  ;;  %4769 = vmatprep.mubr.bf16.mxu1 %v11049_v45  ;;  %v11094_v45 = vld [vmem:[#allocation2 + $0x188] ss:$16 sps:$4 sm:$0xff]  }
 0x86b   :  { %4931 = vmatmul.mubr.bf16.gmra.mxu0 %v11050_v44  ;;  %4770 = vmatmul.mubr.bf16.gmra.mxu1 %v11051_v42  ;;  %v11095_v44 = vld [vmem:[#allocation2 + $0x380] ss:$16 sps:$4 sm:$0xff]  }
 0x86c   :  { %4938 = vmatprep.mubr.bf16.mxu0 %v11052_v20  ;;  %4777 = vmatprep.mubr.bf16.mxu1 %v11053_v49  ;;  %v11096_v20 = vld [vmem:[#allocation2 + $0x1ac] ss:$16 sps:$4 sm:$0xff]   ;;  %v11097_v49 = vld [vmem:[#allocation2 + $0x3a4] ss:$16 sps:$4 sm:$0xff]  }
 0x873   :  { %4939 = vmatmul.mubr.bf16.gmra.mxu0 %v11054_v31  ;;  %4778 = vmatmul.mubr.bf16.gmra.mxu1 %v11055_v38 }
 0x874   :  { %4946 = vmatprep.mubr.bf16.mxu0 %v11056_v25  ;;  %4785 = vmatprep.mubr.bf16.mxu1 %v11057_v43  ;;  %v11098_v43 = vld [vmem:[#allocation2 + $0x1a8] ss:$16 sps:$4 sm:$0xff]  }
 0x87b   :  { %4947 = vmatmul.mubr.bf16.gmra.mxu0 %v11058_v50  ;;  %4786 = vmatmul.mubr.bf16.gmra.mxu1 %v11059_v27  ;;  %v11099_v50 = vld [vmem:[#allocation2 + $0x3a0] ss:$16 sps:$4 sm:$0xff]  }
 0x87c   :  { %4954 = vmatprep.mubr.bf16.mxu0 %v11060_v39  ;;  %4793 = vmatprep.mubr.bf16.mxu1 %v11061_v11  ;;  %v11100_v39 = vld [vmem:[#allocation2 + $0x1cc] ss:$16 sps:$4 sm:$0xff]   ;;  %v11101_v11 = vld [vmem:[#allocation2 + $0x3c4] ss:$16 sps:$4 sm:$0xff]  }
 0x883   :  { %4955 = vmatmul.mubr.bf16.gmra.mxu0 %v11062_v22  ;;  %4794 = vmatmul.mubr.bf16.gmra.mxu1 %v11063_v52 }
 0x884   :  { %4962 = vmatprep.mubr.bf16.mxu0 %v11064_v29  ;;  %4801 = vmatprep.mubr.bf16.mxu1 %v11065_v26  ;;  %v11102_v26 = vld [vmem:[#allocation2 + $0x1c8] ss:$16 sps:$4 sm:$0xff]  }
 0x88b   :  { %4963 = vmatmul.mubr.bf16.gmra.mxu0 %v11066_v63  ;;  %4802 = vmatmul.mubr.bf16.gmra.mxu1 %v11067_v36  ;;  %v11103_v63 = vld [vmem:[#allocation2 + $0x3c0] ss:$16 sps:$4 sm:$0xff]  }
 0x88c   :  { %4970 = vmatprep.mubr.bf16.mxu0 %v11068_v0  ;;  %4809 = vmatprep.mubr.bf16.mxu1 %v11069_v51  ;;  %v11104_v0 = vld [vmem:[#allocation2 + $0x1ec] ss:$16 sps:$4 sm:$0xff]   ;;  %v11105_v51 = vld [vmem:[#allocation2 + $0x3e4] ss:$16 sps:$4 sm:$0xff]  }
 0x893   :  { %4971 = vmatmul.mubr.bf16.gmra.mxu0 %v11070_v7  ;;  %4810 = vmatmul.mubr.bf16.gmra.mxu1 %v11071_v10 }
 0x894   :  { %4978 = vmatprep.mubr.bf16.mxu0 %v11072_v33  ;;  %4817 = vmatprep.mubr.bf16.mxu1 %v11073_v4  ;;  %v11106_v4 = vld [vmem:[#allocation2 + $0x1e8] ss:$16 sps:$4 sm:$0xff]  }
 0x89b   :  { %4979 = vmatmul.mubr.bf16.gmra.mxu0 %v11074_v3  ;;  %4818 = vmatmul.mubr.bf16.gmra.mxu1 %v11075_v47  ;;  %v11107_v3 = vld [vmem:[#allocation2 + $0x3e0] ss:$16 sps:$4 sm:$0xff]  }
 0x89c   :  { %4986 = vmatprep.mubr.bf16.mxu0 %v11076_v18  ;;  %4825 = vmatprep.mubr.bf16.mxu1 %v11077_v56  ;;  %v11108_v18 = vld [vmem:[#allocation2 + $0x20c] ss:$16 sps:$4 sm:$0xff]  }
 0x8a3   :  { %4987 = vmatmul.mubr.bf16.gmra.mxu0 %v11078_v30  ;;  %4826 = vmatmul.mubr.bf16.gmra.mxu1 %v11079_v15  ;;  %v12902_v48 = vpop.f32.mrf.mxu1 }
 0x8a4   :  { %4994 = vmatprep.mubr.bf16.mxu0 %v11080_v59  ;;  %4833 = vmatprep.mubr.bf16.mxu1 %v11081_v55  ;;  %v11109_v59 = vld [vmem:[#allocation2 + $0x208] ss:$16 sps:$4 sm:$0xff]  }
 0x8a5   :  { %v4637_v37 = vpop.f32.mrf.mxu1 }
 0x8a6   :  { %v11110_v37 = vld [vmem:[#allocation2 + $0x22c] ss:$16 sps:$4 sm:$0xff]  }
 0x8a7   :  { %v12904_v1 = vpop.f32.mrf.mxu1 }
 0x8a9   :  { %v4640_v46 = vpop.f32.mrf.mxu1 }
 0x8ab   :  { %4995 = vmatmul.mubr.bf16.gmra.mxu0 %v11082_v19  ;;  %4834 = vmatmul.mubr.bf16.gmra.mxu1 %v11083_v34  ;;  %v12906_v24 = vpop.f32.mrf.mxu1 }
 0x8ac   :  { %5002 = vmatprep.mubr.bf16.mxu0 %v11084_v16  ;;  %4841 = vmatprep.mubr.bf16.mxu1 %v11085_v5  ;;  %v11111_v16 = vld [vmem:[#allocation2 + $0x228] ss:$16 sps:$4 sm:$0xff]  }
 0x8ad   :  { %v4645_v40 = vpop.f32.mrf.mxu1 }
 0x8af   :  { %v12911_v62 = vpop.f32.mrf.mxu1 }
 0x8b1   :  { %v4648_v9 = vpop.f32.mrf.mxu1 }
 0x8b3   :  { %5003 = vmatmul.mubr.bf16.gmra.mxu0 %v11086_v35  ;;  %4842 = vmatmul.mubr.bf16.gmra.mxu1 %v11087_v2  ;;  %v12916_v58 = vpop.f32.mrf.mxu1  ;;  %v11113_v35 = vld [vmem:[#allocation2 + $0x248] ss:$16 sps:$4 sm:$0xff]  }
 0x8b4   :  { %5010 = vmatprep.mubr.bf16.mxu0 %v11088_v12  ;;  %4849 = vmatprep.mubr.bf16.mxu1 %v11089_v28  ;;  %v11114_v12 = vld [vmem:[#allocation2 + $0x26c] ss:$16 sps:$4 sm:$0xff]  }
 0x8b5   :  { %v4653_v53 = vpop.f32.mrf.mxu1 }
 0x8b7   :  { %v12919_v54 = vpop.f32.mrf.mxu1 }
 0x8b9   :  { %v4656_v8 = vpop.f32.mrf.mxu1 }
 0x8bb   :  { %5011 = vmatmul.mubr.bf16.gmra.mxu0 %v11090_v61  ;;  %4850 = vmatmul.mubr.bf16.gmra.mxu1 %v11091_v57  ;;  %v12921_v41 = vpop.f32.mrf.mxu1  ;;  %v11115_v61 = vld [vmem:[#allocation2 + $0x268] ss:$16 sps:$4 sm:$0xff]  }
 0x8bc   :  { %5018 = vmatprep.mubr.bf16.mxu0 %v11092_v13  ;;  %4857 = vmatprep.mubr.bf16.mxu1 %v11093_v60  ;;  %v11116_v13 = vld [vmem:[#allocation2 + $0x28c] ss:$16 sps:$4 sm:$0xff]  }
 0x8bd   :  { %v4661_v17 = vpop.f32.mrf.mxu1 }
 0x8bf   :  { %v12923_v23 = vpop.f32.mrf.mxu1 }
 0x8c1   :  { %v4664_v14 = vpop.f32.mrf.mxu1 }
 0x8c3   :  { %5019 = vmatmul.mubr.bf16.gmra.mxu0 %v11094_v45  ;;  %4858 = vmatmul.mubr.bf16.gmra.mxu1 %v11095_v44  ;;  %v12925_v42 = vpop.f32.mrf.mxu1  ;;  %v11117_v45 = vld [vmem:[#allocation2 + $0x288] ss:$16 sps:$4 sm:$0xff]  }
 0x8c4   :  { %5026 = vmatprep.mubr.bf16.mxu0 %v11096_v20  ;;  %4865 = vmatprep.mubr.bf16.mxu1 %v11097_v49  ;;  %v11118_v20 = vld [vmem:[#allocation2 + $0x2ac] ss:$16 sps:$4 sm:$0xff]  }
 0x8c5   :  { %v4669_v31 = vpop.f32.mrf.mxu1 }
 0x8c7   :  { %v12927_v38 = vpop.f32.mrf.mxu1 }
 0x8c9   :  { %v4672_v25 = vpop.f32.mrf.mxu1 }
 0x8cb   :  { %5027 = vmatmul.mubr.bf16.gmra.mxu0 %v11098_v43  ;;  %4866 = vmatmul.mubr.bf16.gmra.mxu1 %v11099_v50  ;;  %v12929_v27 = vpop.f32.mrf.mxu1  ;;  %v11119_v43 = vld [vmem:[#allocation2 + $0x2a8] ss:$16 sps:$4 sm:$0xff]  }
 0x8cc   :  { %5034 = vmatprep.mubr.bf16.mxu0 %v11100_v39  ;;  %4873 = vmatprep.mubr.bf16.mxu1 %v11101_v11  ;;  %v11120_v39 = vld [vmem:[#allocation2 + $0x2cc] ss:$16 sps:$4 sm:$0xff]  }
 0x8cd   :  { %v4677_v22 = vpop.f32.mrf.mxu1 }
 0x8cf   :  { %v12931_v52 = vpop.f32.mrf.mxu1 }
 0x8d1   :  { %v4680_v29 = vpop.f32.mrf.mxu1 }
 0x8d3   :  { %5035 = vmatmul.mubr.bf16.gmra.mxu0 %v11102_v26  ;;  %4874 = vmatmul.mubr.bf16.gmra.mxu1 %v11103_v63  ;;  %v12933_v36 = vpop.f32.mrf.mxu1  ;;  %v11121_v26 = vld [vmem:[#allocation2 + $0x2c8] ss:$16 sps:$4 sm:$0xff]  }
 0x8d4   :  { %5042 = vmatprep.mubr.bf16.mxu0 %v11104_v0  ;;  %4881 = vmatprep.mubr.bf16.mxu1 %v11105_v51  ;;  %v11122_v0 = vld [vmem:[#allocation2 + $0x2ec] ss:$16 sps:$4 sm:$0xff]  }
 0x8d5   :  { %v4685_v7 = vpop.f32.mrf.mxu1 }
 0x8d7   :  { %v12935_v10 = vpop.f32.mrf.mxu1 }
 0x8d9   :  { %v4688_v33 = vpop.f32.mrf.mxu1 }
 0x8db   :  { %5043 = vmatmul.mubr.bf16.gmra.mxu0 %v11106_v4  ;;  %4882 = vmatmul.mubr.bf16.gmra.mxu1 %v11107_v3  ;;  %v12937_v47 = vpop.f32.mrf.mxu1  ;;  %v11123_v4 = vld [vmem:[#allocation2 + $0x2e8] ss:$16 sps:$4 sm:$0xff]  }
 0x8dc   :  { %5050 = vmatprep.mubr.bf16.mxu0 %v11108_v18  ;;  %v11124_v18 = vld [vmem:[#allocation2 + $0x30c] ss:$16 sps:$4 sm:$0xff]  }
 0x8dd   :  { %v4693_v56 = vpop.f32.mrf.mxu1 }
 0x8df   :  { %v12939_v30 = vpop.f32.mrf.mxu1 }
 0x8e1   :  { %v4696_v15 = vpop.f32.mrf.mxu1 }
 0x8e2   :  { %v12974_v15 = vld [vmem:[%s14449_s6 + $0x2] ss:$0 sm:$0xff] }
 0x8e3   :  { %5051 = vmatmul.mubr.bf16.gmra.mxu0 %v11109_v59  ;;  %v12941_v55 = vpop.f32.mrf.mxu1 }
 0x8e4   :  { %5058 = vmatprep.mubr.bf16.mxu0 %v11110_v37 }
 0x8e5   :  { %v4701_v46 = vpop.f32.mrf.mxu1 }
 0x8e6   :  { %v4636_v46 = vadd.f32 %v12974_v15, %v12902_v48  ;;  %v4644_v48 = vadd.f32 %v12974_v15, %v12906_v24 }
 0x8e7   :  { %v12943_v19 = vpop.f32.mrf.mxu1 }
 0x8e9   :  { %v4704_v34 = vpop.f32.mrf.mxu1 }
 0x8eb   :  { %5059 = vmatmul.mubr.bf16.gmra.mxu0 %v11111_v16  ;;  %v12945_v5 = vpop.f32.mrf.mxu1  ;;  %v11125_v16 = vld [vmem:[#allocation2 + $0x308] ss:$16 sps:$4 sm:$0xff]  }
 0x8ec   :  { %5066 = vmatprep.mubr.bf16.mxu0 %v11112_v32 }
 0x8ed   :  { %v4709_v40 = vpop.f32.mrf.mxu1 }
 0x8ee   :  { %v11126_v40 = vld [vmem:[#allocation2 + $0x32c] ss:$16 sps:$4 sm:$0xff]  }
 0x8ef   :  { %v12947_v21 = vpop.f32.mrf.mxu1 }
 0x8f1   :  { %v4712_v9 = vpop.f32.mrf.mxu1 }
 0x8f3   :  { %5067 = vmatmul.mubr.bf16.gmra.mxu0 %v11113_v35  ;;  %v12949_v2 = vpop.f32.mrf.mxu1 }
 0x8f4   :  { %5074 = vmatprep.mubr.bf16.mxu0 %v11114_v12  ;;  %v4639_v12 = vadd.f32 %v12974_v15, %v12904_v1 }
 0x8f5   :  { %v4717_v28 = vpop.f32.mrf.mxu1 }
 0x8f7   :  { %v12951_v53 = vpop.f32.mrf.mxu1 }
 0x8f9   :  { %v4720_v8 = vpop.f32.mrf.mxu1 }
 0x8fb   :  { %5075 = vmatmul.mubr.bf16.gmra.mxu0 %v11115_v61  ;;  %v12953_v57 = vpop.f32.mrf.mxu1 }
 0x8fc   :  { %5082 = vmatprep.mubr.bf16.mxu0 %v11116_v13 }
 0x8fd   :  { %v4725_v60 = vpop.f32.mrf.mxu1 }
 0x8ff   :  { %v12955_v17 = vpop.f32.mrf.mxu1 }
 0x901   :  { %v4728_v14 = vpop.f32.mrf.mxu1 }
 0x903   :  { %5083 = vmatmul.mubr.bf16.gmra.mxu0 %v11117_v45  ;;  %v12957_v44 = vpop.f32.mrf.mxu1 }
 0x904   :  { %5090 = vmatprep.mubr.bf16.mxu0 %v11118_v20 }
 0x905   :  { %v4733_v49 = vpop.f32.mrf.mxu1 }
 0x907   :  { %v12959_v31 = vpop.f32.mrf.mxu1 }
 0x909   :  { %v4736_v25 = vpop.f32.mrf.mxu1 }
 0x90a   :  { %v11127_v25 = vld [vmem:[#allocation2 + $0x328] ss:$16 sps:$4 sm:$0xff]  }
 0x90b   :  { %5091 = vmatmul.mubr.bf16.gmra.mxu0 %v11119_v43  ;;  %v12961_v50 = vpop.f32.mrf.mxu1 }
 0x90c   :  { %5098 = vmatprep.mubr.bf16.mxu0 %v11120_v39 }
 0x90d   :  { %v4741_v11 = vpop.f32.mrf.mxu1 }
 0x90e   :  { %v11128_v11 = vld [vmem:[#allocation2 + $0x34c] ss:$16 sps:$4 sm:$0xff]  }
 0x90f   :  { %v12963_v22 = vpop.f32.mrf.mxu1 }
 0x911   :  { %v4744_v29 = vpop.f32.mrf.mxu1 }
 0x913   :  { %5099 = vmatmul.mubr.bf16.gmra.mxu0 %v11121_v26  ;;  %v12965_v63 = vpop.f32.mrf.mxu1  ;;  %v4647_v26 = vadd.f32 %v12974_v15, %v12911_v62 }
 0x914   :  { %5106 = vmatprep.mubr.bf16.mxu0 %v11122_v0 }
 0x915   :  { %v4749_v51 = vpop.f32.mrf.mxu1 }
 0x917   :  { %v12967_v7 = vpop.f32.mrf.mxu1 }
 0x919   :  { %v4752_v33 = vpop.f32.mrf.mxu1 }
 0x91b   :  { %5107 = vmatmul.mubr.bf16.gmra.mxu0 %v11123_v4  ;;  %v12969_v3 = vpop.f32.mrf.mxu1 }
 0x91c   :  { %5114 = vmatprep.mubr.bf16.mxu0 %v11124_v18 }
 0x91d   :  { %v4757_v56 = vpop.f32.mrf.mxu1 }
 0x91e   :  { %v4652_v56 = vadd.f32 %v12974_v15, %v12916_v58 }
 0x91f   :  { %v12976_v59 = vpop.f32.mrf.mxu1 }
 0x921   :  { %v4760_v37 = vpop.f32.mrf.mxu1 }
 0x923   :  { %v4924_v34 = vpop.f32.mrf.mxu0  ;;  %5115 = vmatmul.mubr.bf16.gmra.mxu0 %v11125_v16  ;;  %v12980_v32 = vpop.f32.mrf.mxu1  ;;  %v11129_v16 = vld [vmem:[#allocation2 + $0x348] ss:$16 sps:$4 sm:$0xff]  }
 0x924   :  { %5122 = vmatprep.mubr.bf16.mxu0 %v11126_v40  ;;  %v4925_v28 = vadd.f32 %v4924_v34, %v4636_v46 }
 0x925   :  { %v4926_v9 = vpop.f32.mrf.mxu0  ;;  %v4765_v35 = vpop.f32.mrf.mxu1 }
 0x926   :  { %v5179_v45 = vmax.f32 %v4925_v28, 0.0  ;;  %v11130_v9 = vld [vmem:[#allocation2 + $0x36c] ss:$16 sps:$4 sm:$0xff]   ;;  %v4655_v28 = vadd.f32 %v12974_v15, %v12919_v54 }
 0x927   :  { %v4927_v8 = vpop.f32.mrf.mxu0  ;;  %v12984_v61 = vpop.f32.mrf.mxu1 }
 0x928   :  { %v4928_v13 = vadd.f32 %v4927_v8, %v4639_v12 }
 0x929   :  { %v4929_v60 = vpop.f32.mrf.mxu0  ;;  %v4768_v14 = vpop.f32.mrf.mxu1 }
 0x92a   :  { %v5180_v20 = vmax.f32 %v4928_v13, 0.0 }
 0x92b   :  { %v4932_v49 = vpop.f32.mrf.mxu0  ;;  %5123 = vmatmul.mubr.bf16.gmra.mxu0 %v11127_v25  ;;  %v12988_v43 = vpop.f32.mrf.mxu1 }
 0x92c   :  { %v5243_v39 = vpack.c.bf16 %v5180_v20, %v5179_v45  ;;  %5130 = vmatprep.mubr.bf16.mxu0 %v11128_v11  ;;  %v4933_v0 = vadd.f32 %v4932_v49, %v4644_v48  ;;  %v4660_v45 = vadd.f32 %v12974_v15, %v12921_v41 }
 0x92d   :  { %v4934_v1 = vpop.f32.mrf.mxu0  ;;  %v4773_v29 = vpop.f32.mrf.mxu1 }
 0x92e   :  { %10398 = vmatprep.mubr.msk.bf16.mxu1 %vm173_vm0, %v5243_v39  ;;  %v5181_v37 = vmax.f32 %v4933_v0, 0.0  ;;  %v11131_v39 = vld [vmem:[#allocation2 + $0x368] ss:$16 sps:$4 sm:$0xff]   ;;  %v11132_v1 = vld [vmem:[#allocation2 + $0x38c] ss:$16 sps:$4 sm:$0xff]   ;;  %v4663_v0 = vadd.f32 %v12974_v15, %v12923_v23 }
 0x92f   :  { %v4935_v51 = vpop.f32.mrf.mxu0  ;;  %v12993_v24 = vpop.f32.mrf.mxu1 }
 0x930   :  { %v4936_v33 = vadd.f32 %v4935_v51, %v4647_v26 }
 0x931   :  { %v4937_v4 = vpop.f32.mrf.mxu0  ;;  %v4776_v18 = vpop.f32.mrf.mxu1 }
 0x932   :  { %v5182_v46 = vmax.f32 %v4936_v33, 0.0 }
 0x933   :  { %v4940_v34 = vpop.f32.mrf.mxu0  ;;  %5131 = vmatmul.mubr.bf16.gmra.mxu0 %v11129_v16  ;;  %v12997_v40 = vpop.f32.mrf.mxu1 }
 0x934   :  { %v5244_v62 = vpack.c.bf16 %v5182_v46, %v5181_v37  ;;  %5138 = vmatprep.mubr.bf16.mxu0 %v11130_v9  ;;  %v4941_v8 = vadd.f32 %v4940_v34, %v4652_v56  ;;  %v4668_v37 = vadd.f32 %v12974_v15, %v12925_v42 }
 0x935   :  { %v4942_v35 = vpop.f32.mrf.mxu0  ;;  %v4781_v12 = vpop.f32.mrf.mxu1 }
 0x936   :  { %10399 = vmatmul.mubr.msk.bf16.vlgmr.msra.gmra.mxu1 %vm173_vm0, %v5244_v62  ;;  %v5183_v20 = vmax.f32 %v4941_v8, 0.0  ;;  %v11133_v62 = vld [vmem:[#allocation2 + $0x388] ss:$16 sps:$4 sm:$0xff]   ;;  %v11134_v35 = vld [vmem:[#allocation2 + $0x3ac] ss:$16 sps:$4 sm:$0xff]   ;;  %v4671_v8 = vadd.f32 %v12974_v15, %v12927_v38 }
 0x937   :  { %v4943_v13 = vpop.f32.mrf.mxu0  ;;  %v13002_v58 = vpop.f32.mrf.mxu1 }
 0x938   :  { %v4944_v60 = vadd.f32 %v4943_v13, %v4655_v28 }
 0x939   :  { %v4945_v14 = vpop.f32.mrf.mxu0  ;;  %v4784_v48 = vpop.f32.mrf.mxu1 }
 0x93a   :  { %v5184_v49 = vmax.f32 %v4944_v60, 0.0 }
 0x93b   :  { %v4948_v25 = vpop.f32.mrf.mxu0  ;;  %5139 = vmatmul.mubr.bf16.gmra.mxu0 %v11131_v39  ;;  %v13006_v11 = vpop.f32.mrf.mxu1 }
 0x93c   :  { %v5245_v54 = vpack.c.bf16 %v5184_v49, %v5183_v20  ;;  %5146 = vmatprep.mubr.bf16.mxu0 %v11132_v1  ;;  %v4949_v51 = vadd.f32 %v4948_v25, %v4660_v45  ;;  %v4676_v20 = vadd.f32 %v12974_v15, %v12929_v27 }
 0x93d   :  { %v4950_v29 = vpop.f32.mrf.mxu0  ;;  %v4789_v26 = vpop.f32.mrf.mxu1 }
 0x93e   :  { %10402 = vmatprep.mubr.msk.bf16.mxu1 %vm173_vm0, %v5245_v54  ;;  %v5185_v46 = vmax.f32 %v4949_v51, 0.0  ;;  %v11135_v54 = vld [vmem:[#allocation2 + $0x3a8] ss:$16 sps:$4 sm:$0xff]   ;;  %v11136_v29 = vld [vmem:[#allocation2 + $0x3cc] ss:$16 sps:$4 sm:$0xff]   ;;  %v4679_v51 = vadd.f32 %v12974_v15, %v12931_v52 }
 0x93f   :  { %v4951_v33 = vpop.f32.mrf.mxu0  ;;  %v13011_v41 = vpop.f32.mrf.mxu1 }
 0x940   :  { %v4952_v4 = vadd.f32 %v4951_v33, %v4663_v0 }
 0x941   :  { %v4953_v18 = vpop.f32.mrf.mxu0  ;;  %v4792_v56 = vpop.f32.mrf.mxu1 }
 0x942   :  { %v5186_v34 = vmax.f32 %v4952_v4, 0.0 }
 0x943   :  { %v4956_v16 = vpop.f32.mrf.mxu0  ;;  %5147 = vmatmul.mubr.bf16.gmra.mxu0 %v11133_v62  ;;  %v13015_v9 = vpop.f32.mrf.mxu1 }
 0x944   :  { %v5246_v23 = vpack.c.bf16 %v5186_v34, %v5185_v46  ;;  %5154 = vmatprep.mubr.bf16.mxu0 %v11134_v35  ;;  %v4957_v13 = vadd.f32 %v4956_v16, %v4668_v37  ;;  %v4684_v46 = vadd.f32 %v12974_v15, %v12933_v36 }
 0x945   :  { %v4958_v12 = vpop.f32.mrf.mxu0  ;;  %v4797_v28 = vpop.f32.mrf.mxu1 }
 0x946   :  { %10403 = vmatmul.mubr.msk.bf16.gmra.mxu1 %vm173_vm0, %v5246_v23  ;;  %v5187_v49 = vmax.f32 %v4957_v13, 0.0  ;;  %v11137_v23 = vld [vmem:[#allocation2 + $0x3c8] ss:$16 sps:$4 sm:$0xff]   ;;  %v11138_v12 = vld [vmem:[#allocation2 + $0x3ec] ss:$16 sps:$4 sm:$0xff]   ;;  %v4687_v13 = vadd.f32 %v12974_v15, %v12935_v10 }
 0x947   :  { %v4959_v60 = vpop.f32.mrf.mxu0  ;;  %v13020_v42 = vpop.f32.mrf.mxu1 }
 0x948   :  { %v4960_v14 = vadd.f32 %v4959_v60, %v4671_v8 }
 0x949   :  { %v4961_v48 = vpop.f32.mrf.mxu0  ;;  %v4800_v45 = vpop.f32.mrf.mxu1 }
 0x94a   :  { %v5188_v25 = vmax.f32 %v4960_v14, 0.0 }
 0x94b   :  { %v4964_v39 = vpop.f32.mrf.mxu0  ;;  %5155 = vmatmul.mubr.bf16.gmra.mxu0 %v11135_v54  ;;  %v13024_v1 = vpop.f32.mrf.mxu1 }
 0x94c   :  { %v5247_v38 = vpack.c.bf16 %v5188_v25, %v5187_v49  ;;  %5162 = vmatprep.mubr.bf16.mxu0 %v11136_v29  ;;  %v4965_v33 = vadd.f32 %v4964_v39, %v4676_v20  ;;  %v4692_v49 = vadd.f32 %v12974_v15, %v12937_v47 }
 0x94d   :  { %v4966_v26 = vpop.f32.mrf.mxu0  ;;  %v4805_v0 = vpop.f32.mrf.mxu1 }
 0x94e   :  { %10406 = vmatprep.mubr.msk.bf16.mxu1 %vm173_vm0, %v5247_v38  ;;  %v5189_v34 = vmax.f32 %v4965_v33, 0.0  ;;  %v11139_v38 = vld [vmem:[#allocation2 + $0x3e8] ss:$16 sps:$4 sm:$0xff]   ;;  %v11140_v26 = vld [vmem:[#allocation2 + $0x4] ss:$16 sps:$4 sm:$0xff]   ;;  %v4695_v33 = vadd.f32 %v12974_v15, %v12939_v30 }
 0x94f   :  { %v4967_v4 = vpop.f32.mrf.mxu0  ;;  %v13029_v27 = vpop.f32.mrf.mxu1 }
 0x950   :  { %v4968_v18 = vadd.f32 %v4967_v4, %v4679_v51 }
 0x951   :  { %v4969_v56 = vpop.f32.mrf.mxu0  ;;  %v4808_v37 = vpop.f32.mrf.mxu1 }
 0x952   :  { %v5190_v16 = vmax.f32 %v4968_v18, 0.0 }
 0x953   :  { %v4972_v62 = vpop.f32.mrf.mxu0  ;;  %5163 = vmatmul.mubr.bf16.gmra.mxu0 %v11137_v23  ;;  %v13033_v35 = vpop.f32.mrf.mxu1 }
 0x954   :  { %v5248_v52 = vpack.c.bf16 %v5190_v16, %v5189_v34  ;;  %5170 = vmatprep.mubr.bf16.mxu0 %v11138_v12  ;;  %v4973_v60 = vadd.f32 %v4972_v62, %v4684_v46  ;;  %v4700_v34 = vadd.f32 %v12974_v15, %v12941_v55 }
 0x955   :  { %v4974_v28 = vpop.f32.mrf.mxu0  ;;  %v4813_v8 = vpop.f32.mrf.mxu1 }
 0x956   :  { %10407 = vmatmul.mubr.msk.bf16.gmra.mxu1 %vm173_vm0, %v5248_v52  ;;  %v5191_v25 = vmax.f32 %v4973_v60, 0.0  ;;  %v4703_v8 = vadd.f32 %v12974_v15, %v12943_v19 }
 0x957   :  { %v4975_v14 = vpop.f32.mrf.mxu0  ;;  %v13038_v36 = vpop.f32.mrf.mxu1 }
 0x958   :  { %v4976_v48 = vadd.f32 %v4975_v14, %v4687_v13 }
 0x959   :  { %v4977_v45 = vpop.f32.mrf.mxu0  ;;  %v4816_v20 = vpop.f32.mrf.mxu1 }
 0x95a   :  { %v5192_v39 = vmax.f32 %v4976_v48, 0.0  ;;  %v4708_v20 = vadd.f32 %v12974_v15, %v12945_v5 }
 0x95b   :  { %v4980_v54 = vpop.f32.mrf.mxu0  ;;  %5171 = vmatmul.mubr.bf16.gmra.mxu0 %v11139_v38  ;;  %v13042_v29 = vpop.f32.mrf.mxu1 }
 0x95c   :  { %v5249_v10 = vpack.c.bf16 %v5192_v39, %v5191_v25  ;;  %5749 = vmatprep.mubr.bf16.mxu0 %v11140_v26  ;;  %v4981_v4 = vadd.f32 %v4980_v54, %v4692_v49  ;;  %v4711_v26 = vadd.f32 %v12974_v15, %v12947_v21 }
 0x95d   :  { %v4982_v0 = vpop.f32.mrf.mxu0  ;;  %v4821_v51 = vpop.f32.mrf.mxu1 }
 0x95e   :  { %10410 = vmatprep.mubr.msk.bf16.mxu1 %vm173_vm0, %v5249_v10  ;;  %v5193_v16 = vmax.f32 %v4981_v4, 0.0 }
 0x95f   :  { %v4983_v18 = vpop.f32.mrf.mxu0  ;;  %v13047_v47 = vpop.f32.mrf.mxu1 }
 0x960   :  { %v4984_v56 = vadd.f32 %v4983_v18, %v4695_v33 }
 0x961   :  { %v4985_v37 = vpop.f32.mrf.mxu0  ;;  %v4824_v46 = vpop.f32.mrf.mxu1 }
 0x962   :  { %v5194_v62 = vmax.f32 %v4984_v56, 0.0  ;;  %v4716_v56 = vadd.f32 %v12974_v15, %v12949_v2 }
 0x963   :  { %v4988_v23 = vpop.f32.mrf.mxu0  ;;  %v13051_v52 = vpop.f32.mrf.mxu1 }
 0x964   :  { %v5250_v12 = vpack.c.bf16 %v5194_v62, %v5193_v16  ;;  %v4989_v13 = vadd.f32 %v4988_v23, %v4700_v34 }
 0x965   :  { %v4990_v28 = vpop.f32.mrf.mxu0  ;;  %v4829_v30 = vpop.f32.mrf.mxu1 }
 0x966   :  { %10411 = vmatmul.mubr.msk.bf16.gmra.mxu1 %vm173_vm0, %v5250_v12  ;;  %v5195_v49 = vmax.f32 %v4989_v13, 0.0  ;;  %v4719_v12 = vadd.f32 %v12974_v15, %v12951_v53 }
 0x967   :  { %v4991_v60 = vpop.f32.mrf.mxu0  ;;  %v13056_v14 = vpop.f32.mrf.mxu1 }
 0x968   :  { %v4992_v48 = vadd.f32 %v4991_v60, %v4703_v8 }
 0x969   :  { %v4993_v45 = vpop.f32.mrf.mxu0  ;;  %v4832_v55 = vpop.f32.mrf.mxu1 }
 0x96a   :  { %v5196_v25 = vmax.f32 %v4992_v48, 0.0  ;;  %v4724_v48 = vadd.f32 %v12974_v15, %v12953_v57 }
 0x96b   :  { %v4996_v39 = vpop.f32.mrf.mxu0  ;;  %v13060_v54 = vpop.f32.mrf.mxu1 }
 0x96c   :  { %v5251_v38 = vpack.c.bf16 %v5196_v25, %v5195_v49  ;;  %v4997_v0 = vadd.f32 %v4996_v39, %v4708_v20 }
 0x96d   :  { %v4998_v10 = vpop.f32.mrf.mxu0  ;;  %v4837_v19 = vpop.f32.mrf.mxu1 }
 0x96e   :  { %10414 = vmatprep.mubr.msk.bf16.mxu1 %vm173_vm0, %v5251_v38  ;;  %v5197_v37 = vmax.f32 %v4997_v0, 0.0  ;;  %v4727_v38 = vadd.f32 %v12974_v15, %v12955_v17 }
 0x96f   :  { %v4999_v51 = vpop.f32.mrf.mxu0  ;;  %v13065_v33 = vpop.f32.mrf.mxu1 }
 0x970   :  { %v5000_v4 = vadd.f32 %v4999_v51, %v4711_v26 }
 0x971   :  { %v5001_v18 = vpop.f32.mrf.mxu0  ;;  %v4840_v5 = vpop.f32.mrf.mxu1 }
 0x972   :  { %v5198_v46 = vmax.f32 %v5000_v4, 0.0  ;;  %v4732_v4 = vadd.f32 %v12974_v15, %v12957_v44 }
 0x973   :  { %v5004_v34 = vpop.f32.mrf.mxu0  ;;  %v13069_v16 = vpop.f32.mrf.mxu1 }
 0x974   :  { %v5252_v62 = vpack.c.bf16 %v5198_v46, %v5197_v37  ;;  %v5005_v28 = vadd.f32 %v5004_v34, %v4716_v56 }
 0x975   :  { %v5006_v23 = vpop.f32.mrf.mxu0  ;;  %v4845_v21 = vpop.f32.mrf.mxu1 }
 0x976   :  { %10415 = vmatmul.mubr.msk.bf16.gmra.mxu1 %vm173_vm0, %v5252_v62  ;;  %v5199_v45 = vmax.f32 %v5005_v28, 0.0  ;;  %v4735_v62 = vadd.f32 %v12974_v15, %v12959_v31 }
 0x977   :  { %v5007_v30 = vpop.f32.mrf.mxu0  ;;  %v13074_v8 = vpop.f32.mrf.mxu1 }
 0x978   :  { %v5008_v13 = vadd.f32 %v5007_v30, %v4719_v12 }
 0x979   :  { %v5009_v60 = vpop.f32.mrf.mxu0  ;;  %v4848_v2 = vpop.f32.mrf.mxu1 }
 0x97a   :  { %v5200_v55 = vmax.f32 %v5008_v13, 0.0  ;;  %v4740_v13 = vadd.f32 %v12974_v15, %v12961_v50 }
 0x97b   :  { %v5012_v20 = vpop.f32.mrf.mxu0  ;;  %v13078_v49 = vpop.f32.mrf.mxu1 }
 0x97c   :  { %v5253_v25 = vpack.c.bf16 %v5200_v55, %v5199_v45  ;;  %v5013_v10 = vadd.f32 %v5012_v20, %v4724_v48 }
 0x97d   :  { %v5014_v39 = vpop.f32.mrf.mxu0  ;;  %v4853_v53 = vpop.f32.mrf.mxu1 }
 0x97e   :  { %10418 = vmatprep.mubr.msk.bf16.mxu1 %vm173_vm0, %v5253_v25  ;;  %v5201_v18 = vmax.f32 %v5013_v10, 0.0  ;;  %v4743_v25 = vadd.f32 %v12974_v15, %v12963_v22 }
 0x97f   :  { %v5015_v19 = vpop.f32.mrf.mxu0  ;;  %v13083_v26 = vpop.f32.mrf.mxu1 }
 0x980   :  { %v5016_v0 = vadd.f32 %v5015_v19, %v4727_v38 }
 0x981   :  { %v5017_v51 = vpop.f32.mrf.mxu0  ;;  %v4856_v57 = vpop.f32.mrf.mxu1 }
 0x982   :  { %v5202_v5 = vmax.f32 %v5016_v0, 0.0  ;;  %v4748_v0 = vadd.f32 %v12974_v15, %v12965_v63 }
 0x983   :  { %v5020_v56 = vpop.f32.mrf.mxu0  ;;  %v13087_v37 = vpop.f32.mrf.mxu1 }
 0x984   :  { %v5254_v46 = vpack.c.bf16 %v5202_v5, %v5201_v18  ;;  %v5021_v23 = vadd.f32 %v5020_v56, %v4732_v4 }
 0x985   :  { %v5022_v34 = vpop.f32.mrf.mxu0  ;;  %v4861_v17 = vpop.f32.mrf.mxu1 }
 0x986   :  { %10419 = vmatmul.mubr.msk.bf16.gmra.mxu1 %vm173_vm0, %v5254_v46  ;;  %v5203_v60 = vmax.f32 %v5021_v23, 0.0  ;;  %v4751_v46 = vadd.f32 %v12974_v15, %v12967_v7 }
 0x987   :  { %v5023_v21 = vpop.f32.mrf.mxu0  ;;  %v13092_v12 = vpop.f32.mrf.mxu1 }
 0x988   :  { %v5024_v28 = vadd.f32 %v5023_v21, %v4735_v62 }
 0x989   :  { %v5025_v30 = vpop.f32.mrf.mxu0  ;;  %v4864_v44 = vpop.f32.mrf.mxu1 }
 0x98a   :  { %v5204_v2 = vmax.f32 %v5024_v28, 0.0  ;;  %v4756_v28 = vadd.f32 %v12974_v15, %v12969_v3 }
 0x98b   :  { %v5028_v48 = vpop.f32.mrf.mxu0  ;;  %v13096_v45 = vpop.f32.mrf.mxu1 }
 0x98c   :  { %v5255_v55 = vpack.c.bf16 %v5204_v2, %v5203_v60  ;;  %v5029_v39 = vadd.f32 %v5028_v48, %v4740_v13 }
 0x98d   :  { %v5030_v20 = vpop.f32.mrf.mxu0  ;;  %v4869_v31 = vpop.f32.mrf.mxu1 }
 0x98e   :  { %10422 = vmatprep.mubr.msk.bf16.mxu1 %vm173_vm0, %v5255_v55  ;;  %v5205_v51 = vmax.f32 %v5029_v39, 0.0  ;;  %v4759_v55 = vadd.f32 %v12974_v15, %v12976_v59  ;;  %v4767_v59 = vadd.f32 %v12974_v15, %v12984_v61 }
 0x98f   :  { %v5031_v53 = vpop.f32.mrf.mxu0  ;;  %v13101_v38 = vpop.f32.mrf.mxu1 }
 0x990   :  { %v5032_v10 = vadd.f32 %v5031_v53, %v4743_v25 }
 0x991   :  { %v5033_v19 = vpop.f32.mrf.mxu0  ;;  %v4872_v50 = vpop.f32.mrf.mxu1 }
 0x992   :  { %v5206_v57 = vmax.f32 %v5032_v10, 0.0  ;;  %v4764_v10 = vadd.f32 %v12974_v15, %v12980_v32 }
 0x993   :  { %v5036_v4 = vpop.f32.mrf.mxu0  ;;  %v13105_v18 = vpop.f32.mrf.mxu1 }
 0x994   :  { %v5256_v5 = vpack.c.bf16 %v5206_v57, %v5205_v51  ;;  %v5037_v34 = vadd.f32 %v5036_v4, %v4748_v0 }
 0x995   :  { %v5038_v56 = vpop.f32.mrf.mxu0  ;;  %v4877_v22 = vpop.f32.mrf.mxu1 }
 0x996   :  { %10423 = vmatmul.mubr.msk.bf16.gmra.mxu1 %vm173_vm0, %v5256_v5  ;;  %v5207_v30 = vmax.f32 %v5037_v34, 0.0 }
 0x997   :  { %v5039_v17 = vpop.f32.mrf.mxu0  ;;  %v13110_v62 = vpop.f32.mrf.mxu1 }
 0x998   :  { %v5040_v23 = vadd.f32 %v5039_v17, %v4751_v46  ;;  %v4772_v46 = vadd.f32 %v12974_v15, %v12988_v43 }
 0x999   :  { %v5041_v21 = vpop.f32.mrf.mxu0  ;;  %v4880_v63 = vpop.f32.mrf.mxu1 }
 0x99a   :  { %v5208_v44 = vmax.f32 %v5040_v23, 0.0  ;;  %v4775_v63 = vadd.f32 %v12974_v15, %v12993_v24 }
 0x99b   :  { %v5044_v13 = vpop.f32.mrf.mxu0  ;;  %v13114_v60 = vpop.f32.mrf.mxu1 }
 0x99c   :  { %v5257_v2 = vpack.c.bf16 %v5208_v44, %v5207_v30  ;;  %v5045_v20 = vadd.f32 %v5044_v13, %v4756_v28  ;;  %v4780_v13 = vadd.f32 %v12974_v15, %v12997_v40 }
 0x99d   :  { %v5046_v48 = vpop.f32.mrf.mxu0  ;;  %v4885_v7 = vpop.f32.mrf.mxu1 }
 0x99e   :  { %10426 = vmatprep.mubr.msk.bf16.mxu1 %vm173_vm0, %v5257_v2  ;;  %v5209_v19 = vmax.f32 %v5045_v20, 0.0  ;;  %v4783_v20 = vadd.f32 %v12974_v15, %v13002_v58 }
 0x99f   :  { %v5047_v31 = vpop.f32.mrf.mxu0  ;;  %v13119_v25 = vpop.f32.mrf.mxu1 }
 0x9a0   :  { %v5048_v39 = vadd.f32 %v5047_v31, %v4759_v55 }
 0x9a1   :  { %v5049_v53 = vpop.f32.mrf.mxu0  ;;  %v4888_v3 = vpop.f32.mrf.mxu1 }
 0x9a2   :  { %v5210_v50 = vmax.f32 %v5048_v39, 0.0  ;;  %v4788_v3 = vadd.f32 %v12974_v15, %v13006_v11 }
 0x9a3   :  { %v5052_v0 = vpop.f32.mrf.mxu0 }
 0x9a4   :  { %v5258_v51 = vpack.c.bf16 %v5210_v50, %v5209_v19  ;;  %v5053_v4 = vadd.f32 %v5052_v0, %v4764_v10 }
 0x9a5   :  { %v5054_v57 = vpop.f32.mrf.mxu0 }
 0x9a6   :  { %10427 = vmatmul.mubr.msk.bf16.gmra.mxu1 %vm173_vm0, %v5258_v51  ;;  %v5211_v34 = vmax.f32 %v5053_v4, 0.0  ;;  %v4791_v51 = vadd.f32 %v12974_v15, %v13011_v41 }
 0x9a7   :  { %v5055_v5 = vpop.f32.mrf.mxu0 }
 0x9a8   :  { %v5056_v56 = vadd.f32 %v5055_v5, %v4767_v59  ;;  %v4796_v5 = vadd.f32 %v12974_v15, %v13015_v9 }
 0x9a9   :  { %v5057_v22 = vpop.f32.mrf.mxu0 }
 0x9aa   :  { %v5212_v17 = vmax.f32 %v5056_v56, 0.0 }
 0x9ab   :  { %v5060_v32 = vpop.f32.mrf.mxu0 }
 0x9ac   :  { %v5259_v23 = vpack.c.bf16 %v5212_v17, %v5211_v34  ;;  %v5061_v28 = vadd.f32 %v5060_v32, %v4772_v46  ;;  %v4799_v17 = vadd.f32 %v12974_v15, %v13020_v42 }
 0x9ad   :  { %v5062_v21 = vpop.f32.mrf.mxu0 }
 0x9ae   :  { %10430 = vmatprep.mubr.msk.bf16.mxu1 %vm173_vm0, %v5259_v23  ;;  %v5213_v2 = vmax.f32 %v5061_v28, 0.0 }
 0x9af   :  { %v5063_v61 = vpop.f32.mrf.mxu0 }
 0x9b0   :  { %v5064_v30 = vadd.f32 %v5063_v61, %v4775_v63  ;;  %v4804_v63 = vadd.f32 %v12974_v15, %v13024_v1 }
 0x9b1   :  { %v5065_v44 = vpop.f32.mrf.mxu0 }
 0x9b2   :  { %v5214_v48 = vmax.f32 %v5064_v30, 0.0 }
 0x9b3   :  { %v5068_v43 = vpop.f32.mrf.mxu0 }
 0x9b4   :  { %v5260_v7 = vpack.c.bf16 %v5214_v48, %v5213_v2  ;;  %v5069_v31 = vadd.f32 %v5068_v43, %v4780_v13  ;;  %v4807_v13 = vadd.f32 %v12974_v15, %v13029_v27 }
 0x9b5   :  { %v5070_v55 = vpop.f32.mrf.mxu0 }
 0x9b6   :  { %10431 = vmatmul.mubr.msk.bf16.gmra.mxu1 %vm173_vm0, %v5260_v7  ;;  %v5215_v10 = vmax.f32 %v5069_v31, 0.0  ;;  %v4812_v7 = vadd.f32 %v12974_v15, %v13033_v35 }
 0x9b7   :  { %v5071_v24 = vpop.f32.mrf.mxu0 }
 0x9b8   :  { %v5072_v39 = vadd.f32 %v5071_v24, %v4783_v20 }
 0x9b9   :  { %v5073_v53 = vpop.f32.mrf.mxu0 }
 0x9ba   :  { %v5216_v19 = vmax.f32 %v5072_v39, 0.0  ;;  %v4815_v39 = vadd.f32 %v12974_v15, %v13038_v36 }
 0x9bb   :  { %v5076_v40 = vpop.f32.mrf.mxu0 }
 0x9bc   :  { %v5261_v50 = vpack.c.bf16 %v5216_v19, %v5215_v10  ;;  %v5077_v57 = vadd.f32 %v5076_v40, %v4788_v3  ;;  %v4820_v19 = vadd.f32 %v12974_v15, %v13042_v29 }
 0x9bd   :  { %v5078_v0 = vpop.f32.mrf.mxu0 }
 0x9be   :  { %10434 = vmatprep.mubr.msk.bf16.mxu1 %vm173_vm0, %v5261_v50  ;;  %v5217_v56 = vmax.f32 %v5077_v57, 0.0  ;;  %v4823_v57 = vadd.f32 %v12974_v15, %v13047_v47 }
 0x9bf   :  { %v5079_v58 = vpop.f32.mrf.mxu0 }
 0x9c0   :  { %v5080_v59 = vadd.f32 %v5079_v58, %v4791_v51 }
 0x9c1   :  { %v5081_v4 = vpop.f32.mrf.mxu0 }
 0x9c2   :  { %v5218_v22 = vmax.f32 %v5080_v59, 0.0 }
 0x9c3   :  { %v5084_v11 = vpop.f32.mrf.mxu0 }
 0x9c4   :  { %v5262_v46 = vpack.c.bf16 %v5218_v22, %v5217_v56  ;;  %v5085_v32 = vadd.f32 %v5084_v11, %v4796_v5  ;;  %v4828_v5 = vadd.f32 %v12974_v15, %v13051_v52 }
 0x9c5   :  { %v5086_v34 = vpop.f32.mrf.mxu0 }
 0x9c6   :  { %10435 = vmatmul.mubr.msk.bf16.gmra.mxu1 %vm173_vm0, %v5262_v46  ;;  %v5219_v28 = vmax.f32 %v5085_v32, 0.0  ;;  %v4831_v34 = vadd.f32 %v12974_v15, %v13056_v14 }
 0x9c7   :  { %v5087_v41 = vpop.f32.mrf.mxu0 }
 0x9c8   :  { %v5088_v23 = vadd.f32 %v5087_v41, %v4799_v17 }
 0x9c9   :  { %v5089_v21 = vpop.f32.mrf.mxu0 }
 0x9ca   :  { %v5220_v61 = vmax.f32 %v5088_v23, 0.0  ;;  %v4836_v23 = vadd.f32 %v12974_v15, %v13060_v54 }
 0x9cb   :  { %v5092_v9 = vpop.f32.mrf.mxu0 }
 0x9cc   :  { %v5263_v30 = vpack.c.bf16 %v5220_v61, %v5219_v28  ;;  %v5093_v2 = vadd.f32 %v5092_v9, %v4804_v63  ;;  %v4839_v9 = vadd.f32 %v12974_v15, %v13065_v33 }
 0x9cd   :  { %v5094_v44 = vpop.f32.mrf.mxu0 }
 0x9ce   :  { %10438 = vmatprep.mubr.msk.bf16.mxu1 %vm173_vm0, %v5263_v30  ;;  %v5221_v55 = vmax.f32 %v5093_v2, 0.0  ;;  %v4844_v2 = vadd.f32 %v12974_v15, %v13069_v16 }
 0x9cf   :  { %v5095_v42 = vpop.f32.mrf.mxu0 }
 0x9d0   :  { %v5096_v48 = vadd.f32 %v5095_v42, %v4807_v13 }
 0x9d1   :  { %v5097_v43 = vpop.f32.mrf.mxu0 }
 0x9d2   :  { %v5222_v20 = vmax.f32 %v5096_v48, 0.0 }
 0x9d3   :  { %v5100_v1 = vpop.f32.mrf.mxu0 }
 0x9d4   :  { %v5264_v31 = vpack.c.bf16 %v5222_v20, %v5221_v55  ;;  %v5101_v53 = vadd.f32 %v5100_v1, %v4812_v7  ;;  %v4847_v55 = vadd.f32 %v12974_v15, %v13074_v8 }
 0x9d5   :  { %v5102_v24 = vpop.f32.mrf.mxu0 }
 0x9d6   :  { %10439 = vmatmul.mubr.msk.bf16.gmra.mxu1 %vm173_vm0, %v5264_v31  ;;  %v5223_v40 = vmax.f32 %v5101_v53, 0.0  ;;  %v4852_v24 = vadd.f32 %v12974_v15, %v13078_v49  ;;  %v4860_v49 = vadd.f32 %v12974_v15, %v13087_v37  ;;  %v4868_v37 = vadd.f32 %v12974_v15, %v13096_v45 }
 0x9d7   :  { %v5103_v27 = vpop.f32.mrf.mxu0  ;;  %v4876_v45 = vadd.f32 %v12974_v15, %v13105_v18  ;;  %v4884_v18 = vadd.f32 %v12974_v15, %v13114_v60 }
 0x9d8   :  { %v5104_v3 = vadd.f32 %v5103_v27, %v4815_v39 }
 0x9d9   :  { %v5105_v10 = vpop.f32.mrf.mxu0 }
 0x9da   :  { %v5224_v50 = vmax.f32 %v5104_v3, 0.0 }
 0x9db   :  { %v5108_v35 = vpop.f32.mrf.mxu0 }
 0x9dc   :  { %v5265_v0 = vpack.c.bf16 %v5224_v50, %v5223_v40  ;;  %v5109_v58 = vadd.f32 %v5108_v35, %v4820_v19  ;;  %v4855_v19 = vadd.f32 %v12974_v15, %v13083_v26  ;;  %v4863_v26 = vadd.f32 %v12974_v15, %v13092_v12 }
 0x9dd   :  { %v5110_v51 = vpop.f32.mrf.mxu0  ;;  %v4871_v12 = vadd.f32 %v12974_v15, %v13101_v38  ;;  %v4879_v38 = vadd.f32 %v12974_v15, %v13110_v62  ;;  %v4887_v62 = vadd.f32 %v12974_v15, %v13119_v25 }
 0x9de   :  { %10442 = vmatprep.mubr.msk.bf16.mxu1 %vm173_vm0, %v5265_v0  ;;  %v5225_v56 = vmax.f32 %v5109_v58, 0.0 }
 0x9df   :  { %v5111_v36 = vpop.f32.mrf.mxu0 }
 0x9e0   :  { %v5112_v59 = vadd.f32 %v5111_v36, %v4823_v57 }
 0x9e1   :  { %v5113_v4 = vpop.f32.mrf.mxu0 }
 0x9e2   :  { %v5226_v22 = vmax.f32 %v5112_v59, 0.0 }
 0x9e3   :  { %v5116_v29 = vpop.f32.mrf.mxu0 }
 0x9e4   :  { %v5266_v11 = vpack.c.bf16 %v5226_v22, %v5225_v56  ;;  %v5117_v17 = vadd.f32 %v5116_v29, %v4828_v5 }
 0x9e5   :  { %v5118_v46 = vpop.f32.mrf.mxu0 }
 0x9e6   :  { %10443 = vmatmul.mubr.msk.bf16.gmra.mxu1 %vm173_vm0, %v5266_v11  ;;  %v5227_v21 = vmax.f32 %v5117_v17, 0.0 }
 0x9e7   :  { %v5119_v47 = vpop.f32.mrf.mxu0 }
 0x9e8   :  { %v5120_v32 = vadd.f32 %v5119_v47, %v4831_v34 }
 0x9e9   :  { %v5121_v41 = vpop.f32.mrf.mxu0 }
 0x9ea   :  { %v5228_v63 = vmax.f32 %v5120_v32, 0.0 }
 0x9eb   :  { %v5124_v52 = vpop.f32.mrf.mxu0 }
 0x9ec   :  { %v5267_v28 = vpack.c.bf16 %v5228_v63, %v5227_v21  ;;  %v5125_v30 = vadd.f32 %v5124_v52, %v4836_v23 }
 0x9ed   :  { %v5126_v61 = vpop.f32.mrf.mxu0 }
 0x9ee   :  { %10446 = vmatprep.mubr.msk.bf16.mxu1 %vm173_vm0, %v5267_v28  ;;  %v5229_v42 = vmax.f32 %v5125_v30, 0.0 }
 0x9ef   :  { %v5127_v14 = vpop.f32.mrf.mxu0 }
 0x9f0   :  { %v5128_v44 = vadd.f32 %v5127_v14, %v4839_v9 }
 0x9f1   :  { %v5129_v13 = vpop.f32.mrf.mxu0 }
 0x9f2   :  { %v5230_v48 = vmax.f32 %v5128_v44, 0.0 }
 0x9f3   :  { %v5132_v54 = vpop.f32.mrf.mxu0 }
 0x9f4   :  { %v5268_v43 = vpack.c.bf16 %v5230_v48, %v5229_v42  ;;  %v5133_v20 = vadd.f32 %v5132_v54, %v4844_v2 }
 0x9f5   :  { %v5134_v7 = vpop.f32.mrf.mxu0 }
 0x9f6   :  { %10447 = vmatmul.mubr.msk.bf16.gmra.mxu1 %vm173_vm0, %v5268_v43  ;;  %v5231_v39 = vmax.f32 %v5133_v20, 0.0  ;;  %v13178_v27 = vpop.f32.mrf.mxu1 }
 0x9f7   :  { %v5135_v33 = vpop.f32.mrf.mxu0 }
 0x9f8   :  { %v5136_v1 = vadd.f32 %v5135_v33, %v4847_v55  ;;  %v13183_v50 = vpop.f32.mrf.mxu1 }
 0x9f9   :  { %v5137_v31 = vpop.f32.mrf.mxu0 }
 0x9fa   :  { %v5232_v53 = vmax.f32 %v5136_v1, 0.0  ;;  %v13187_v36 = vpop.f32.mrf.mxu1 }
 0x9fb   :  { %v5140_v16 = vpop.f32.mrf.mxu0 }
 0x9fc   :  { %v5269_v3 = vpack.c.bf16 %v5232_v53, %v5231_v39  ;;  %v5141_v8 = vadd.f32 %v5140_v16, %v4852_v24  ;;  %v13192_v22 = vpop.f32.mrf.mxu1 }
 0x9fd   :  { %v5142_v10 = vpop.f32.mrf.mxu0 }
 0x9fe   :  { %10450 = vmatprep.mubr.msk.bf16.mxu1 %vm173_vm0, %v5269_v3  ;;  %v5233_v51 = vmax.f32 %v5141_v8, 0.0 }
 0x9ff   :  { %v5143_v40 = vpop.f32.mrf.mxu0 }
 0xa00   :  { %v5144_v35 = vadd.f32 %v5143_v40, %v4855_v19 }
 0xa01   :  { %v5145_v0 = vpop.f32.mrf.mxu0 }
 0xa02   :  { %v5234_v57 = vmax.f32 %v5144_v35, 0.0  ;;  %v11141_v0 = vld [vmem:[#allocation2 + $0xc] ss:$16 sps:$4 sm:$0xff]  }
 0xa03   :  { %v5148_v58 = vpop.f32.mrf.mxu0 }
 0xa04   :  { %v5270_v59 = vpack.c.bf16 %v5234_v57, %v5233_v51  ;;  %v5149_v5 = vadd.f32 %v5148_v58, %v4860_v49 }
 0xa05   :  { %v5150_v4 = vpop.f32.mrf.mxu0 }
 0xa06   :  { %10451 = vmatmul.mubr.msk.bf16.gmra.mxu1 %vm173_vm0, %v5270_v59  ;;  %v5235_v46 = vmax.f32 %v5149_v5, 0.0  ;;  %v13196_v34 = vpop.f32.mrf.mxu1 }
 0xa07   :  { %v5151_v56 = vpop.f32.mrf.mxu0 }
 0xa08   :  { %v5152_v29 = vadd.f32 %v5151_v56, %v4863_v26  ;;  %v13200_v23 = vpop.f32.mrf.mxu1 }
 0xa09   :  { %v5153_v11 = vpop.f32.mrf.mxu0 }
 0xa0a   :  { %v5236_v17 = vmax.f32 %v5152_v29, 0.0  ;;  %v10405_v61 = vpop.f32.mrf.mxu1  ;;  %v5678_v29 = vpack.c.bf16 %v13187_v36, %v13178_v27 }
 0xa0b   :  { %v5156_v47 = vpop.f32.mrf.mxu0  ;;  %v5680_v4 = vpack.c.bf16 %v10405_v61, %v13196_v34 }
 0xa0c   :  { %v5271_v32 = vpack.c.bf16 %v5236_v17, %v5235_v46  ;;  %v5157_v21 = vadd.f32 %v5156_v47, %v4868_v37  ;;  %v5441_v2 = vpop.f32.mrf.mxu1  ;;  %v5677_v37 = vpack.c.bf16 %v13192_v22, %v13183_v50 }
 0xa0d   :  { %v5158_v41 = vpop.f32.mrf.mxu0  ;;  %v5679_v5 = vpack.c.bf16 %v5441_v2, %v13200_v23 }
 0xa0e   :  { %10454 = vmatprep.mubr.msk.bf16.mxu1 %vm173_vm0, %v5271_v32  ;;  %v5237_v9 = vmax.f32 %v5157_v21, 0.0 }
 0xa0f   :  { %v5159_v63 = vpop.f32.mrf.mxu0 }
 0xa10   :  { %v5160_v52 = vadd.f32 %v5159_v63, %v4871_v12 }
 0xa11   :  { %v5161_v28 = vpop.f32.mrf.mxu0 }
 0xa12   :  { %v5238_v30 = vmax.f32 %v5160_v52, 0.0 }
 0xa13   :  { %v5164_v14 = vpop.f32.mrf.mxu0 }
 0xa14   :  { %v5272_v44 = vpack.c.bf16 %v5238_v30, %v5237_v9  ;;  %v5165_v42 = vadd.f32 %v5164_v14, %v4876_v45 }
 0xa15   :  { %v5166_v13 = vpop.f32.mrf.mxu0 }
 0xa16   :  { %10455 = vmatmul.mubr.msk.bf16.gmra.mxu1 %vm173_vm0, %v5272_v44  ;;  %v10408_v54 = vpop.f32.mrf.mxu1  ;;  %v5239_v55 = vmax.f32 %v5165_v42, 0.0 }
 0xa17   :  { %v5167_v48 = vpop.f32.mrf.mxu0 }
 0xa18   :  { %v5168_v43 = vadd.f32 %v5167_v48, %v4879_v38  ;;  %v5454_v31 = vpop.f32.mrf.mxu1  ;;  %v11142_v48 = vld [vmem:[#allocation2] ss:$16 sps:$4 sm:$0xff]  }
 0xa19   :  { %v5169_v7 = vpop.f32.mrf.mxu0 }
 0xa1a   :  { %v5240_v20 = vmax.f32 %v5168_v43, 0.0  ;;  %v10409_v16 = vpop.f32.mrf.mxu1 }
 0xa1b   :  { %v5172_v33 = vpop.f32.mrf.mxu0  ;;  %v5682_v58 = vpack.c.bf16 %v10409_v16, %v10408_v54  ;;  %v11143_v54 = vld [vmem:[#allocation2 + $0x24] ss:$16 sps:$4 sm:$0xff]  }
 0xa1c   :  { %v5273_v1 = vpack.c.bf16 %v5240_v20, %v5239_v55  ;;  %v5173_v39 = vadd.f32 %v5172_v33, %v4884_v18  ;;  %v5457_v40 = vpop.f32.mrf.mxu1  ;;  %v11144_v18 = vld [vmem:[#allocation2 + $0x20] ss:$16 sps:$4 sm:$0xff]   ;;  %v11145_v55 = vld [vmem:[#allocation2 + $0x44] ss:$16 sps:$4 sm:$0xff]  }
 0xa1d   :  { %v5174_v24 = vpop.f32.mrf.mxu0  ;;  %v5681_v59 = vpack.c.bf16 %v5457_v40, %v5454_v31  ;;  %v11146_v31 = vld [vmem:[#allocation2 + $0x40] ss:$16 sps:$4 sm:$0xff]   ;;  %v11149_v16 = vld [vmem:[#allocation2 + $0x84] ss:$16 sps:$4 sm:$0xff]  }
 0xa1e   :  { %10458 = vmatprep.mubr.msk.bf16.mxu1 %vm173_vm0, %v5273_v1  ;;  %v5241_v19 = vmax.f32 %v5173_v39, 0.0  ;;  %v11147_v24 = vld [vmem:[#allocation2 + $0x64] ss:$16 sps:$4 sm:$0xff]  }
 0xa1f   :  { %v5175_v53 = vpop.f32.mrf.mxu0 }
 0xa20   :  { %v5176_v3 = vadd.f32 %v5175_v53, %v4887_v62  ;;  %v11148_v53 = vld [vmem:[#allocation2 + $0x60] ss:$16 sps:$4 sm:$0xff]  }
 0xa21   :  { %v5177_v10 = vpop.f32.mrf.mxu0 }
 0xa22   :  { %v5242_v8 = vmax.f32 %v5176_v3, 0.0 }
 0xa24   :  { %v5274_v60 = vpack.c.bf16 %v5242_v8, %v5241_v19 }
 0xa26   :  { %v10412_v35 = vpop.f32.mrf.mxu1  ;;  %10459 = vmatmul.mubr.msk.bf16.gmra.mxu1 %vm173_vm0, %v5274_v60  ;;  %v11150_v60 = vld [vmem:[#allocation2 + $0x80] ss:$16 sps:$4 sm:$0xff]  }
 0xa27   :  { %6038 = vmatprep.mubr.bf16.mxu1 %v11141_v0 }
 0xa28   :  { %v5470_v49 = vpop.f32.mrf.mxu1 }
 0xa2a   :  { %v10413_v51 = vpop.f32.mrf.mxu1 }
 0xa2b   :  { %v5684_v57 = vpack.c.bf16 %v10413_v51, %v10412_v35  ;;  %v11151_v35 = vld [vmem:[#allocation2 + $0xa4] ss:$16 sps:$4 sm:$0xff]   ;;  %v11152_v51 = vld [vmem:[#allocation2 + $0xa0] ss:$16 sps:$4 sm:$0xff]  }
 0xa2c   :  { %v5473_v15 = vpop.f32.mrf.mxu1 }
 0xa2d   :  { %5718 = vmatpush1.bf16.msra.mxu0 %v5684_v57  ;;  %v5683_v25 = vpack.c.bf16 %v5473_v15, %v5470_v49  ;;  %v11153_v57 = vld [vmem:[#allocation2 + $0xc4] ss:$16 sps:$4 sm:$0xff]  }
 0xa2e   :  { %5719 = vmatprep.subr.bf16.mxu0 %v11571_v6 }
 0xa31   :  { %5720 = vmatpush1.bf16.msra.mxu0 %v5683_v25 }
 0xa32   :  { %5721 = vmatprep.subr.bf16.mxu0 %v11571_v6 }
 0xa35   :  { %5722 = vmatpush1.bf16.msra.mxu0 %v5682_v58 }
 0xa36   :  { %5723 = vmatprep.subr.bf16.mxu0 %v11571_v6  ;;  %v10416_v26 = vpop.f32.mrf.mxu1 }
 0xa38   :  { %v5486_v56 = vpop.f32.mrf.mxu1 }
 0xa39   :  { %5724 = vmatpush1.bf16.msra.mxu0 %v5681_v59  ;;  %v11154_v59 = vld [vmem:[#allocation2 + $0xc0] ss:$16 sps:$4 sm:$0xff]  }
 0xa3a   :  { %5725 = vmatprep.subr.bf16.mxu0 %v11571_v6  ;;  %v10417_v11 = vpop.f32.mrf.mxu1 }
 0xa3b   :  { %v5686_v44 = vpack.c.bf16 %v10417_v11, %v10416_v26  ;;  %v11156_v11 = vld [vmem:[#allocation2 + $0xe0] ss:$16 sps:$4 sm:$0xff]  }
 0xa3c   :  { %v5489_v46 = vpop.f32.mrf.mxu1 }
 0xa3d   :  { %5726 = vmatpush1.bf16.msra.mxu0 %v5680_v4  ;;  %v5685_v38 = vpack.c.bf16 %v5489_v46, %v5486_v56  ;;  %v11155_v4 = vld [vmem:[#allocation2 + $0xe4] ss:$16 sps:$4 sm:$0xff]  }
 0xa3e   :  { %5727 = vmatprep.subr.bf16.mxu0 %v11571_v6 }
 0xa41   :  { %5728 = vmatpush1.bf16.msra.mxu0 %v5679_v5 }
 0xa42   :  { %5729 = vmatprep.subr.bf16.mxu0 %v11571_v6 }
 0xa45   :  { %5730 = vmatpush1.bf16.msra.mxu0 %v5678_v29 }
 0xa46   :  { %5731 = vmatprep.subr.bf16.mxu0 %v11571_v6  ;;  %v10420_v34 = vpop.f32.mrf.mxu1 }
 0xa48   :  { %v5502_v17 = vpop.f32.mrf.mxu1 }
 0xa49   :  { %5732 = vmatpush1.bf16.msra.mxu0 %v5677_v37  ;;  %v11157_v37 = vld [vmem:[#allocation2 + $0x104] ss:$16 sps:$4 sm:$0xff]  }
 0xa4a   :  { %5733 = vmatprep.subr.bf16.mxu0 %v11571_v6  ;;  %v10421_v47 = vpop.f32.mrf.mxu1 }
 0xa4b   :  { %v5688_v61 = vpack.c.bf16 %v10421_v47, %v10420_v34  ;;  %v11158_v47 = vld [vmem:[#allocation2 + $0x100] ss:$16 sps:$4 sm:$0xff]  }
 0xa4c   :  { %v5505_v32 = vpop.f32.mrf.mxu1 }
 0xa4d   :  { %v5687_v30 = vpack.c.bf16 %v5505_v32, %v5502_v17  ;;  %v11159_v32 = vld [vmem:[#allocation2 + $0x124] ss:$16 sps:$4 sm:$0xff]  }
 0xa56   :  { %v10424_v41 = vpop.f32.mrf.mxu1 }
 0xa58   :  { %v5518_v12 = vpop.f32.mrf.mxu1 }
 0xa5a   :  { %v10425_v23 = vpop.f32.mrf.mxu1 }
 0xa5b   :  { %v5690_v22 = vpack.c.bf16 %v10425_v23, %v10424_v41  ;;  %v11160_v23 = vld [vmem:[#allocation2 + $0x120] ss:$16 sps:$4 sm:$0xff]  }
 0xa5c   :  { %v5521_v21 = vpop.f32.mrf.mxu1 }
 0xa5d   :  { %v5689_v45 = vpack.c.bf16 %v5521_v21, %v5518_v12  ;;  %v11161_v21 = vld [vmem:[#allocation2 + $0x144] ss:$16 sps:$4 sm:$0xff]  }
 0xa66   :  { %v10428_v27 = vpop.f32.mrf.mxu1 }
 0xa68   :  { %v5534_v36 = vpop.f32.mrf.mxu1 }
 0xa6a   :  { %v10429_v63 = vpop.f32.mrf.mxu1 }
 0xa6b   :  { %v5692_v52 = vpack.c.bf16 %v10429_v63, %v10428_v27 }
 0xa6c   :  { %v5537_v28 = vpop.f32.mrf.mxu1 }
 0xa6d   :  { %5734 = vmatpush2.bf16.msra.mxu0 %v5692_v52  ;;  %v5691_v50 = vpack.c.bf16 %v5537_v28, %v5534_v36  ;;  %v11162_v52 = vld [vmem:[#allocation2 + $0x140] ss:$16 sps:$4 sm:$0xff]   ;;  %v11163_v28 = vld [vmem:[#allocation2 + $0x164] ss:$16 sps:$4 sm:$0xff]  }
 0xa6e   :  { %5735 = vmatprep.subr.bf16.mxu0 %v11571_v6 }
 0xa71   :  { %5736 = vmatpush2.bf16.msra.mxu0 %v5691_v50 }
 0xa72   :  { %5737 = vmatprep.subr.bf16.mxu0 %v11571_v6 }
 0xa75   :  { %5738 = vmatpush2.bf16.msra.mxu0 %v5690_v22 }
 0xa76   :  { %5739 = vmatprep.subr.bf16.mxu0 %v11571_v6  ;;  %v13232_v9 = vpop.f32.mrf.mxu1 }
 0xa78   :  { %v13235_v14 = vpop.f32.mrf.mxu1 }
 0xa79   :  { %5740 = vmatpush2.bf16.msra.mxu0 %v5689_v45  ;;  %v11164_v45 = vld [vmem:[#allocation2 + $0x160] ss:$16 sps:$4 sm:$0xff]  }
 0xa7a   :  { %5741 = vmatprep.subr.bf16.mxu0 %v11571_v6  ;;  %v13238_v13 = vpop.f32.mrf.mxu1 }
 0xa7b   :  { %v5694_v56 = vpack.c.bf16 %v13238_v13, %v13232_v9 }
 0xa7c   :  { %v13241_v2 = vpop.f32.mrf.mxu1 }
 0xa7d   :  { %5742 = vmatpush2.bf16.msra.mxu0 %v5688_v61  ;;  %v5693_v46 = vpack.c.bf16 %v13241_v2, %v13235_v14  ;;  %v11165_v61 = vld [vmem:[#allocation2 + $0x184] ss:$16 sps:$4 sm:$0xff]  }
 0xa7e   :  { %5743 = vmatprep.subr.bf16.mxu0 %v11571_v6  ;;  %v11167_v2 = vld [vmem:[#allocation2 + $0x1a4] ss:$16 sps:$4 sm:$0xff]  }
 0xa81   :  { %5744 = vmatpush2.bf16.msra.mxu0 %v5687_v30 }
 0xa82   :  { %5745 = vmatprep.subr.bf16.mxu0 %v11571_v6 }
 0xa85   :  { %5746 = vmatpush2.bf16.msra.mxu0 %v5686_v44 }
 0xa86   :  { %5747 = vmatprep.subr.bf16.mxu0 %v11571_v6  ;;  %v10436_v42 = vpop.f32.mrf.mxu1 }
 0xa88   :  { %v5566_v43 = vpop.f32.mrf.mxu1 }
 0xa89   :  { %5748 = vmatpush2.bf16.msra.mxu0 %v5685_v38  ;;  %v11166_v38 = vld [vmem:[#allocation2 + $0x180] ss:$16 sps:$4 sm:$0xff]  }
 0xa8a   :  { %v10437_v7 = vpop.f32.mrf.mxu1 }
 0xa8b   :  { %v5696_v25 = vpack.c.bf16 %v10437_v7, %v10436_v42 }
 0xa8c   :  { %5750 = vmatmul.mubr.bf16.vlgmr.msra.gmra.mxu0 %v11142_v48  ;;  %v5569_v20 = vpop.f32.mrf.mxu1 }
 0xa8d   :  { %5757 = vmatprep.mubr.bf16.mxu0 %v11143_v54  ;;  %v5695_v26 = vpack.c.bf16 %v5569_v20, %v5566_v43  ;;  %v11168_v54 = vld [vmem:[#allocation2 + $0x1a0] ss:$16 sps:$4 sm:$0xff]   ;;  %v11169_v43 = vld [vmem:[#allocation2 + $0x1c4] ss:$16 sps:$4 sm:$0xff]  }
 0xa8e   :  { %v11171_v20 = vld [vmem:[#allocation2 + $0x1e4] ss:$16 sps:$4 sm:$0xff]  }
 0xa94   :  { %5758 = vmatmul.mubr.bf16.gmra.mxu0 %v11144_v18 }
 0xa95   :  { %5765 = vmatprep.mubr.bf16.mxu0 %v11145_v55  ;;  %v11170_v55 = vld [vmem:[#allocation2 + $0x1c0] ss:$16 sps:$4 sm:$0xff]  }
 0xa96   :  { %v10440_v33 = vpop.f32.mrf.mxu1 }
 0xa98   :  { %v5582_v1 = vpop.f32.mrf.mxu1 }
 0xa9a   :  { %v10441_v62 = vpop.f32.mrf.mxu1 }
 0xa9b   :  { %v5698_v49 = vpack.c.bf16 %v10441_v62, %v10440_v33 }
 0xa9c   :  { %5766 = vmatmul.mubr.bf16.gmra.mxu0 %v11146_v31  ;;  %v5585_v39 = vpop.f32.mrf.mxu1  ;;  %v11172_v31 = vld [vmem:[#allocation2 + $0x1e0] ss:$16 sps:$4 sm:$0xff]  }
 0xa9d   :  { %5773 = vmatprep.mubr.bf16.mxu0 %v11147_v24  ;;  %v5697_v15 = vpack.c.bf16 %v5585_v39, %v5582_v1  ;;  %v11173_v24 = vld [vmem:[#allocation2 + $0x204] ss:$16 sps:$4 sm:$0xff]   ;;  %v11174_v39 = vld [vmem:[#allocation2 + $0x8] ss:$16 sps:$4 sm:$0xff]  }
 0xaa4   :  { %5774 = vmatmul.mubr.bf16.gmra.mxu0 %v11148_v53  ;;  %v11175_v53 = vld [vmem:[#allocation2 + $0x200] ss:$16 sps:$4 sm:$0xff]  }
 0xaa5   :  { %5781 = vmatprep.mubr.bf16.mxu0 %v11149_v16  ;;  %v11176_v16 = vld [vmem:[#allocation2 + $0x2c] ss:$16 sps:$4 sm:$0xff]  }
 0xaa6   :  { %v10444_v3 = vpop.f32.mrf.mxu1 }
 0xaa8   :  { %v5598_v10 = vpop.f32.mrf.mxu1 }
 0xaaa   :  { %v10445_v19 = vpop.f32.mrf.mxu1 }
 0xaab   :  { %v5700_v8 = vpack.c.bf16 %v10445_v19, %v10444_v3  ;;  %v11177_v3 = vld [vmem:[#allocation2 + $0x224] ss:$16 sps:$4 sm:$0xff]   ;;  %v11179_v19 = vld [vmem:[#allocation2 + $0x220] ss:$16 sps:$4 sm:$0xff]  }
 0xaac   :  { %v5601_v40 = vpop.f32.mrf.mxu1  ;;  %5782 = vmatmul.mubr.bf16.gmra.mxu0 %v11150_v60  ;;  %v11182_v60 = vld [vmem:[#allocation2 + $0x48] ss:$16 sps:$4 sm:$0xff]  }
 0xaad   :  { %6007 = vmatpush1.bf16.msra.mxu1 %v5700_v8  ;;  %5789 = vmatprep.mubr.bf16.mxu0 %v11151_v35  ;;  %v5699_v0 = vpack.c.bf16 %v5601_v40, %v5598_v10  ;;  %v11178_v10 = vld [vmem:[#allocation2 + $0x28] ss:$16 sps:$4 sm:$0xff]   ;;  %v11180_v8 = vld [vmem:[#allocation2 + $0x4c] ss:$16 sps:$4 sm:$0xff]   ;;  %v11181_v40 = vld [vmem:[#allocation2 + $0x244] ss:$16 sps:$4 sm:$0xff]  }
 0xaae   :  { %6008 = vmatprep.subr.bf16.mxu1 %v11571_v6  ;;  %v11183_v35 = vld [vmem:[#allocation2 + $0x240] ss:$16 sps:$4 sm:$0xff]  }
 0xab1   :  { %6009 = vmatpush1.bf16.msra.mxu1 %v5699_v0  ;;  %v11184_v0 = vld [vmem:[#allocation2 + $0x6c] ss:$16 sps:$4 sm:$0xff]  }
 0xab2   :  { %6010 = vmatprep.subr.bf16.mxu1 %v11571_v6 }
 0xab4   :  { %5790 = vmatmul.mubr.bf16.gmra.mxu0 %v11152_v51  ;;  %v11186_v51 = vld [vmem:[#allocation2 + $0x68] ss:$16 sps:$4 sm:$0xff]  }
 0xab5   :  { %6011 = vmatpush1.bf16.msra.mxu1 %v5698_v49  ;;  %5797 = vmatprep.mubr.bf16.mxu0 %v11153_v57  ;;  %v11185_v49 = vld [vmem:[#allocation2 + $0x264] ss:$16 sps:$4 sm:$0xff]   ;;  %v11187_v57 = vld [vmem:[#allocation2 + $0x260] ss:$16 sps:$4 sm:$0xff]  }
 0xab6   :  { %6012 = vmatprep.subr.bf16.mxu1 %v11571_v6  ;;  %v13247_v58 = vpop.f32.mrf.mxu1 }
 0xab8   :  { %v13250_v5 = vpop.f32.mrf.mxu1 }
 0xab9   :  { %6013 = vmatpush1.bf16.msra.mxu1 %v5697_v15  ;;  %v11188_v15 = vld [vmem:[#allocation2 + $0x8c] ss:$16 sps:$4 sm:$0xff]  }
 0xaba   :  { %6014 = vmatprep.subr.bf16.mxu1 %v11571_v6  ;;  %v13255_v29 = vpop.f32.mrf.mxu1 }
 0xabb   :  { %v5702_v1 = vpack.c.bf16 %v13255_v29, %v13247_v58  ;;  %v11190_v58 = vld [vmem:[#allocation2 + $0x88] ss:$16 sps:$4 sm:$0xff]   ;;  %v11196_v29 = vld [vmem:[#allocation2 + $0xcc] ss:$16 sps:$4 sm:$0xff]  }
 0xabc   :  { %5798 = vmatmul.mubr.bf16.gmra.mxu0 %v11154_v59  ;;  %v13260_v34 = vpop.f32.mrf.mxu1  ;;  %v11191_v59 = vld [vmem:[#allocation2 + $0x280] ss:$16 sps:$4 sm:$0xff]  }
 0xabd   :  { %6015 = vmatpush1.bf16.msra.mxu1 %v5696_v25  ;;  %5805 = vmatprep.mubr.bf16.mxu0 %v11155_v4  ;;  %v5701_v62 = vpack.c.bf16 %v13260_v34, %v13250_v5  ;;  %v11189_v25 = vld [vmem:[#allocation2 + $0x284] ss:$16 sps:$4 sm:$0xff]   ;;  %v11192_v4 = vld [vmem:[#allocation2 + $0xac] ss:$16 sps:$4 sm:$0xff]   ;;  %v11194_v5 = vld [vmem:[#allocation2 + $0xa8] ss:$16 sps:$4 sm:$0xff]  }
 0xabe   :  { %6016 = vmatprep.subr.bf16.mxu1 %v11571_v6  ;;  %v11200_v34 = vld [vmem:[#allocation2 + $0xec] ss:$16 sps:$4 sm:$0xff]  }
 0xac1   :  { %6017 = vmatpush1.bf16.msra.mxu1 %v5695_v26  ;;  %v11193_v26 = vld [vmem:[#allocation2 + $0x2a4] ss:$16 sps:$4 sm:$0xff]  }
 0xac2   :  { %6018 = vmatprep.subr.bf16.mxu1 %v11571_v6 }
 0xac4   :  { %5806 = vmatmul.mubr.bf16.gmra.mxu0 %v11156_v11  ;;  %v11197_v11 = vld [vmem:[#allocation2 + $0x2c4] ss:$16 sps:$4 sm:$0xff]  }
 0xac5   :  { %6019 = vmatpush1.bf16.msra.mxu1 %v5694_v56  ;;  %5813 = vmatprep.mubr.bf16.mxu0 %v11157_v37  ;;  %v11195_v56 = vld [vmem:[#allocation2 + $0x2a0] ss:$16 sps:$4 sm:$0xff]   ;;  %v11198_v37 = vld [vmem:[#allocation2 + $0xc8] ss:$16 sps:$4 sm:$0xff]  }
 0xac6   :  { %6020 = vmatprep.subr.bf16.mxu1 %v11571_v6  ;;  %v10452_v17 = vpop.f32.mrf.mxu1 }
 0xac8   :  { %v5630_v41 = vpop.f32.mrf.mxu1 }
 0xac9   :  { %6021 = vmatpush1.bf16.msra.mxu1 %v5693_v46  ;;  %v11199_v46 = vld [vmem:[#allocation2 + $0x2c0] ss:$16 sps:$4 sm:$0xff]  }
 0xaca   :  { %6022 = vmatprep.subr.bf16.mxu1 %v11571_v6  ;;  %v10453_v12 = vpop.f32.mrf.mxu1 }
 0xacb   :  { %v5704_v18 = vpack.c.bf16 %v10453_v12, %v10452_v17  ;;  %v11201_v17 = vld [vmem:[#allocation2 + $0x2e4] ss:$16 sps:$4 sm:$0xff]  }
 0xacc   :  { %5814 = vmatmul.mubr.bf16.gmra.mxu0 %v11158_v47  ;;  %v5633_v27 = vpop.f32.mrf.mxu1  ;;  %v11202_v47 = vld [vmem:[#allocation2 + $0xe8] ss:$16 sps:$4 sm:$0xff]   ;;  %v11205_v12 = vld [vmem:[#allocation2 + $0x304] ss:$16 sps:$4 sm:$0xff]  }
 0xacd   :  { %5821 = vmatprep.mubr.bf16.mxu0 %v11159_v32  ;;  %v5703_v33 = vpack.c.bf16 %v5633_v27, %v5630_v41  ;;  %v11203_v32 = vld [vmem:[#allocation2 + $0x2e0] ss:$16 sps:$4 sm:$0xff]   ;;  %v11204_v41 = vld [vmem:[#allocation2 + $0x10c] ss:$16 sps:$4 sm:$0xff]  }
 0xad4   :  { %5822 = vmatmul.mubr.bf16.gmra.mxu0 %v11160_v23  ;;  %v11206_v23 = vld [vmem:[#allocation2 + $0x108] ss:$16 sps:$4 sm:$0xff]  }
 0xad5   :  { %5829 = vmatprep.mubr.bf16.mxu0 %v11161_v21  ;;  %v11207_v21 = vld [vmem:[#allocation2 + $0x300] ss:$16 sps:$4 sm:$0xff]  }
 0xad6   :  { %v10456_v36 = vpop.f32.mrf.mxu1 }
 0xad8   :  { %v5646_v63 = vpop.f32.mrf.mxu1 }
 0xada   :  { %v10457_v50 = vpop.f32.mrf.mxu1 }
 0xadb   :  { %v5706_v48 = vpack.c.bf16 %v10457_v50, %v10456_v36  ;;  %v11208_v36 = vld [vmem:[#allocation2 + $0x12c] ss:$16 sps:$4 sm:$0xff]  }
 0xadc   :  { %5830 = vmatmul.mubr.bf16.gmra.mxu0 %v11162_v52  ;;  %v5649_v22 = vpop.f32.mrf.mxu1 }
 0xadd   :  { %5837 = vmatprep.mubr.bf16.mxu0 %v11163_v28  ;;  %v5705_v7 = vpack.c.bf16 %v5649_v22, %v5646_v63  ;;  %v11209_v63 = vld [vmem:[#allocation2 + $0x324] ss:$16 sps:$4 sm:$0xff]   ;;  %v11210_v22 = vld [vmem:[#allocation2 + $0x128] ss:$16 sps:$4 sm:$0xff]  }
 0xae4   :  { %5838 = vmatmul.mubr.bf16.gmra.mxu0 %v11164_v45  ;;  %v11211_v45 = vld [vmem:[#allocation2 + $0x320] ss:$16 sps:$4 sm:$0xff]  }
 0xae5   :  { %5845 = vmatprep.mubr.bf16.mxu0 %v11165_v61 }
 0xae6   :  { %v10460_v9 = vpop.f32.mrf.mxu1 }
 0xae8   :  { %v5662_v30 = vpop.f32.mrf.mxu1 }
 0xaea   :  { %v10461_v14 = vpop.f32.mrf.mxu1 }
 0xaeb   :  { %v5708_v44 = vpack.c.bf16 %v10461_v14, %v10460_v9  ;;  %v11212_v9 = vld [vmem:[#allocation2 + $0x14c] ss:$16 sps:$4 sm:$0xff]  }
 0xaec   :  { %v5665_v13 = vpop.f32.mrf.mxu1  ;;  %5846 = vmatmul.mubr.bf16.gmra.mxu0 %v11166_v38  ;;  %v10849_v14 = vld [vmem:[%s14448_s5 + $0x48] sm:$0xff]   ;;  %v10850_v38 = vld [vmem:[%s14448_s5 + $0x40] sm:$0xff]  }
 0xaed   :  { %6023 = vmatpush2.bf16.msra.mxu1 %v5708_v44  ;;  %5853 = vmatprep.mubr.bf16.mxu0 %v11167_v2  ;;  %v5707_v42 = vpack.c.bf16 %v5665_v13, %v5662_v30  ;;  %v11213_v30 = vld [vmem:[#allocation2 + $0x344] ss:$16 sps:$4 sm:$0xff]  }
 0xaee   :  { %6024 = vmatprep.subr.bf16.mxu1 %v11571_v6  ;;  %10462 = vmatprep.subr.bf16.mxu0 %v10849_v14 }
 0xaef   :  { %10463 = vmatpush3.bf16.msra.mxu0 %v10849_v14  ;;  %v11240_v14 = vld [vmem:[#allocation2 + $0x24c] ss:$16 sps:$4 sm:$0xff]  }
 0xaf0   :  { %10464 = vmatprep.subr.bf16.mxu0 %v10850_v38 }
 0xaf1   :  { %6025 = vmatpush2.bf16.msra.mxu1 %v5707_v42  ;;  %v11214_v42 = vld [vmem:[#allocation2 + $0x148] ss:$16 sps:$4 sm:$0xff]  }
 0xaf2   :  { %6026 = vmatprep.subr.bf16.mxu1 %v11571_v6 }
 0xaf3   :  { %10465 = vmatpush3.bf16.msra.mxu0 %v10850_v38 }
 0xaf4   :  { %5854 = vmatmul.mubr.bf16.gmra.mxu0 %v11168_v54  ;;  %7122 = vmatprep.subr.bf16.mxu0 %v11571_v6 }
 0xaf5   :  { %6027 = vmatpush2.bf16.msra.mxu1 %v5706_v48  ;;  %5861 = vmatprep.mubr.bf16.mxu0 %v11169_v43  ;;  %v11215_v48 = vld [vmem:[#allocation2 + $0x340] ss:$16 sps:$4 sm:$0xff]   ;;  %v11216_v43 = vld [vmem:[#allocation2 + $0x16c] ss:$16 sps:$4 sm:$0xff]  }
 0xaf6   :  { %6028 = vmatprep.subr.bf16.mxu1 %v11571_v6 }
 0xaf9   :  { %6029 = vmatpush2.bf16.msra.mxu1 %v5705_v7  ;;  %v11217_v7 = vld [vmem:[#allocation2 + $0x364] ss:$16 sps:$4 sm:$0xff]  }
 0xafa   :  { %6030 = vmatprep.subr.bf16.mxu1 %v11571_v6 }
 0xafc   :  { %5862 = vmatmul.mubr.bf16.gmra.mxu0 %v11170_v55 }
 0xafd   :  { %6031 = vmatpush2.bf16.msra.mxu1 %v5704_v18  ;;  %5869 = vmatprep.mubr.bf16.mxu0 %v11171_v20 }
 0xafe   :  { %6032 = vmatprep.subr.bf16.mxu1 %v11571_v6 }
 0xb01   :  { %6033 = vmatpush2.bf16.msra.mxu1 %v5703_v33  ;;  %v11218_v33 = vld [vmem:[#allocation2 + $0x168] ss:$16 sps:$4 sm:$0xff]  }
 0xb02   :  { %6034 = vmatprep.subr.bf16.mxu1 %v11571_v6 }
 0xb04   :  { %5870 = vmatmul.mubr.bf16.gmra.mxu0 %v11172_v31 }
 0xb05   :  { %6035 = vmatpush2.bf16.msra.mxu1 %v5702_v1  ;;  %5877 = vmatprep.mubr.bf16.mxu0 %v11173_v24  ;;  %v11219_v1 = vld [vmem:[#allocation2 + $0x360] ss:$16 sps:$4 sm:$0xff]   ;;  %v11220_v24 = vld [vmem:[#allocation2 + $0x18c] ss:$16 sps:$4 sm:$0xff]  }
 0xb06   :  { %6036 = vmatprep.subr.bf16.mxu1 %v11571_v6 }
 0xb09   :  { %6037 = vmatpush2.bf16.msra.mxu1 %v5701_v62  ;;  %v11221_v62 = vld [vmem:[#allocation2 + $0x384] ss:$16 sps:$4 sm:$0xff]  }
 0xb0a   :  { %6833 = vmatprep.subr.bf16.mxu1 %v11571_v6 }
 0xb0c   :  { %6039 = vmatmul.mubr.bf16.vlgmr.msra.gmra.mxu1 %v11174_v39  ;;  %5878 = vmatmul.mubr.bf16.gmra.mxu0 %v11175_v53 }
 0xb0d   :  { %6046 = vmatprep.mubr.bf16.mxu1 %v11176_v16  ;;  %5885 = vmatprep.mubr.bf16.mxu0 %v11177_v3  ;;  %v11222_v3 = vld [vmem:[#allocation2 + $0x188] ss:$16 sps:$4 sm:$0xff]  }
 0xb14   :  { %6047 = vmatmul.mubr.bf16.gmra.mxu1 %v11178_v10  ;;  %5886 = vmatmul.mubr.bf16.gmra.mxu0 %v11179_v19  ;;  %v11223_v10 = vld [vmem:[#allocation2 + $0x380] ss:$16 sps:$4 sm:$0xff]  }
 0xb15   :  { %6054 = vmatprep.mubr.bf16.mxu1 %v11180_v8  ;;  %5893 = vmatprep.mubr.bf16.mxu0 %v11181_v40  ;;  %v11224_v8 = vld [vmem:[#allocation2 + $0x1ac] ss:$16 sps:$4 sm:$0xff]   ;;  %v11225_v40 = vld [vmem:[#allocation2 + $0x3a4] ss:$16 sps:$4 sm:$0xff]  }
 0xb1c   :  { %6055 = vmatmul.mubr.bf16.gmra.mxu1 %v11182_v60  ;;  %5894 = vmatmul.mubr.bf16.gmra.mxu0 %v11183_v35 }
 0xb1d   :  { %6062 = vmatprep.mubr.bf16.mxu1 %v11184_v0  ;;  %5901 = vmatprep.mubr.bf16.mxu0 %v11185_v49  ;;  %v11226_v49 = vld [vmem:[#allocation2 + $0x1a8] ss:$16 sps:$4 sm:$0xff]  }
 0xb24   :  { %6063 = vmatmul.mubr.bf16.gmra.mxu1 %v11186_v51  ;;  %5902 = vmatmul.mubr.bf16.gmra.mxu0 %v11187_v57  ;;  %v11227_v51 = vld [vmem:[#allocation2 + $0x3a0] ss:$16 sps:$4 sm:$0xff]  }
 0xb25   :  { %6070 = vmatprep.mubr.bf16.mxu1 %v11188_v15  ;;  %5909 = vmatprep.mubr.bf16.mxu0 %v11189_v25  ;;  %v11228_v15 = vld [vmem:[#allocation2 + $0x1cc] ss:$16 sps:$4 sm:$0xff]   ;;  %v11229_v25 = vld [vmem:[#allocation2 + $0x3c4] ss:$16 sps:$4 sm:$0xff]  }
 0xb2c   :  { %6071 = vmatmul.mubr.bf16.gmra.mxu1 %v11190_v58  ;;  %5910 = vmatmul.mubr.bf16.gmra.mxu0 %v11191_v59 }
 0xb2d   :  { %6078 = vmatprep.mubr.bf16.mxu1 %v11192_v4  ;;  %5917 = vmatprep.mubr.bf16.mxu0 %v11193_v26  ;;  %v11230_v26 = vld [vmem:[#allocation2 + $0x1c8] ss:$16 sps:$4 sm:$0xff]  }
 0xb34   :  { %6079 = vmatmul.mubr.bf16.gmra.mxu1 %v11194_v5  ;;  %5918 = vmatmul.mubr.bf16.gmra.mxu0 %v11195_v56  ;;  %v11231_v5 = vld [vmem:[#allocation2 + $0x3c0] ss:$16 sps:$4 sm:$0xff]  }
 0xb35   :  { %6086 = vmatprep.mubr.bf16.mxu1 %v11196_v29  ;;  %5925 = vmatprep.mubr.bf16.mxu0 %v11197_v11  ;;  %v11232_v29 = vld [vmem:[#allocation2 + $0x1ec] ss:$16 sps:$4 sm:$0xff]   ;;  %v11233_v11 = vld [vmem:[#allocation2 + $0x3e4] ss:$16 sps:$4 sm:$0xff]  }
 0xb3c   :  { %6087 = vmatmul.mubr.bf16.gmra.mxu1 %v11198_v37  ;;  %5926 = vmatmul.mubr.bf16.gmra.mxu0 %v11199_v46 }
 0xb3d   :  { %6094 = vmatprep.mubr.bf16.mxu1 %v11200_v34  ;;  %5933 = vmatprep.mubr.bf16.mxu0 %v11201_v17  ;;  %v11234_v17 = vld [vmem:[#allocation2 + $0x1e8] ss:$16 sps:$4 sm:$0xff]  }
 0xb44   :  { %6095 = vmatmul.mubr.bf16.gmra.mxu1 %v11202_v47  ;;  %5934 = vmatmul.mubr.bf16.gmra.mxu0 %v11203_v32  ;;  %v11235_v47 = vld [vmem:[#allocation2 + $0x3e0] ss:$16 sps:$4 sm:$0xff]  }
 0xb45   :  { %6102 = vmatprep.mubr.bf16.mxu1 %v11204_v41  ;;  %5941 = vmatprep.mubr.bf16.mxu0 %v11205_v12  ;;  %v11236_v41 = vld [vmem:[#allocation2 + $0x20c] ss:$16 sps:$4 sm:$0xff]  }
 0xb4c   :  { %6103 = vmatmul.mubr.bf16.gmra.mxu1 %v11206_v23  ;;  %5942 = vmatmul.mubr.bf16.gmra.mxu0 %v11207_v21  ;;  %v13275_v27 = vpop.f32.mrf.mxu0 }
 0xb4d   :  { %6110 = vmatprep.mubr.bf16.mxu1 %v11208_v36  ;;  %5949 = vmatprep.mubr.bf16.mxu0 %v11209_v63  ;;  %v11237_v36 = vld [vmem:[#allocation2 + $0x208] ss:$16 sps:$4 sm:$0xff]  }
 0xb4e   :  { %v5753_v52 = vpop.f32.mrf.mxu0 }
 0xb4f   :  { %v11238_v52 = vld [vmem:[#allocation2 + $0x22c] ss:$16 sps:$4 sm:$0xff]  }
 0xb50   :  { %v13277_v28 = vpop.f32.mrf.mxu0 }
 0xb52   :  { %v5756_v50 = vpop.f32.mrf.mxu0 }
 0xb54   :  { %6111 = vmatmul.mubr.bf16.gmra.mxu1 %v11210_v22  ;;  %5950 = vmatmul.mubr.bf16.gmra.mxu0 %v11211_v45  ;;  %v13279_v61 = vpop.f32.mrf.mxu0 }
 0xb55   :  { %6118 = vmatprep.mubr.bf16.mxu1 %v11212_v9  ;;  %5957 = vmatprep.mubr.bf16.mxu0 %v11213_v30  ;;  %v11239_v9 = vld [vmem:[#allocation2 + $0x228] ss:$16 sps:$4 sm:$0xff]  }
 0xb56   :  { %v5761_v44 = vpop.f32.mrf.mxu0 }
 0xb58   :  { %v13284_v13 = vpop.f32.mrf.mxu0 }
 0xb5a   :  { %v5764_v2 = vpop.f32.mrf.mxu0 }
 0xb5c   :  { %6119 = vmatmul.mubr.bf16.gmra.mxu1 %v11214_v42  ;;  %5958 = vmatmul.mubr.bf16.gmra.mxu0 %v11215_v48  ;;  %v13289_v54 = vpop.f32.mrf.mxu0  ;;  %v11241_v42 = vld [vmem:[#allocation2 + $0x248] ss:$16 sps:$4 sm:$0xff]  }
 0xb5d   :  { %6126 = vmatprep.mubr.bf16.mxu1 %v11216_v43  ;;  %5965 = vmatprep.mubr.bf16.mxu0 %v11217_v7  ;;  %v11242_v43 = vld [vmem:[#allocation2 + $0x26c] ss:$16 sps:$4 sm:$0xff]  }
 0xb5e   :  { %v5769_v18 = vpop.f32.mrf.mxu0 }
 0xb60   :  { %v13292_v55 = vpop.f32.mrf.mxu0 }
 0xb62   :  { %v5772_v20 = vpop.f32.mrf.mxu0 }
 0xb64   :  { %6127 = vmatmul.mubr.bf16.gmra.mxu1 %v11218_v33  ;;  %5966 = vmatmul.mubr.bf16.gmra.mxu0 %v11219_v1  ;;  %v13294_v31 = vpop.f32.mrf.mxu0  ;;  %v11243_v33 = vld [vmem:[#allocation2 + $0x268] ss:$16 sps:$4 sm:$0xff]  }
 0xb65   :  { %6134 = vmatprep.mubr.bf16.mxu1 %v11220_v24  ;;  %5973 = vmatprep.mubr.bf16.mxu0 %v11221_v62  ;;  %v11244_v24 = vld [vmem:[#allocation2 + $0x28c] ss:$16 sps:$4 sm:$0xff]  }
 0xb66   :  { %v5777_v39 = vpop.f32.mrf.mxu0 }
 0xb68   :  { %v13296_v53 = vpop.f32.mrf.mxu0 }
 0xb6a   :  { %v5780_v16 = vpop.f32.mrf.mxu0 }
 0xb6c   :  { %6135 = vmatmul.mubr.bf16.gmra.mxu1 %v11222_v3  ;;  %5974 = vmatmul.mubr.bf16.gmra.mxu0 %v11223_v10  ;;  %v13298_v19 = vpop.f32.mrf.mxu0  ;;  %v11245_v3 = vld [vmem:[#allocation2 + $0x288] ss:$16 sps:$4 sm:$0xff]  }
 0xb6d   :  { %6142 = vmatprep.mubr.bf16.mxu1 %v11224_v8  ;;  %5981 = vmatprep.mubr.bf16.mxu0 %v11225_v40  ;;  %v11246_v8 = vld [vmem:[#allocation2 + $0x2ac] ss:$16 sps:$4 sm:$0xff]  }
 0xb6e   :  { %v5785_v60 = vpop.f32.mrf.mxu0 }
 0xb70   :  { %v13300_v35 = vpop.f32.mrf.mxu0 }
 0xb72   :  { %v5788_v0 = vpop.f32.mrf.mxu0 }
 0xb74   :  { %6143 = vmatmul.mubr.bf16.gmra.mxu1 %v11226_v49  ;;  %5982 = vmatmul.mubr.bf16.gmra.mxu0 %v11227_v51  ;;  %v13302_v57 = vpop.f32.mrf.mxu0  ;;  %v11247_v49 = vld [vmem:[#allocation2 + $0x2a8] ss:$16 sps:$4 sm:$0xff]  }
 0xb75   :  { %6150 = vmatprep.mubr.bf16.mxu1 %v11228_v15  ;;  %5989 = vmatprep.mubr.bf16.mxu0 %v11229_v25  ;;  %v11248_v15 = vld [vmem:[#allocation2 + $0x2cc] ss:$16 sps:$4 sm:$0xff]  }
 0xb76   :  { %v5793_v58 = vpop.f32.mrf.mxu0 }
 0xb78   :  { %v13304_v59 = vpop.f32.mrf.mxu0 }
 0xb7a   :  { %v5796_v4 = vpop.f32.mrf.mxu0 }
 0xb7c   :  { %6151 = vmatmul.mubr.bf16.gmra.mxu1 %v11230_v26  ;;  %5990 = vmatmul.mubr.bf16.gmra.mxu0 %v11231_v5  ;;  %v13306_v56 = vpop.f32.mrf.mxu0  ;;  %v11249_v26 = vld [vmem:[#allocation2 + $0x2c8] ss:$16 sps:$4 sm:$0xff]  }
 0xb7d   :  { %6158 = vmatprep.mubr.bf16.mxu1 %v11232_v29  ;;  %5997 = vmatprep.mubr.bf16.mxu0 %v11233_v11  ;;  %v11250_v29 = vld [vmem:[#allocation2 + $0x2ec] ss:$16 sps:$4 sm:$0xff]  }
 0xb7e   :  { %v5801_v37 = vpop.f32.mrf.mxu0 }
 0xb80   :  { %v13308_v46 = vpop.f32.mrf.mxu0 }
 0xb82   :  { %v5804_v34 = vpop.f32.mrf.mxu0 }
 0xb84   :  { %6159 = vmatmul.mubr.bf16.gmra.mxu1 %v11234_v17  ;;  %5998 = vmatmul.mubr.bf16.gmra.mxu0 %v11235_v47  ;;  %v13310_v32 = vpop.f32.mrf.mxu0  ;;  %v11251_v17 = vld [vmem:[#allocation2 + $0x2e8] ss:$16 sps:$4 sm:$0xff]  }
 0xb85   :  { %6166 = vmatprep.mubr.bf16.mxu1 %v11236_v41  ;;  %v11252_v41 = vld [vmem:[#allocation2 + $0x30c] ss:$16 sps:$4 sm:$0xff]  }
 0xb86   :  { %v5809_v12 = vpop.f32.mrf.mxu0 }
 0xb88   :  { %v13312_v23 = vpop.f32.mrf.mxu0 }
 0xb8a   :  { %v5812_v21 = vpop.f32.mrf.mxu0 }
 0xb8b   :  { %v13347_v21 = vld [vmem:[%s14449_s6 + $0x3] ss:$0 sm:$0xff] }
 0xb8c   :  { %6167 = vmatmul.mubr.bf16.gmra.mxu1 %v11237_v36  ;;  %v13314_v63 = vpop.f32.mrf.mxu0 }
 0xb8d   :  { %6174 = vmatprep.mubr.bf16.mxu1 %v11238_v52 }
 0xb8e   :  { %v5817_v50 = vpop.f32.mrf.mxu0 }
 0xb8f   :  { %v5752_v50 = vadd.f32 %v13347_v21, %v13275_v27  ;;  %v5760_v27 = vadd.f32 %v13347_v21, %v13279_v61 }
 0xb90   :  { %v13316_v22 = vpop.f32.mrf.mxu0 }
 0xb92   :  { %v5820_v45 = vpop.f32.mrf.mxu0 }
 0xb94   :  { %6175 = vmatmul.mubr.bf16.gmra.mxu1 %v11239_v9  ;;  %v13318_v30 = vpop.f32.mrf.mxu0  ;;  %v11253_v9 = vld [vmem:[#allocation2 + $0x308] ss:$16 sps:$4 sm:$0xff]  }
 0xb95   :  { %6182 = vmatprep.mubr.bf16.mxu1 %v11240_v14 }
 0xb96   :  { %v5825_v44 = vpop.f32.mrf.mxu0 }
 0xb97   :  { %v11254_v44 = vld [vmem:[#allocation2 + $0x32c] ss:$16 sps:$4 sm:$0xff]  }
 0xb98   :  { %v13320_v38 = vpop.f32.mrf.mxu0 }
 0xb9a   :  { %v5828_v2 = vpop.f32.mrf.mxu0 }
 0xb9c   :  { %6183 = vmatmul.mubr.bf16.gmra.mxu1 %v11241_v42  ;;  %v13322_v48 = vpop.f32.mrf.mxu0 }
 0xb9d   :  { %6190 = vmatprep.mubr.bf16.mxu1 %v11242_v43  ;;  %v5755_v43 = vadd.f32 %v13347_v21, %v13277_v28 }
 0xb9e   :  { %v5833_v7 = vpop.f32.mrf.mxu0 }
 0xba0   :  { %v13324_v18 = vpop.f32.mrf.mxu0 }
 0xba2   :  { %v5836_v20 = vpop.f32.mrf.mxu0 }
 0xba4   :  { %6191 = vmatmul.mubr.bf16.gmra.mxu1 %v11243_v33  ;;  %v13326_v1 = vpop.f32.mrf.mxu0 }
 0xba5   :  { %6198 = vmatprep.mubr.bf16.mxu1 %v11244_v24 }
 0xba6   :  { %v5841_v62 = vpop.f32.mrf.mxu0 }
 0xba8   :  { %v13328_v39 = vpop.f32.mrf.mxu0 }
 0xbaa   :  { %v5844_v16 = vpop.f32.mrf.mxu0 }
 0xbac   :  { %6199 = vmatmul.mubr.bf16.gmra.mxu1 %v11245_v3  ;;  %v13330_v10 = vpop.f32.mrf.mxu0 }
 0xbad   :  { %6206 = vmatprep.mubr.bf16.mxu1 %v11246_v8 }
 0xbae   :  { %v5849_v40 = vpop.f32.mrf.mxu0 }
 0xbb0   :  { %v13332_v60 = vpop.f32.mrf.mxu0 }
 0xbb2   :  { %v5852_v0 = vpop.f32.mrf.mxu0 }
 0xbb3   :  { %v11255_v0 = vld [vmem:[#allocation2 + $0x328] ss:$16 sps:$4 sm:$0xff]  }
 0xbb4   :  { %6207 = vmatmul.mubr.bf16.gmra.mxu1 %v11247_v49  ;;  %v13334_v51 = vpop.f32.mrf.mxu0 }
 0xbb5   :  { %6214 = vmatprep.mubr.bf16.mxu1 %v11248_v15 }
 0xbb6   :  { %v5857_v25 = vpop.f32.mrf.mxu0 }
 0xbb7   :  { %v11256_v25 = vld [vmem:[#allocation2 + $0x34c] ss:$16 sps:$4 sm:$0xff]  }
 0xbb8   :  { %v13336_v58 = vpop.f32.mrf.mxu0 }
 0xbba   :  { %v5860_v4 = vpop.f32.mrf.mxu0 }
 0xbbc   :  { %6215 = vmatmul.mubr.bf16.gmra.mxu1 %v11249_v26  ;;  %v13338_v5 = vpop.f32.mrf.mxu0  ;;  %v5763_v26 = vadd.f32 %v13347_v21, %v13284_v13 }
 0xbbd   :  { %6222 = vmatprep.mubr.bf16.mxu1 %v11250_v29 }
 0xbbe   :  { %v5865_v11 = vpop.f32.mrf.mxu0 }
 0xbc0   :  { %v13340_v37 = vpop.f32.mrf.mxu0 }
 0xbc2   :  { %v5868_v34 = vpop.f32.mrf.mxu0 }
 0xbc4   :  { %6223 = vmatmul.mubr.bf16.gmra.mxu1 %v11251_v17  ;;  %v13342_v47 = vpop.f32.mrf.mxu0 }
 0xbc5   :  { %6230 = vmatprep.mubr.bf16.mxu1 %v11252_v41 }
 0xbc6   :  { %v5873_v12 = vpop.f32.mrf.mxu0 }
 0xbc7   :  { %v5768_v12 = vadd.f32 %v13347_v21, %v13289_v54 }
 0xbc8   :  { %v13349_v36 = vpop.f32.mrf.mxu0 }
 0xbca   :  { %v5876_v52 = vpop.f32.mrf.mxu0 }
 0xbcc   :  { %v6040_v45 = vpop.f32.mrf.mxu1  ;;  %6231 = vmatmul.mubr.bf16.gmra.mxu1 %v11253_v9  ;;  %v13353_v14 = vpop.f32.mrf.mxu0  ;;  %v11257_v9 = vld [vmem:[#allocation2 + $0x348] ss:$16 sps:$4 sm:$0xff]  }
 0xbcd   :  { %6238 = vmatprep.mubr.bf16.mxu1 %v11254_v44  ;;  %v6041_v7 = vadd.f32 %v6040_v45, %v5752_v50 }
 0xbce   :  { %v6042_v2 = vpop.f32.mrf.mxu1  ;;  %v5881_v42 = vpop.f32.mrf.mxu0 }
 0xbcf   :  { %v6295_v3 = vmax.f32 %v6041_v7, 0.0  ;;  %v11258_v2 = vld [vmem:[#allocation2 + $0x36c] ss:$16 sps:$4 sm:$0xff]   ;;  %v5771_v7 = vadd.f32 %v13347_v21, %v13292_v55 }
 0xbd0   :  { %v6043_v20 = vpop.f32.mrf.mxu1  ;;  %v13357_v33 = vpop.f32.mrf.mxu0 }
 0xbd1   :  { %v6044_v24 = vadd.f32 %v6043_v20, %v5755_v43 }
 0xbd2   :  { %v6045_v62 = vpop.f32.mrf.mxu1  ;;  %v5884_v16 = vpop.f32.mrf.mxu0 }
 0xbd3   :  { %v6296_v8 = vmax.f32 %v6044_v24, 0.0 }
 0xbd4   :  { %v6048_v40 = vpop.f32.mrf.mxu1  ;;  %6239 = vmatmul.mubr.bf16.gmra.mxu1 %v11255_v0  ;;  %v13361_v49 = vpop.f32.mrf.mxu0 }
 0xbd5   :  { %v6359_v15 = vpack.c.bf16 %v6296_v8, %v6295_v3  ;;  %6246 = vmatprep.mubr.bf16.mxu1 %v11256_v25  ;;  %v6049_v29 = vadd.f32 %v6048_v40, %v5760_v27  ;;  %v5776_v3 = vadd.f32 %v13347_v21, %v13294_v31 }
 0xbd6   :  { %v6050_v28 = vpop.f32.mrf.mxu1  ;;  %v5889_v4 = vpop.f32.mrf.mxu0 }
 0xbd7   :  { %10466 = vmatprep.mubr.msk.bf16.mxu0 %vm173_vm0, %v6359_v15  ;;  %v6297_v52 = vmax.f32 %v6049_v29, 0.0  ;;  %v11259_v15 = vld [vmem:[#allocation2 + $0x368] ss:$16 sps:$4 sm:$0xff]   ;;  %v11260_v28 = vld [vmem:[#allocation2 + $0x38c] ss:$16 sps:$4 sm:$0xff]   ;;  %v5779_v29 = vadd.f32 %v13347_v21, %v13296_v53 }
 0xbd8   :  { %v6051_v11 = vpop.f32.mrf.mxu1  ;;  %v13366_v61 = vpop.f32.mrf.mxu0 }
 0xbd9   :  { %v6052_v34 = vadd.f32 %v6051_v11, %v5763_v26 }
 0xbda   :  { %v6053_v17 = vpop.f32.mrf.mxu1  ;;  %v5892_v41 = vpop.f32.mrf.mxu0 }
 0xbdb   :  { %v6298_v50 = vmax.f32 %v6052_v34, 0.0 }
 0xbdc   :  { %v6056_v45 = vpop.f32.mrf.mxu1  ;;  %6247 = vmatmul.mubr.bf16.gmra.mxu1 %v11257_v9  ;;  %v13370_v44 = vpop.f32.mrf.mxu0 }
 0xbdd   :  { %v6360_v13 = vpack.c.bf16 %v6298_v50, %v6297_v52  ;;  %6254 = vmatprep.mubr.bf16.mxu1 %v11258_v2  ;;  %v6057_v20 = vadd.f32 %v6056_v45, %v5768_v12  ;;  %v5784_v52 = vadd.f32 %v13347_v21, %v13298_v19 }
 0xbde   :  { %v6058_v42 = vpop.f32.mrf.mxu1  ;;  %v5897_v43 = vpop.f32.mrf.mxu0 }
 0xbdf   :  { %10467 = vmatmul.mubr.msk.bf16.vlgmr.msra.gmra.mxu0 %vm173_vm0, %v6360_v13  ;;  %v6299_v8 = vmax.f32 %v6057_v20, 0.0  ;;  %v11261_v13 = vld [vmem:[#allocation2 + $0x388] ss:$16 sps:$4 sm:$0xff]   ;;  %v11262_v42 = vld [vmem:[#allocation2 + $0x3ac] ss:$16 sps:$4 sm:$0xff]   ;;  %v5787_v20 = vadd.f32 %v13347_v21, %v13300_v35 }
 0xbe0   :  { %v6059_v24 = vpop.f32.mrf.mxu1  ;;  %v13375_v54 = vpop.f32.mrf.mxu0 }
 0xbe1   :  { %v6060_v62 = vadd.f32 %v6059_v24, %v5771_v7 }
 0xbe2   :  { %v6061_v16 = vpop.f32.mrf.mxu1  ;;  %v5900_v27 = vpop.f32.mrf.mxu0 }
 0xbe3   :  { %v6300_v40 = vmax.f32 %v6060_v62, 0.0 }
 0xbe4   :  { %v6064_v0 = vpop.f32.mrf.mxu1  ;;  %6255 = vmatmul.mubr.bf16.gmra.mxu1 %v11259_v15  ;;  %v13379_v25 = vpop.f32.mrf.mxu0 }
 0xbe5   :  { %v6361_v55 = vpack.c.bf16 %v6300_v40, %v6299_v8  ;;  %6262 = vmatprep.mubr.bf16.mxu1 %v11260_v28  ;;  %v6065_v11 = vadd.f32 %v6064_v0, %v5776_v3  ;;  %v5792_v8 = vadd.f32 %v13347_v21, %v13302_v57 }
 0xbe6   :  { %v6066_v4 = vpop.f32.mrf.mxu1  ;;  %v5905_v26 = vpop.f32.mrf.mxu0 }
 0xbe7   :  { %10470 = vmatprep.mubr.msk.bf16.mxu0 %vm173_vm0, %v6361_v55  ;;  %v6301_v50 = vmax.f32 %v6065_v11, 0.0  ;;  %v11263_v55 = vld [vmem:[#allocation2 + $0x3a8] ss:$16 sps:$4 sm:$0xff]   ;;  %v11264_v4 = vld [vmem:[#allocation2 + $0x3cc] ss:$16 sps:$4 sm:$0xff]   ;;  %v5795_v11 = vadd.f32 %v13347_v21, %v13304_v59 }
 0xbe8   :  { %v6067_v34 = vpop.f32.mrf.mxu1  ;;  %v13384_v31 = vpop.f32.mrf.mxu0 }
 0xbe9   :  { %v6068_v17 = vadd.f32 %v6067_v34, %v5779_v29 }
 0xbea   :  { %v6069_v41 = vpop.f32.mrf.mxu1  ;;  %v5908_v12 = vpop.f32.mrf.mxu0 }
 0xbeb   :  { %v6302_v45 = vmax.f32 %v6068_v17, 0.0 }
 0xbec   :  { %v6072_v9 = vpop.f32.mrf.mxu1  ;;  %6263 = vmatmul.mubr.bf16.gmra.mxu1 %v11261_v13  ;;  %v13388_v2 = vpop.f32.mrf.mxu0 }
 0xbed   :  { %v6362_v53 = vpack.c.bf16 %v6302_v45, %v6301_v50  ;;  %6270 = vmatprep.mubr.bf16.mxu1 %v11262_v42  ;;  %v6073_v24 = vadd.f32 %v6072_v9, %v5784_v52  ;;  %v5800_v50 = vadd.f32 %v13347_v21, %v13306_v56 }
 0xbee   :  { %v6074_v43 = vpop.f32.mrf.mxu1  ;;  %v5913_v7 = vpop.f32.mrf.mxu0 }
 0xbef   :  { %10471 = vmatmul.mubr.msk.bf16.gmra.mxu0 %vm173_vm0, %v6362_v53  ;;  %v6303_v40 = vmax.f32 %v6073_v24, 0.0  ;;  %v11265_v53 = vld [vmem:[#allocation2 + $0x3c8] ss:$16 sps:$4 sm:$0xff]   ;;  %v11266_v43 = vld [vmem:[#allocation2 + $0x3ec] ss:$16 sps:$4 sm:$0xff]   ;;  %v5803_v24 = vadd.f32 %v13347_v21, %v13308_v46 }
 0xbf0   :  { %v6075_v62 = vpop.f32.mrf.mxu1  ;;  %v13393_v19 = vpop.f32.mrf.mxu0 }
 0xbf1   :  { %v6076_v16 = vadd.f32 %v6075_v62, %v5787_v20 }
 0xbf2   :  { %v6077_v27 = vpop.f32.mrf.mxu1  ;;  %v5916_v3 = vpop.f32.mrf.mxu0 }
 0xbf3   :  { %v6304_v0 = vmax.f32 %v6076_v16, 0.0 }
 0xbf4   :  { %v6080_v15 = vpop.f32.mrf.mxu1  ;;  %6271 = vmatmul.mubr.bf16.gmra.mxu1 %v11263_v55  ;;  %v13397_v28 = vpop.f32.mrf.mxu0 }
 0xbf5   :  { %v6363_v35 = vpack.c.bf16 %v6304_v0, %v6303_v40  ;;  %6278 = vmatprep.mubr.bf16.mxu1 %v11264_v4  ;;  %v6081_v34 = vadd.f32 %v6080_v15, %v5792_v8  ;;  %v5808_v40 = vadd.f32 %v13347_v21, %v13310_v32 }
 0xbf6   :  { %v6082_v26 = vpop.f32.mrf.mxu1  ;;  %v5921_v29 = vpop.f32.mrf.mxu0 }
 0xbf7   :  { %10474 = vmatprep.mubr.msk.bf16.mxu0 %vm173_vm0, %v6363_v35  ;;  %v6305_v45 = vmax.f32 %v6081_v34, 0.0  ;;  %v11267_v35 = vld [vmem:[#allocation2 + $0x3e8] ss:$16 sps:$4 sm:$0xff]   ;;  %v11268_v26 = vld [vmem:[#allocation2 + $0x4] ss:$16 sps:$4 sm:$0xff]   ;;  %v5811_v34 = vadd.f32 %v13347_v21, %v13312_v23 }
 0xbf8   :  { %v6083_v17 = vpop.f32.mrf.mxu1  ;;  %v13402_v57 = vpop.f32.mrf.mxu0 }
 0xbf9   :  { %v6084_v41 = vadd.f32 %v6083_v17, %v5795_v11 }
 0xbfa   :  { %v6085_v12 = vpop.f32.mrf.mxu1  ;;  %v5924_v52 = vpop.f32.mrf.mxu0 }
 0xbfb   :  { %v6306_v9 = vmax.f32 %v6084_v41, 0.0 }
 0xbfc   :  { %v6088_v13 = vpop.f32.mrf.mxu1  ;;  %6279 = vmatmul.mubr.bf16.gmra.mxu1 %v11265_v53  ;;  %v13406_v42 = vpop.f32.mrf.mxu0 }
 0xbfd   :  { %v6364_v59 = vpack.c.bf16 %v6306_v9, %v6305_v45  ;;  %6286 = vmatprep.mubr.bf16.mxu1 %v11266_v43  ;;  %v6089_v62 = vadd.f32 %v6088_v13, %v5800_v50  ;;  %v5816_v45 = vadd.f32 %v13347_v21, %v13314_v63 }
 0xbfe   :  { %v6090_v7 = vpop.f32.mrf.mxu1  ;;  %v5929_v20 = vpop.f32.mrf.mxu0 }
 0xbff   :  { %10475 = vmatmul.mubr.msk.bf16.gmra.mxu0 %vm173_vm0, %v6364_v59  ;;  %v6307_v0 = vmax.f32 %v6089_v62, 0.0  ;;  %v5819_v20 = vadd.f32 %v13347_v21, %v13316_v22 }
 0xc00   :  { %v6091_v16 = vpop.f32.mrf.mxu1  ;;  %v13411_v56 = vpop.f32.mrf.mxu0 }
 0xc01   :  { %v6092_v27 = vadd.f32 %v6091_v16, %v5803_v24 }
 0xc02   :  { %v6093_v3 = vpop.f32.mrf.mxu1  ;;  %v5932_v8 = vpop.f32.mrf.mxu0 }
 0xc03   :  { %v6308_v15 = vmax.f32 %v6092_v27, 0.0  ;;  %v5824_v8 = vadd.f32 %v13347_v21, %v13318_v30 }
 0xc04   :  { %v6096_v55 = vpop.f32.mrf.mxu1  ;;  %6287 = vmatmul.mubr.bf16.gmra.mxu1 %v11267_v35  ;;  %v13415_v4 = vpop.f32.mrf.mxu0 }
 0xc05   :  { %v6365_v46 = vpack.c.bf16 %v6308_v15, %v6307_v0  ;;  %6865 = vmatprep.mubr.bf16.mxu1 %v11268_v26  ;;  %v6097_v17 = vadd.f32 %v6096_v55, %v5808_v40  ;;  %v5827_v26 = vadd.f32 %v13347_v21, %v13320_v38 }
 0xc06   :  { %v6098_v29 = vpop.f32.mrf.mxu1  ;;  %v5937_v11 = vpop.f32.mrf.mxu0 }
 0xc07   :  { %10478 = vmatprep.mubr.msk.bf16.mxu0 %vm173_vm0, %v6365_v46  ;;  %v6309_v9 = vmax.f32 %v6097_v17, 0.0 }
 0xc08   :  { %v6099_v41 = vpop.f32.mrf.mxu1  ;;  %v13420_v32 = vpop.f32.mrf.mxu0 }
 0xc09   :  { %v6100_v12 = vadd.f32 %v6099_v41, %v5811_v34 }
 0xc0a   :  { %v6101_v52 = vpop.f32.mrf.mxu1  ;;  %v5940_v50 = vpop.f32.mrf.mxu0 }
 0xc0b   :  { %v6310_v13 = vmax.f32 %v6100_v12, 0.0  ;;  %v5832_v12 = vadd.f32 %v13347_v21, %v13322_v48 }
 0xc0c   :  { %v6104_v53 = vpop.f32.mrf.mxu1  ;;  %v13424_v59 = vpop.f32.mrf.mxu0 }
 0xc0d   :  { %v6366_v43 = vpack.c.bf16 %v6310_v13, %v6309_v9  ;;  %v6105_v24 = vadd.f32 %v6104_v53, %v5816_v45 }
 0xc0e   :  { %v6106_v7 = vpop.f32.mrf.mxu1  ;;  %v5945_v23 = vpop.f32.mrf.mxu0 }
 0xc0f   :  { %10479 = vmatmul.mubr.msk.bf16.gmra.mxu0 %vm173_vm0, %v6366_v43  ;;  %v6311_v40 = vmax.f32 %v6105_v24, 0.0  ;;  %v5835_v43 = vadd.f32 %v13347_v21, %v13324_v18 }
 0xc10   :  { %v6107_v62 = vpop.f32.mrf.mxu1  ;;  %v13429_v16 = vpop.f32.mrf.mxu0 }
 0xc11   :  { %v6108_v27 = vadd.f32 %v6107_v62, %v5819_v20 }
 0xc12   :  { %v6109_v3 = vpop.f32.mrf.mxu1  ;;  %v5948_v63 = vpop.f32.mrf.mxu0 }
 0xc13   :  { %v6312_v0 = vmax.f32 %v6108_v27, 0.0  ;;  %v5840_v27 = vadd.f32 %v13347_v21, %v13326_v1 }
 0xc14   :  { %v6112_v15 = vpop.f32.mrf.mxu1  ;;  %v13433_v55 = vpop.f32.mrf.mxu0 }
 0xc15   :  { %v6367_v35 = vpack.c.bf16 %v6312_v0, %v6311_v40  ;;  %v6113_v29 = vadd.f32 %v6112_v15, %v5824_v8 }
 0xc16   :  { %v6114_v46 = vpop.f32.mrf.mxu1  ;;  %v5953_v22 = vpop.f32.mrf.mxu0 }
 0xc17   :  { %10482 = vmatprep.mubr.msk.bf16.mxu0 %vm173_vm0, %v6367_v35  ;;  %v6313_v52 = vmax.f32 %v6113_v29, 0.0  ;;  %v5843_v35 = vadd.f32 %v13347_v21, %v13328_v39 }
 0xc18   :  { %v6115_v11 = vpop.f32.mrf.mxu1  ;;  %v13438_v34 = vpop.f32.mrf.mxu0 }
 0xc19   :  { %v6116_v17 = vadd.f32 %v6115_v11, %v5827_v26 }
 0xc1a   :  { %v6117_v41 = vpop.f32.mrf.mxu1  ;;  %v5956_v30 = vpop.f32.mrf.mxu0 }
 0xc1b   :  { %v6314_v50 = vmax.f32 %v6116_v17, 0.0  ;;  %v5848_v17 = vadd.f32 %v13347_v21, %v13330_v10 }
 0xc1c   :  { %v6120_v45 = vpop.f32.mrf.mxu1  ;;  %v13442_v9 = vpop.f32.mrf.mxu0 }
 0xc1d   :  { %v6368_v13 = vpack.c.bf16 %v6314_v50, %v6313_v52  ;;  %v6121_v7 = vadd.f32 %v6120_v45, %v5832_v12 }
 0xc1e   :  { %v6122_v53 = vpop.f32.mrf.mxu1  ;;  %v5961_v38 = vpop.f32.mrf.mxu0 }
 0xc1f   :  { %10483 = vmatmul.mubr.msk.bf16.gmra.mxu0 %vm173_vm0, %v6368_v13  ;;  %v6315_v3 = vmax.f32 %v6121_v7, 0.0  ;;  %v5851_v13 = vadd.f32 %v13347_v21, %v13332_v60 }
 0xc20   :  { %v6123_v23 = vpop.f32.mrf.mxu1  ;;  %v13447_v20 = vpop.f32.mrf.mxu0 }
 0xc21   :  { %v6124_v24 = vadd.f32 %v6123_v23, %v5835_v43 }
 0xc22   :  { %v6125_v62 = vpop.f32.mrf.mxu1  ;;  %v5964_v48 = vpop.f32.mrf.mxu0 }
 0xc23   :  { %v6316_v63 = vmax.f32 %v6124_v24, 0.0  ;;  %v5856_v24 = vadd.f32 %v13347_v21, %v13334_v51 }
 0xc24   :  { %v6128_v8 = vpop.f32.mrf.mxu1  ;;  %v13451_v40 = vpop.f32.mrf.mxu0 }
 0xc25   :  { %v6369_v0 = vpack.c.bf16 %v6316_v63, %v6315_v3  ;;  %v6129_v46 = vadd.f32 %v6128_v8, %v5840_v27 }
 0xc26   :  { %v6130_v15 = vpop.f32.mrf.mxu1  ;;  %v5969_v18 = vpop.f32.mrf.mxu0 }
 0xc27   :  { %10486 = vmatprep.mubr.msk.bf16.mxu0 %vm173_vm0, %v6369_v0  ;;  %v6317_v41 = vmax.f32 %v6129_v46, 0.0  ;;  %v5859_v0 = vadd.f32 %v13347_v21, %v13336_v58 }
 0xc28   :  { %v6131_v22 = vpop.f32.mrf.mxu1  ;;  %v13456_v26 = vpop.f32.mrf.mxu0 }
 0xc29   :  { %v6132_v29 = vadd.f32 %v6131_v22, %v5843_v35 }
 0xc2a   :  { %v6133_v11 = vpop.f32.mrf.mxu1  ;;  %v5972_v1 = vpop.f32.mrf.mxu0 }
 0xc2b   :  { %v6318_v30 = vmax.f32 %v6132_v29, 0.0  ;;  %v5864_v29 = vadd.f32 %v13347_v21, %v13338_v5 }
 0xc2c   :  { %v6136_v12 = vpop.f32.mrf.mxu1  ;;  %v13460_v52 = vpop.f32.mrf.mxu0 }
 0xc2d   :  { %v6370_v50 = vpack.c.bf16 %v6318_v30, %v6317_v41  ;;  %v6137_v53 = vadd.f32 %v6136_v12, %v5848_v17 }
 0xc2e   :  { %v6138_v45 = vpop.f32.mrf.mxu1  ;;  %v5977_v39 = vpop.f32.mrf.mxu0 }
 0xc2f   :  { %10487 = vmatmul.mubr.msk.bf16.gmra.mxu0 %vm173_vm0, %v6370_v50  ;;  %v6319_v62 = vmax.f32 %v6137_v53, 0.0  ;;  %v5867_v50 = vadd.f32 %v13347_v21, %v13340_v37 }
 0xc30   :  { %v6139_v38 = vpop.f32.mrf.mxu1  ;;  %v13465_v43 = vpop.f32.mrf.mxu0 }
 0xc31   :  { %v6140_v7 = vadd.f32 %v6139_v38, %v5851_v13 }
 0xc32   :  { %v6141_v23 = vpop.f32.mrf.mxu1  ;;  %v5980_v10 = vpop.f32.mrf.mxu0 }
 0xc33   :  { %v6320_v48 = vmax.f32 %v6140_v7, 0.0  ;;  %v5872_v7 = vadd.f32 %v13347_v21, %v13342_v47 }
 0xc34   :  { %v6144_v27 = vpop.f32.mrf.mxu1  ;;  %v13469_v3 = vpop.f32.mrf.mxu0 }
 0xc35   :  { %v6371_v63 = vpack.c.bf16 %v6320_v48, %v6319_v62  ;;  %v6145_v15 = vadd.f32 %v6144_v27, %v5856_v24 }
 0xc36   :  { %v6146_v8 = vpop.f32.mrf.mxu1  ;;  %v5985_v60 = vpop.f32.mrf.mxu0 }
 0xc37   :  { %10490 = vmatprep.mubr.msk.bf16.mxu0 %vm173_vm0, %v6371_v63  ;;  %v6321_v11 = vmax.f32 %v6145_v15, 0.0  ;;  %v5875_v63 = vadd.f32 %v13347_v21, %v13349_v36  ;;  %v5883_v36 = vadd.f32 %v13347_v21, %v13357_v33 }
 0xc38   :  { %v6147_v18 = vpop.f32.mrf.mxu1  ;;  %v13474_v35 = vpop.f32.mrf.mxu0 }
 0xc39   :  { %v6148_v46 = vadd.f32 %v6147_v18, %v5859_v0 }
 0xc3a   :  { %v6149_v22 = vpop.f32.mrf.mxu1  ;;  %v5988_v51 = vpop.f32.mrf.mxu0 }
 0xc3b   :  { %v6322_v1 = vmax.f32 %v6148_v46, 0.0  ;;  %v5880_v46 = vadd.f32 %v13347_v21, %v13353_v14 }
 0xc3c   :  { %v6152_v17 = vpop.f32.mrf.mxu1  ;;  %v13478_v41 = vpop.f32.mrf.mxu0 }
 0xc3d   :  { %v6372_v30 = vpack.c.bf16 %v6322_v1, %v6321_v11  ;;  %v6153_v45 = vadd.f32 %v6152_v17, %v5864_v29 }
 0xc3e   :  { %v6154_v12 = vpop.f32.mrf.mxu1  ;;  %v5993_v58 = vpop.f32.mrf.mxu0 }
 0xc3f   :  { %10491 = vmatmul.mubr.msk.bf16.gmra.mxu0 %vm173_vm0, %v6372_v30  ;;  %v6323_v23 = vmax.f32 %v6153_v45, 0.0 }
 0xc40   :  { %v6155_v39 = vpop.f32.mrf.mxu1  ;;  %v13483_v13 = vpop.f32.mrf.mxu0 }
 0xc41   :  { %v6156_v53 = vadd.f32 %v6155_v39, %v5867_v50  ;;  %v5888_v50 = vadd.f32 %v13347_v21, %v13361_v49 }
 0xc42   :  { %v6157_v38 = vpop.f32.mrf.mxu1  ;;  %v5996_v5 = vpop.f32.mrf.mxu0 }
 0xc43   :  { %v6324_v10 = vmax.f32 %v6156_v53, 0.0  ;;  %v5891_v5 = vadd.f32 %v13347_v21, %v13366_v61 }
 0xc44   :  { %v6160_v24 = vpop.f32.mrf.mxu1  ;;  %v13487_v62 = vpop.f32.mrf.mxu0 }
 0xc45   :  { %v6373_v48 = vpack.c.bf16 %v6324_v10, %v6323_v23  ;;  %v6161_v8 = vadd.f32 %v6160_v24, %v5872_v7  ;;  %v5896_v24 = vadd.f32 %v13347_v21, %v13370_v44 }
 0xc46   :  { %v6162_v27 = vpop.f32.mrf.mxu1  ;;  %v6001_v37 = vpop.f32.mrf.mxu0 }
 0xc47   :  { %10494 = vmatprep.mubr.msk.bf16.mxu0 %vm173_vm0, %v6373_v48  ;;  %v6325_v22 = vmax.f32 %v6161_v8, 0.0  ;;  %v5899_v8 = vadd.f32 %v13347_v21, %v13375_v54 }
 0xc48   :  { %v6163_v60 = vpop.f32.mrf.mxu1  ;;  %v13492_v0 = vpop.f32.mrf.mxu0 }
 0xc49   :  { %v6164_v15 = vadd.f32 %v6163_v60, %v5875_v63 }
 0xc4a   :  { %v6165_v18 = vpop.f32.mrf.mxu1  ;;  %v6004_v47 = vpop.f32.mrf.mxu0 }
 0xc4b   :  { %v6326_v51 = vmax.f32 %v6164_v15, 0.0  ;;  %v5904_v47 = vadd.f32 %v13347_v21, %v13379_v25 }
 0xc4c   :  { %v6168_v29 = vpop.f32.mrf.mxu1 }
 0xc4d   :  { %v6374_v11 = vpack.c.bf16 %v6326_v51, %v6325_v22  ;;  %v6169_v17 = vadd.f32 %v6168_v29, %v5880_v46 }
 0xc4e   :  { %v6170_v1 = vpop.f32.mrf.mxu1 }
 0xc4f   :  { %10495 = vmatmul.mubr.msk.bf16.gmra.mxu0 %vm173_vm0, %v6374_v11  ;;  %v6327_v45 = vmax.f32 %v6169_v17, 0.0  ;;  %v5907_v11 = vadd.f32 %v13347_v21, %v13384_v31 }
 0xc50   :  { %v6171_v30 = vpop.f32.mrf.mxu1 }
 0xc51   :  { %v6172_v12 = vadd.f32 %v6171_v30, %v5883_v36  ;;  %v5912_v30 = vadd.f32 %v13347_v21, %v13388_v2 }
 0xc52   :  { %v6173_v58 = vpop.f32.mrf.mxu1 }
 0xc53   :  { %v6328_v39 = vmax.f32 %v6172_v12, 0.0 }
 0xc54   :  { %v6176_v14 = vpop.f32.mrf.mxu1 }
 0xc55   :  { %v6375_v53 = vpack.c.bf16 %v6328_v39, %v6327_v45  ;;  %v6177_v7 = vadd.f32 %v6176_v14, %v5888_v50  ;;  %v5915_v39 = vadd.f32 %v13347_v21, %v13393_v19 }
 0xc56   :  { %v6178_v38 = vpop.f32.mrf.mxu1 }
 0xc57   :  { %10498 = vmatprep.mubr.msk.bf16.mxu0 %vm173_vm0, %v6375_v53  ;;  %v6329_v48 = vmax.f32 %v6177_v7, 0.0 }
 0xc58   :  { %v6179_v33 = vpop.f32.mrf.mxu1 }
 0xc59   :  { %v6180_v23 = vadd.f32 %v6179_v33, %v5891_v5  ;;  %v5920_v5 = vadd.f32 %v13347_v21, %v13397_v28 }
 0xc5a   :  { %v6181_v10 = vpop.f32.mrf.mxu1 }
 0xc5b   :  { %v6330_v27 = vmax.f32 %v6180_v23, 0.0 }
 0xc5c   :  { %v6184_v49 = vpop.f32.mrf.mxu1 }
 0xc5d   :  { %v6376_v37 = vpack.c.bf16 %v6330_v27, %v6329_v48  ;;  %v6185_v60 = vadd.f32 %v6184_v49, %v5896_v24  ;;  %v5923_v24 = vadd.f32 %v13347_v21, %v13402_v57 }
 0xc5e   :  { %v6186_v63 = vpop.f32.mrf.mxu1 }
 0xc5f   :  { %10499 = vmatmul.mubr.msk.bf16.gmra.mxu0 %vm173_vm0, %v6376_v37  ;;  %v6331_v46 = vmax.f32 %v6185_v60, 0.0  ;;  %v5928_v37 = vadd.f32 %v13347_v21, %v13406_v42 }
 0xc60   :  { %v6187_v61 = vpop.f32.mrf.mxu1 }
 0xc61   :  { %v6188_v15 = vadd.f32 %v6187_v61, %v5899_v8 }
 0xc62   :  { %v6189_v18 = vpop.f32.mrf.mxu1 }
 0xc63   :  { %v6332_v22 = vmax.f32 %v6188_v15, 0.0  ;;  %v5931_v15 = vadd.f32 %v13347_v21, %v13411_v56 }
 0xc64   :  { %v6192_v44 = vpop.f32.mrf.mxu1 }
 0xc65   :  { %v6377_v51 = vpack.c.bf16 %v6332_v22, %v6331_v46  ;;  %v6193_v1 = vadd.f32 %v6192_v44, %v5904_v47  ;;  %v5936_v22 = vadd.f32 %v13347_v21, %v13415_v4 }
 0xc66   :  { %v6194_v29 = vpop.f32.mrf.mxu1 }
 0xc67   :  { %10502 = vmatprep.mubr.msk.bf16.mxu0 %vm173_vm0, %v6377_v51  ;;  %v6333_v12 = vmax.f32 %v6193_v1, 0.0  ;;  %v5939_v1 = vadd.f32 %v13347_v21, %v13420_v32 }
 0xc68   :  { %v6195_v54 = vpop.f32.mrf.mxu1 }
 0xc69   :  { %v6196_v36 = vadd.f32 %v6195_v54, %v5907_v11 }
 0xc6a   :  { %v6197_v17 = vpop.f32.mrf.mxu1 }
 0xc6b   :  { %v6334_v58 = vmax.f32 %v6196_v36, 0.0 }
 0xc6c   :  { %v6200_v25 = vpop.f32.mrf.mxu1 }
 0xc6d   :  { %v6378_v50 = vpack.c.bf16 %v6334_v58, %v6333_v12  ;;  %v6201_v14 = vadd.f32 %v6200_v25, %v5912_v30  ;;  %v5944_v30 = vadd.f32 %v13347_v21, %v13424_v59 }
 0xc6e   :  { %v6202_v45 = vpop.f32.mrf.mxu1 }
 0xc6f   :  { %10503 = vmatmul.mubr.msk.bf16.gmra.mxu0 %vm173_vm0, %v6378_v50  ;;  %v6335_v7 = vmax.f32 %v6201_v14, 0.0  ;;  %v5947_v45 = vadd.f32 %v13347_v21, %v13429_v16 }
 0xc70   :  { %v6203_v31 = vpop.f32.mrf.mxu1 }
 0xc71   :  { %v6204_v53 = vadd.f32 %v6203_v31, %v5915_v39 }
 0xc72   :  { %v6205_v38 = vpop.f32.mrf.mxu1 }
 0xc73   :  { %v6336_v33 = vmax.f32 %v6204_v53, 0.0  ;;  %v5952_v53 = vadd.f32 %v13347_v21, %v13433_v55 }
 0xc74   :  { %v6208_v2 = vpop.f32.mrf.mxu1 }
 0xc75   :  { %v6379_v23 = vpack.c.bf16 %v6336_v33, %v6335_v7  ;;  %v6209_v48 = vadd.f32 %v6208_v2, %v5920_v5  ;;  %v5955_v2 = vadd.f32 %v13347_v21, %v13438_v34 }
 0xc76   :  { %v6210_v10 = vpop.f32.mrf.mxu1 }
 0xc77   :  { %10506 = vmatprep.mubr.msk.bf16.mxu0 %vm173_vm0, %v6379_v23  ;;  %v6337_v63 = vmax.f32 %v6209_v48, 0.0  ;;  %v5960_v48 = vadd.f32 %v13347_v21, %v13442_v9 }
 0xc78   :  { %v6211_v19 = vpop.f32.mrf.mxu1 }
 0xc79   :  { %v6212_v27 = vadd.f32 %v6211_v19, %v5923_v24 }
 0xc7a   :  { %v6213_v49 = vpop.f32.mrf.mxu1 }
 0xc7b   :  { %v6338_v8 = vmax.f32 %v6212_v27, 0.0 }
 0xc7c   :  { %v6216_v28 = vpop.f32.mrf.mxu1 }
 0xc7d   :  { %v6380_v60 = vpack.c.bf16 %v6338_v8, %v6337_v63  ;;  %v6217_v18 = vadd.f32 %v6216_v28, %v5928_v37  ;;  %v5963_v63 = vadd.f32 %v13347_v21, %v13447_v20 }
 0xc7e   :  { %v6218_v61 = vpop.f32.mrf.mxu1 }
 0xc7f   :  { %10507 = vmatmul.mubr.msk.bf16.gmra.mxu0 %vm173_vm0, %v6380_v60  ;;  %v6339_v44 = vmax.f32 %v6217_v18, 0.0  ;;  %v5968_v61 = vadd.f32 %v13347_v21, %v13451_v40  ;;  %v5976_v40 = vadd.f32 %v13347_v21, %v13460_v52  ;;  %v5984_v52 = vadd.f32 %v13347_v21, %v13469_v3 }
 0xc80   :  { %v6219_v57 = vpop.f32.mrf.mxu1  ;;  %v5992_v3 = vadd.f32 %v13347_v21, %v13478_v41  ;;  %v6000_v41 = vadd.f32 %v13347_v21, %v13487_v62 }
 0xc81   :  { %v6220_v47 = vadd.f32 %v6219_v57, %v5931_v15 }
 0xc82   :  { %v6221_v46 = vpop.f32.mrf.mxu1 }
 0xc83   :  { %v6340_v51 = vmax.f32 %v6220_v47, 0.0 }
 0xc84   :  { %v6224_v42 = vpop.f32.mrf.mxu1 }
 0xc85   :  { %v6381_v29 = vpack.c.bf16 %v6340_v51, %v6339_v44  ;;  %v6225_v54 = vadd.f32 %v6224_v42, %v5936_v22  ;;  %v5971_v22 = vadd.f32 %v13347_v21, %v13456_v26  ;;  %v5979_v26 = vadd.f32 %v13347_v21, %v13465_v43 }
 0xc86   :  { %v6226_v11 = vpop.f32.mrf.mxu1  ;;  %v5987_v43 = vadd.f32 %v13347_v21, %v13474_v35  ;;  %v5995_v35 = vadd.f32 %v13347_v21, %v13483_v13  ;;  %v6003_v13 = vadd.f32 %v13347_v21, %v13492_v0 }
 0xc87   :  { %10510 = vmatprep.mubr.msk.bf16.mxu0 %vm173_vm0, %v6381_v29  ;;  %v6341_v12 = vmax.f32 %v6225_v54, 0.0 }
 0xc88   :  { %v6227_v56 = vpop.f32.mrf.mxu1 }
 0xc89   :  { %v6228_v36 = vadd.f32 %v6227_v56, %v5939_v1 }
 0xc8a   :  { %v6229_v17 = vpop.f32.mrf.mxu1 }
 0xc8b   :  { %v6342_v58 = vmax.f32 %v6228_v36, 0.0 }
 0xc8c   :  { %v6232_v4 = vpop.f32.mrf.mxu1 }
 0xc8d   :  { %v6382_v25 = vpack.c.bf16 %v6342_v58, %v6341_v12  ;;  %v6233_v39 = vadd.f32 %v6232_v4, %v5944_v30 }
 0xc8e   :  { %v6234_v50 = vpop.f32.mrf.mxu1 }
 0xc8f   :  { %10511 = vmatmul.mubr.msk.bf16.gmra.mxu0 %vm173_vm0, %v6382_v25  ;;  %v6343_v38 = vmax.f32 %v6233_v39, 0.0 }
 0xc90   :  { %v6235_v32 = vpop.f32.mrf.mxu1 }
 0xc91   :  { %v6236_v14 = vadd.f32 %v6235_v32, %v5947_v45 }
 0xc92   :  { %v6237_v31 = vpop.f32.mrf.mxu1 }
 0xc93   :  { %v6344_v5 = vmax.f32 %v6236_v14, 0.0 }
 0xc94   :  { %v6240_v59 = vpop.f32.mrf.mxu1 }
 0xc95   :  { %v6383_v7 = vpack.c.bf16 %v6344_v5, %v6343_v38  ;;  %v6241_v23 = vadd.f32 %v6240_v59, %v5952_v53 }
 0xc96   :  { %v6242_v33 = vpop.f32.mrf.mxu1 }
 0xc97   :  { %10514 = vmatprep.mubr.msk.bf16.mxu0 %vm173_vm0, %v6383_v7  ;;  %v6345_v19 = vmax.f32 %v6241_v23, 0.0 }
 0xc98   :  { %v6243_v16 = vpop.f32.mrf.mxu1 }
 0xc99   :  { %v6244_v10 = vadd.f32 %v6243_v16, %v5955_v2 }
 0xc9a   :  { %v6245_v24 = vpop.f32.mrf.mxu1 }
 0xc9b   :  { %v6346_v27 = vmax.f32 %v6244_v10, 0.0 }
 0xc9c   :  { %v6248_v55 = vpop.f32.mrf.mxu1 }
 0xc9d   :  { %v6384_v49 = vpack.c.bf16 %v6346_v27, %v6345_v19  ;;  %v6249_v8 = vadd.f32 %v6248_v55, %v5960_v48 }
 0xc9e   :  { %v6250_v37 = vpop.f32.mrf.mxu1 }
 0xc9f   :  { %10515 = vmatmul.mubr.msk.bf16.gmra.mxu0 %vm173_vm0, %v6384_v49  ;;  %v6347_v15 = vmax.f32 %v6249_v8, 0.0  ;;  %v13551_v57 = vpop.f32.mrf.mxu0 }
 0xca0   :  { %v6251_v34 = vpop.f32.mrf.mxu1 }
 0xca1   :  { %v6252_v28 = vadd.f32 %v6251_v34, %v5963_v63  ;;  %v13556_v51 = vpop.f32.mrf.mxu0 }
 0xca2   :  { %v6253_v60 = vpop.f32.mrf.mxu1 }
 0xca3   :  { %v6348_v18 = vmax.f32 %v6252_v28, 0.0  ;;  %v13560_v56 = vpop.f32.mrf.mxu0 }
 0xca4   :  { %v6256_v9 = vpop.f32.mrf.mxu1 }
 0xca5   :  { %v6385_v47 = vpack.c.bf16 %v6348_v18, %v6347_v15  ;;  %v6257_v20 = vadd.f32 %v6256_v9, %v5968_v61  ;;  %v13565_v58 = vpop.f32.mrf.mxu0 }
 0xca6   :  { %v6258_v46 = vpop.f32.mrf.mxu1 }
 0xca7   :  { %10518 = vmatprep.mubr.msk.bf16.mxu0 %vm173_vm0, %v6385_v47  ;;  %v6349_v11 = vmax.f32 %v6257_v20, 0.0 }
 0xca8   :  { %v6259_v44 = vpop.f32.mrf.mxu1 }
 0xca9   :  { %v6260_v42 = vadd.f32 %v6259_v44, %v5971_v22 }
 0xcaa   :  { %v6261_v29 = vpop.f32.mrf.mxu1 }
 0xcab   :  { %v6350_v1 = vmax.f32 %v6260_v42, 0.0  ;;  %v11269_v29 = vld [vmem:[#allocation2 + $0xc] ss:$16 sps:$4 sm:$0xff]  }
 0xcac   :  { %v6264_v54 = vpop.f32.mrf.mxu1 }
 0xcad   :  { %v6386_v36 = vpack.c.bf16 %v6350_v1, %v6349_v11  ;;  %v6265_v30 = vadd.f32 %v6264_v54, %v5976_v40 }
 0xcae   :  { %v6266_v17 = vpop.f32.mrf.mxu1 }
 0xcaf   :  { %10519 = vmatmul.mubr.msk.bf16.gmra.mxu0 %vm173_vm0, %v6386_v36  ;;  %v6351_v50 = vmax.f32 %v6265_v30, 0.0  ;;  %v13569_v45 = vpop.f32.mrf.mxu0 }
 0xcb0   :  { %v6267_v12 = vpop.f32.mrf.mxu1 }
 0xcb1   :  { %v6268_v4 = vadd.f32 %v6267_v12, %v5979_v26  ;;  %v13573_v53 = vpop.f32.mrf.mxu0 }
 0xcb2   :  { %v6269_v25 = vpop.f32.mrf.mxu1 }
 0xcb3   :  { %v6352_v39 = vmax.f32 %v6268_v4, 0.0  ;;  %v10473_v33 = vpop.f32.mrf.mxu0  ;;  %v6794_v4 = vpack.c.bf16 %v13560_v56, %v13551_v57 }
 0xcb4   :  { %v6272_v32 = vpop.f32.mrf.mxu1  ;;  %v6796_v17 = vpack.c.bf16 %v10473_v33, %v13569_v45 }
 0xcb5   :  { %v6387_v14 = vpack.c.bf16 %v6352_v39, %v6351_v50  ;;  %v6273_v38 = vadd.f32 %v6272_v32, %v5984_v52  ;;  %v6557_v48 = vpop.f32.mrf.mxu0  ;;  %v6793_v52 = vpack.c.bf16 %v13565_v58, %v13556_v51 }
 0xcb6   :  { %v6274_v31 = vpop.f32.mrf.mxu1  ;;  %v6795_v30 = vpack.c.bf16 %v6557_v48, %v13573_v53 }
 0xcb7   :  { %10522 = vmatprep.mubr.msk.bf16.mxu0 %vm173_vm0, %v6387_v14  ;;  %v6353_v2 = vmax.f32 %v6273_v38, 0.0 }
 0xcb8   :  { %v6275_v5 = vpop.f32.mrf.mxu1 }
 0xcb9   :  { %v6276_v59 = vadd.f32 %v6275_v5, %v5987_v43 }
 0xcba   :  { %v6277_v7 = vpop.f32.mrf.mxu1 }
 0xcbb   :  { %v6354_v23 = vmax.f32 %v6276_v59, 0.0 }
 0xcbc   :  { %v6280_v16 = vpop.f32.mrf.mxu1 }
 0xcbd   :  { %v6388_v10 = vpack.c.bf16 %v6354_v23, %v6353_v2  ;;  %v6281_v19 = vadd.f32 %v6280_v16, %v5992_v3 }
 0xcbe   :  { %v6282_v24 = vpop.f32.mrf.mxu1 }
 0xcbf   :  { %10523 = vmatmul.mubr.msk.bf16.gmra.mxu0 %vm173_vm0, %v6388_v10  ;;  %v10476_v55 = vpop.f32.mrf.mxu0  ;;  %v6355_v63 = vmax.f32 %v6281_v19, 0.0 }
 0xcc0   :  { %v6283_v27 = vpop.f32.mrf.mxu1 }
 0xcc1   :  { %v6284_v49 = vadd.f32 %v6283_v27, %v5995_v35  ;;  %v6570_v60 = vpop.f32.mrf.mxu0  ;;  %v11270_v27 = vld [vmem:[#allocation2] ss:$16 sps:$4 sm:$0xff]  }
 0xcc2   :  { %v6285_v37 = vpop.f32.mrf.mxu1 }
 0xcc3   :  { %v6356_v8 = vmax.f32 %v6284_v49, 0.0  ;;  %v10477_v9 = vpop.f32.mrf.mxu0 }
 0xcc4   :  { %v6288_v34 = vpop.f32.mrf.mxu1  ;;  %v6798_v54 = vpack.c.bf16 %v10477_v9, %v10476_v55  ;;  %v11271_v55 = vld [vmem:[#allocation2 + $0x24] ss:$16 sps:$4 sm:$0xff]  }
 0xcc5   :  { %v6389_v28 = vpack.c.bf16 %v6356_v8, %v6355_v63  ;;  %v6289_v15 = vadd.f32 %v6288_v34, %v6000_v41  ;;  %v6573_v44 = vpop.f32.mrf.mxu0  ;;  %v11272_v41 = vld [vmem:[#allocation2 + $0x20] ss:$16 sps:$4 sm:$0xff]   ;;  %v11273_v63 = vld [vmem:[#allocation2 + $0x44] ss:$16 sps:$4 sm:$0xff]  }
 0xcc6   :  { %v6290_v61 = vpop.f32.mrf.mxu1  ;;  %v6797_v36 = vpack.c.bf16 %v6573_v44, %v6570_v60  ;;  %v11274_v60 = vld [vmem:[#allocation2 + $0x40] ss:$16 sps:$4 sm:$0xff]   ;;  %v11277_v9 = vld [vmem:[#allocation2 + $0x84] ss:$16 sps:$4 sm:$0xff]  }
 0xcc7   :  { %10526 = vmatprep.mubr.msk.bf16.mxu0 %vm173_vm0, %v6389_v28  ;;  %v6357_v22 = vmax.f32 %v6289_v15, 0.0  ;;  %v11275_v61 = vld [vmem:[#allocation2 + $0x64] ss:$16 sps:$4 sm:$0xff]  }
 0xcc8   :  { %v6291_v18 = vpop.f32.mrf.mxu1 }
 0xcc9   :  { %v6292_v47 = vadd.f32 %v6291_v18, %v6003_v13  ;;  %v11276_v18 = vld [vmem:[#allocation2 + $0x60] ss:$16 sps:$4 sm:$0xff]  }
 0xcca   :  { %v6293_v46 = vpop.f32.mrf.mxu1 }
 0xccb   :  { %v6358_v20 = vmax.f32 %v6292_v47, 0.0 }
 0xccd   :  { %v6390_v62 = vpack.c.bf16 %v6358_v20, %v6357_v22 }
 0xccf   :  { %v10480_v42 = vpop.f32.mrf.mxu0  ;;  %10527 = vmatmul.mubr.msk.bf16.gmra.mxu0 %vm173_vm0, %v6390_v62  ;;  %v11278_v62 = vld [vmem:[#allocation2 + $0x80] ss:$16 sps:$4 sm:$0xff]  }
 0xcd0   :  { %7154 = vmatprep.mubr.bf16.mxu0 %v11269_v29 }
 0xcd1   :  { %v6586_v40 = vpop.f32.mrf.mxu0 }
 0xcd3   :  { %v10481_v11 = vpop.f32.mrf.mxu0 }
 0xcd4   :  { %v6800_v1 = vpack.c.bf16 %v10481_v11, %v10480_v42  ;;  %v11279_v42 = vld [vmem:[#allocation2 + $0xa4] ss:$16 sps:$4 sm:$0xff]   ;;  %v11280_v11 = vld [vmem:[#allocation2 + $0xa0] ss:$16 sps:$4 sm:$0xff]  }
 0xcd5   :  { %v6589_v21 = vpop.f32.mrf.mxu0 }
 0xcd6   :  { %6834 = vmatpush1.bf16.msra.mxu1 %v6800_v1  ;;  %v6799_v0 = vpack.c.bf16 %v6589_v21, %v6586_v40  ;;  %v11281_v1 = vld [vmem:[#allocation2 + $0xc4] ss:$16 sps:$4 sm:$0xff]  }
 0xcd7   :  { %6835 = vmatprep.subr.bf16.mxu1 %v11571_v6 }
 0xcda   :  { %6836 = vmatpush1.bf16.msra.mxu1 %v6799_v0 }
 0xcdb   :  { %6837 = vmatprep.subr.bf16.mxu1 %v11571_v6 }
 0xcde   :  { %6838 = vmatpush1.bf16.msra.mxu1 %v6798_v54 }
 0xcdf   :  { %6839 = vmatprep.subr.bf16.mxu1 %v11571_v6  ;;  %v10484_v26 = vpop.f32.mrf.mxu0 }
 0xce1   :  { %v6602_v12 = vpop.f32.mrf.mxu0 }
 0xce2   :  { %6840 = vmatpush1.bf16.msra.mxu1 %v6797_v36  ;;  %v11282_v36 = vld [vmem:[#allocation2 + $0xc0] ss:$16 sps:$4 sm:$0xff]  }
 0xce3   :  { %6841 = vmatprep.subr.bf16.mxu1 %v11571_v6  ;;  %v10485_v25 = vpop.f32.mrf.mxu0 }
 0xce4   :  { %v6802_v10 = vpack.c.bf16 %v10485_v25, %v10484_v26  ;;  %v11284_v25 = vld [vmem:[#allocation2 + $0xe0] ss:$16 sps:$4 sm:$0xff]  }
 0xce5   :  { %v6605_v50 = vpop.f32.mrf.mxu0 }
 0xce6   :  { %6842 = vmatpush1.bf16.msra.mxu1 %v6796_v17  ;;  %v6801_v35 = vpack.c.bf16 %v6605_v50, %v6602_v12  ;;  %v11283_v17 = vld [vmem:[#allocation2 + $0xe4] ss:$16 sps:$4 sm:$0xff]  }
 0xce7   :  { %6843 = vmatprep.subr.bf16.mxu1 %v11571_v6 }
 0xcea   :  { %6844 = vmatpush1.bf16.msra.mxu1 %v6795_v30 }
 0xceb   :  { %6845 = vmatprep.subr.bf16.mxu1 %v11571_v6 }
 0xcee   :  { %6846 = vmatpush1.bf16.msra.mxu1 %v6794_v4 }
 0xcef   :  { %6847 = vmatprep.subr.bf16.mxu1 %v11571_v6  ;;  %v10488_v45 = vpop.f32.mrf.mxu0 }
 0xcf1   :  { %v6618_v39 = vpop.f32.mrf.mxu0 }
 0xcf2   :  { %6848 = vmatpush1.bf16.msra.mxu1 %v6793_v52  ;;  %v11285_v52 = vld [vmem:[#allocation2 + $0x104] ss:$16 sps:$4 sm:$0xff]  }
 0xcf3   :  { %6849 = vmatprep.subr.bf16.mxu1 %v11571_v6  ;;  %v10489_v32 = vpop.f32.mrf.mxu0 }
 0xcf4   :  { %v6804_v33 = vpack.c.bf16 %v10489_v32, %v10488_v45  ;;  %v11286_v32 = vld [vmem:[#allocation2 + $0x100] ss:$16 sps:$4 sm:$0xff]  }
 0xcf5   :  { %v6621_v14 = vpop.f32.mrf.mxu0 }
 0xcf6   :  { %v6803_v23 = vpack.c.bf16 %v6621_v14, %v6618_v39  ;;  %v11287_v14 = vld [vmem:[#allocation2 + $0x124] ss:$16 sps:$4 sm:$0xff]  }
 0xcff   :  { %v10492_v31 = vpop.f32.mrf.mxu0 }
 0xd01   :  { %v6634_v43 = vpop.f32.mrf.mxu0 }
 0xd03   :  { %v10493_v53 = vpop.f32.mrf.mxu0 }
 0xd04   :  { %v6806_v58 = vpack.c.bf16 %v10493_v53, %v10492_v31  ;;  %v11288_v53 = vld [vmem:[#allocation2 + $0x120] ss:$16 sps:$4 sm:$0xff]  }
 0xd05   :  { %v6637_v38 = vpop.f32.mrf.mxu0 }
 0xd06   :  { %v6805_v3 = vpack.c.bf16 %v6637_v38, %v6634_v43  ;;  %v11289_v38 = vld [vmem:[#allocation2 + $0x144] ss:$16 sps:$4 sm:$0xff]  }
 0xd0f   :  { %v10496_v57 = vpop.f32.mrf.mxu0 }
 0xd11   :  { %v6650_v56 = vpop.f32.mrf.mxu0 }
 0xd13   :  { %v10497_v5 = vpop.f32.mrf.mxu0 }
 0xd14   :  { %v6808_v59 = vpack.c.bf16 %v10497_v5, %v10496_v57 }
 0xd15   :  { %v6653_v7 = vpop.f32.mrf.mxu0 }
 0xd16   :  { %6850 = vmatpush2.bf16.msra.mxu1 %v6808_v59  ;;  %v6807_v51 = vpack.c.bf16 %v6653_v7, %v6650_v56  ;;  %v11290_v59 = vld [vmem:[#allocation2 + $0x140] ss:$16 sps:$4 sm:$0xff]   ;;  %v11291_v7 = vld [vmem:[#allocation2 + $0x164] ss:$16 sps:$4 sm:$0xff]  }
 0xd17   :  { %6851 = vmatprep.subr.bf16.mxu1 %v11571_v6 }
 0xd1a   :  { %6852 = vmatpush2.bf16.msra.mxu1 %v6807_v51 }
 0xd1b   :  { %6853 = vmatprep.subr.bf16.mxu1 %v11571_v6 }
 0xd1e   :  { %6854 = vmatpush2.bf16.msra.mxu1 %v6806_v58 }
 0xd1f   :  { %6855 = vmatprep.subr.bf16.mxu1 %v11571_v6  ;;  %v13605_v2 = vpop.f32.mrf.mxu0 }
 0xd21   :  { %v13608_v16 = vpop.f32.mrf.mxu0 }
 0xd22   :  { %6856 = vmatpush2.bf16.msra.mxu1 %v6805_v3  ;;  %v11292_v3 = vld [vmem:[#allocation2 + $0x160] ss:$16 sps:$4 sm:$0xff]  }
 0xd23   :  { %6857 = vmatprep.subr.bf16.mxu1 %v11571_v6  ;;  %v13611_v24 = vpop.f32.mrf.mxu0 }
 0xd24   :  { %v6810_v12 = vpack.c.bf16 %v13611_v24, %v13605_v2 }
 0xd25   :  { %v13614_v48 = vpop.f32.mrf.mxu0 }
 0xd26   :  { %6858 = vmatpush2.bf16.msra.mxu1 %v6804_v33  ;;  %v6809_v50 = vpack.c.bf16 %v13614_v48, %v13608_v16  ;;  %v11293_v33 = vld [vmem:[#allocation2 + $0x184] ss:$16 sps:$4 sm:$0xff]  }
 0xd27   :  { %6859 = vmatprep.subr.bf16.mxu1 %v11571_v6  ;;  %v11295_v48 = vld [vmem:[#allocation2 + $0x1a4] ss:$16 sps:$4 sm:$0xff]  }
 0xd2a   :  { %6860 = vmatpush2.bf16.msra.mxu1 %v6803_v23 }
 0xd2b   :  { %6861 = vmatprep.subr.bf16.mxu1 %v11571_v6 }
 0xd2e   :  { %6862 = vmatpush2.bf16.msra.mxu1 %v6802_v10 }
 0xd2f   :  { %6863 = vmatprep.subr.bf16.mxu1 %v11571_v6  ;;  %v10504_v19 = vpop.f32.mrf.mxu0 }
 0xd31   :  { %v6682_v49 = vpop.f32.mrf.mxu0 }
 0xd32   :  { %6864 = vmatpush2.bf16.msra.mxu1 %v6801_v35  ;;  %v11294_v35 = vld [vmem:[#allocation2 + $0x180] ss:$16 sps:$4 sm:$0xff]  }
 0xd33   :  { %v10505_v37 = vpop.f32.mrf.mxu0 }
 0xd34   :  { %v6812_v0 = vpack.c.bf16 %v10505_v37, %v10504_v19 }
 0xd35   :  { %6866 = vmatmul.mubr.bf16.vlgmr.msra.gmra.mxu1 %v11270_v27  ;;  %v6685_v8 = vpop.f32.mrf.mxu0 }
 0xd36   :  { %6873 = vmatprep.mubr.bf16.mxu1 %v11271_v55  ;;  %v6811_v26 = vpack.c.bf16 %v6685_v8, %v6682_v49  ;;  %v11296_v55 = vld [vmem:[#allocation2 + $0x1a0] ss:$16 sps:$4 sm:$0xff]   ;;  %v11297_v49 = vld [vmem:[#allocation2 + $0x1c4] ss:$16 sps:$4 sm:$0xff]  }
 0xd37   :  { %v11299_v8 = vld [vmem:[#allocation2 + $0x1e4] ss:$16 sps:$4 sm:$0xff]  }
 0xd3d   :  { %6874 = vmatmul.mubr.bf16.gmra.mxu1 %v11272_v41 }
 0xd3e   :  { %6881 = vmatprep.mubr.bf16.mxu1 %v11273_v63  ;;  %v11298_v63 = vld [vmem:[#allocation2 + $0x1c0] ss:$16 sps:$4 sm:$0xff]  }
 0xd3f   :  { %v10508_v34 = vpop.f32.mrf.mxu0 }
 0xd41   :  { %v6698_v28 = vpop.f32.mrf.mxu0 }
 0xd43   :  { %v10509_v13 = vpop.f32.mrf.mxu0 }
 0xd44   :  { %v6814_v40 = vpack.c.bf16 %v10509_v13, %v10508_v34 }
 0xd45   :  { %6882 = vmatmul.mubr.bf16.gmra.mxu1 %v11274_v60  ;;  %v6701_v15 = vpop.f32.mrf.mxu0  ;;  %v11300_v60 = vld [vmem:[#allocation2 + $0x1e0] ss:$16 sps:$4 sm:$0xff]  }
 0xd46   :  { %6889 = vmatprep.mubr.bf16.mxu1 %v11275_v61  ;;  %v6813_v21 = vpack.c.bf16 %v6701_v15, %v6698_v28  ;;  %v11301_v61 = vld [vmem:[#allocation2 + $0x204] ss:$16 sps:$4 sm:$0xff]   ;;  %v11302_v15 = vld [vmem:[#allocation2 + $0x8] ss:$16 sps:$4 sm:$0xff]  }
 0xd4d   :  { %6890 = vmatmul.mubr.bf16.gmra.mxu1 %v11276_v18  ;;  %v11303_v18 = vld [vmem:[#allocation2 + $0x200] ss:$16 sps:$4 sm:$0xff]  }
 0xd4e   :  { %6897 = vmatprep.mubr.bf16.mxu1 %v11277_v9  ;;  %v11304_v9 = vld [vmem:[#allocation2 + $0x2c] ss:$16 sps:$4 sm:$0xff]  }
 0xd4f   :  { %v10512_v47 = vpop.f32.mrf.mxu0 }
 0xd51   :  { %v6714_v46 = vpop.f32.mrf.mxu0 }
 0xd53   :  { %v10513_v22 = vpop.f32.mrf.mxu0 }
 0xd54   :  { %v6816_v20 = vpack.c.bf16 %v10513_v22, %v10512_v47  ;;  %v11305_v47 = vld [vmem:[#allocation2 + $0x224] ss:$16 sps:$4 sm:$0xff]   ;;  %v11307_v22 = vld [vmem:[#allocation2 + $0x220] ss:$16 sps:$4 sm:$0xff]  }
 0xd55   :  { %v6717_v44 = vpop.f32.mrf.mxu0  ;;  %6898 = vmatmul.mubr.bf16.gmra.mxu1 %v11278_v62  ;;  %v11310_v62 = vld [vmem:[#allocation2 + $0x48] ss:$16 sps:$4 sm:$0xff]  }
 0xd56   :  { %7123 = vmatpush1.bf16.msra.mxu0 %v6816_v20  ;;  %6905 = vmatprep.mubr.bf16.mxu1 %v11279_v42  ;;  %v6815_v29 = vpack.c.bf16 %v6717_v44, %v6714_v46  ;;  %v11306_v46 = vld [vmem:[#allocation2 + $0x28] ss:$16 sps:$4 sm:$0xff]   ;;  %v11308_v20 = vld [vmem:[#allocation2 + $0x4c] ss:$16 sps:$4 sm:$0xff]   ;;  %v11309_v44 = vld [vmem:[#allocation2 + $0x244] ss:$16 sps:$4 sm:$0xff]  }
 0xd57   :  { %7124 = vmatprep.subr.bf16.mxu0 %v11571_v6  ;;  %v11311_v42 = vld [vmem:[#allocation2 + $0x240] ss:$16 sps:$4 sm:$0xff]  }
 0xd5a   :  { %7125 = vmatpush1.bf16.msra.mxu0 %v6815_v29  ;;  %v11312_v29 = vld [vmem:[#allocation2 + $0x6c] ss:$16 sps:$4 sm:$0xff]  }
 0xd5b   :  { %7126 = vmatprep.subr.bf16.mxu0 %v11571_v6 }
 0xd5d   :  { %6906 = vmatmul.mubr.bf16.gmra.mxu1 %v11280_v11  ;;  %v11314_v11 = vld [vmem:[#allocation2 + $0x68] ss:$16 sps:$4 sm:$0xff]  }
 0xd5e   :  { %7127 = vmatpush1.bf16.msra.mxu0 %v6814_v40  ;;  %6913 = vmatprep.mubr.bf16.mxu1 %v11281_v1  ;;  %v11313_v40 = vld [vmem:[#allocation2 + $0x264] ss:$16 sps:$4 sm:$0xff]   ;;  %v11315_v1 = vld [vmem:[#allocation2 + $0x260] ss:$16 sps:$4 sm:$0xff]  }
 0xd5f   :  { %7128 = vmatprep.subr.bf16.mxu0 %v11571_v6  ;;  %v13620_v54 = vpop.f32.mrf.mxu0 }
 0xd61   :  { %v13623_v30 = vpop.f32.mrf.mxu0 }
 0xd62   :  { %7129 = vmatpush1.bf16.msra.mxu0 %v6813_v21  ;;  %v11316_v21 = vld [vmem:[#allocation2 + $0x8c] ss:$16 sps:$4 sm:$0xff]  }
 0xd63   :  { %7130 = vmatprep.subr.bf16.mxu0 %v11571_v6  ;;  %v13628_v4 = vpop.f32.mrf.mxu0 }
 0xd64   :  { %v6818_v28 = vpack.c.bf16 %v13628_v4, %v13620_v54  ;;  %v11318_v54 = vld [vmem:[#allocation2 + $0x88] ss:$16 sps:$4 sm:$0xff]   ;;  %v11324_v4 = vld [vmem:[#allocation2 + $0xcc] ss:$16 sps:$4 sm:$0xff]  }
 0xd65   :  { %6914 = vmatmul.mubr.bf16.gmra.mxu1 %v11282_v36  ;;  %v13633_v45 = vpop.f32.mrf.mxu0  ;;  %v11319_v36 = vld [vmem:[#allocation2 + $0x280] ss:$16 sps:$4 sm:$0xff]  }
 0xd66   :  { %7131 = vmatpush1.bf16.msra.mxu0 %v6812_v0  ;;  %6921 = vmatprep.mubr.bf16.mxu1 %v11283_v17  ;;  %v6817_v13 = vpack.c.bf16 %v13633_v45, %v13623_v30  ;;  %v11317_v0 = vld [vmem:[#allocation2 + $0x284] ss:$16 sps:$4 sm:$0xff]   ;;  %v11320_v17 = vld [vmem:[#allocation2 + $0xac] ss:$16 sps:$4 sm:$0xff]   ;;  %v11322_v30 = vld [vmem:[#allocation2 + $0xa8] ss:$16 sps:$4 sm:$0xff]  }
 0xd67   :  { %7132 = vmatprep.subr.bf16.mxu0 %v11571_v6  ;;  %v11328_v45 = vld [vmem:[#allocation2 + $0xec] ss:$16 sps:$4 sm:$0xff]  }
 0xd6a   :  { %7133 = vmatpush1.bf16.msra.mxu0 %v6811_v26  ;;  %v11321_v26 = vld [vmem:[#allocation2 + $0x2a4] ss:$16 sps:$4 sm:$0xff]  }
 0xd6b   :  { %7134 = vmatprep.subr.bf16.mxu0 %v11571_v6 }
 0xd6d   :  { %6922 = vmatmul.mubr.bf16.gmra.mxu1 %v11284_v25  ;;  %v11325_v25 = vld [vmem:[#allocation2 + $0x2c4] ss:$16 sps:$4 sm:$0xff]  }
 0xd6e   :  { %7135 = vmatpush1.bf16.msra.mxu0 %v6810_v12  ;;  %6929 = vmatprep.mubr.bf16.mxu1 %v11285_v52  ;;  %v11323_v12 = vld [vmem:[#allocation2 + $0x2a0] ss:$16 sps:$4 sm:$0xff]   ;;  %v11326_v52 = vld [vmem:[#allocation2 + $0xc8] ss:$16 sps:$4 sm:$0xff]  }
 0xd6f   :  { %7136 = vmatprep.subr.bf16.mxu0 %v11571_v6  ;;  %v10520_v39 = vpop.f32.mrf.mxu0 }
 0xd71   :  { %v6746_v31 = vpop.f32.mrf.mxu0 }
 0xd72   :  { %7137 = vmatpush1.bf16.msra.mxu0 %v6809_v50  ;;  %v11327_v50 = vld [vmem:[#allocation2 + $0x2c0] ss:$16 sps:$4 sm:$0xff]  }
 0xd73   :  { %7138 = vmatprep.subr.bf16.mxu0 %v11571_v6  ;;  %v10521_v43 = vpop.f32.mrf.mxu0 }
 0xd74   :  { %v6820_v41 = vpack.c.bf16 %v10521_v43, %v10520_v39  ;;  %v11329_v39 = vld [vmem:[#allocation2 + $0x2e4] ss:$16 sps:$4 sm:$0xff]  }
 0xd75   :  { %6930 = vmatmul.mubr.bf16.gmra.mxu1 %v11286_v32  ;;  %v6749_v57 = vpop.f32.mrf.mxu0  ;;  %v11330_v32 = vld [vmem:[#allocation2 + $0xe8] ss:$16 sps:$4 sm:$0xff]   ;;  %v11333_v43 = vld [vmem:[#allocation2 + $0x304] ss:$16 sps:$4 sm:$0xff]  }
 0xd76   :  { %6937 = vmatprep.mubr.bf16.mxu1 %v11287_v14  ;;  %v6819_v34 = vpack.c.bf16 %v6749_v57, %v6746_v31  ;;  %v11331_v14 = vld [vmem:[#allocation2 + $0x2e0] ss:$16 sps:$4 sm:$0xff]   ;;  %v11332_v31 = vld [vmem:[#allocation2 + $0x10c] ss:$16 sps:$4 sm:$0xff]  }
 0xd7d   :  { %6938 = vmatmul.mubr.bf16.gmra.mxu1 %v11288_v53  ;;  %v11334_v53 = vld [vmem:[#allocation2 + $0x108] ss:$16 sps:$4 sm:$0xff]  }
 0xd7e   :  { %6945 = vmatprep.mubr.bf16.mxu1 %v11289_v38  ;;  %v11335_v38 = vld [vmem:[#allocation2 + $0x300] ss:$16 sps:$4 sm:$0xff]  }
 0xd7f   :  { %v10524_v56 = vpop.f32.mrf.mxu0 }
 0xd81   :  { %v6762_v5 = vpop.f32.mrf.mxu0 }
 0xd83   :  { %v10525_v51 = vpop.f32.mrf.mxu0 }
 0xd84   :  { %v6822_v27 = vpack.c.bf16 %v10525_v51, %v10524_v56  ;;  %v11336_v56 = vld [vmem:[#allocation2 + $0x12c] ss:$16 sps:$4 sm:$0xff]  }
 0xd85   :  { %6946 = vmatmul.mubr.bf16.gmra.mxu1 %v11290_v59  ;;  %v6765_v58 = vpop.f32.mrf.mxu0 }
 0xd86   :  { %6953 = vmatprep.mubr.bf16.mxu1 %v11291_v7  ;;  %v6821_v37 = vpack.c.bf16 %v6765_v58, %v6762_v5  ;;  %v11337_v5 = vld [vmem:[#allocation2 + $0x324] ss:$16 sps:$4 sm:$0xff]   ;;  %v11338_v58 = vld [vmem:[#allocation2 + $0x128] ss:$16 sps:$4 sm:$0xff]  }
 0xd8d   :  { %6954 = vmatmul.mubr.bf16.gmra.mxu1 %v11292_v3  ;;  %v11339_v3 = vld [vmem:[#allocation2 + $0x320] ss:$16 sps:$4 sm:$0xff]  }
 0xd8e   :  { %6961 = vmatprep.mubr.bf16.mxu1 %v11293_v33 }
 0xd8f   :  { %v10528_v2 = vpop.f32.mrf.mxu0 }
 0xd91   :  { %v6778_v23 = vpop.f32.mrf.mxu0 }
 0xd93   :  { %v10529_v16 = vpop.f32.mrf.mxu0 }
 0xd94   :  { %v6824_v10 = vpack.c.bf16 %v10529_v16, %v10528_v2  ;;  %v11340_v2 = vld [vmem:[#allocation2 + $0x14c] ss:$16 sps:$4 sm:$0xff]  }
 0xd95   :  { %v6781_v24 = vpop.f32.mrf.mxu0  ;;  %6962 = vmatmul.mubr.bf16.gmra.mxu1 %v11294_v35  ;;  %v10851_v16 = vld [vmem:[%s14448_s5 + $0x58] sm:$0xff]   ;;  %v10852_v35 = vld [vmem:[%s14448_s5 + $0x50] sm:$0xff]   ;;  %s11572_s5 = smov [#allocation5]  }
 0xd96   :  { %7139 = vmatpush2.bf16.msra.mxu0 %v6824_v10  ;;  %6969 = vmatprep.mubr.bf16.mxu1 %v11295_v48  ;;  %v6823_v19 = vpack.c.bf16 %v6781_v24, %v6778_v23  ;;  %v11341_v23 = vld [vmem:[#allocation2 + $0x344] ss:$16 sps:$4 sm:$0xff]   ;;  %s9192_s12 = sshll.u32 %s11572_s5, 4  ;;  %s9193_s12 = int_to_ptr.vmem [resolvable:$true] %s9192_s12 }
 0xd97   :  { %7140 = vmatprep.subr.bf16.mxu0 %v11571_v6  ;;  %10530 = vmatprep.subr.bf16.mxu1 %v10851_v16  ;;  %p11549_p6 = scmp.lt.s32.totalorder %s9193_s12, %s9193_s12 }
 0xd98   :  { %10531 = vmatpush3.bf16.msra.mxu1 %v10851_v16  ;;  %v11368_v16 = vld [vmem:[#allocation2 + $0x24c] ss:$16 sps:$4 sm:$0xff]  }
 0xd99   :  { %10532 = vmatprep.subr.bf16.mxu1 %v10852_v35 }
 0xd9a   :  { %7141 = vmatpush2.bf16.msra.mxu0 %v6823_v19  ;;  %v11342_v19 = vld [vmem:[#allocation2 + $0x148] ss:$16 sps:$4 sm:$0xff]  }
 0xd9b   :  { %7142 = vmatprep.subr.bf16.mxu0 %v11571_v6 }
 0xd9c   :  { %10533 = vmatpush3.bf16.msra.mxu1 %v10852_v35 }
 0xd9d   :  { %6970 = vmatmul.mubr.bf16.gmra.mxu1 %v11296_v55  ;;  %8238 = vmatprep.subr.bf16.mxu1 %v11571_v6 }
 0xd9e   :  { %7143 = vmatpush2.bf16.msra.mxu0 %v6822_v27  ;;  %6977 = vmatprep.mubr.bf16.mxu1 %v11297_v49  ;;  %v11343_v27 = vld [vmem:[#allocation2 + $0x340] ss:$16 sps:$4 sm:$0xff]   ;;  %v11344_v49 = vld [vmem:[#allocation2 + $0x16c] ss:$16 sps:$4 sm:$0xff]  }
 0xd9f   :  { %7144 = vmatprep.subr.bf16.mxu0 %v11571_v6 }
 0xda2   :  { %7145 = vmatpush2.bf16.msra.mxu0 %v6821_v37  ;;  %v11345_v37 = vld [vmem:[#allocation2 + $0x364] ss:$16 sps:$4 sm:$0xff]  }
 0xda3   :  { %7146 = vmatprep.subr.bf16.mxu0 %v11571_v6 }
 0xda5   :  { %6978 = vmatmul.mubr.bf16.gmra.mxu1 %v11298_v63 }
 0xda6   :  { %7147 = vmatpush2.bf16.msra.mxu0 %v6820_v41  ;;  %6985 = vmatprep.mubr.bf16.mxu1 %v11299_v8 }
 0xda7   :  { %7148 = vmatprep.subr.bf16.mxu0 %v11571_v6 }
 0xdaa   :  { %7149 = vmatpush2.bf16.msra.mxu0 %v6819_v34  ;;  %v11346_v34 = vld [vmem:[#allocation2 + $0x168] ss:$16 sps:$4 sm:$0xff]  }
 0xdab   :  { %7150 = vmatprep.subr.bf16.mxu0 %v11571_v6 }
 0xdad   :  { %6986 = vmatmul.mubr.bf16.gmra.mxu1 %v11300_v60 }
 0xdae   :  { %7151 = vmatpush2.bf16.msra.mxu0 %v6818_v28  ;;  %6993 = vmatprep.mubr.bf16.mxu1 %v11301_v61  ;;  %v11347_v28 = vld [vmem:[#allocation2 + $0x360] ss:$16 sps:$4 sm:$0xff]   ;;  %v11348_v61 = vld [vmem:[#allocation2 + $0x18c] ss:$16 sps:$4 sm:$0xff]  }
 0xdaf   :  { %7152 = vmatprep.subr.bf16.mxu0 %v11571_v6 }
 0xdb2   :  { %7153 = vmatpush2.bf16.msra.mxu0 %v6817_v13  ;;  %v11349_v13 = vld [vmem:[#allocation2 + $0x384] ss:$16 sps:$4 sm:$0xff]  }
 0xdb3   :  { %7949 = vmatprep.subr.bf16.mxu0 %v11571_v6 }
 0xdb5   :  { %7155 = vmatmul.mubr.bf16.vlgmr.msra.gmra.mxu0 %v11302_v15  ;;  %6994 = vmatmul.mubr.bf16.gmra.mxu1 %v11303_v18 }
 0xdb6   :  { %7162 = vmatprep.mubr.bf16.mxu0 %v11304_v9  ;;  %7001 = vmatprep.mubr.bf16.mxu1 %v11305_v47  ;;  %v11350_v47 = vld [vmem:[#allocation2 + $0x188] ss:$16 sps:$4 sm:$0xff]  }
 0xdbd   :  { %7163 = vmatmul.mubr.bf16.gmra.mxu0 %v11306_v46  ;;  %7002 = vmatmul.mubr.bf16.gmra.mxu1 %v11307_v22  ;;  %v11351_v46 = vld [vmem:[#allocation2 + $0x380] ss:$16 sps:$4 sm:$0xff]  }
 0xdbe   :  { %7170 = vmatprep.mubr.bf16.mxu0 %v11308_v20  ;;  %7009 = vmatprep.mubr.bf16.mxu1 %v11309_v44  ;;  %v11352_v20 = vld [vmem:[#allocation2 + $0x1ac] ss:$16 sps:$4 sm:$0xff]   ;;  %v11353_v44 = vld [vmem:[#allocation2 + $0x3a4] ss:$16 sps:$4 sm:$0xff]  }
 0xdc5   :  { %7171 = vmatmul.mubr.bf16.gmra.mxu0 %v11310_v62  ;;  %7010 = vmatmul.mubr.bf16.gmra.mxu1 %v11311_v42 }
 0xdc6   :  { %7178 = vmatprep.mubr.bf16.mxu0 %v11312_v29  ;;  %7017 = vmatprep.mubr.bf16.mxu1 %v11313_v40  ;;  %v11354_v40 = vld [vmem:[#allocation2 + $0x1a8] ss:$16 sps:$4 sm:$0xff]  }
 0xdcd   :  { %7179 = vmatmul.mubr.bf16.gmra.mxu0 %v11314_v11  ;;  %7018 = vmatmul.mubr.bf16.gmra.mxu1 %v11315_v1  ;;  %v11355_v11 = vld [vmem:[#allocation2 + $0x3a0] ss:$16 sps:$4 sm:$0xff]  }
 0xdce   :  { %7186 = vmatprep.mubr.bf16.mxu0 %v11316_v21  ;;  %7025 = vmatprep.mubr.bf16.mxu1 %v11317_v0  ;;  %v11356_v21 = vld [vmem:[#allocation2 + $0x1cc] ss:$16 sps:$4 sm:$0xff]   ;;  %v11357_v0 = vld [vmem:[#allocation2 + $0x3c4] ss:$16 sps:$4 sm:$0xff]  }
 0xdd5   :  { %7187 = vmatmul.mubr.bf16.gmra.mxu0 %v11318_v54  ;;  %7026 = vmatmul.mubr.bf16.gmra.mxu1 %v11319_v36 }
 0xdd6   :  { %7194 = vmatprep.mubr.bf16.mxu0 %v11320_v17  ;;  %7033 = vmatprep.mubr.bf16.mxu1 %v11321_v26  ;;  %v11358_v26 = vld [vmem:[#allocation2 + $0x1c8] ss:$16 sps:$4 sm:$0xff]  }
 0xddd   :  { %7195 = vmatmul.mubr.bf16.gmra.mxu0 %v11322_v30  ;;  %7034 = vmatmul.mubr.bf16.gmra.mxu1 %v11323_v12  ;;  %v11359_v30 = vld [vmem:[#allocation2 + $0x3c0] ss:$16 sps:$4 sm:$0xff]  }
 0xdde   :  { %7202 = vmatprep.mubr.bf16.mxu0 %v11324_v4  ;;  %7041 = vmatprep.mubr.bf16.mxu1 %v11325_v25  ;;  %v11360_v4 = vld [vmem:[#allocation2 + $0x1ec] ss:$16 sps:$4 sm:$0xff]   ;;  %v11361_v25 = vld [vmem:[#allocation2 + $0x3e4] ss:$16 sps:$4 sm:$0xff]  }
 0xde5   :  { %7203 = vmatmul.mubr.bf16.gmra.mxu0 %v11326_v52  ;;  %7042 = vmatmul.mubr.bf16.gmra.mxu1 %v11327_v50 }
 0xde6   :  { %7210 = vmatprep.mubr.bf16.mxu0 %v11328_v45  ;;  %7049 = vmatprep.mubr.bf16.mxu1 %v11329_v39  ;;  %v11362_v39 = vld [vmem:[#allocation2 + $0x1e8] ss:$16 sps:$4 sm:$0xff]  }
 0xded   :  { %7211 = vmatmul.mubr.bf16.gmra.mxu0 %v11330_v32  ;;  %7050 = vmatmul.mubr.bf16.gmra.mxu1 %v11331_v14  ;;  %v11363_v32 = vld [vmem:[#allocation2 + $0x3e0] ss:$16 sps:$4 sm:$0xff]  }
 0xdee   :  { %7218 = vmatprep.mubr.bf16.mxu0 %v11332_v31  ;;  %7057 = vmatprep.mubr.bf16.mxu1 %v11333_v43  ;;  %v11364_v31 = vld [vmem:[#allocation2 + $0x20c] ss:$16 sps:$4 sm:$0xff]  }
 0xdf5   :  { %7219 = vmatmul.mubr.bf16.gmra.mxu0 %v11334_v53  ;;  %7058 = vmatmul.mubr.bf16.gmra.mxu1 %v11335_v38  ;;  %v13648_v57 = vpop.f32.mrf.mxu1 }
 0xdf6   :  { %7226 = vmatprep.mubr.bf16.mxu0 %v11336_v56  ;;  %7065 = vmatprep.mubr.bf16.mxu1 %v11337_v5  ;;  %v11365_v56 = vld [vmem:[#allocation2 + $0x208] ss:$16 sps:$4 sm:$0xff]  }
 0xdf7   :  { %v6869_v59 = vpop.f32.mrf.mxu1 }
 0xdf8   :  { %v11366_v59 = vld [vmem:[#allocation2 + $0x22c] ss:$16 sps:$4 sm:$0xff]  }
 0xdf9   :  { %v13650_v7 = vpop.f32.mrf.mxu1 }
 0xdfb   :  { %v6872_v51 = vpop.f32.mrf.mxu1 }
 0xdfd   :  { %7227 = vmatmul.mubr.bf16.gmra.mxu0 %v11338_v58  ;;  %7066 = vmatmul.mubr.bf16.gmra.mxu1 %v11339_v3  ;;  %v13652_v33 = vpop.f32.mrf.mxu1 }
 0xdfe   :  { %7234 = vmatprep.mubr.bf16.mxu0 %v11340_v2  ;;  %7073 = vmatprep.mubr.bf16.mxu1 %v11341_v23  ;;  %v11367_v2 = vld [vmem:[#allocation2 + $0x228] ss:$16 sps:$4 sm:$0xff]  }
 0xdff   :  { %v6877_v10 = vpop.f32.mrf.mxu1 }
 0xe01   :  { %v13657_v24 = vpop.f32.mrf.mxu1 }
 0xe03   :  { %v6880_v48 = vpop.f32.mrf.mxu1 }
 0xe05   :  { %7235 = vmatmul.mubr.bf16.gmra.mxu0 %v11342_v19  ;;  %7074 = vmatmul.mubr.bf16.gmra.mxu1 %v11343_v27  ;;  %v13662_v55 = vpop.f32.mrf.mxu1  ;;  %v11369_v19 = vld [vmem:[#allocation2 + $0x248] ss:$16 sps:$4 sm:$0xff]  }
 0xe06   :  { %7242 = vmatprep.mubr.bf16.mxu0 %v11344_v49  ;;  %7081 = vmatprep.mubr.bf16.mxu1 %v11345_v37  ;;  %v11370_v49 = vld [vmem:[#allocation2 + $0x26c] ss:$16 sps:$4 sm:$0xff]  }
 0xe07   :  { %v6885_v41 = vpop.f32.mrf.mxu1 }
 0xe09   :  { %v13665_v63 = vpop.f32.mrf.mxu1 }
 0xe0b   :  { %v6888_v8 = vpop.f32.mrf.mxu1 }
 0xe0d   :  { %7243 = vmatmul.mubr.bf16.gmra.mxu0 %v11346_v34  ;;  %7082 = vmatmul.mubr.bf16.gmra.mxu1 %v11347_v28  ;;  %v13667_v60 = vpop.f32.mrf.mxu1  ;;  %v11371_v34 = vld [vmem:[#allocation2 + $0x268] ss:$16 sps:$4 sm:$0xff]  }
 0xe0e   :  { %7250 = vmatprep.mubr.bf16.mxu0 %v11348_v61  ;;  %7089 = vmatprep.mubr.bf16.mxu1 %v11349_v13  ;;  %v11372_v61 = vld [vmem:[#allocation2 + $0x28c] ss:$16 sps:$4 sm:$0xff]  }
 0xe0f   :  { %v6893_v15 = vpop.f32.mrf.mxu1 }
 0xe11   :  { %v13669_v18 = vpop.f32.mrf.mxu1 }
 0xe13   :  { %v6896_v9 = vpop.f32.mrf.mxu1 }
 0xe15   :  { %7251 = vmatmul.mubr.bf16.gmra.mxu0 %v11350_v47  ;;  %7090 = vmatmul.mubr.bf16.gmra.mxu1 %v11351_v46  ;;  %v13671_v22 = vpop.f32.mrf.mxu1  ;;  %v11373_v47 = vld [vmem:[#allocation2 + $0x288] ss:$16 sps:$4 sm:$0xff]  }
 0xe16   :  { %7258 = vmatprep.mubr.bf16.mxu0 %v11352_v20  ;;  %7097 = vmatprep.mubr.bf16.mxu1 %v11353_v44  ;;  %v11374_v20 = vld [vmem:[#allocation2 + $0x2ac] ss:$16 sps:$4 sm:$0xff]  }
 0xe17   :  { %v6901_v62 = vpop.f32.mrf.mxu1 }
 0xe19   :  { %v13673_v42 = vpop.f32.mrf.mxu1 }
 0xe1b   :  { %v6904_v29 = vpop.f32.mrf.mxu1 }
 0xe1d   :  { %7259 = vmatmul.mubr.bf16.gmra.mxu0 %v11354_v40  ;;  %7098 = vmatmul.mubr.bf16.gmra.mxu1 %v11355_v11  ;;  %v13675_v1 = vpop.f32.mrf.mxu1  ;;  %v11375_v40 = vld [vmem:[#allocation2 + $0x2a8] ss:$16 sps:$4 sm:$0xff]  }
 0xe1e   :  { %7266 = vmatprep.mubr.bf16.mxu0 %v11356_v21  ;;  %7105 = vmatprep.mubr.bf16.mxu1 %v11357_v0  ;;  %v11376_v21 = vld [vmem:[#allocation2 + $0x2cc] ss:$16 sps:$4 sm:$0xff]  }
 0xe1f   :  { %v6909_v54 = vpop.f32.mrf.mxu1 }
 0xe21   :  { %v13677_v36 = vpop.f32.mrf.mxu1 }
 0xe23   :  { %v6912_v17 = vpop.f32.mrf.mxu1 }
 0xe25   :  { %7267 = vmatmul.mubr.bf16.gmra.mxu0 %v11358_v26  ;;  %7106 = vmatmul.mubr.bf16.gmra.mxu1 %v11359_v30  ;;  %v13679_v12 = vpop.f32.mrf.mxu1  ;;  %v11377_v26 = vld [vmem:[#allocation2 + $0x2c8] ss:$16 sps:$4 sm:$0xff]  }
 0xe26   :  { %7274 = vmatprep.mubr.bf16.mxu0 %v11360_v4  ;;  %7113 = vmatprep.mubr.bf16.mxu1 %v11361_v25  ;;  %v11378_v4 = vld [vmem:[#allocation2 + $0x2ec] ss:$16 sps:$4 sm:$0xff]  }
 0xe27   :  { %v6917_v52 = vpop.f32.mrf.mxu1 }
 0xe29   :  { %v13681_v50 = vpop.f32.mrf.mxu1 }
 0xe2b   :  { %v6920_v45 = vpop.f32.mrf.mxu1 }
 0xe2d   :  { %7275 = vmatmul.mubr.bf16.gmra.mxu0 %v11362_v39  ;;  %7114 = vmatmul.mubr.bf16.gmra.mxu1 %v11363_v32  ;;  %v13683_v14 = vpop.f32.mrf.mxu1  ;;  %v11379_v39 = vld [vmem:[#allocation2 + $0x2e8] ss:$16 sps:$4 sm:$0xff]  }
 0xe2e   :  { %7282 = vmatprep.mubr.bf16.mxu0 %v11364_v31  ;;  %v11380_v31 = vld [vmem:[#allocation2 + $0x30c] ss:$16 sps:$4 sm:$0xff]  }
 0xe2f   :  { %v6925_v43 = vpop.f32.mrf.mxu1 }
 0xe31   :  { %v13685_v53 = vpop.f32.mrf.mxu1 }
 0xe33   :  { %v6928_v38 = vpop.f32.mrf.mxu1 }
 0xe34   :  { %v13720_v38 = vld [vmem:[%s14449_s6 + $0x4] ss:$0 sm:$0xff] }
 0xe35   :  { %7283 = vmatmul.mubr.bf16.gmra.mxu0 %v11365_v56  ;;  %v13687_v5 = vpop.f32.mrf.mxu1 }
 0xe36   :  { %7290 = vmatprep.mubr.bf16.mxu0 %v11366_v59 }
 0xe37   :  { %v6933_v51 = vpop.f32.mrf.mxu1 }
 0xe38   :  { %v6868_v51 = vadd.f32 %v13720_v38, %v13648_v57  ;;  %v6876_v57 = vadd.f32 %v13720_v38, %v13652_v33 }
 0xe39   :  { %v13689_v58 = vpop.f32.mrf.mxu1 }
 0xe3b   :  { %v6936_v3 = vpop.f32.mrf.mxu1 }
 0xe3d   :  { %7291 = vmatmul.mubr.bf16.gmra.mxu0 %v11367_v2  ;;  %v13691_v23 = vpop.f32.mrf.mxu1  ;;  %v11381_v2 = vld [vmem:[#allocation2 + $0x308] ss:$16 sps:$4 sm:$0xff]  }
 0xe3e   :  { %7298 = vmatprep.mubr.bf16.mxu0 %v11368_v16 }
 0xe3f   :  { %v6941_v10 = vpop.f32.mrf.mxu1 }
 0xe40   :  { %v11382_v10 = vld [vmem:[#allocation2 + $0x32c] ss:$16 sps:$4 sm:$0xff]  }
 0xe41   :  { %v13693_v35 = vpop.f32.mrf.mxu1 }
 0xe43   :  { %v6944_v48 = vpop.f32.mrf.mxu1 }
 0xe45   :  { %7299 = vmatmul.mubr.bf16.gmra.mxu0 %v11369_v19  ;;  %v13695_v27 = vpop.f32.mrf.mxu1 }
 0xe46   :  { %7306 = vmatprep.mubr.bf16.mxu0 %v11370_v49  ;;  %v6871_v49 = vadd.f32 %v13720_v38, %v13650_v7 }
 0xe47   :  { %v6949_v37 = vpop.f32.mrf.mxu1 }
 0xe49   :  { %v13697_v41 = vpop.f32.mrf.mxu1 }
 0xe4b   :  { %v6952_v8 = vpop.f32.mrf.mxu1 }
 0xe4d   :  { %7307 = vmatmul.mubr.bf16.gmra.mxu0 %v11371_v34  ;;  %v13699_v28 = vpop.f32.mrf.mxu1 }
 0xe4e   :  { %7314 = vmatprep.mubr.bf16.mxu0 %v11372_v61 }
 0xe4f   :  { %v6957_v13 = vpop.f32.mrf.mxu1 }
 0xe51   :  { %v13701_v15 = vpop.f32.mrf.mxu1 }
 0xe53   :  { %v6960_v9 = vpop.f32.mrf.mxu1 }
 0xe55   :  { %7315 = vmatmul.mubr.bf16.gmra.mxu0 %v11373_v47  ;;  %v13703_v46 = vpop.f32.mrf.mxu1 }
 0xe56   :  { %7322 = vmatprep.mubr.bf16.mxu0 %v11374_v20 }
 0xe57   :  { %v6965_v44 = vpop.f32.mrf.mxu1 }
 0xe59   :  { %v13705_v62 = vpop.f32.mrf.mxu1 }
 0xe5b   :  { %v6968_v29 = vpop.f32.mrf.mxu1 }
 0xe5c   :  { %v11383_v29 = vld [vmem:[#allocation2 + $0x328] ss:$16 sps:$4 sm:$0xff]  }
 0xe5d   :  { %7323 = vmatmul.mubr.bf16.gmra.mxu0 %v11375_v40  ;;  %v13707_v11 = vpop.f32.mrf.mxu1 }
 0xe5e   :  { %7330 = vmatprep.mubr.bf16.mxu0 %v11376_v21 }
 0xe5f   :  { %v6973_v0 = vpop.f32.mrf.mxu1 }
 0xe60   :  { %v11384_v0 = vld [vmem:[#allocation2 + $0x34c] ss:$16 sps:$4 sm:$0xff]  }
 0xe61   :  { %v13709_v54 = vpop.f32.mrf.mxu1 }
 0xe63   :  { %v6976_v17 = vpop.f32.mrf.mxu1 }
 0xe65   :  { %7331 = vmatmul.mubr.bf16.gmra.mxu0 %v11377_v26  ;;  %v13711_v30 = vpop.f32.mrf.mxu1  ;;  %v6879_v26 = vadd.f32 %v13720_v38, %v13657_v24 }
 0xe66   :  { %7338 = vmatprep.mubr.bf16.mxu0 %v11378_v4 }
 0xe67   :  { %v6981_v25 = vpop.f32.mrf.mxu1 }
 0xe69   :  { %v13713_v52 = vpop.f32.mrf.mxu1 }
 0xe6b   :  { %v6984_v45 = vpop.f32.mrf.mxu1 }
 0xe6d   :  { %7339 = vmatmul.mubr.bf16.gmra.mxu0 %v11379_v39  ;;  %v13715_v32 = vpop.f32.mrf.mxu1 }
 0xe6e   :  { %7346 = vmatprep.mubr.bf16.mxu0 %v11380_v31 }
 0xe6f   :  { %v6989_v43 = vpop.f32.mrf.mxu1 }
 0xe70   :  { %v6884_v43 = vadd.f32 %v13720_v38, %v13662_v55 }
 0xe71   :  { %v13722_v56 = vpop.f32.mrf.mxu1 }
 0xe73   :  { %v6992_v59 = vpop.f32.mrf.mxu1 }
 0xe75   :  { %v7156_v3 = vpop.f32.mrf.mxu0  ;;  %7347 = vmatmul.mubr.bf16.gmra.mxu0 %v11381_v2  ;;  %v13726_v16 = vpop.f32.mrf.mxu1  ;;  %v11385_v2 = vld [vmem:[#allocation2 + $0x348] ss:$16 sps:$4 sm:$0xff]  }
 0xe76   :  { %7354 = vmatprep.mubr.bf16.mxu0 %v11382_v10  ;;  %v7157_v37 = vadd.f32 %v7156_v3, %v6868_v51 }
 0xe77   :  { %v7158_v48 = vpop.f32.mrf.mxu0  ;;  %v6997_v19 = vpop.f32.mrf.mxu1 }
 0xe78   :  { %v7411_v47 = vmax.f32 %v7157_v37, 0.0  ;;  %v11386_v48 = vld [vmem:[#allocation2 + $0x36c] ss:$16 sps:$4 sm:$0xff]   ;;  %v6887_v37 = vadd.f32 %v13720_v38, %v13665_v63 }
 0xe79   :  { %v7159_v8 = vpop.f32.mrf.mxu0  ;;  %v13730_v34 = vpop.f32.mrf.mxu1 }
 0xe7a   :  { %v7160_v61 = vadd.f32 %v7159_v8, %v6871_v49 }
 0xe7b   :  { %v7161_v13 = vpop.f32.mrf.mxu0  ;;  %v7000_v9 = vpop.f32.mrf.mxu1 }
 0xe7c   :  { %v7412_v20 = vmax.f32 %v7160_v61, 0.0 }
 0xe7d   :  { %v7164_v44 = vpop.f32.mrf.mxu0  ;;  %7355 = vmatmul.mubr.bf16.gmra.mxu0 %v11383_v29  ;;  %v13734_v40 = vpop.f32.mrf.mxu1 }
 0xe7e   :  { %v7475_v21 = vpack.c.bf16 %v7412_v20, %v7411_v47  ;;  %7362 = vmatprep.mubr.bf16.mxu0 %v11384_v0  ;;  %v7165_v4 = vadd.f32 %v7164_v44, %v6876_v57  ;;  %v6892_v47 = vadd.f32 %v13720_v38, %v13667_v60 }
 0xe7f   :  { %v7166_v7 = vpop.f32.mrf.mxu0  ;;  %v7005_v17 = vpop.f32.mrf.mxu1 }
 0xe80   :  { %10534 = vmatprep.mubr.msk.bf16.mxu1 %vm173_vm0, %v7475_v21  ;;  %v7413_v59 = vmax.f32 %v7165_v4, 0.0  ;;  %v11387_v21 = vld [vmem:[#allocation2 + $0x368] ss:$16 sps:$4 sm:$0xff]   ;;  %v11388_v7 = vld [vmem:[#allocation2 + $0x38c] ss:$16 sps:$4 sm:$0xff]   ;;  %v6895_v4 = vadd.f32 %v13720_v38, %v13669_v18 }
 0xe81   :  { %v7167_v25 = vpop.f32.mrf.mxu0  ;;  %v13739_v33 = vpop.f32.mrf.mxu1 }
 0xe82   :  { %v7168_v45 = vadd.f32 %v7167_v25, %v6879_v26 }
 0xe83   :  { %v7169_v39 = vpop.f32.mrf.mxu0  ;;  %v7008_v31 = vpop.f32.mrf.mxu1 }
 0xe84   :  { %v7414_v51 = vmax.f32 %v7168_v45, 0.0 }
 0xe85   :  { %v7172_v3 = vpop.f32.mrf.mxu0  ;;  %7363 = vmatmul.mubr.bf16.gmra.mxu0 %v11385_v2  ;;  %v13743_v10 = vpop.f32.mrf.mxu1 }
 0xe86   :  { %v7476_v24 = vpack.c.bf16 %v7414_v51, %v7413_v59  ;;  %7370 = vmatprep.mubr.bf16.mxu0 %v11386_v48  ;;  %v7173_v8 = vadd.f32 %v7172_v3, %v6884_v43  ;;  %v6900_v59 = vadd.f32 %v13720_v38, %v13671_v22 }
 0xe87   :  { %v7174_v19 = vpop.f32.mrf.mxu0  ;;  %v7013_v49 = vpop.f32.mrf.mxu1 }
 0xe88   :  { %10535 = vmatmul.mubr.msk.bf16.vlgmr.msra.gmra.mxu1 %vm173_vm0, %v7476_v24  ;;  %v7415_v20 = vmax.f32 %v7173_v8, 0.0  ;;  %v11389_v24 = vld [vmem:[#allocation2 + $0x388] ss:$16 sps:$4 sm:$0xff]   ;;  %v11390_v19 = vld [vmem:[#allocation2 + $0x3ac] ss:$16 sps:$4 sm:$0xff]   ;;  %v6903_v8 = vadd.f32 %v13720_v38, %v13673_v42 }
 0xe89   :  { %v7175_v61 = vpop.f32.mrf.mxu0  ;;  %v13748_v55 = vpop.f32.mrf.mxu1 }
 0xe8a   :  { %v7176_v13 = vadd.f32 %v7175_v61, %v6887_v37 }
 0xe8b   :  { %v7177_v9 = vpop.f32.mrf.mxu0  ;;  %v7016_v57 = vpop.f32.mrf.mxu1 }
 0xe8c   :  { %v7416_v44 = vmax.f32 %v7176_v13, 0.0 }
 0xe8d   :  { %v7180_v29 = vpop.f32.mrf.mxu0  ;;  %7371 = vmatmul.mubr.bf16.gmra.mxu0 %v11387_v21  ;;  %v13752_v0 = vpop.f32.mrf.mxu1 }
 0xe8e   :  { %v7477_v63 = vpack.c.bf16 %v7416_v44, %v7415_v20  ;;  %7378 = vmatprep.mubr.bf16.mxu0 %v11388_v7  ;;  %v7181_v25 = vadd.f32 %v7180_v29, %v6892_v47  ;;  %v6908_v20 = vadd.f32 %v13720_v38, %v13675_v1 }
 0xe8f   :  { %v7182_v17 = vpop.f32.mrf.mxu0  ;;  %v7021_v26 = vpop.f32.mrf.mxu1 }
 0xe90   :  { %10538 = vmatprep.mubr.msk.bf16.mxu1 %vm173_vm0, %v7477_v63  ;;  %v7417_v51 = vmax.f32 %v7181_v25, 0.0  ;;  %v11391_v63 = vld [vmem:[#allocation2 + $0x3a8] ss:$16 sps:$4 sm:$0xff]   ;;  %v11392_v17 = vld [vmem:[#allocation2 + $0x3cc] ss:$16 sps:$4 sm:$0xff]   ;;  %v6911_v25 = vadd.f32 %v13720_v38, %v13677_v36 }
 0xe91   :  { %v7183_v45 = vpop.f32.mrf.mxu0  ;;  %v13757_v60 = vpop.f32.mrf.mxu1 }
 0xe92   :  { %v7184_v39 = vadd.f32 %v7183_v45, %v6895_v4 }
 0xe93   :  { %v7185_v31 = vpop.f32.mrf.mxu0  ;;  %v7024_v43 = vpop.f32.mrf.mxu1 }
 0xe94   :  { %v7418_v3 = vmax.f32 %v7184_v39, 0.0 }
 0xe95   :  { %v7188_v2 = vpop.f32.mrf.mxu0  ;;  %7379 = vmatmul.mubr.bf16.gmra.mxu0 %v11389_v24  ;;  %v13761_v48 = vpop.f32.mrf.mxu1 }
 0xe96   :  { %v7478_v18 = vpack.c.bf16 %v7418_v3, %v7417_v51  ;;  %7386 = vmatprep.mubr.bf16.mxu0 %v11390_v19  ;;  %v7189_v61 = vadd.f32 %v7188_v2, %v6900_v59  ;;  %v6916_v51 = vadd.f32 %v13720_v38, %v13679_v12 }
 0xe97   :  { %v7190_v49 = vpop.f32.mrf.mxu0  ;;  %v7029_v37 = vpop.f32.mrf.mxu1 }
 0xe98   :  { %10539 = vmatmul.mubr.msk.bf16.gmra.mxu1 %vm173_vm0, %v7478_v18  ;;  %v7419_v44 = vmax.f32 %v7189_v61, 0.0  ;;  %v11393_v18 = vld [vmem:[#allocation2 + $0x3c8] ss:$16 sps:$4 sm:$0xff]   ;;  %v11394_v49 = vld [vmem:[#allocation2 + $0x3ec] ss:$16 sps:$4 sm:$0xff]   ;;  %v6919_v61 = vadd.f32 %v13720_v38, %v13681_v50 }
 0xe99   :  { %v7191_v13 = vpop.f32.mrf.mxu0  ;;  %v13766_v22 = vpop.f32.mrf.mxu1 }
 0xe9a   :  { %v7192_v9 = vadd.f32 %v7191_v13, %v6903_v8 }
 0xe9b   :  { %v7193_v57 = vpop.f32.mrf.mxu0  ;;  %v7032_v47 = vpop.f32.mrf.mxu1 }
 0xe9c   :  { %v7420_v29 = vmax.f32 %v7192_v9, 0.0 }
 0xe9d   :  { %v7196_v21 = vpop.f32.mrf.mxu0  ;;  %7387 = vmatmul.mubr.bf16.gmra.mxu0 %v11391_v63  ;;  %v13770_v7 = vpop.f32.mrf.mxu1 }
 0xe9e   :  { %v7479_v42 = vpack.c.bf16 %v7420_v29, %v7419_v44  ;;  %7394 = vmatprep.mubr.bf16.mxu0 %v11392_v17  ;;  %v7197_v45 = vadd.f32 %v7196_v21, %v6908_v20  ;;  %v6924_v44 = vadd.f32 %v13720_v38, %v13683_v14 }
 0xe9f   :  { %v7198_v26 = vpop.f32.mrf.mxu0  ;;  %v7037_v4 = vpop.f32.mrf.mxu1 }
 0xea0   :  { %10542 = vmatprep.mubr.msk.bf16.mxu1 %vm173_vm0, %v7479_v42  ;;  %v7421_v3 = vmax.f32 %v7197_v45, 0.0  ;;  %v11395_v42 = vld [vmem:[#allocation2 + $0x3e8] ss:$16 sps:$4 sm:$0xff]   ;;  %v11396_v26 = vld [vmem:[#allocation2 + $0x4] ss:$16 sps:$4 sm:$0xff]   ;;  %v6927_v45 = vadd.f32 %v13720_v38, %v13685_v53 }
 0xea1   :  { %v7199_v39 = vpop.f32.mrf.mxu0  ;;  %v13775_v1 = vpop.f32.mrf.mxu1 }
 0xea2   :  { %v7200_v31 = vadd.f32 %v7199_v39, %v6911_v25 }
 0xea3   :  { %v7201_v43 = vpop.f32.mrf.mxu0  ;;  %v7040_v59 = vpop.f32.mrf.mxu1 }
 0xea4   :  { %v7422_v2 = vmax.f32 %v7200_v31, 0.0 }
 0xea5   :  { %v7204_v24 = vpop.f32.mrf.mxu0  ;;  %7395 = vmatmul.mubr.bf16.gmra.mxu0 %v11393_v18  ;;  %v13779_v19 = vpop.f32.mrf.mxu1 }
 0xea6   :  { %v7480_v36 = vpack.c.bf16 %v7422_v2, %v7421_v3  ;;  %7402 = vmatprep.mubr.bf16.mxu0 %v11394_v49  ;;  %v7205_v13 = vadd.f32 %v7204_v24, %v6916_v51  ;;  %v6932_v3 = vadd.f32 %v13720_v38, %v13687_v5 }
 0xea7   :  { %v7206_v37 = vpop.f32.mrf.mxu0  ;;  %v7045_v8 = vpop.f32.mrf.mxu1 }
 0xea8   :  { %10543 = vmatmul.mubr.msk.bf16.gmra.mxu1 %vm173_vm0, %v7480_v36  ;;  %v7423_v29 = vmax.f32 %v7205_v13, 0.0  ;;  %v6935_v8 = vadd.f32 %v13720_v38, %v13689_v58 }
 0xea9   :  { %v7207_v9 = vpop.f32.mrf.mxu0  ;;  %v13784_v12 = vpop.f32.mrf.mxu1 }
 0xeaa   :  { %v7208_v57 = vadd.f32 %v7207_v9, %v6919_v61 }
 0xeab   :  { %v7209_v47 = vpop.f32.mrf.mxu0  ;;  %v7048_v20 = vpop.f32.mrf.mxu1 }
 0xeac   :  { %v7424_v21 = vmax.f32 %v7208_v57, 0.0  ;;  %v6940_v20 = vadd.f32 %v13720_v38, %v13691_v23 }
 0xead   :  { %v7212_v63 = vpop.f32.mrf.mxu0  ;;  %7403 = vmatmul.mubr.bf16.gmra.mxu0 %v11395_v42  ;;  %v13788_v17 = vpop.f32.mrf.mxu1 }
 0xeae   :  { %v7481_v50 = vpack.c.bf16 %v7424_v21, %v7423_v29  ;;  %7981 = vmatprep.mubr.bf16.mxu0 %v11396_v26  ;;  %v7213_v39 = vadd.f32 %v7212_v63, %v6924_v44  ;;  %v6943_v26 = vadd.f32 %v13720_v38, %v13693_v35 }
 0xeaf   :  { %v7214_v4 = vpop.f32.mrf.mxu0  ;;  %v7053_v25 = vpop.f32.mrf.mxu1 }
 0xeb0   :  { %10546 = vmatprep.mubr.msk.bf16.mxu1 %vm173_vm0, %v7481_v50  ;;  %v7425_v2 = vmax.f32 %v7213_v39, 0.0 }
 0xeb1   :  { %v7215_v31 = vpop.f32.mrf.mxu0  ;;  %v13793_v14 = vpop.f32.mrf.mxu1 }
 0xeb2   :  { %v7216_v43 = vadd.f32 %v7215_v31, %v6927_v45 }
 0xeb3   :  { %v7217_v59 = vpop.f32.mrf.mxu0  ;;  %v7056_v51 = vpop.f32.mrf.mxu1 }
 0xeb4   :  { %v7426_v24 = vmax.f32 %v7216_v43, 0.0  ;;  %v6948_v43 = vadd.f32 %v13720_v38, %v13695_v27 }
 0xeb5   :  { %v7220_v18 = vpop.f32.mrf.mxu0  ;;  %v13797_v36 = vpop.f32.mrf.mxu1 }
 0xeb6   :  { %v7482_v49 = vpack.c.bf16 %v7426_v24, %v7425_v2  ;;  %v7221_v61 = vadd.f32 %v7220_v18, %v6932_v3 }
 0xeb7   :  { %v7222_v37 = vpop.f32.mrf.mxu0  ;;  %v7061_v53 = vpop.f32.mrf.mxu1 }
 0xeb8   :  { %10547 = vmatmul.mubr.msk.bf16.gmra.mxu1 %vm173_vm0, %v7482_v49  ;;  %v7427_v44 = vmax.f32 %v7221_v61, 0.0  ;;  %v6951_v49 = vadd.f32 %v13720_v38, %v13697_v41 }
 0xeb9   :  { %v7223_v13 = vpop.f32.mrf.mxu0  ;;  %v13802_v9 = vpop.f32.mrf.mxu1 }
 0xeba   :  { %v7224_v57 = vadd.f32 %v7223_v13, %v6935_v8 }
 0xebb   :  { %v7225_v47 = vpop.f32.mrf.mxu0  ;;  %v7064_v5 = vpop.f32.mrf.mxu1 }
 0xebc   :  { %v7428_v29 = vmax.f32 %v7224_v57, 0.0  ;;  %v6956_v57 = vadd.f32 %v13720_v38, %v13699_v28 }
 0xebd   :  { %v7228_v21 = vpop.f32.mrf.mxu0  ;;  %v13806_v63 = vpop.f32.mrf.mxu1 }
 0xebe   :  { %v7483_v42 = vpack.c.bf16 %v7428_v29, %v7427_v44  ;;  %v7229_v4 = vadd.f32 %v7228_v21, %v6940_v20 }
 0xebf   :  { %v7230_v50 = vpop.f32.mrf.mxu0  ;;  %v7069_v58 = vpop.f32.mrf.mxu1 }
 0xec0   :  { %10550 = vmatprep.mubr.msk.bf16.mxu1 %vm173_vm0, %v7483_v42  ;;  %v7429_v59 = vmax.f32 %v7229_v4, 0.0  ;;  %v6959_v42 = vadd.f32 %v13720_v38, %v13701_v15 }
 0xec1   :  { %v7231_v25 = vpop.f32.mrf.mxu0  ;;  %v13811_v45 = vpop.f32.mrf.mxu1 }
 0xec2   :  { %v7232_v39 = vadd.f32 %v7231_v25, %v6943_v26 }
 0xec3   :  { %v7233_v31 = vpop.f32.mrf.mxu0  ;;  %v7072_v23 = vpop.f32.mrf.mxu1 }
 0xec4   :  { %v7430_v51 = vmax.f32 %v7232_v39, 0.0  ;;  %v6964_v39 = vadd.f32 %v13720_v38, %v13703_v46 }
 0xec5   :  { %v7236_v3 = vpop.f32.mrf.mxu0  ;;  %v13815_v2 = vpop.f32.mrf.mxu1 }
 0xec6   :  { %v7484_v24 = vpack.c.bf16 %v7430_v51, %v7429_v59  ;;  %v7237_v37 = vadd.f32 %v7236_v3, %v6948_v43 }
 0xec7   :  { %v7238_v18 = vpop.f32.mrf.mxu0  ;;  %v7077_v35 = vpop.f32.mrf.mxu1 }
 0xec8   :  { %10551 = vmatmul.mubr.msk.bf16.gmra.mxu1 %vm173_vm0, %v7484_v24  ;;  %v7431_v47 = vmax.f32 %v7237_v37, 0.0  ;;  %v6967_v24 = vadd.f32 %v13720_v38, %v13705_v62 }
 0xec9   :  { %v7239_v53 = vpop.f32.mrf.mxu0  ;;  %v13820_v8 = vpop.f32.mrf.mxu1 }
 0xeca   :  { %v7240_v61 = vadd.f32 %v7239_v53, %v6951_v49 }
 0xecb   :  { %v7241_v13 = vpop.f32.mrf.mxu0  ;;  %v7080_v27 = vpop.f32.mrf.mxu1 }
 0xecc   :  { %v7432_v5 = vmax.f32 %v7240_v61, 0.0  ;;  %v6972_v61 = vadd.f32 %v13720_v38, %v13707_v11 }
 0xecd   :  { %v7244_v20 = vpop.f32.mrf.mxu0  ;;  %v13824_v44 = vpop.f32.mrf.mxu1 }
 0xece   :  { %v7485_v29 = vpack.c.bf16 %v7432_v5, %v7431_v47  ;;  %v7245_v50 = vadd.f32 %v7244_v20, %v6956_v57 }
 0xecf   :  { %v7246_v21 = vpop.f32.mrf.mxu0  ;;  %v7085_v41 = vpop.f32.mrf.mxu1 }
 0xed0   :  { %10554 = vmatprep.mubr.msk.bf16.mxu1 %vm173_vm0, %v7485_v29  ;;  %v7433_v31 = vmax.f32 %v7245_v50, 0.0  ;;  %v6975_v29 = vadd.f32 %v13720_v38, %v13709_v54 }
 0xed1   :  { %v7247_v58 = vpop.f32.mrf.mxu0  ;;  %v13829_v26 = vpop.f32.mrf.mxu1 }
 0xed2   :  { %v7248_v4 = vadd.f32 %v7247_v58, %v6959_v42 }
 0xed3   :  { %v7249_v25 = vpop.f32.mrf.mxu0  ;;  %v7088_v28 = vpop.f32.mrf.mxu1 }
 0xed4   :  { %v7434_v23 = vmax.f32 %v7248_v4, 0.0  ;;  %v6980_v4 = vadd.f32 %v13720_v38, %v13711_v30 }
 0xed5   :  { %v7252_v43 = vpop.f32.mrf.mxu0  ;;  %v13833_v59 = vpop.f32.mrf.mxu1 }
 0xed6   :  { %v7486_v51 = vpack.c.bf16 %v7434_v23, %v7433_v31  ;;  %v7253_v18 = vadd.f32 %v7252_v43, %v6964_v39 }
 0xed7   :  { %v7254_v3 = vpop.f32.mrf.mxu0  ;;  %v7093_v15 = vpop.f32.mrf.mxu1 }
 0xed8   :  { %10555 = vmatmul.mubr.msk.bf16.gmra.mxu1 %vm173_vm0, %v7486_v51  ;;  %v7435_v13 = vmax.f32 %v7253_v18, 0.0  ;;  %v6983_v51 = vadd.f32 %v13720_v38, %v13713_v52 }
 0xed9   :  { %v7255_v35 = vpop.f32.mrf.mxu0  ;;  %v13838_v49 = vpop.f32.mrf.mxu1 }
 0xeda   :  { %v7256_v37 = vadd.f32 %v7255_v35, %v6967_v24 }
 0xedb   :  { %v7257_v53 = vpop.f32.mrf.mxu0  ;;  %v7096_v46 = vpop.f32.mrf.mxu1 }
 0xedc   :  { %v7436_v27 = vmax.f32 %v7256_v37, 0.0  ;;  %v6988_v37 = vadd.f32 %v13720_v38, %v13715_v32 }
 0xedd   :  { %v7260_v57 = vpop.f32.mrf.mxu0  ;;  %v13842_v47 = vpop.f32.mrf.mxu1 }
 0xede   :  { %v7487_v5 = vpack.c.bf16 %v7436_v27, %v7435_v13  ;;  %v7261_v21 = vadd.f32 %v7260_v57, %v6972_v61 }
 0xedf   :  { %v7262_v20 = vpop.f32.mrf.mxu0  ;;  %v7101_v62 = vpop.f32.mrf.mxu1 }
 0xee0   :  { %10558 = vmatprep.mubr.msk.bf16.mxu1 %vm173_vm0, %v7487_v5  ;;  %v7437_v25 = vmax.f32 %v7261_v21, 0.0  ;;  %v6991_v5 = vadd.f32 %v13720_v38, %v13722_v56  ;;  %v6999_v56 = vadd.f32 %v13720_v38, %v13730_v34 }
 0xee1   :  { %v7263_v41 = vpop.f32.mrf.mxu0  ;;  %v13847_v42 = vpop.f32.mrf.mxu1 }
 0xee2   :  { %v7264_v50 = vadd.f32 %v7263_v41, %v6975_v29 }
 0xee3   :  { %v7265_v58 = vpop.f32.mrf.mxu0  ;;  %v7104_v11 = vpop.f32.mrf.mxu1 }
 0xee4   :  { %v7438_v28 = vmax.f32 %v7264_v50, 0.0  ;;  %v6996_v50 = vadd.f32 %v13720_v38, %v13726_v16 }
 0xee5   :  { %v7268_v39 = vpop.f32.mrf.mxu0  ;;  %v13851_v31 = vpop.f32.mrf.mxu1 }
 0xee6   :  { %v7488_v23 = vpack.c.bf16 %v7438_v28, %v7437_v25  ;;  %v7269_v3 = vadd.f32 %v7268_v39, %v6980_v4 }
 0xee7   :  { %v7270_v43 = vpop.f32.mrf.mxu0  ;;  %v7109_v54 = vpop.f32.mrf.mxu1 }
 0xee8   :  { %10559 = vmatmul.mubr.msk.bf16.gmra.mxu1 %vm173_vm0, %v7488_v23  ;;  %v7439_v53 = vmax.f32 %v7269_v3, 0.0 }
 0xee9   :  { %v7271_v15 = vpop.f32.mrf.mxu0  ;;  %v13856_v24 = vpop.f32.mrf.mxu1 }
 0xeea   :  { %v7272_v18 = vadd.f32 %v7271_v15, %v6983_v51  ;;  %v7004_v51 = vadd.f32 %v13720_v38, %v13734_v40 }
 0xeeb   :  { %v7273_v35 = vpop.f32.mrf.mxu0  ;;  %v7112_v30 = vpop.f32.mrf.mxu1 }
 0xeec   :  { %v7440_v46 = vmax.f32 %v7272_v18, 0.0  ;;  %v7007_v30 = vadd.f32 %v13720_v38, %v13739_v33 }
 0xeed   :  { %v7276_v61 = vpop.f32.mrf.mxu0  ;;  %v13860_v13 = vpop.f32.mrf.mxu1 }
 0xeee   :  { %v7489_v27 = vpack.c.bf16 %v7440_v46, %v7439_v53  ;;  %v7277_v20 = vadd.f32 %v7276_v61, %v6988_v37  ;;  %v7012_v61 = vadd.f32 %v13720_v38, %v13743_v10 }
 0xeef   :  { %v7278_v57 = vpop.f32.mrf.mxu0  ;;  %v7117_v52 = vpop.f32.mrf.mxu1 }
 0xef0   :  { %10562 = vmatprep.mubr.msk.bf16.mxu1 %vm173_vm0, %v7489_v27  ;;  %v7441_v58 = vmax.f32 %v7277_v20, 0.0  ;;  %v7015_v20 = vadd.f32 %v13720_v38, %v13748_v55 }
 0xef1   :  { %v7279_v62 = vpop.f32.mrf.mxu0  ;;  %v13865_v29 = vpop.f32.mrf.mxu1 }
 0xef2   :  { %v7280_v21 = vadd.f32 %v7279_v62, %v6991_v5 }
 0xef3   :  { %v7281_v41 = vpop.f32.mrf.mxu0  ;;  %v7120_v32 = vpop.f32.mrf.mxu1 }
 0xef4   :  { %v7442_v11 = vmax.f32 %v7280_v21, 0.0  ;;  %v7020_v32 = vadd.f32 %v13720_v38, %v13752_v0 }
 0xef5   :  { %v7284_v4 = vpop.f32.mrf.mxu0 }
 0xef6   :  { %v7490_v25 = vpack.c.bf16 %v7442_v11, %v7441_v58  ;;  %v7285_v39 = vadd.f32 %v7284_v4, %v6996_v50 }
 0xef7   :  { %v7286_v28 = vpop.f32.mrf.mxu0 }
 0xef8   :  { %10563 = vmatmul.mubr.msk.bf16.gmra.mxu1 %vm173_vm0, %v7490_v25  ;;  %v7443_v3 = vmax.f32 %v7285_v39, 0.0  ;;  %v7023_v25 = vadd.f32 %v13720_v38, %v13757_v60 }
 0xef9   :  { %v7287_v23 = vpop.f32.mrf.mxu0 }
 0xefa   :  { %v7288_v43 = vadd.f32 %v7287_v23, %v6999_v56  ;;  %v7028_v23 = vadd.f32 %v13720_v38, %v13761_v48 }
 0xefb   :  { %v7289_v54 = vpop.f32.mrf.mxu0 }
 0xefc   :  { %v7444_v15 = vmax.f32 %v7288_v43, 0.0 }
 0xefd   :  { %v7292_v16 = vpop.f32.mrf.mxu0 }
 0xefe   :  { %v7491_v18 = vpack.c.bf16 %v7444_v15, %v7443_v3  ;;  %v7293_v37 = vadd.f32 %v7292_v16, %v7004_v51  ;;  %v7031_v15 = vadd.f32 %v13720_v38, %v13766_v22 }
 0xeff   :  { %v7294_v35 = vpop.f32.mrf.mxu0 }
 0xf00   :  { %10566 = vmatprep.mubr.msk.bf16.mxu1 %vm173_vm0, %v7491_v18  ;;  %v7445_v27 = vmax.f32 %v7293_v37, 0.0 }
 0xf01   :  { %v7295_v34 = vpop.f32.mrf.mxu0 }
 0xf02   :  { %v7296_v53 = vadd.f32 %v7295_v34, %v7007_v30  ;;  %v7036_v30 = vadd.f32 %v13720_v38, %v13770_v7 }
 0xf03   :  { %v7297_v46 = vpop.f32.mrf.mxu0 }
 0xf04   :  { %v7446_v57 = vmax.f32 %v7296_v53, 0.0 }
 0xf05   :  { %v7300_v40 = vpop.f32.mrf.mxu0 }
 0xf06   :  { %v7492_v52 = vpack.c.bf16 %v7446_v57, %v7445_v27  ;;  %v7301_v62 = vadd.f32 %v7300_v40, %v7012_v61  ;;  %v7039_v61 = vadd.f32 %v13720_v38, %v13775_v1 }
 0xf07   :  { %v7302_v5 = vpop.f32.mrf.mxu0 }
 0xf08   :  { %10567 = vmatmul.mubr.msk.bf16.gmra.mxu1 %vm173_vm0, %v7492_v52  ;;  %v7447_v50 = vmax.f32 %v7301_v62, 0.0  ;;  %v7044_v52 = vadd.f32 %v13720_v38, %v13779_v19 }
 0xf09   :  { %v7303_v33 = vpop.f32.mrf.mxu0 }
 0xf0a   :  { %v7304_v21 = vadd.f32 %v7303_v33, %v7015_v20 }
 0xf0b   :  { %v7305_v41 = vpop.f32.mrf.mxu0 }
 0xf0c   :  { %v7448_v58 = vmax.f32 %v7304_v21, 0.0  ;;  %v7047_v21 = vadd.f32 %v13720_v38, %v13784_v12 }
 0xf0d   :  { %v7308_v10 = vpop.f32.mrf.mxu0 }
 0xf0e   :  { %v7493_v11 = vpack.c.bf16 %v7448_v58, %v7447_v50  ;;  %v7309_v28 = vadd.f32 %v7308_v10, %v7020_v32  ;;  %v7052_v58 = vadd.f32 %v13720_v38, %v13788_v17 }
 0xf0f   :  { %v7310_v4 = vpop.f32.mrf.mxu0 }
 0xf10   :  { %10570 = vmatprep.mubr.msk.bf16.mxu1 %vm173_vm0, %v7493_v11  ;;  %v7449_v43 = vmax.f32 %v7309_v28, 0.0  ;;  %v7055_v28 = vadd.f32 %v13720_v38, %v13793_v14 }
 0xf11   :  { %v7311_v55 = vpop.f32.mrf.mxu0 }
 0xf12   :  { %v7312_v56 = vadd.f32 %v7311_v55, %v7023_v25 }
 0xf13   :  { %v7313_v39 = vpop.f32.mrf.mxu0 }
 0xf14   :  { %v7450_v54 = vmax.f32 %v7312_v56, 0.0 }
 0xf15   :  { %v7316_v0 = vpop.f32.mrf.mxu0 }
 0xf16   :  { %v7494_v51 = vpack.c.bf16 %v7450_v54, %v7449_v43  ;;  %v7317_v16 = vadd.f32 %v7316_v0, %v7028_v23  ;;  %v7060_v23 = vadd.f32 %v13720_v38, %v13797_v36 }
 0xf17   :  { %v7318_v3 = vpop.f32.mrf.mxu0 }
 0xf18   :  { %10571 = vmatmul.mubr.msk.bf16.gmra.mxu1 %vm173_vm0, %v7494_v51  ;;  %v7451_v37 = vmax.f32 %v7317_v16, 0.0  ;;  %v7063_v3 = vadd.f32 %v13720_v38, %v13802_v9 }
 0xf19   :  { %v7319_v60 = vpop.f32.mrf.mxu0 }
 0xf1a   :  { %v7320_v18 = vadd.f32 %v7319_v60, %v7031_v15 }
 0xf1b   :  { %v7321_v35 = vpop.f32.mrf.mxu0 }
 0xf1c   :  { %v7452_v34 = vmax.f32 %v7320_v18, 0.0  ;;  %v7068_v18 = vadd.f32 %v13720_v38, %v13806_v63 }
 0xf1d   :  { %v7324_v48 = vpop.f32.mrf.mxu0 }
 0xf1e   :  { %v7495_v53 = vpack.c.bf16 %v7452_v34, %v7451_v37  ;;  %v7325_v27 = vadd.f32 %v7324_v48, %v7036_v30  ;;  %v7071_v48 = vadd.f32 %v13720_v38, %v13811_v45 }
 0xf1f   :  { %v7326_v46 = vpop.f32.mrf.mxu0 }
 0xf20   :  { %10574 = vmatprep.mubr.msk.bf16.mxu1 %vm173_vm0, %v7495_v53  ;;  %v7453_v5 = vmax.f32 %v7325_v27, 0.0  ;;  %v7076_v27 = vadd.f32 %v13720_v38, %v13815_v2 }
 0xf21   :  { %v7327_v22 = vpop.f32.mrf.mxu0 }
 0xf22   :  { %v7328_v57 = vadd.f32 %v7327_v22, %v7039_v61 }
 0xf23   :  { %v7329_v40 = vpop.f32.mrf.mxu0 }
 0xf24   :  { %v7454_v20 = vmax.f32 %v7328_v57, 0.0 }
 0xf25   :  { %v7332_v7 = vpop.f32.mrf.mxu0 }
 0xf26   :  { %v7496_v62 = vpack.c.bf16 %v7454_v20, %v7453_v5  ;;  %v7333_v41 = vadd.f32 %v7332_v7, %v7044_v52  ;;  %v7079_v5 = vadd.f32 %v13720_v38, %v13820_v8 }
 0xf27   :  { %v7334_v33 = vpop.f32.mrf.mxu0 }
 0xf28   :  { %10575 = vmatmul.mubr.msk.bf16.gmra.mxu1 %vm173_vm0, %v7496_v62  ;;  %v7455_v10 = vmax.f32 %v7333_v41, 0.0  ;;  %v7084_v33 = vadd.f32 %v13720_v38, %v13824_v44  ;;  %v7092_v44 = vadd.f32 %v13720_v38, %v13833_v59  ;;  %v7100_v59 = vadd.f32 %v13720_v38, %v13842_v47 }
 0xf29   :  { %v7335_v1 = vpop.f32.mrf.mxu0  ;;  %v7108_v47 = vadd.f32 %v13720_v38, %v13851_v31  ;;  %v7116_v31 = vadd.f32 %v13720_v38, %v13860_v13 }
 0xf2a   :  { %v7336_v32 = vadd.f32 %v7335_v1, %v7047_v21 }
 0xf2b   :  { %v7337_v50 = vpop.f32.mrf.mxu0 }
 0xf2c   :  { %v7456_v11 = vmax.f32 %v7336_v32, 0.0 }
 0xf2d   :  { %v7340_v19 = vpop.f32.mrf.mxu0 }
 0xf2e   :  { %v7497_v4 = vpack.c.bf16 %v7456_v11, %v7455_v10  ;;  %v7341_v55 = vadd.f32 %v7340_v19, %v7052_v58  ;;  %v7087_v58 = vadd.f32 %v13720_v38, %v13829_v26  ;;  %v7095_v26 = vadd.f32 %v13720_v38, %v13838_v49 }
 0xf2f   :  { %v7342_v25 = vpop.f32.mrf.mxu0  ;;  %v7103_v49 = vadd.f32 %v13720_v38, %v13847_v42  ;;  %v7111_v42 = vadd.f32 %v13720_v38, %v13856_v24  ;;  %v7119_v24 = vadd.f32 %v13720_v38, %v13865_v29 }
 0xf30   :  { %10578 = vmatprep.mubr.msk.bf16.mxu1 %vm173_vm0, %v7497_v4  ;;  %v7457_v43 = vmax.f32 %v7341_v55, 0.0 }
 0xf31   :  { %v7343_v12 = vpop.f32.mrf.mxu0 }
 0xf32   :  { %v7344_v56 = vadd.f32 %v7343_v12, %v7055_v28 }
 0xf33   :  { %v7345_v39 = vpop.f32.mrf.mxu0 }
 0xf34   :  { %v7458_v54 = vmax.f32 %v7344_v56, 0.0 }
 0xf35   :  { %v7348_v17 = vpop.f32.mrf.mxu0 }
 0xf36   :  { %v7498_v0 = vpack.c.bf16 %v7458_v54, %v7457_v43  ;;  %v7349_v15 = vadd.f32 %v7348_v17, %v7060_v23 }
 0xf37   :  { %v7350_v51 = vpop.f32.mrf.mxu0 }
 0xf38   :  { %10579 = vmatmul.mubr.msk.bf16.gmra.mxu1 %vm173_vm0, %v7498_v0  ;;  %v7459_v35 = vmax.f32 %v7349_v15, 0.0 }
 0xf39   :  { %v7351_v14 = vpop.f32.mrf.mxu0 }
 0xf3a   :  { %v7352_v16 = vadd.f32 %v7351_v14, %v7063_v3 }
 0xf3b   :  { %v7353_v60 = vpop.f32.mrf.mxu0 }
 0xf3c   :  { %v7460_v30 = vmax.f32 %v7352_v16, 0.0 }
 0xf3d   :  { %v7356_v36 = vpop.f32.mrf.mxu0 }
 0xf3e   :  { %v7499_v37 = vpack.c.bf16 %v7460_v30, %v7459_v35  ;;  %v7357_v53 = vadd.f32 %v7356_v36, %v7068_v18 }
 0xf3f   :  { %v7358_v34 = vpop.f32.mrf.mxu0 }
 0xf40   :  { %10582 = vmatprep.mubr.msk.bf16.mxu1 %vm173_vm0, %v7499_v37  ;;  %v7461_v22 = vmax.f32 %v7357_v53, 0.0 }
 0xf41   :  { %v7359_v9 = vpop.f32.mrf.mxu0 }
 0xf42   :  { %v7360_v46 = vadd.f32 %v7359_v9, %v7071_v48 }
 0xf43   :  { %v7361_v61 = vpop.f32.mrf.mxu0 }
 0xf44   :  { %v7462_v57 = vmax.f32 %v7360_v46, 0.0 }
 0xf45   :  { %v7364_v63 = vpop.f32.mrf.mxu0 }
 0xf46   :  { %v7500_v40 = vpack.c.bf16 %v7462_v57, %v7461_v22  ;;  %v7365_v20 = vadd.f32 %v7364_v63, %v7076_v27 }
 0xf47   :  { %v7366_v52 = vpop.f32.mrf.mxu0 }
 0xf48   :  { %10583 = vmatmul.mubr.msk.bf16.gmra.mxu1 %vm173_vm0, %v7500_v40  ;;  %v7463_v21 = vmax.f32 %v7365_v20, 0.0  ;;  %v13924_v1 = vpop.f32.mrf.mxu1 }
 0xf49   :  { %v7367_v45 = vpop.f32.mrf.mxu0 }
 0xf4a   :  { %v7368_v7 = vadd.f32 %v7367_v45, %v7079_v5  ;;  %v13929_v11 = vpop.f32.mrf.mxu1 }
 0xf4b   :  { %v7369_v62 = vpop.f32.mrf.mxu0 }
 0xf4c   :  { %v7464_v41 = vmax.f32 %v7368_v7, 0.0  ;;  %v13933_v12 = vpop.f32.mrf.mxu1 }
 0xf4d   :  { %v7372_v2 = vpop.f32.mrf.mxu0 }
 0xf4e   :  { %v7501_v32 = vpack.c.bf16 %v7464_v41, %v7463_v21  ;;  %v7373_v8 = vadd.f32 %v7372_v2, %v7084_v33  ;;  %v13938_v54 = vpop.f32.mrf.mxu1 }
 0xf4f   :  { %v7374_v50 = vpop.f32.mrf.mxu0 }
 0xf50   :  { %10586 = vmatprep.mubr.msk.bf16.mxu1 %vm173_vm0, %v7501_v32  ;;  %v7465_v25 = vmax.f32 %v7373_v8, 0.0 }
 0xf51   :  { %v7375_v10 = vpop.f32.mrf.mxu0 }
 0xf52   :  { %v7376_v19 = vadd.f32 %v7375_v10, %v7087_v58 }
 0xf53   :  { %v7377_v4 = vpop.f32.mrf.mxu0 }
 0xf54   :  { %v7466_v28 = vmax.f32 %v7376_v19, 0.0  ;;  %v11397_v4 = vld [vmem:[#allocation2 + $0xc] ss:$16 sps:$4 sm:$0xff]  }
 0xf55   :  { %v7380_v55 = vpop.f32.mrf.mxu0 }
 0xf56   :  { %v7502_v56 = vpack.c.bf16 %v7466_v28, %v7465_v25  ;;  %v7381_v23 = vadd.f32 %v7380_v55, %v7092_v44 }
 0xf57   :  { %v7382_v39 = vpop.f32.mrf.mxu0 }
 0xf58   :  { %10587 = vmatmul.mubr.msk.bf16.gmra.mxu1 %vm173_vm0, %v7502_v56  ;;  %v7467_v51 = vmax.f32 %v7381_v23, 0.0  ;;  %v13942_v3 = vpop.f32.mrf.mxu1 }
 0xf59   :  { %v7383_v43 = vpop.f32.mrf.mxu0 }
 0xf5a   :  { %v7384_v17 = vadd.f32 %v7383_v43, %v7095_v26  ;;  %v13946_v18 = vpop.f32.mrf.mxu1 }
 0xf5b   :  { %v7385_v0 = vpop.f32.mrf.mxu0 }
 0xf5c   :  { %v7468_v15 = vmax.f32 %v7384_v17, 0.0  ;;  %v10541_v34 = vpop.f32.mrf.mxu1  ;;  %v7910_v17 = vpack.c.bf16 %v13933_v12, %v13924_v1 }
 0xf5d   :  { %v7388_v14 = vpop.f32.mrf.mxu0  ;;  %v7912_v39 = vpack.c.bf16 %v10541_v34, %v13942_v3 }
 0xf5e   :  { %v7503_v16 = vpack.c.bf16 %v7468_v15, %v7467_v51  ;;  %v7389_v35 = vadd.f32 %v7388_v14, %v7100_v59  ;;  %v7673_v27 = vpop.f32.mrf.mxu1  ;;  %v7909_v59 = vpack.c.bf16 %v13938_v54, %v13929_v11 }
 0xf5f   :  { %v7390_v60 = vpop.f32.mrf.mxu0  ;;  %v7911_v23 = vpack.c.bf16 %v7673_v27, %v13946_v18 }
 0xf60   :  { %10590 = vmatprep.mubr.msk.bf16.mxu1 %vm173_vm0, %v7503_v16  ;;  %v7469_v48 = vmax.f32 %v7389_v35, 0.0 }
 0xf61   :  { %v7391_v30 = vpop.f32.mrf.mxu0 }
 0xf62   :  { %v7392_v36 = vadd.f32 %v7391_v30, %v7103_v49 }
 0xf63   :  { %v7393_v37 = vpop.f32.mrf.mxu0 }
 0xf64   :  { %v7470_v53 = vmax.f32 %v7392_v36, 0.0 }
 0xf65   :  { %v7396_v9 = vpop.f32.mrf.mxu0 }
 0xf66   :  { %v7504_v46 = vpack.c.bf16 %v7470_v53, %v7469_v48  ;;  %v7397_v22 = vadd.f32 %v7396_v9, %v7108_v47 }
 0xf67   :  { %v7398_v61 = vpop.f32.mrf.mxu0 }
 0xf68   :  { %10591 = vmatmul.mubr.msk.bf16.gmra.mxu1 %vm173_vm0, %v7504_v46  ;;  %v10544_v63 = vpop.f32.mrf.mxu1  ;;  %v7471_v5 = vmax.f32 %v7397_v22, 0.0 }
 0xf69   :  { %v7399_v57 = vpop.f32.mrf.mxu0 }
 0xf6a   :  { %v7400_v40 = vadd.f32 %v7399_v57, %v7111_v42  ;;  %v7686_v62 = vpop.f32.mrf.mxu1  ;;  %v11398_v57 = vld [vmem:[#allocation2] ss:$16 sps:$4 sm:$0xff]  }
 0xf6b   :  { %v7401_v52 = vpop.f32.mrf.mxu0 }
 0xf6c   :  { %v7472_v20 = vmax.f32 %v7400_v40, 0.0  ;;  %v10545_v2 = vpop.f32.mrf.mxu1 }
 0xf6d   :  { %v7404_v45 = vpop.f32.mrf.mxu0  ;;  %v7914_v55 = vpack.c.bf16 %v10545_v2, %v10544_v63  ;;  %v11399_v63 = vld [vmem:[#allocation2 + $0x24] ss:$16 sps:$4 sm:$0xff]  }
 0xf6e   :  { %v7505_v7 = vpack.c.bf16 %v7472_v20, %v7471_v5  ;;  %v7405_v21 = vadd.f32 %v7404_v45, %v7116_v31  ;;  %v7689_v10 = vpop.f32.mrf.mxu1  ;;  %v11400_v31 = vld [vmem:[#allocation2 + $0x20] ss:$16 sps:$4 sm:$0xff]   ;;  %v11401_v5 = vld [vmem:[#allocation2 + $0x44] ss:$16 sps:$4 sm:$0xff]  }
 0xf6f   :  { %v7406_v33 = vpop.f32.mrf.mxu0  ;;  %v7913_v56 = vpack.c.bf16 %v7689_v10, %v7686_v62  ;;  %v11402_v62 = vld [vmem:[#allocation2 + $0x40] ss:$16 sps:$4 sm:$0xff]   ;;  %v11405_v2 = vld [vmem:[#allocation2 + $0x84] ss:$16 sps:$4 sm:$0xff]  }
 0xf70   :  { %10594 = vmatprep.mubr.msk.bf16.mxu1 %vm173_vm0, %v7505_v7  ;;  %v7473_v58 = vmax.f32 %v7405_v21, 0.0  ;;  %v11403_v33 = vld [vmem:[#allocation2 + $0x64] ss:$16 sps:$4 sm:$0xff]  }
 0xf71   :  { %v7407_v41 = vpop.f32.mrf.mxu0 }
 0xf72   :  { %v7408_v32 = vadd.f32 %v7407_v41, %v7119_v24  ;;  %v11404_v41 = vld [vmem:[#allocation2 + $0x60] ss:$16 sps:$4 sm:$0xff]  }
 0xf73   :  { %v7409_v50 = vpop.f32.mrf.mxu0 }
 0xf74   :  { %v7474_v8 = vmax.f32 %v7408_v32, 0.0 }
 0xf76   :  { %v7506_v13 = vpack.c.bf16 %v7474_v8, %v7473_v58 }
 0xf78   :  { %v10548_v19 = vpop.f32.mrf.mxu1  ;;  %10595 = vmatmul.mubr.msk.bf16.gmra.mxu1 %vm173_vm0, %v7506_v13  ;;  %v11406_v13 = vld [vmem:[#allocation2 + $0x80] ss:$16 sps:$4 sm:$0xff]  }
 0xf79   :  { %8270 = vmatprep.mubr.bf16.mxu1 %v11397_v4 }
 0xf7a   :  { %v7702_v44 = vpop.f32.mrf.mxu1 }
 0xf7c   :  { %v10549_v25 = vpop.f32.mrf.mxu1 }
 0xf7d   :  { %v7916_v28 = vpack.c.bf16 %v10549_v25, %v10548_v19  ;;  %v11407_v19 = vld [vmem:[#allocation2 + $0xa4] ss:$16 sps:$4 sm:$0xff]   ;;  %v11408_v25 = vld [vmem:[#allocation2 + $0xa0] ss:$16 sps:$4 sm:$0xff]  }
 0xf7e   :  { %v7705_v38 = vpop.f32.mrf.mxu1 }
 0xf7f   :  { %7950 = vmatpush1.bf16.msra.mxu0 %v7916_v28  ;;  %v7915_v29 = vpack.c.bf16 %v7705_v38, %v7702_v44  ;;  %v11409_v28 = vld [vmem:[#allocation2 + $0xc4] ss:$16 sps:$4 sm:$0xff]  }
 0xf80   :  { %7951 = vmatprep.subr.bf16.mxu0 %v11571_v6 }
 0xf83   :  { %7952 = vmatpush1.bf16.msra.mxu0 %v7915_v29 }
 0xf84   :  { %7953 = vmatprep.subr.bf16.mxu0 %v11571_v6 }
 0xf87   :  { %7954 = vmatpush1.bf16.msra.mxu0 %v7914_v55 }
 0xf88   :  { %7955 = vmatprep.subr.bf16.mxu0 %v11571_v6  ;;  %v10552_v26 = vpop.f32.mrf.mxu1 }
 0xf8a   :  { %v7718_v43 = vpop.f32.mrf.mxu1 }
 0xf8b   :  { %7956 = vmatpush1.bf16.msra.mxu0 %v7913_v56  ;;  %v11410_v56 = vld [vmem:[#allocation2 + $0xc0] ss:$16 sps:$4 sm:$0xff]  }
 0xf8c   :  { %7957 = vmatprep.subr.bf16.mxu0 %v11571_v6  ;;  %v10553_v0 = vpop.f32.mrf.mxu1 }
 0xf8d   :  { %v7918_v46 = vpack.c.bf16 %v10553_v0, %v10552_v26  ;;  %v11412_v0 = vld [vmem:[#allocation2 + $0xe0] ss:$16 sps:$4 sm:$0xff]  }
 0xf8e   :  { %v7721_v51 = vpop.f32.mrf.mxu1 }
 0xf8f   :  { %7958 = vmatpush1.bf16.msra.mxu0 %v7912_v39  ;;  %v7917_v42 = vpack.c.bf16 %v7721_v51, %v7718_v43  ;;  %v11411_v39 = vld [vmem:[#allocation2 + $0xe4] ss:$16 sps:$4 sm:$0xff]  }
 0xf90   :  { %7959 = vmatprep.subr.bf16.mxu0 %v11571_v6 }
 0xf93   :  { %7960 = vmatpush1.bf16.msra.mxu0 %v7911_v23 }
 0xf94   :  { %7961 = vmatprep.subr.bf16.mxu0 %v11571_v6 }
 0xf97   :  { %7962 = vmatpush1.bf16.msra.mxu0 %v7910_v17 }
 0xf98   :  { %7963 = vmatprep.subr.bf16.mxu0 %v11571_v6  ;;  %v10556_v3 = vpop.f32.mrf.mxu1 }
 0xf9a   :  { %v7734_v15 = vpop.f32.mrf.mxu1 }
 0xf9b   :  { %7964 = vmatpush1.bf16.msra.mxu0 %v7909_v59  ;;  %v11413_v59 = vld [vmem:[#allocation2 + $0x104] ss:$16 sps:$4 sm:$0xff]  }
 0xf9c   :  { %7965 = vmatprep.subr.bf16.mxu0 %v11571_v6  ;;  %v10557_v14 = vpop.f32.mrf.mxu1 }
 0xf9d   :  { %v7920_v34 = vpack.c.bf16 %v10557_v14, %v10556_v3  ;;  %v11414_v14 = vld [vmem:[#allocation2 + $0x100] ss:$16 sps:$4 sm:$0xff]  }
 0xf9e   :  { %v7737_v16 = vpop.f32.mrf.mxu1 }
 0xf9f   :  { %v7919_v53 = vpack.c.bf16 %v7737_v16, %v7734_v15  ;;  %v11415_v16 = vld [vmem:[#allocation2 + $0x124] ss:$16 sps:$4 sm:$0xff]  }
 0xfa8   :  { %v10560_v60 = vpop.f32.mrf.mxu1 }
 0xfaa   :  { %v7750_v49 = vpop.f32.mrf.mxu1 }
 0xfac   :  { %v10561_v18 = vpop.f32.mrf.mxu1 }
 0xfad   :  { %v7922_v54 = vpack.c.bf16 %v10561_v18, %v10560_v60  ;;  %v11416_v18 = vld [vmem:[#allocation2 + $0x120] ss:$16 sps:$4 sm:$0xff]  }
 0xfae   :  { %v7753_v35 = vpop.f32.mrf.mxu1 }
 0xfaf   :  { %v7921_v47 = vpack.c.bf16 %v7753_v35, %v7750_v49  ;;  %v11417_v35 = vld [vmem:[#allocation2 + $0x144] ss:$16 sps:$4 sm:$0xff]  }
 0xfb8   :  { %v10564_v1 = vpop.f32.mrf.mxu1 }
 0xfba   :  { %v7766_v12 = vpop.f32.mrf.mxu1 }
 0xfbc   :  { %v10565_v30 = vpop.f32.mrf.mxu1 }
 0xfbd   :  { %v7924_v36 = vpack.c.bf16 %v10565_v30, %v10564_v1 }
 0xfbe   :  { %v7769_v37 = vpop.f32.mrf.mxu1 }
 0xfbf   :  { %7966 = vmatpush2.bf16.msra.mxu0 %v7924_v36  ;;  %v7923_v11 = vpack.c.bf16 %v7769_v37, %v7766_v12  ;;  %v11418_v36 = vld [vmem:[#allocation2 + $0x140] ss:$16 sps:$4 sm:$0xff]   ;;  %v11419_v37 = vld [vmem:[#allocation2 + $0x164] ss:$16 sps:$4 sm:$0xff]  }
 0xfc0   :  { %7967 = vmatprep.subr.bf16.mxu0 %v11571_v6 }
 0xfc3   :  { %7968 = vmatpush2.bf16.msra.mxu0 %v7923_v11 }
 0xfc4   :  { %7969 = vmatprep.subr.bf16.mxu0 %v11571_v6 }
 0xfc7   :  { %7970 = vmatpush2.bf16.msra.mxu0 %v7922_v54 }
 0xfc8   :  { %7971 = vmatprep.subr.bf16.mxu0 %v11571_v6  ;;  %v13978_v48 = vpop.f32.mrf.mxu1 }
 0xfca   :  { %v13981_v9 = vpop.f32.mrf.mxu1 }
 0xfcb   :  { %7972 = vmatpush2.bf16.msra.mxu0 %v7921_v47  ;;  %v11420_v47 = vld [vmem:[#allocation2 + $0x160] ss:$16 sps:$4 sm:$0xff]  }
 0xfcc   :  { %7973 = vmatprep.subr.bf16.mxu0 %v11571_v6  ;;  %v13984_v61 = vpop.f32.mrf.mxu1 }
 0xfcd   :  { %v7926_v43 = vpack.c.bf16 %v13984_v61, %v13978_v48 }
 0xfce   :  { %v13987_v27 = vpop.f32.mrf.mxu1 }
 0xfcf   :  { %7974 = vmatpush2.bf16.msra.mxu0 %v7920_v34  ;;  %v7925_v51 = vpack.c.bf16 %v13987_v27, %v13981_v9  ;;  %v11421_v34 = vld [vmem:[#allocation2 + $0x184] ss:$16 sps:$4 sm:$0xff]  }
 0xfd0   :  { %7975 = vmatprep.subr.bf16.mxu0 %v11571_v6  ;;  %v11423_v27 = vld [vmem:[#allocation2 + $0x1a4] ss:$16 sps:$4 sm:$0xff]  }
 0xfd3   :  { %7976 = vmatpush2.bf16.msra.mxu0 %v7919_v53 }
 0xfd4   :  { %7977 = vmatprep.subr.bf16.mxu0 %v11571_v6 }
 0xfd7   :  { %7978 = vmatpush2.bf16.msra.mxu0 %v7918_v46 }
 0xfd8   :  { %7979 = vmatprep.subr.bf16.mxu0 %v11571_v6  ;;  %v10572_v22 = vpop.f32.mrf.mxu1 }
 0xfda   :  { %v7798_v40 = vpop.f32.mrf.mxu1 }
 0xfdb   :  { %7980 = vmatpush2.bf16.msra.mxu0 %v7917_v42  ;;  %v11422_v42 = vld [vmem:[#allocation2 + $0x180] ss:$16 sps:$4 sm:$0xff]  }
 0xfdc   :  { %v10573_v52 = vpop.f32.mrf.mxu1 }
 0xfdd   :  { %v7928_v29 = vpack.c.bf16 %v10573_v52, %v10572_v22 }
 0xfde   :  { %7982 = vmatmul.mubr.bf16.vlgmr.msra.gmra.mxu0 %v11398_v57  ;;  %v7801_v20 = vpop.f32.mrf.mxu1 }
 0xfdf   :  { %7989 = vmatprep.mubr.bf16.mxu0 %v11399_v63  ;;  %v7927_v26 = vpack.c.bf16 %v7801_v20, %v7798_v40  ;;  %v11424_v63 = vld [vmem:[#allocation2 + $0x1a0] ss:$16 sps:$4 sm:$0xff]   ;;  %v11425_v40 = vld [vmem:[#allocation2 + $0x1c4] ss:$16 sps:$4 sm:$0xff]  }
 0xfe0   :  { %v11427_v20 = vld [vmem:[#allocation2 + $0x1e4] ss:$16 sps:$4 sm:$0xff]  }
 0xfe6   :  { %7990 = vmatmul.mubr.bf16.gmra.mxu0 %v11400_v31 }
 0xfe7   :  { %7997 = vmatprep.mubr.bf16.mxu0 %v11401_v5  ;;  %v11426_v5 = vld [vmem:[#allocation2 + $0x1c0] ss:$16 sps:$4 sm:$0xff]  }
 0xfe8   :  { %v10576_v45 = vpop.f32.mrf.mxu1 }
 0xfea   :  { %v7814_v7 = vpop.f32.mrf.mxu1 }
 0xfec   :  { %v10577_v24 = vpop.f32.mrf.mxu1 }
 0xfed   :  { %v7930_v44 = vpack.c.bf16 %v10577_v24, %v10576_v45 }
 0xfee   :  { %7998 = vmatmul.mubr.bf16.gmra.mxu0 %v11402_v62  ;;  %v7817_v21 = vpop.f32.mrf.mxu1  ;;  %v11428_v62 = vld [vmem:[#allocation2 + $0x1e0] ss:$16 sps:$4 sm:$0xff]  }
 0xfef   :  { %8005 = vmatprep.mubr.bf16.mxu0 %v11403_v33  ;;  %v7929_v38 = vpack.c.bf16 %v7817_v21, %v7814_v7  ;;  %v11429_v33 = vld [vmem:[#allocation2 + $0x204] ss:$16 sps:$4 sm:$0xff]   ;;  %v11430_v21 = vld [vmem:[#allocation2 + $0x8] ss:$16 sps:$4 sm:$0xff]  }
 0xff6   :  { %8006 = vmatmul.mubr.bf16.gmra.mxu0 %v11404_v41  ;;  %v11431_v41 = vld [vmem:[#allocation2 + $0x200] ss:$16 sps:$4 sm:$0xff]  }
 0xff7   :  { %8013 = vmatprep.mubr.bf16.mxu0 %v11405_v2  ;;  %v11432_v2 = vld [vmem:[#allocation2 + $0x2c] ss:$16 sps:$4 sm:$0xff]  }
 0xff8   :  { %v10580_v32 = vpop.f32.mrf.mxu1 }
 0xffa   :  { %v7830_v50 = vpop.f32.mrf.mxu1 }
 0xffc   :  { %v10581_v58 = vpop.f32.mrf.mxu1 }
 0xffd   :  { %v7932_v8 = vpack.c.bf16 %v10581_v58, %v10580_v32  ;;  %v11433_v32 = vld [vmem:[#allocation2 + $0x224] ss:$16 sps:$4 sm:$0xff]   ;;  %v11435_v58 = vld [vmem:[#allocation2 + $0x220] ss:$16 sps:$4 sm:$0xff]  }
 0xffe   :  { %v7833_v10 = vpop.f32.mrf.mxu1  ;;  %8014 = vmatmul.mubr.bf16.gmra.mxu0 %v11406_v13  ;;  %v11439_v13 = vld [vmem:[#allocation2 + $0x240] ss:$16 sps:$4 sm:$0xff]  }
 0xfff   :  { %8239 = vmatpush1.bf16.msra.mxu1 %v7932_v8  ;;  %8021 = vmatprep.mubr.bf16.mxu0 %v11407_v19  ;;  %v7931_v4 = vpack.c.bf16 %v7833_v10, %v7830_v50  ;;  %v11434_v50 = vld [vmem:[#allocation2 + $0x28] ss:$16 sps:$4 sm:$0xff]   ;;  %v11436_v8 = vld [vmem:[#allocation2 + $0x4c] ss:$16 sps:$4 sm:$0xff]   ;;  %v11437_v10 = vld [vmem:[#allocation2 + $0x244] ss:$16 sps:$4 sm:$0xff]  }
0x1000   :  { %8240 = vmatprep.subr.bf16.mxu1 %v11571_v6  ;;  %v11440_v19 = vld [vmem:[#allocation2 + $0x6c] ss:$16 sps:$4 sm:$0xff]  }
0x1003   :  { %8241 = vmatpush1.bf16.msra.mxu1 %v7931_v4  ;;  %v11441_v4 = vld [vmem:[#allocation2 + $0x264] ss:$16 sps:$4 sm:$0xff]  }
0x1004   :  { %8242 = vmatprep.subr.bf16.mxu1 %v11571_v6 }
0x1006   :  { %8022 = vmatmul.mubr.bf16.gmra.mxu0 %v11408_v25  ;;  %v11443_v25 = vld [vmem:[#allocation2 + $0x260] ss:$16 sps:$4 sm:$0xff]  }
0x1007   :  { %8243 = vmatpush1.bf16.msra.mxu1 %v7930_v44  ;;  %8029 = vmatprep.mubr.bf16.mxu0 %v11409_v28  ;;  %v11442_v44 = vld [vmem:[#allocation2 + $0x68] ss:$16 sps:$4 sm:$0xff]   ;;  %v11444_v28 = vld [vmem:[#allocation2 + $0x8c] ss:$16 sps:$4 sm:$0xff]  }
0x1008   :  { %8244 = vmatprep.subr.bf16.mxu1 %v11571_v6  ;;  %v13993_v55 = vpop.f32.mrf.mxu1 }
0x100a   :  { %v13996_v23 = vpop.f32.mrf.mxu1 }
0x100b   :  { %8245 = vmatpush1.bf16.msra.mxu1 %v7929_v38  ;;  %v11445_v38 = vld [vmem:[#allocation2 + $0x284] ss:$16 sps:$4 sm:$0xff]  }
0x100c   :  { %8246 = vmatprep.subr.bf16.mxu1 %v11571_v6  ;;  %v14001_v17 = vpop.f32.mrf.mxu1 }
0x100d   :  { %v7934_v7 = vpack.c.bf16 %v14001_v17, %v13993_v55  ;;  %v11447_v55 = vld [vmem:[#allocation2 + $0x280] ss:$16 sps:$4 sm:$0xff]   ;;  %v11453_v17 = vld [vmem:[#allocation2 + $0x2c4] ss:$16 sps:$4 sm:$0xff]  }
0x100e   :  { %8030 = vmatmul.mubr.bf16.gmra.mxu0 %v11410_v56  ;;  %v14006_v3 = vpop.f32.mrf.mxu1  ;;  %v11448_v56 = vld [vmem:[#allocation2 + $0xac] ss:$16 sps:$4 sm:$0xff]  }
0x100f   :  { %8247 = vmatpush1.bf16.msra.mxu1 %v7928_v29  ;;  %8037 = vmatprep.mubr.bf16.mxu0 %v11411_v39  ;;  %v7933_v24 = vpack.c.bf16 %v14006_v3, %v13996_v23  ;;  %v11446_v29 = vld [vmem:[#allocation2 + $0x88] ss:$16 sps:$4 sm:$0xff]   ;;  %v11449_v39 = vld [vmem:[#allocation2 + $0x2a4] ss:$16 sps:$4 sm:$0xff]   ;;  %v11451_v23 = vld [vmem:[#allocation2 + $0x2a0] ss:$16 sps:$4 sm:$0xff]  }
0x1010   :  { %8248 = vmatprep.subr.bf16.mxu1 %v11571_v6  ;;  %v11457_v3 = vld [vmem:[#allocation2 + $0x2e4] ss:$16 sps:$4 sm:$0xff]  }
0x1013   :  { %8249 = vmatpush1.bf16.msra.mxu1 %v7927_v26  ;;  %v11450_v26 = vld [vmem:[#allocation2 + $0xa8] ss:$16 sps:$4 sm:$0xff]  }
0x1014   :  { %8250 = vmatprep.subr.bf16.mxu1 %v11571_v6 }
0x1016   :  { %8038 = vmatmul.mubr.bf16.gmra.mxu0 %v11412_v0  ;;  %v11454_v0 = vld [vmem:[#allocation2 + $0xc8] ss:$16 sps:$4 sm:$0xff]  }
0x1017   :  { %8251 = vmatpush1.bf16.msra.mxu1 %v7926_v43  ;;  %8045 = vmatprep.mubr.bf16.mxu0 %v11413_v59  ;;  %v11452_v43 = vld [vmem:[#allocation2 + $0xcc] ss:$16 sps:$4 sm:$0xff]   ;;  %v11455_v59 = vld [vmem:[#allocation2 + $0x2c0] ss:$16 sps:$4 sm:$0xff]  }
0x1018   :  { %8252 = vmatprep.subr.bf16.mxu1 %v11571_v6  ;;  %v10588_v15 = vpop.f32.mrf.mxu1 }
0x101a   :  { %v7862_v60 = vpop.f32.mrf.mxu1 }
0x101b   :  { %8253 = vmatpush1.bf16.msra.mxu1 %v7925_v51  ;;  %v11456_v51 = vld [vmem:[#allocation2 + $0xec] ss:$16 sps:$4 sm:$0xff]  }
0x101c   :  { %8254 = vmatprep.subr.bf16.mxu1 %v11571_v6  ;;  %v10589_v49 = vpop.f32.mrf.mxu1 }
0x101d   :  { %v7936_v31 = vpack.c.bf16 %v10589_v49, %v10588_v15  ;;  %v11458_v15 = vld [vmem:[#allocation2 + $0xe8] ss:$16 sps:$4 sm:$0xff]  }
0x101e   :  { %8046 = vmatmul.mubr.bf16.gmra.mxu0 %v11414_v14  ;;  %v7865_v1 = vpop.f32.mrf.mxu1  ;;  %v11459_v14 = vld [vmem:[#allocation2 + $0x2e0] ss:$16 sps:$4 sm:$0xff]   ;;  %v11462_v49 = vld [vmem:[#allocation2 + $0x108] ss:$16 sps:$4 sm:$0xff]  }
0x101f   :  { %8053 = vmatprep.mubr.bf16.mxu0 %v11415_v16  ;;  %v7935_v45 = vpack.c.bf16 %v7865_v1, %v7862_v60  ;;  %v11460_v16 = vld [vmem:[#allocation2 + $0x10c] ss:$16 sps:$4 sm:$0xff]   ;;  %v11461_v60 = vld [vmem:[#allocation2 + $0x304] ss:$16 sps:$4 sm:$0xff]  }
0x1020   :  { %v11464_v1 = vld [vmem:[#allocation2 + $0x12c] ss:$16 sps:$4 sm:$0xff]  }
0x1026   :  { %8054 = vmatmul.mubr.bf16.gmra.mxu0 %v11416_v18 }
0x1027   :  { %8061 = vmatprep.mubr.bf16.mxu0 %v11417_v35  ;;  %v11463_v35 = vld [vmem:[#allocation2 + $0x300] ss:$16 sps:$4 sm:$0xff]  }
0x1028   :  { %v10592_v12 = vpop.f32.mrf.mxu1 }
0x102a   :  { %v7878_v30 = vpop.f32.mrf.mxu1 }
0x102c   :  { %v10593_v11 = vpop.f32.mrf.mxu1 }
0x102d   :  { %v7938_v57 = vpack.c.bf16 %v10593_v11, %v10592_v12  ;;  %v11465_v12 = vld [vmem:[#allocation2 + $0x324] ss:$16 sps:$4 sm:$0xff]   ;;  %v11466_v11 = vld [vmem:[#allocation2 + $0x128] ss:$16 sps:$4 sm:$0xff]  }
0x102e   :  { %8062 = vmatmul.mubr.bf16.gmra.mxu0 %v11418_v36  ;;  %v7881_v54 = vpop.f32.mrf.mxu1 }
0x102f   :  { %8069 = vmatprep.mubr.bf16.mxu0 %v11419_v37  ;;  %v7937_v52 = vpack.c.bf16 %v7881_v54, %v7878_v30 }
0x1036   :  { %8070 = vmatmul.mubr.bf16.gmra.mxu0 %v11420_v47  ;;  %v11467_v47 = vld [vmem:[#allocation2 + $0x320] ss:$16 sps:$4 sm:$0xff]  }
0x1037   :  { %8077 = vmatprep.mubr.bf16.mxu0 %v11421_v34  ;;  %v11468_v34 = vld [vmem:[#allocation2 + $0x14c] ss:$16 sps:$4 sm:$0xff]  }
0x1038   :  { %v10596_v48 = vpop.f32.mrf.mxu1 }
0x103a   :  { %v7894_v53 = vpop.f32.mrf.mxu1 }
0x103c   :  { %v10597_v9 = vpop.f32.mrf.mxu1 }
0x103d   :  { %v7940_v46 = vpack.c.bf16 %v10597_v9, %v10596_v48  ;;  %v11469_v48 = vld [vmem:[#allocation2 + $0x344] ss:$16 sps:$4 sm:$0xff]  }
0x103e   :  { %v7897_v61 = vpop.f32.mrf.mxu1  ;;  %8078 = vmatmul.mubr.bf16.gmra.mxu0 %v11422_v42 }
0x103f   :  { %8255 = vmatpush2.bf16.msra.mxu1 %v7940_v46  ;;  %8085 = vmatprep.mubr.bf16.mxu0 %v11423_v27  ;;  %v7939_v22 = vpack.c.bf16 %v7897_v61, %v7894_v53  ;;  %v11470_v61 = vld [vmem:[#allocation2 + $0x148] ss:$16 sps:$4 sm:$0xff]   ;;  %v11471_v27 = vld [vmem:[#allocation2 + $0x340] ss:$16 sps:$4 sm:$0xff]  }
0x1040   :  { %8256 = vmatprep.subr.bf16.mxu1 %v11571_v6 }
0x1043   :  { %8257 = vmatpush2.bf16.msra.mxu1 %v7939_v22  ;;  %v11472_v22 = vld [vmem:[#allocation2 + $0x16c] ss:$16 sps:$4 sm:$0xff]  }
0x1044   :  { %8258 = vmatprep.subr.bf16.mxu1 %v11571_v6 }
0x1046   :  { %8086 = vmatmul.mubr.bf16.gmra.mxu0 %v11424_v63 }
0x1047   :  { %8259 = vmatpush2.bf16.msra.mxu1 %v7938_v57  ;;  %8093 = vmatprep.mubr.bf16.mxu0 %v11425_v40  ;;  %v11473_v57 = vld [vmem:[#allocation2 + $0x364] ss:$16 sps:$4 sm:$0xff]  }
0x1048   :  { %8260 = vmatprep.subr.bf16.mxu1 %v11571_v6 }
0x104b   :  { %8261 = vmatpush2.bf16.msra.mxu1 %v7937_v52 }
0x104c   :  { %8262 = vmatprep.subr.bf16.mxu1 %v11571_v6 }
0x104e   :  { %8094 = vmatmul.mubr.bf16.gmra.mxu0 %v11426_v5 }
0x104f   :  { %8263 = vmatpush2.bf16.msra.mxu1 %v7936_v31  ;;  %8101 = vmatprep.mubr.bf16.mxu0 %v11427_v20  ;;  %v11474_v31 = vld [vmem:[#allocation2 + $0x168] ss:$16 sps:$4 sm:$0xff]   ;;  %v11475_v20 = vld [vmem:[#allocation2 + $0x360] ss:$16 sps:$4 sm:$0xff]  }
0x1050   :  { %8264 = vmatprep.subr.bf16.mxu1 %v11571_v6 }
0x1053   :  { %8265 = vmatpush2.bf16.msra.mxu1 %v7935_v45  ;;  %v11476_v45 = vld [vmem:[#allocation2 + $0x18c] ss:$16 sps:$4 sm:$0xff]  }
0x1054   :  { %8266 = vmatprep.subr.bf16.mxu1 %v11571_v6 }
0x1056   :  { %8102 = vmatmul.mubr.bf16.gmra.mxu0 %v11428_v62 }
0x1057   :  { %8267 = vmatpush2.bf16.msra.mxu1 %v7934_v7  ;;  %8109 = vmatprep.mubr.bf16.mxu0 %v11429_v33  ;;  %v11477_v7 = vld [vmem:[#allocation2 + $0x384] ss:$16 sps:$4 sm:$0xff]  }
0x1058   :  { %8268 = vmatprep.subr.bf16.mxu1 %v11571_v6  ;;  %v11438_v6 = vld [vmem:[#allocation2 + $0x48] ss:$16 sps:$4 sm:$0xff]  }
0x105b   :  { %8269 = vmatpush2.bf16.msra.mxu1 %v7933_v24 }
0x105e   :  { %8271 = vmatmul.mubr.bf16.vlgmr.msra.gmra.mxu1 %v11430_v21  ;;  %8110 = vmatmul.mubr.bf16.gmra.mxu0 %v11431_v41  ;;  %v11478_v21 = vld [vmem:[#allocation2 + $0x188] ss:$16 sps:$4 sm:$0xff]  }
0x105f   :  { %8278 = vmatprep.mubr.bf16.mxu1 %v11432_v2  ;;  %8117 = vmatprep.mubr.bf16.mxu0 %v11433_v32  ;;  %v11479_v2 = vld [vmem:[#allocation2 + $0x380] ss:$16 sps:$4 sm:$0xff]   ;;  %v11480_v32 = vld [vmem:[#allocation2 + $0x1ac] ss:$16 sps:$4 sm:$0xff]  }
0x1066   :  { %8279 = vmatmul.mubr.bf16.gmra.mxu1 %v11434_v50  ;;  %8118 = vmatmul.mubr.bf16.gmra.mxu0 %v11435_v58  ;;  %v11481_v50 = vld [vmem:[#allocation2 + $0x3a4] ss:$16 sps:$4 sm:$0xff]  }
0x1067   :  { %8286 = vmatprep.mubr.bf16.mxu1 %v11436_v8  ;;  %8125 = vmatprep.mubr.bf16.mxu0 %v11437_v10 }
0x106e   :  { %8287 = vmatmul.mubr.bf16.gmra.mxu1 %v11438_v6  ;;  %8126 = vmatmul.mubr.bf16.gmra.mxu0 %v11439_v13  ;;  %v11482_v6 = vld [vmem:[#allocation2 + $0x1a8] ss:$16 sps:$4 sm:$0xff]  }
0x106f   :  { %8294 = vmatprep.mubr.bf16.mxu1 %v11440_v19  ;;  %8133 = vmatprep.mubr.bf16.mxu0 %v11441_v4  ;;  %v11483_v19 = vld [vmem:[#allocation2 + $0x3a0] ss:$16 sps:$4 sm:$0xff]   ;;  %v11484_v4 = vld [vmem:[#allocation2 + $0x1cc] ss:$16 sps:$4 sm:$0xff]  }
0x1076   :  { %8295 = vmatmul.mubr.bf16.gmra.mxu1 %v11442_v44  ;;  %8134 = vmatmul.mubr.bf16.gmra.mxu0 %v11443_v25  ;;  %v11485_v44 = vld [vmem:[#allocation2 + $0x3c4] ss:$16 sps:$4 sm:$0xff]  }
0x1077   :  { %8302 = vmatprep.mubr.bf16.mxu1 %v11444_v28  ;;  %8141 = vmatprep.mubr.bf16.mxu0 %v11445_v38 }
0x107e   :  { %8303 = vmatmul.mubr.bf16.gmra.mxu1 %v11446_v29  ;;  %8142 = vmatmul.mubr.bf16.gmra.mxu0 %v11447_v55  ;;  %v11486_v29 = vld [vmem:[#allocation2 + $0x1c8] ss:$16 sps:$4 sm:$0xff]  }
0x107f   :  { %8310 = vmatprep.mubr.bf16.mxu1 %v11448_v56  ;;  %8149 = vmatprep.mubr.bf16.mxu0 %v11449_v39  ;;  %v11487_v56 = vld [vmem:[#allocation2 + $0x3c0] ss:$16 sps:$4 sm:$0xff]   ;;  %v11488_v39 = vld [vmem:[#allocation2 + $0x1ec] ss:$16 sps:$4 sm:$0xff]  }
0x1086   :  { %8311 = vmatmul.mubr.bf16.gmra.mxu1 %v11450_v26  ;;  %8150 = vmatmul.mubr.bf16.gmra.mxu0 %v11451_v23  ;;  %v11489_v26 = vld [vmem:[#allocation2 + $0x3e4] ss:$16 sps:$4 sm:$0xff]  }
0x1087   :  { %8318 = vmatprep.mubr.bf16.mxu1 %v11452_v43  ;;  %8157 = vmatprep.mubr.bf16.mxu0 %v11453_v17 }
0x108e   :  { %8319 = vmatmul.mubr.bf16.gmra.mxu1 %v11454_v0  ;;  %8158 = vmatmul.mubr.bf16.gmra.mxu0 %v11455_v59  ;;  %v11490_v0 = vld [vmem:[#allocation2 + $0x1e8] ss:$16 sps:$4 sm:$0xff]  }
0x108f   :  { %8326 = vmatprep.mubr.bf16.mxu1 %v11456_v51  ;;  %8165 = vmatprep.mubr.bf16.mxu0 %v11457_v3  ;;  %v11491_v51 = vld [vmem:[#allocation2 + $0x3e0] ss:$16 sps:$4 sm:$0xff]   ;;  %v11492_v3 = vld [vmem:[#allocation2 + $0x20c] ss:$16 sps:$4 sm:$0xff]  }
0x1096   :  { %8327 = vmatmul.mubr.bf16.gmra.mxu1 %v11458_v15  ;;  %8166 = vmatmul.mubr.bf16.gmra.mxu0 %v11459_v14 }
0x1097   :  { %8334 = vmatprep.mubr.bf16.mxu1 %v11460_v16  ;;  %8173 = vmatprep.mubr.bf16.mxu0 %v11461_v60  ;;  %v11493_v60 = vld [vmem:[#allocation2 + $0x208] ss:$16 sps:$4 sm:$0xff]  }
0x109e   :  { %8335 = vmatmul.mubr.bf16.gmra.mxu1 %v11462_v49  ;;  %v14020_v18 = vpop.f32.mrf.mxu0  ;;  %8174 = vmatmul.mubr.bf16.gmra.mxu0 %v11463_v35  ;;  %v11494_v35 = vld [vmem:[#allocation2 + $0x22c] ss:$16 sps:$4 sm:$0xff]  }
0x109f   :  { %8342 = vmatprep.mubr.bf16.mxu1 %v11464_v1  ;;  %8181 = vmatprep.mubr.bf16.mxu0 %v11465_v12 }
0x10a0   :  { %v7985_v30 = vpop.f32.mrf.mxu0 }
0x10a2   :  { %v14022_v36 = vpop.f32.mrf.mxu0 }
0x10a4   :  { %v7988_v37 = vpop.f32.mrf.mxu0 }
0x10a5   :  { %v11495_v37 = vld [vmem:[#allocation2 + $0x228] ss:$16 sps:$4 sm:$0xff]  }
0x10a6   :  { %8343 = vmatmul.mubr.bf16.gmra.mxu1 %v11466_v11  ;;  %v14024_v54 = vpop.f32.mrf.mxu0  ;;  %8182 = vmatmul.mubr.bf16.gmra.mxu0 %v11467_v47  ;;  %v11496_v47 = vld [vmem:[#allocation2 + $0x24c] ss:$16 sps:$4 sm:$0xff]  }
0x10a7   :  { %8350 = vmatprep.mubr.bf16.mxu1 %v11468_v34  ;;  %8189 = vmatprep.mubr.bf16.mxu0 %v11469_v48 }
0x10a8   :  { %v7993_v53 = vpop.f32.mrf.mxu0 }
0x10aa   :  { %v14026_v9 = vpop.f32.mrf.mxu0 }
0x10ac   :  { %v7996_v46 = vpop.f32.mrf.mxu0 }
0x10ad   :  { %v11497_v46 = vld [vmem:[#allocation2 + $0x248] ss:$16 sps:$4 sm:$0xff]  }
0x10ae   :  { %8351 = vmatmul.mubr.bf16.gmra.mxu1 %v11470_v61  ;;  %v14028_v42 = vpop.f32.mrf.mxu0  ;;  %8190 = vmatmul.mubr.bf16.gmra.mxu0 %v11471_v27  ;;  %v11498_v27 = vld [vmem:[#allocation2 + $0x26c] ss:$16 sps:$4 sm:$0xff]  }
0x10af   :  { %8358 = vmatprep.mubr.bf16.mxu1 %v11472_v22  ;;  %8197 = vmatprep.mubr.bf16.mxu0 %v11473_v57 }
0x10b0   :  { %v8001_v63 = vpop.f32.mrf.mxu0 }
0x10b2   :  { %v14030_v40 = vpop.f32.mrf.mxu0 }
0x10b4   :  { %v8004_v52 = vpop.f32.mrf.mxu0 }
0x10b5   :  { %v11499_v52 = vld [vmem:[#allocation2 + $0x268] ss:$16 sps:$4 sm:$0xff]  }
0x10b6   :  { %8359 = vmatmul.mubr.bf16.gmra.mxu1 %v11474_v31  ;;  %v14032_v5 = vpop.f32.mrf.mxu0  ;;  %8198 = vmatmul.mubr.bf16.gmra.mxu0 %v11475_v20  ;;  %v11500_v20 = vld [vmem:[#allocation2 + $0x28c] ss:$16 sps:$4 sm:$0xff]  }
0x10b7   :  { %8366 = vmatprep.mubr.bf16.mxu1 %v11476_v45  ;;  %8205 = vmatprep.mubr.bf16.mxu0 %v11477_v7 }
0x10b8   :  { %v8009_v62 = vpop.f32.mrf.mxu0 }
0x10ba   :  { %v14034_v33 = vpop.f32.mrf.mxu0 }
0x10bc   :  { %v8012_v24 = vpop.f32.mrf.mxu0 }
0x10bd   :  { %v11501_v24 = vld [vmem:[#allocation2 + $0x288] ss:$16 sps:$4 sm:$0xff]  }
0x10be   :  { %8367 = vmatmul.mubr.bf16.gmra.mxu1 %v11478_v21  ;;  %v14036_v41 = vpop.f32.mrf.mxu0  ;;  %8206 = vmatmul.mubr.bf16.gmra.mxu0 %v11479_v2  ;;  %v11502_v2 = vld [vmem:[#allocation2 + $0x2ac] ss:$16 sps:$4 sm:$0xff]  }
0x10bf   :  { %8374 = vmatprep.mubr.bf16.mxu1 %v11480_v32  ;;  %8213 = vmatprep.mubr.bf16.mxu0 %v11481_v50 }
0x10c0   :  { %v8017_v58 = vpop.f32.mrf.mxu0 }
0x10c2   :  { %v14038_v8 = vpop.f32.mrf.mxu0 }
0x10c4   :  { %v8020_v10 = vpop.f32.mrf.mxu0 }
0x10c5   :  { %v11503_v10 = vld [vmem:[#allocation2 + $0x2a8] ss:$16 sps:$4 sm:$0xff]  }
0x10c6   :  { %8375 = vmatmul.mubr.bf16.gmra.mxu1 %v11482_v6  ;;  %v14040_v13 = vpop.f32.mrf.mxu0  ;;  %8214 = vmatmul.mubr.bf16.gmra.mxu0 %v11483_v19  ;;  %v11504_v19 = vld [vmem:[#allocation2 + $0x2cc] ss:$16 sps:$4 sm:$0xff]  }
0x10c7   :  { %8382 = vmatprep.mubr.bf16.mxu1 %v11484_v4  ;;  %8221 = vmatprep.mubr.bf16.mxu0 %v11485_v44 }
0x10c8   :  { %v8025_v25 = vpop.f32.mrf.mxu0 }
0x10ca   :  { %v14042_v28 = vpop.f32.mrf.mxu0 }
0x10cc   :  { %v8028_v38 = vpop.f32.mrf.mxu0 }
0x10cd   :  { %v11505_v38 = vld [vmem:[#allocation2 + $0x2c8] ss:$16 sps:$4 sm:$0xff]  }
0x10ce   :  { %8383 = vmatmul.mubr.bf16.gmra.mxu1 %v11486_v29  ;;  %v14044_v55 = vpop.f32.mrf.mxu0  ;;  %8222 = vmatmul.mubr.bf16.gmra.mxu0 %v11487_v56  ;;  %v11506_v56 = vld [vmem:[#allocation2 + $0x2ec] ss:$16 sps:$4 sm:$0xff]  }
0x10cf   :  { %8390 = vmatprep.mubr.bf16.mxu1 %v11488_v39  ;;  %8229 = vmatprep.mubr.bf16.mxu0 %v11489_v26 }
0x10d0   :  { %v8033_v23 = vpop.f32.mrf.mxu0 }
0x10d2   :  { %v14046_v43 = vpop.f32.mrf.mxu0 }
0x10d4   :  { %v8036_v17 = vpop.f32.mrf.mxu0 }
0x10d5   :  { %v11507_v17 = vld [vmem:[#allocation2 + $0x2e8] ss:$16 sps:$4 sm:$0xff]  }
0x10d6   :  { %8391 = vmatmul.mubr.bf16.gmra.mxu1 %v11490_v0  ;;  %v14048_v59 = vpop.f32.mrf.mxu0  ;;  %8230 = vmatmul.mubr.bf16.gmra.mxu0 %v11491_v51  ;;  %v11508_v51 = vld [vmem:[#allocation2 + $0x30c] ss:$16 sps:$4 sm:$0xff]  }
0x10d7   :  { %8398 = vmatprep.mubr.bf16.mxu1 %v11492_v3  ;;  %v14085_v3 = vld [vmem:[%s14449_s6 + $0x5] ss:$0 sm:$0xff] }
0x10d8   :  { %v8041_v15 = vpop.f32.mrf.mxu0 }
0x10da   :  { %v14050_v14 = vpop.f32.mrf.mxu0 }
0x10dc   :  { %v8044_v16 = vpop.f32.mrf.mxu0 }
0x10de   :  { %8399 = vmatmul.mubr.bf16.gmra.mxu1 %v11493_v60  ;;  %v14052_v49 = vpop.f32.mrf.mxu0  ;;  %v7984_v60 = vadd.f32 %v14085_v3, %v14020_v18  ;;  %v7992_v18 = vadd.f32 %v14085_v3, %v14024_v54  ;;  %v7995_v54 = vadd.f32 %v14085_v3, %v14026_v9  ;;  %v11514_v9 = vld [vmem:[#allocation2 + $0x36c] ss:$16 sps:$4 sm:$0xff]  }
0x10df   :  { %8406 = vmatprep.mubr.bf16.mxu1 %v11494_v35 }
0x10e0   :  { %v8049_v1 = vpop.f32.mrf.mxu0 }
0x10e2   :  { %v14054_v12 = vpop.f32.mrf.mxu0 }
0x10e4   :  { %v8052_v30 = vpop.f32.mrf.mxu0 }
0x10e5   :  { %v11509_v30 = vld [vmem:[#allocation2 + $0x308] ss:$16 sps:$4 sm:$0xff]  }
0x10e6   :  { %8407 = vmatmul.mubr.bf16.gmra.mxu1 %v11495_v37  ;;  %v14056_v11 = vpop.f32.mrf.mxu0 }
0x10e7   :  { %8414 = vmatprep.mubr.bf16.mxu1 %v11496_v47 }
0x10e8   :  { %v8057_v34 = vpop.f32.mrf.mxu0 }
0x10e9   :  { %v11510_v34 = vld [vmem:[#allocation2 + $0x32c] ss:$16 sps:$4 sm:$0xff]  }
0x10ea   :  { %v14058_v48 = vpop.f32.mrf.mxu0 }
0x10ec   :  { %v8060_v53 = vpop.f32.mrf.mxu0 }
0x10ee   :  { %8415 = vmatmul.mubr.bf16.gmra.mxu1 %v11497_v46  ;;  %v14060_v61 = vpop.f32.mrf.mxu0 }
0x10ef   :  { %8422 = vmatprep.mubr.bf16.mxu1 %v11498_v27  ;;  %v7987_v27 = vadd.f32 %v14085_v3, %v14022_v36  ;;  %v11512_v36 = vld [vmem:[#allocation2 + $0x34c] ss:$16 sps:$4 sm:$0xff]  }
0x10f0   :  { %v8065_v22 = vpop.f32.mrf.mxu0 }
0x10f2   :  { %v14062_v57 = vpop.f32.mrf.mxu0 }
0x10f4   :  { %v8068_v63 = vpop.f32.mrf.mxu0 }
0x10f6   :  { %8423 = vmatmul.mubr.bf16.gmra.mxu1 %v11499_v52  ;;  %v14064_v31 = vpop.f32.mrf.mxu0 }
0x10f7   :  { %8430 = vmatprep.mubr.bf16.mxu1 %v11500_v20 }
0x10f8   :  { %v8073_v45 = vpop.f32.mrf.mxu0 }
0x10fa   :  { %v14066_v7 = vpop.f32.mrf.mxu0 }
0x10fc   :  { %v8076_v62 = vpop.f32.mrf.mxu0 }
0x10fe   :  { %8431 = vmatmul.mubr.bf16.gmra.mxu1 %v11501_v24  ;;  %v14068_v21 = vpop.f32.mrf.mxu0 }
0x10ff   :  { %8438 = vmatprep.mubr.bf16.mxu1 %v11502_v2 }
0x1100   :  { %v8081_v32 = vpop.f32.mrf.mxu0 }
0x1101   :  { %v11511_v32 = vld [vmem:[#allocation2 + $0x328] ss:$16 sps:$4 sm:$0xff]  }
0x1102   :  { %v14070_v50 = vpop.f32.mrf.mxu0 }
0x1104   :  { %v8084_v58 = vpop.f32.mrf.mxu0 }
0x1106   :  { %8439 = vmatmul.mubr.bf16.gmra.mxu1 %v11503_v10  ;;  %v14072_v6 = vpop.f32.mrf.mxu0 }
0x1107   :  { %8446 = vmatprep.mubr.bf16.mxu1 %v11504_v19 }
0x1108   :  { %v8089_v4 = vpop.f32.mrf.mxu0 }
0x110a   :  { %v14074_v44 = vpop.f32.mrf.mxu0 }
0x110c   :  { %v8092_v25 = vpop.f32.mrf.mxu0 }
0x110e   :  { %8447 = vmatmul.mubr.bf16.gmra.mxu1 %v11505_v38  ;;  %v14076_v29 = vpop.f32.mrf.mxu0 }
0x110f   :  { %8454 = vmatprep.mubr.bf16.mxu1 %v11506_v56 }
0x1110   :  { %v8097_v39 = vpop.f32.mrf.mxu0 }
0x1111   :  { %v8000_v39 = vadd.f32 %v14085_v3, %v14028_v42  ;;  %v8003_v42 = vadd.f32 %v14085_v3, %v14030_v40  ;;  %v11516_v40 = vld [vmem:[#allocation2 + $0x38c] ss:$16 sps:$4 sm:$0xff]  }
0x1112   :  { %v14078_v26 = vpop.f32.mrf.mxu0 }
0x1114   :  { %v8100_v23 = vpop.f32.mrf.mxu0 }
0x1116   :  { %8455 = vmatmul.mubr.bf16.gmra.mxu1 %v11507_v17  ;;  %v14080_v0 = vpop.f32.mrf.mxu0 }
0x1117   :  { %8462 = vmatprep.mubr.bf16.mxu1 %v11508_v51 }
0x1118   :  { %v8105_v15 = vpop.f32.mrf.mxu0 }
0x111a   :  { %v14087_v16 = vpop.f32.mrf.mxu0 }
0x111c   :  { %v8108_v35 = vpop.f32.mrf.mxu0 }
0x111e   :  { %v8272_v1 = vpop.f32.mrf.mxu1  ;;  %8463 = vmatmul.mubr.bf16.gmra.mxu1 %v11509_v30  ;;  %v14091_v37 = vpop.f32.mrf.mxu0 }
0x111f   :  { %v8273_v47 = vadd.f32 %v8272_v1, %v7984_v60  ;;  %8470 = vmatprep.mubr.bf16.mxu1 %v11510_v34  ;;  %v11513_v1 = vld [vmem:[#allocation2 + $0x348] ss:$16 sps:$4 sm:$0xff]  }
0x1120   :  { %v8274_v53 = vpop.f32.mrf.mxu1  ;;  %v8113_v46 = vpop.f32.mrf.mxu0 }
0x1121   :  { %v8527_v62 = vmax.f32 %v8273_v47, 0.0 }
0x1122   :  { %v8275_v22 = vpop.f32.mrf.mxu1  ;;  %v14095_v63 = vpop.f32.mrf.mxu0 }
0x1123   :  { %v8276_v52 = vadd.f32 %v8275_v22, %v7987_v27 }
0x1124   :  { %v8277_v20 = vpop.f32.mrf.mxu1  ;;  %v8116_v45 = vpop.f32.mrf.mxu0 }
0x1125   :  { %v8528_v24 = vmax.f32 %v8276_v52, 0.0 }
0x1126   :  { %v8280_v2 = vpop.f32.mrf.mxu1  ;;  %8471 = vmatmul.mubr.bf16.gmra.mxu1 %v11511_v32  ;;  %v14099_v58 = vpop.f32.mrf.mxu0  ;;  %v11515_v32 = vld [vmem:[#allocation2 + $0x368] ss:$16 sps:$4 sm:$0xff]  }
0x1127   :  { %v14101_v10 = vpack.c.bf16 %v8528_v24, %v8527_v62  ;;  %v8281_v19 = vadd.f32 %v8280_v2, %v7992_v18  ;;  %8478 = vmatprep.mubr.bf16.mxu1 %v11512_v36  ;;  %v8008_v18 = vadd.f32 %v14085_v3, %v14032_v5  ;;  %v8011_v5 = vadd.f32 %v14085_v3, %v14034_v33  ;;  %v11518_v33 = vld [vmem:[#allocation2 + $0x3ac] ss:$16 sps:$4 sm:$0xff]  }
0x1128   :  { %v8282_v4 = vpop.f32.mrf.mxu1  ;;  %v8121_v25 = vpop.f32.mrf.mxu0 }
0x1129   :  { %v8529_v15 = vmax.f32 %v8281_v19, 0.0 }
0x112a   :  { %v8283_v38 = vpop.f32.mrf.mxu1  ;;  %v14105_v56 = vpop.f32.mrf.mxu0 }
0x112b   :  { %v8284_v23 = vadd.f32 %v8283_v38, %v7995_v54 }
0x112c   :  { %v8285_v17 = vpop.f32.mrf.mxu1  ;;  %v8124_v51 = vpop.f32.mrf.mxu0 }
0x112d   :  { %v8530_v60 = vmax.f32 %v8284_v23, 0.0  ;;  %v8016_v23 = vadd.f32 %v14085_v3, %v14036_v41  ;;  %v8019_v41 = vadd.f32 %v14085_v3, %v14038_v8  ;;  %v11520_v8 = vld [vmem:[#allocation2 + $0x3cc] ss:$16 sps:$4 sm:$0xff]  }
0x112e   :  { %v8288_v35 = vpop.f32.mrf.mxu1  ;;  %8479 = vmatmul.mubr.bf16.gmra.mxu1 %v11513_v1  ;;  %v14109_v30 = vpop.f32.mrf.mxu0 }
0x112f   :  { %v14111_v47 = vpack.c.bf16 %v8530_v60, %v8529_v15  ;;  %v8289_v34 = vadd.f32 %v8288_v35, %v8000_v39  ;;  %8486 = vmatprep.mubr.bf16.mxu1 %v11514_v9 }
0x1130   :  { %v8290_v53 = vpop.f32.mrf.mxu1  ;;  %v8129_v46 = vpop.f32.mrf.mxu0 }
0x1131   :  { %v8531_v62 = vmax.f32 %v8289_v34, 0.0  ;;  %v11517_v34 = vld [vmem:[#allocation2 + $0x388] ss:$16 sps:$4 sm:$0xff]  }
0x1132   :  { %v8291_v27 = vpop.f32.mrf.mxu1  ;;  %v14115_v22 = vpop.f32.mrf.mxu0 }
0x1133   :  { %v8292_v52 = vadd.f32 %v8291_v27, %v8003_v42 }
0x1134   :  { %v8293_v20 = vpop.f32.mrf.mxu1  ;;  %v8132_v45 = vpop.f32.mrf.mxu0 }
0x1135   :  { %v8532_v24 = vmax.f32 %v8292_v52, 0.0  ;;  %v8024_v20 = vadd.f32 %v14085_v3, %v14040_v13  ;;  %v8027_v13 = vadd.f32 %v14085_v3, %v14042_v28  ;;  %v11522_v28 = vld [vmem:[#allocation2 + $0x3ec] ss:$16 sps:$4 sm:$0xff]  }
0x1136   :  { %v8296_v2 = vpop.f32.mrf.mxu1  ;;  %8487 = vmatmul.mubr.bf16.gmra.mxu1 %v11515_v32  ;;  %v14119_v19 = vpop.f32.mrf.mxu0 }
0x1137   :  { %v14121_v36 = vpack.c.bf16 %v8532_v24, %v8531_v62  ;;  %v8297_v4 = vadd.f32 %v8296_v2, %v8008_v18  ;;  %8494 = vmatprep.mubr.bf16.mxu1 %v11516_v40  ;;  %v11519_v40 = vld [vmem:[#allocation2 + $0x3a8] ss:$16 sps:$4 sm:$0xff]  }
0x1138   :  { %v8298_v25 = vpop.f32.mrf.mxu1  ;;  %v8137_v54 = vpop.f32.mrf.mxu0 }
0x1139   :  { %v8533_v60 = vmax.f32 %v8297_v4, 0.0 }
0x113a   :  { %v8299_v38 = vpop.f32.mrf.mxu1  ;;  %v14125_v39 = vpop.f32.mrf.mxu0 }
0x113b   :  { %v8300_v17 = vadd.f32 %v8299_v38, %v8011_v5 }
0x113c   :  { %v8301_v51 = vpop.f32.mrf.mxu1  ;;  %v8140_v15 = vpop.f32.mrf.mxu0 }
0x113d   :  { %v8534_v35 = vmax.f32 %v8300_v17, 0.0  ;;  %v8032_v15 = vadd.f32 %v14085_v3, %v14044_v55  ;;  %v8035_v55 = vadd.f32 %v14085_v3, %v14046_v43 }
0x113e   :  { %v8304_v1 = vpop.f32.mrf.mxu1  ;;  %8495 = vmatmul.mubr.bf16.gmra.mxu1 %v11517_v34  ;;  %v14129_v9 = vpop.f32.mrf.mxu0 }
0x113f   :  { %v14131_v53 = vpack.c.bf16 %v8534_v35, %v8533_v60  ;;  %v8305_v46 = vadd.f32 %v8304_v1, %v8016_v23  ;;  %8502 = vmatprep.mubr.bf16.mxu1 %v11518_v33 }
0x1140   :  { %v8306_v42 = vpop.f32.mrf.mxu1  ;;  %v8145_v27 = vpop.f32.mrf.mxu0 }
0x1141   :  { %v8535_v2 = vmax.f32 %v8305_v46, 0.0  ;;  %v11521_v42 = vld [vmem:[#allocation2 + $0x3c8] ss:$16 sps:$4 sm:$0xff]  }
0x1142   :  { %v8307_v18 = vpop.f32.mrf.mxu1  ;;  %v14135_v52 = vpop.f32.mrf.mxu0 }
0x1143   :  { %v8308_v45 = vadd.f32 %v8307_v18, %v8019_v41 }
0x1144   :  { %v8309_v62 = vpop.f32.mrf.mxu1  ;;  %v8148_v24 = vpop.f32.mrf.mxu0 }
0x1145   :  { %v8536_v32 = vmax.f32 %v8308_v45, 0.0 }
0x1146   :  { %v8312_v4 = vpop.f32.mrf.mxu1  ;;  %8503 = vmatmul.mubr.bf16.gmra.mxu1 %v11519_v40  ;;  %v14139_v25 = vpop.f32.mrf.mxu0 }
0x1147   :  { %v14141_v54 = vpack.c.bf16 %v8536_v32, %v8535_v2  ;;  %v8313_v5 = vadd.f32 %v8312_v4, %v8024_v20  ;;  %8510 = vmatprep.mubr.bf16.mxu1 %v11520_v8  ;;  %v8040_v2 = vadd.f32 %v14085_v3, %v14048_v59 }
0x1148   :  { %v8314_v38 = vpop.f32.mrf.mxu1  ;;  %v8153_v23 = vpop.f32.mrf.mxu0 }
0x1149   :  { %v8537_v34 = vmax.f32 %v8313_v5, 0.0  ;;  %v11523_v23 = vld [vmem:[#allocation2 + $0x3e8] ss:$16 sps:$4 sm:$0xff]  }
0x114a   :  { %v8315_v17 = vpop.f32.mrf.mxu1  ;;  %v14145_v51 = vpop.f32.mrf.mxu0 }
0x114b   :  { %v8316_v60 = vadd.f32 %v8315_v17, %v8027_v13 }
0x114c   :  { %v8317_v35 = vpop.f32.mrf.mxu1  ;;  %v8156_v1 = vpop.f32.mrf.mxu0 }
0x114d   :  { %v8538_v46 = vmax.f32 %v8316_v60, 0.0  ;;  %v8043_v35 = vadd.f32 %v14085_v3, %v14050_v14  ;;  %v8051_v14 = vadd.f32 %v14085_v3, %v14054_v12  ;;  %v8059_v12 = vadd.f32 %v14085_v3, %v14058_v48 }
0x114e   :  { %v8320_v33 = vpop.f32.mrf.mxu1  ;;  %8511 = vmatmul.mubr.bf16.gmra.mxu1 %v11521_v42  ;;  %v14149_v27 = vpop.f32.mrf.mxu0  ;;  %v8067_v48 = vadd.f32 %v14085_v3, %v14062_v57  ;;  %v8075_v57 = vadd.f32 %v14085_v3, %v14066_v7  ;;  %v8083_v7 = vadd.f32 %v14085_v3, %v14070_v50  ;;  %v8091_v50 = vadd.f32 %v14085_v3, %v14074_v44 }
0x114f   :  { %v14151_v41 = vpack.c.bf16 %v8538_v46, %v8537_v34  ;;  %v8321_v18 = vadd.f32 %v8320_v33, %v8032_v15  ;;  %8518 = vmatprep.mubr.bf16.mxu1 %v11522_v28  ;;  %v8048_v34 = vadd.f32 %v14085_v3, %v14052_v49  ;;  %v8056_v49 = vadd.f32 %v14085_v3, %v14056_v11 }
0x1150   :  { %v8322_v20 = vpop.f32.mrf.mxu1  ;;  %v8161_v45 = vpop.f32.mrf.mxu0  ;;  %v8099_v44 = vadd.f32 %v14085_v3, %v14078_v26  ;;  %v8107_v26 = vadd.f32 %v14085_v3, %v14087_v16 }
0x1151   :  { %v8539_v5 = vmax.f32 %v8321_v18, 0.0 }
0x1152   :  { %v8323_v62 = vpop.f32.mrf.mxu1  ;;  %v14155_v24 = vpop.f32.mrf.mxu0 }
0x1153   :  { %v8324_v32 = vadd.f32 %v8323_v62, %v8035_v55 }
0x1154   :  { %v8325_v4 = vpop.f32.mrf.mxu1  ;;  %v8164_v40 = vpop.f32.mrf.mxu0 }
0x1155   :  { %v8540_v8 = vmax.f32 %v8324_v32, 0.0 }
0x1156   :  { %v8328_v38 = vpop.f32.mrf.mxu1  ;;  %8519 = vmatmul.mubr.bf16.gmra.mxu1 %v11523_v23  ;;  %v14159_v13 = vpop.f32.mrf.mxu0 }
0x1157   :  { %v14161_v17 = vpack.c.bf16 %v8540_v8, %v8539_v5  ;;  %v8329_v15 = vadd.f32 %v8328_v38, %v8040_v2 }
0x1158   :  { %v8330_v43 = vpop.f32.mrf.mxu1  ;;  %v8169_v60 = vpop.f32.mrf.mxu0 }
0x1159   :  { %v8541_v18 = vmax.f32 %v8329_v15, 0.0 }
0x115a   :  { %v8331_v1 = vpop.f32.mrf.mxu1  ;;  %v14165_v59 = vpop.f32.mrf.mxu0 }
0x115b   :  { %v8332_v46 = vadd.f32 %v8331_v1, %v8043_v35 }
0x115c   :  { %v8333_v33 = vpop.f32.mrf.mxu1  ;;  %v8172_v42 = vpop.f32.mrf.mxu0 }
0x115d   :  { %v8542_v28 = vmax.f32 %v8332_v46, 0.0 }
0x115e   :  { %v8336_v20 = vpop.f32.mrf.mxu1  ;;  %v14169_v45 = vpop.f32.mrf.mxu0 }
0x115f   :  { %v14171_v55 = vpack.c.bf16 %v8542_v28, %v8541_v18  ;;  %v8337_v62 = vadd.f32 %v8336_v20, %v8048_v34  ;;  %v8064_v20 = vadd.f32 %v14085_v3, %v14060_v61  ;;  %v8072_v61 = vadd.f32 %v14085_v3, %v14064_v31 }
0x1160   :  { %v8338_v2 = vpop.f32.mrf.mxu1  ;;  %v8177_v32 = vpop.f32.mrf.mxu0  ;;  %v8080_v31 = vadd.f32 %v14085_v3, %v14068_v21  ;;  %v8088_v21 = vadd.f32 %v14085_v3, %v14072_v6  ;;  %v8096_v6 = vadd.f32 %v14085_v3, %v14076_v29  ;;  %v8104_v29 = vadd.f32 %v14085_v3, %v14080_v0 }
0x1161   :  { %v8543_v23 = vmax.f32 %v8337_v62, 0.0 }
0x1162   :  { %v8339_v4 = vpop.f32.mrf.mxu1  ;;  %v14175_v40 = vpop.f32.mrf.mxu0 }
0x1163   :  { %v8340_v5 = vadd.f32 %v8339_v4, %v8051_v14 }
0x1164   :  { %v8341_v8 = vpop.f32.mrf.mxu1  ;;  %v8180_v38 = vpop.f32.mrf.mxu0 }
0x1165   :  { %v8544_v15 = vmax.f32 %v8340_v5, 0.0 }
0x1166   :  { %v8344_v43 = vpop.f32.mrf.mxu1  ;;  %v14179_v60 = vpop.f32.mrf.mxu0 }
0x1167   :  { %v14181_v35 = vpack.c.bf16 %v8544_v15, %v8543_v23  ;;  %v8345_v1 = vadd.f32 %v8344_v43, %v8056_v49 }
0x1168   :  { %v8346_v34 = vpop.f32.mrf.mxu1  ;;  %v8185_v46 = vpop.f32.mrf.mxu0 }
0x1169   :  { %v8545_v62 = vmax.f32 %v8345_v1, 0.0 }
0x116a   :  { %v8347_v33 = vpop.f32.mrf.mxu1  ;;  %v14185_v42 = vpop.f32.mrf.mxu0 }
0x116b   :  { %v8348_v11 = vadd.f32 %v8347_v33, %v8059_v12 }
0x116c   :  { %v8349_v18 = vpop.f32.mrf.mxu1  ;;  %v8188_v28 = vpop.f32.mrf.mxu0 }
0x116d   :  { %v8546_v2 = vmax.f32 %v8348_v11, 0.0 }
0x116e   :  { %v8352_v32 = vpop.f32.mrf.mxu1  ;;  %v14189_v14 = vpop.f32.mrf.mxu0 }
0x116f   :  { %v14191_v4 = vpack.c.bf16 %v8546_v2, %v8545_v62  ;;  %v8353_v8 = vadd.f32 %v8352_v32, %v8064_v20 }
0x1170   :  { %v8354_v49 = vpop.f32.mrf.mxu1  ;;  %v8193_v5 = vpop.f32.mrf.mxu0 }
0x1171   :  { %v8547_v1 = vmax.f32 %v8353_v8, 0.0 }
0x1172   :  { %v8355_v38 = vpop.f32.mrf.mxu1  ;;  %v14195_v23 = vpop.f32.mrf.mxu0 }
0x1173   :  { %v8356_v15 = vadd.f32 %v8355_v38, %v8067_v48 }
0x1174   :  { %v8357_v43 = vpop.f32.mrf.mxu1  ;;  %v8196_v34 = vpop.f32.mrf.mxu0 }
0x1175   :  { %v8548_v46 = vmax.f32 %v8356_v15, 0.0 }
0x1176   :  { %v8360_v12 = vpop.f32.mrf.mxu1  ;;  %v14199_v33 = vpop.f32.mrf.mxu0 }
0x1177   :  { %v14201_v11 = vpack.c.bf16 %v8548_v46, %v8547_v1  ;;  %v8361_v20 = vadd.f32 %v8360_v12, %v8072_v61 }
0x1178   :  { %v8362_v18 = vpop.f32.mrf.mxu1  ;;  %v8201_v28 = vpop.f32.mrf.mxu0 }
0x1179   :  { %v8549_v48 = vmax.f32 %v8361_v20, 0.0 }
0x117a   :  { %v8363_v62 = vpop.f32.mrf.mxu1  ;;  %v14205_v2 = vpop.f32.mrf.mxu0 }
0x117b   :  { %v8364_v32 = vadd.f32 %v8363_v62, %v8075_v57 }
0x117c   :  { %v8365_v49 = vpop.f32.mrf.mxu1  ;;  %v8204_v5 = vpop.f32.mrf.mxu0 }
0x117d   :  { %v8550_v8 = vmax.f32 %v8364_v32, 0.0 }
0x117e   :  { %v8368_v38 = vpop.f32.mrf.mxu1  ;;  %v14209_v15 = vpop.f32.mrf.mxu0 }
0x117f   :  { %v14211_v43 = vpack.c.bf16 %v8550_v8, %v8549_v48  ;;  %v8369_v61 = vadd.f32 %v8368_v38, %v8080_v31 }
0x1180   :  { %v8370_v34 = vpop.f32.mrf.mxu1  ;;  %v8209_v1 = vpop.f32.mrf.mxu0 }
0x1181   :  { %v8551_v20 = vmax.f32 %v8369_v61, 0.0 }
0x1182   :  { %v8371_v46 = vpop.f32.mrf.mxu1  ;;  %v14215_v12 = vpop.f32.mrf.mxu0 }
0x1183   :  { %v8372_v18 = vadd.f32 %v8371_v46, %v8083_v7 }
0x1184   :  { %v8373_v28 = vpop.f32.mrf.mxu1  ;;  %v8212_v57 = vpop.f32.mrf.mxu0 }
0x1185   :  { %v8552_v62 = vmax.f32 %v8372_v18, 0.0 }
0x1186   :  { %v8376_v32 = vpop.f32.mrf.mxu1  ;;  %v14219_v49 = vpop.f32.mrf.mxu0 }
0x1187   :  { %v14221_v5 = vpack.c.bf16 %v8552_v62, %v8551_v20  ;;  %v8377_v31 = vadd.f32 %v8376_v32, %v8088_v21 }
0x1188   :  { %v8378_v48 = vpop.f32.mrf.mxu1  ;;  %v8217_v8 = vpop.f32.mrf.mxu0 }
0x1189   :  { %v8553_v61 = vmax.f32 %v8377_v31, 0.0 }
0x118a   :  { %v8379_v38 = vpop.f32.mrf.mxu1  ;;  %v14225_v34 = vpop.f32.mrf.mxu0 }
0x118b   :  { %v8380_v1 = vadd.f32 %v8379_v38, %v8091_v50 }
0x118c   :  { %v8381_v7 = vpop.f32.mrf.mxu1  ;;  %v8220_v46 = vpop.f32.mrf.mxu0 }
0x118d   :  { %v8554_v18 = vmax.f32 %v8380_v1, 0.0 }
0x118e   :  { %v8384_v28 = vpop.f32.mrf.mxu1  ;;  %v14229_v57 = vpop.f32.mrf.mxu0 }
0x118f   :  { %14455 = vst [vmem:[#allocation8_spill] sm:$0xff] %v14229_v57  ;;  %v8620_v20 = vpack.c.bf16 %v8554_v18, %v8553_v61  ;;  %v8385_v21 = vadd.f32 %v8384_v28, %v8096_v6 }
0x1190   :  { %v8386_v62 = vpop.f32.mrf.mxu1  ;;  %v8225_v48 = vpop.f32.mrf.mxu0 }
0x1191   :  { %v8555_v31 = vmax.f32 %v8385_v21, 0.0 }
0x1192   :  { %v8387_v32 = vpop.f32.mrf.mxu1  ;;  %v14233_v8 = vpop.f32.mrf.mxu0 }
0x1193   :  { %v8388_v50 = vadd.f32 %v8387_v32, %v8099_v44  ;;  %v8112_v44 = vadd.f32 %v14085_v3, %v14091_v37 }
0x1194   :  { %v8389_v38 = vpop.f32.mrf.mxu1  ;;  %v8228_v7 = vpop.f32.mrf.mxu0 }
0x1195   :  { %v8556_v1 = vmax.f32 %v8388_v50, 0.0 }
0x1196   :  { %v8392_v46 = vpop.f32.mrf.mxu1  ;;  %v14237_v57 = vpop.f32.mrf.mxu0 }
0x1197   :  { %14456 = vst [vmem:[#allocation9_spill] sm:$0xff] %v14237_v57  ;;  %v8621_v61 = vpack.c.bf16 %v8556_v1, %v8555_v31  ;;  %v8393_v6 = vadd.f32 %v8392_v46, %v8104_v29  ;;  %v8120_v29 = vadd.f32 %v14085_v3, %v14099_v58  ;;  %v8128_v58 = vadd.f32 %v14085_v3, %v14109_v30 }
0x1198   :  { %v8394_v18 = vpop.f32.mrf.mxu1  ;;  %v8233_v62 = vpop.f32.mrf.mxu0  ;;  %v8136_v30 = vadd.f32 %v14085_v3, %v14119_v19  ;;  %v8139_v19 = vadd.f32 %v14085_v3, %v14125_v39 }
0x1199   :  { %v8557_v50 = vmax.f32 %v8393_v6, 0.0  ;;  %v8115_v18 = vadd.f32 %v14085_v3, %v14095_v63 }
0x119a   :  { %v8395_v28 = vpop.f32.mrf.mxu1  ;;  %v14241_v48 = vpop.f32.mrf.mxu0 }
0x119b   :  { %v8396_v32 = vadd.f32 %v8395_v28, %v8107_v26 }
0x119c   :  { %v8397_v0 = vpop.f32.mrf.mxu1  ;;  %v8236_v21 = vpop.f32.mrf.mxu0 }
0x119d   :  { %v8558_v38 = vmax.f32 %v8396_v32, 0.0 }
0x119e   :  { %v8400_v7 = vpop.f32.mrf.mxu1 }
0x119f   :  { %v8622_v57 = vpack.c.bf16 %v8558_v38, %v8557_v50  ;;  %v8401_v31 = vadd.f32 %v8400_v7, %v8112_v44 }
0x11a0   :  { %v8402_v1 = vpop.f32.mrf.mxu1 }
0x11a1   :  { %9956 = vmatprep.subr.bf16.mxu0 %v8622_v57  ;;  %v8559_v62 = vmax.f32 %v8401_v31, 0.0  ;;  %v8123_v57 = vadd.f32 %v14085_v3, %v14105_v56 }
0x11a2   :  { %v8403_v16 = vpop.f32.mrf.mxu1  ;;  %9957 = vmatpush3.bf16.msra.mxu0 %v14171_v55 }
0x11a3   :  { %v8404_v37 = vadd.f32 %v8403_v16, %v8115_v18  ;;  %9958 = vmatprep.subr.bf16.mxu0 %v8621_v61 }
0x11a4   :  { %v8405_v46 = vpop.f32.mrf.mxu1 }
0x11a5   :  { %v8560_v26 = vmax.f32 %v8404_v37, 0.0  ;;  %v10853_v46 = vld [vmem:[%s14445_s2] ss:$16 sps:$4 sm:$0xff]  }
0x11a6   :  { %v8408_v6 = vpop.f32.mrf.mxu1  ;;  %9959 = vmatpush3.bf16.msra.mxu0 %v14161_v17 }
0x11a7   :  { %v14251_v28 = vpack.c.bf16 %v8560_v26, %v8559_v62  ;;  %v8409_v44 = vadd.f32 %v8408_v6, %v8120_v29  ;;  %9960 = vmatprep.subr.bf16.mxu0 %v8620_v20  ;;  %v8147_v6 = vadd.f32 %v14085_v3, %v14135_v52  ;;  %v10867_v52 = vld [vmem:[%s14445_s2 + $0x44] ss:$16 sps:$4 sm:$0xff]  }
0x11a8   :  { %v8410_v63 = vpop.f32.mrf.mxu1 }
0x11a9   :  { %v8561_v0 = vmax.f32 %v8409_v44, 0.0 }
0x11aa   :  { %v8411_v55 = vpop.f32.mrf.mxu1  ;;  %9961 = vmatpush3.bf16.msra.mxu0 %v14151_v41  ;;  %v8131_v41 = vadd.f32 %v14085_v3, %v14115_v22 }
0x11ab   :  { %v8412_v61 = vadd.f32 %v8411_v55, %v8123_v57  ;;  %9962 = vmatprep.subr.bf16.mxu0 %v14221_v5 }
0x11ac   :  { %v8413_v32 = vpop.f32.mrf.mxu1 }
0x11ad   :  { %v8562_v17 = vmax.f32 %v8412_v61, 0.0  ;;  %v10859_v61 = vld [vmem:[%s14445_s2 + $0x20] ss:$16 sps:$4 sm:$0xff]  }
0x11ae   :  { %v8416_v21 = vpop.f32.mrf.mxu1  ;;  %9963 = vmatpush3.bf16.msra.mxu0 %v14141_v54 }
0x11af   :  { %v14260_v20 = vpack.c.bf16 %v8562_v17, %v8561_v0  ;;  %v8417_v50 = vadd.f32 %v8416_v21, %v8128_v58  ;;  %9964 = vmatprep.subr.bf16.mxu0 %v14211_v43 }
0x11b0   :  { %v8418_v56 = vpop.f32.mrf.mxu1 }
0x11b1   :  { %v8563_v54 = vmax.f32 %v8417_v50, 0.0  ;;  %v8160_v56 = vadd.f32 %v14085_v3, %v14149_v27  ;;  %v8163_v27 = vadd.f32 %v14085_v3, %v14155_v24  ;;  %v8171_v24 = vadd.f32 %v14085_v3, %v14165_v59 }
0x11b2   :  { %v8419_v38 = vpop.f32.mrf.mxu1  ;;  %9965 = vmatpush3.bf16.msra.mxu0 %v14131_v53  ;;  %v10855_v53 = vld [vmem:[%s14445_s2 + $0x4] ss:$16 sps:$4 sm:$0xff]   ;;  %v8184_v59 = vadd.f32 %v14085_v3, %v14179_v60 }
0x11b3   :  { %v8420_v5 = vadd.f32 %v8419_v38, %v8131_v41  ;;  %9966 = vmatprep.subr.bf16.mxu0 %v14201_v11  ;;  %8751 = vmatprep.mubr.bf16.mxu0 %v10855_v53  ;;  %v8168_v53 = vadd.f32 %v14085_v3, %v14159_v13  ;;  %v8176_v13 = vadd.f32 %v14085_v3, %v14169_v45 }
0x11b4   :  { %v8421_v7 = vpop.f32.mrf.mxu1 }
0x11b5   :  { %v8564_v31 = vmax.f32 %v8420_v5, 0.0  ;;  %v10865_v7 = vld [vmem:[%s14445_s2 + $0x40] ss:$16 sps:$4 sm:$0xff]  }
0x11b6   :  { %v8424_v1 = vpop.f32.mrf.mxu1  ;;  %9967 = vmatpush3.bf16.msra.mxu0 %v14121_v36  ;;  %v8144_v36 = vadd.f32 %v14085_v3, %v14129_v9 }
0x11b7   :  { %v14270_v43 = vpack.c.bf16 %v8564_v31, %v8563_v54  ;;  %v8425_v18 = vadd.f32 %v8424_v1, %v8136_v30  ;;  %9968 = vmatprep.subr.bf16.mxu0 %v14191_v4 }
0x11b8   :  { %v8426_v22 = vpop.f32.mrf.mxu1 }
0x11b9   :  { %v8565_v4 = vmax.f32 %v8425_v18, 0.0 }
0x11ba   :  { %v8427_v11 = vpop.f32.mrf.mxu1  ;;  %9969 = vmatpush3.bf16.msra.mxu0 %v14111_v47  ;;  %v10858_v47 = vld [vmem:[%s14445_s2 + $0xc] ss:$16 sps:$4 sm:$0xff]  }
0x11bb   :  { %v8428_v16 = vadd.f32 %v8427_v11, %v8139_v19  ;;  %9970 = vmatprep.subr.bf16.mxu0 %v14181_v35  ;;  %8816 = vmatprep.mubr.bf16.mxu1 %v10858_v47  ;;  %v10861_v35 = vld [vmem:[%s14445_s2 + $0x24] ss:$16 sps:$4 sm:$0xff]  }
0x11bc   :  { %v8429_v29 = vpop.f32.mrf.mxu1 }
0x11bd   :  { %v8566_v37 = vmax.f32 %v8428_v16, 0.0  ;;  %v10871_v29 = vld [vmem:[%s14445_s2 + $0x60] ss:$16 sps:$4 sm:$0xff]  }
0x11be   :  { %v8432_v62 = vpop.f32.mrf.mxu1  ;;  %9971 = vmatpush3.bf16.msra.mxu0 %v14101_v10  ;;  %v8152_v10 = vadd.f32 %v14085_v3, %v14139_v25  ;;  %v8155_v25 = vadd.f32 %v14085_v3, %v14145_v51  ;;  %v10873_v51 = vld [vmem:[%s14445_s2 + $0x64] ss:$16 sps:$4 sm:$0xff]  }
0x11bf   :  { %v14289_v39 = vpack.c.bf16 %v8566_v37, %v8565_v4  ;;  %v8433_v9 = vadd.f32 %v8432_v62, %v8144_v36 }
0x11c0   :  { %v8434_v26 = vpop.f32.mrf.mxu1 }
0x11c1   :  { %8752 = vmatmul.mubr.bf16.vlgmr.msra.gmra.mxu0 %v10853_v46  ;;  %v8567_v55 = vmax.f32 %v8433_v9, 0.0 }
0x11c2   :  { %v8435_v44 = vpop.f32.mrf.mxu1  ;;  %8759 = vmatprep.mubr.bf16.mxu0 %v10861_v35 }
0x11c3   :  { %v8436_v63 = vadd.f32 %v8435_v44, %v8147_v6 }
0x11c4   :  { %v8437_v57 = vpop.f32.mrf.mxu1 }
0x11c5   :  { %v8568_v58 = vmax.f32 %v8436_v63, 0.0 }
0x11c6   :  { %v8440_v32 = vpop.f32.mrf.mxu1 }
0x11c7   :  { %v14301_v0 = vpack.c.bf16 %v8568_v58, %v8567_v55  ;;  %v8441_v17 = vadd.f32 %v8440_v32, %v8152_v10  ;;  %v8179_v55 = vadd.f32 %v14085_v3, %v14175_v40  ;;  %v8192_v40 = vadd.f32 %v14085_v3, %v14189_v14 }
0x11c8   :  { %v8442_v21 = vpop.f32.mrf.mxu1 }
0x11c9   :  { %8760 = vmatmul.mubr.bf16.gmra.mxu0 %v10859_v61  ;;  %v8569_v30 = vmax.f32 %v8441_v17, 0.0 }
0x11ca   :  { %v8443_v50 = vpop.f32.mrf.mxu1  ;;  %8767 = vmatprep.mubr.bf16.mxu0 %v10867_v52 }
0x11cb   :  { %v8444_v41 = vadd.f32 %v8443_v50, %v8155_v25 }
0x11cc   :  { %v8445_v38 = vpop.f32.mrf.mxu1 }
0x11cd   :  { %v8570_v5 = vmax.f32 %v8444_v41, 0.0 }
0x11ce   :  { %v8448_v54 = vpop.f32.mrf.mxu1 }
0x11cf   :  { %v14313_v31 = vpack.c.bf16 %v8570_v5, %v8569_v30  ;;  %v8449_v1 = vadd.f32 %v8448_v54, %v8160_v56  ;;  %v8187_v56 = vadd.f32 %v14085_v3, %v14185_v42  ;;  %v8200_v42 = vadd.f32 %v14085_v3, %v14199_v33 }
0x11d0   :  { %v8450_v18 = vpop.f32.mrf.mxu1 }
0x11d1   :  { %8768 = vmatmul.mubr.bf16.gmra.mxu0 %v10865_v7  ;;  %v8571_v36 = vmax.f32 %v8449_v1, 0.0  ;;  %v8195_v18 = vadd.f32 %v14085_v3, %v14195_v23 }
0x11d2   :  { %v8451_v22 = vpop.f32.mrf.mxu1  ;;  %8775 = vmatprep.mubr.bf16.mxu0 %v10873_v51 }
0x11d3   :  { %v8452_v19 = vadd.f32 %v8451_v22, %v8163_v27 }
0x11d4   :  { %v8453_v11 = vpop.f32.mrf.mxu1 }
0x11d5   :  { %v8572_v16 = vmax.f32 %v8452_v19, 0.0 }
0x11d6   :  { %v8456_v4 = vpop.f32.mrf.mxu1 }
0x11d7   :  { %v14325_v37 = vpack.c.bf16 %v8572_v16, %v8571_v36  ;;  %v8457_v46 = vadd.f32 %v8456_v4, %v8168_v53 }
0x11d8   :  { %v8458_v62 = vpop.f32.mrf.mxu1 }
0x11d9   :  { %8776 = vmatmul.mubr.bf16.gmra.mxu0 %v10871_v29  ;;  %v8573_v35 = vmax.f32 %v8457_v46, 0.0  ;;  %v8203_v29 = vadd.f32 %v14085_v3, %v14205_v2  ;;  %v8216_v2 = vadd.f32 %v14085_v3, %v14219_v49 }
0x11da   :  { %v8459_v47 = vpop.f32.mrf.mxu1 }
0x11db   :  { %v8460_v9 = vadd.f32 %v8459_v47, %v8171_v24  ;;  %v8208_v24 = vadd.f32 %v14085_v3, %v14209_v15 }
0x11dc   :  { %v8461_v26 = vpop.f32.mrf.mxu1 }
0x11dd   :  { %v8574_v6 = vmax.f32 %v8460_v9, 0.0 }
0x11de   :  { %v8464_v44 = vpop.f32.mrf.mxu1 }
0x11df   :  { %v14331_v10 = vpack.c.bf16 %v8574_v6, %v8573_v35  ;;  %v8465_v63 = vadd.f32 %v8464_v44, %v8176_v13  ;;  %v8211_v35 = vadd.f32 %v14085_v3, %v14215_v12  ;;  %v14457_v12 = vld [vmem:[#allocation8_spill] sm:$0xff] }
0x11e0   :  { %v8466_v57 = vpop.f32.mrf.mxu1 }
0x11e1   :  { %v8575_v17 = vmax.f32 %v8465_v63, 0.0 }
0x11e2   :  { %v8467_v58 = vpop.f32.mrf.mxu1 }
0x11e3   :  { %v8468_v61 = vadd.f32 %v8467_v58, %v8179_v55 }
0x11e4   :  { %v8469_v32 = vpop.f32.mrf.mxu1 }
0x11e5   :  { %v8576_v45 = vmax.f32 %v8468_v61, 0.0  ;;  %v8219_v32 = vadd.f32 %v14085_v3, %v14225_v34  ;;  %v14458_v34 = vld [vmem:[#allocation9_spill] sm:$0xff] }
0x11e6   :  { %v8472_v21 = vpop.f32.mrf.mxu1 }
0x11e7   :  { %v14337_v52 = vpack.c.bf16 %v8576_v45, %v8575_v17  ;;  %v8473_v25 = vadd.f32 %v8472_v21, %v8184_v59 }
0x11e8   :  { %v8474_v50 = vpop.f32.mrf.mxu1 }
0x11e9   :  { %v8577_v5 = vmax.f32 %v8473_v25, 0.0  ;;  %v8224_v50 = vadd.f32 %v14085_v3, %v14457_v12 }
0x11ea   :  { %v8475_v41 = vpop.f32.mrf.mxu1 }
0x11eb   :  { %v8476_v38 = vadd.f32 %v8475_v41, %v8187_v56 }
0x11ec   :  { %v8477_v30 = vpop.f32.mrf.mxu1 }
0x11ed   :  { %v8578_v60 = vmax.f32 %v8476_v38, 0.0 }
0x11ee   :  { %v8480_v7 = vpop.f32.mrf.mxu1 }
0x11ef   :  { %v14343_v54 = vpack.c.bf16 %v8578_v60, %v8577_v5  ;;  %v8481_v51 = vadd.f32 %v8480_v7, %v8192_v40  ;;  %v8227_v40 = vadd.f32 %v14085_v3, %v14233_v8 }
0x11f0   :  { %v8482_v1 = vpop.f32.mrf.mxu1 }
0x11f1   :  { %v8579_v19 = vmax.f32 %v8481_v51, 0.0 }
0x11f2   :  { %v8483_v27 = vpop.f32.mrf.mxu1 }
0x11f3   :  { %v8484_v22 = vadd.f32 %v8483_v27, %v8195_v18  ;;  %v8232_v18 = vadd.f32 %v14085_v3, %v14458_v34 }
0x11f4   :  { %v8485_v53 = vpop.f32.mrf.mxu1 }
0x11f5   :  { %v8580_v11 = vmax.f32 %v8484_v22, 0.0 }
0x11f6   :  { %v8488_v36 = vpop.f32.mrf.mxu1 }
0x11f7   :  { %v14349_v14 = vpack.c.bf16 %v8580_v11, %v8579_v19  ;;  %v8489_v4 = vadd.f32 %v8488_v36, %v8200_v42  ;;  %v8235_v19 = vadd.f32 %v14085_v3, %v14241_v48  ;;  %v10856_v3 = vld [vmem:[%s14445_s2 + $0x8] ss:$16 sps:$4 sm:$0xff]   ;;  %v10864_v48 = vld [vmem:[%s14445_s2 + $0x2c] ss:$16 sps:$4 sm:$0xff]  }
0x11f8   :  { %v8490_v16 = vpop.f32.mrf.mxu1 }
0x11f9   :  { %v8581_v47 = vmax.f32 %v8489_v4, 0.0 }
0x11fa   :  { %v8491_v46 = vpop.f32.mrf.mxu1 }
0x11fb   :  { %v8492_v62 = vadd.f32 %v8491_v46, %v8203_v29 }
0x11fc   :  { %v8493_v23 = vpop.f32.mrf.mxu1 }
0x11fd   :  { %v8582_v13 = vmax.f32 %v8492_v62, 0.0 }
0x11fe   :  { %v8496_v9 = vpop.f32.mrf.mxu1 }
0x11ff   :  { %v8634_v33 = vpack.c.bf16 %v8582_v13, %v8581_v47  ;;  %v8497_v6 = vadd.f32 %v8496_v9, %v8208_v24 }
0x1200   :  { %v8498_v26 = vpop.f32.mrf.mxu1 }
0x1201   :  { %v8583_v55 = vmax.f32 %v8497_v6, 0.0 }
0x1202   :  { %v8499_v44 = vpop.f32.mrf.mxu1 }
0x1203   :  { %v8500_v63 = vadd.f32 %v8499_v44, %v8211_v35 }
0x1204   :  { %v8501_v57 = vpop.f32.mrf.mxu1 }
0x1205   :  { %v8584_v58 = vmax.f32 %v8500_v63, 0.0 }
0x1206   :  { %v8504_v59 = vpop.f32.mrf.mxu1 }
0x1207   :  { %v8635_v61 = vpack.c.bf16 %v8584_v58, %v8583_v55  ;;  %v8505_v17 = vadd.f32 %v8504_v59, %v8216_v2 }
0x1208   :  { %v8506_v15 = vpop.f32.mrf.mxu1 }
0x1209   :  { %v8585_v56 = vmax.f32 %v8505_v17, 0.0 }
0x120a   :  { %v8507_v45 = vpop.f32.mrf.mxu1 }
0x120b   :  { %v8508_v21 = vadd.f32 %v8507_v45, %v8219_v32 }
0x120c   :  { %v8509_v25 = vpop.f32.mrf.mxu1 }
0x120d   :  { %v8586_v41 = vmax.f32 %v8508_v21, 0.0 }
0x120e   :  { %v8512_v38 = vpop.f32.mrf.mxu1 }
0x120f   :  { %v8636_v30 = vpack.c.bf16 %v8586_v41, %v8585_v56  ;;  %v8513_v5 = vadd.f32 %v8512_v38, %v8224_v50 }
0x1210   :  { %v8514_v49 = vpop.f32.mrf.mxu1 }
0x1211   :  { %v8587_v51 = vmax.f32 %v8513_v5, 0.0 }
0x1212   :  { %v8515_v60 = vpop.f32.mrf.mxu1 }
0x1213   :  { %v8516_v7 = vadd.f32 %v8515_v60, %v8227_v40 }
0x1214   :  { %v8517_v1 = vpop.f32.mrf.mxu1 }
0x1215   :  { %v8588_v27 = vmax.f32 %v8516_v7, 0.0 }
0x1216   :  { %v8520_v22 = vpop.f32.mrf.mxu1 }
0x1217   :  { %v8637_v53 = vpack.c.bf16 %v8588_v27, %v8587_v51  ;;  %v8521_v11 = vadd.f32 %v8520_v22, %v8232_v18 }
0x1218   :  { %v8522_v42 = vpop.f32.mrf.mxu1 }
0x1219   :  { %v8589_v8 = vmax.f32 %v8521_v11, 0.0 }
0x121a   :  { %v8523_v36 = vpop.f32.mrf.mxu1 }
0x121b   :  { %v8524_v16 = vadd.f32 %v8523_v36, %v8235_v19 }
0x121c   :  { %v8525_v29 = vpop.f32.mrf.mxu1 }
0x121d   :  { %v8590_v4 = vmax.f32 %v8524_v16, 0.0 }
0x121f   :  { %v8638_v46 = vpack.c.bf16 %v8590_v4, %v8589_v8 }
0x1221   :  { %9996 = vmatprep.subr.bf16.mxu1 %v8638_v46 }
0x1222   :  { %9997 = vmatpush3.bf16.msra.mxu1 %v14331_v10 }
0x1223   :  { %9998 = vmatprep.subr.bf16.mxu1 %v8637_v53 }
0x1226   :  { %9999 = vmatpush3.bf16.msra.mxu1 %v14325_v37  ;;  %v10878_v37 = vld [vmem:[%s14450_s7] sm:$0xff]  }
0x1227   :  { %10000 = vmatprep.subr.bf16.mxu1 %v8636_v30 }
0x122a   :  { %10001 = vmatpush3.bf16.msra.mxu1 %v14313_v31  ;;  %v10877_v31 = vld [vmem:[%s14450_s7 + $0x8] sm:$0xff]  }
0x122b   :  { %10002 = vmatprep.subr.bf16.mxu1 %v8635_v61  ;;  %10598 = vmatprep.subr.bf16.mxu0 %v10877_v31 }
0x122c   :  { %10599 = vmatpush3.bf16.msra.mxu0 %v10877_v31 }
0x122d   :  { %10600 = vmatprep.subr.bf16.mxu0 %v10878_v37 }
0x122e   :  { %10003 = vmatpush3.bf16.msra.mxu1 %v14301_v0  ;;  %v10874_v0 = vld [vmem:[%s14445_s2 + $0x68] ss:$16 sps:$4 sm:$0xff]  }
0x122f   :  { %10004 = vmatprep.subr.bf16.mxu1 %v8634_v33 }
0x1230   :  { %10601 = vmatpush3.bf16.msra.mxu0 %v10878_v37 }
0x1232   :  { %10005 = vmatpush3.bf16.msra.mxu1 %v14289_v39  ;;  %v10876_v39 = vld [vmem:[%s14445_s2 + $0x6c] ss:$16 sps:$4 sm:$0xff]  }
0x1233   :  { %10006 = vmatprep.subr.bf16.mxu1 %v14349_v14 }
0x1236   :  { %10007 = vmatpush3.bf16.msra.mxu1 %v14270_v43  ;;  %v10862_v43 = vld [vmem:[%s14445_s2 + $0x28] ss:$16 sps:$4 sm:$0xff]  }
0x1237   :  { %10008 = vmatprep.subr.bf16.mxu1 %v14343_v54 }
0x123a   :  { %10009 = vmatpush3.bf16.msra.mxu1 %v14260_v20  ;;  %v10870_v20 = vld [vmem:[%s14445_s2 + $0x4c] ss:$16 sps:$4 sm:$0xff]  }
0x123b   :  { %10010 = vmatprep.subr.bf16.mxu1 %v14337_v52 }
0x123e   :  { %10011 = vmatpush3.bf16.msra.mxu1 %v14251_v28  ;;  %v10868_v28 = vld [vmem:[%s14445_s2 + $0x48] ss:$16 sps:$4 sm:$0xff]  }
0x1241   :  { %8817 = vmatmul.mubr.bf16.vlgmr.msra.gmra.mxu1 %v10856_v3 }
0x1242   :  { %8824 = vmatprep.mubr.bf16.mxu1 %v10864_v48 }
0x1249   :  { %8825 = vmatmul.mubr.bf16.gmra.mxu1 %v10862_v43 }
0x124a   :  { %8832 = vmatprep.mubr.bf16.mxu1 %v10870_v20 }
0x1251   :  { %8833 = vmatmul.mubr.bf16.gmra.mxu1 %v10868_v28 }
0x1252   :  { %8840 = vmatprep.mubr.bf16.mxu1 %v10876_v39  ;;  %v10879_v39 = vld [vmem:[%s14450_s7 + $0x18] sm:$0xff]  }
0x1253   :  { %10610 = vmatprep.subr.bf16.mxu1 %v10879_v39 }
0x1254   :  { %10611 = vmatpush3.bf16.msra.mxu1 %v10879_v39 }
0x1259   :  { %8841 = vmatmul.mubr.bf16.gmra.mxu1 %v10874_v0  ;;  %v10880_v0 = vld [vmem:[%s14450_s7 + $0x10] sm:$0xff]  }
0x125a   :  { %10612 = vmatprep.subr.bf16.mxu1 %v10880_v0 }
0x125b   :  { %10613 = vmatpush3.bf16.msra.mxu1 %v10880_v0 }
0x1281   :  { %v9972_v10 = vpop.f32.mrf.mxu0 }
0x1283   :  { %v9973_v52 = vpop.f32.mrf.mxu0 }
0x1284   :  { %v9974_v63 = vadd.f32 %v9973_v52, %v9972_v10  ;;  %v9658_v10 = vld [vmem:[%s14451_s8] ss:$0 sm:$0xff] }
0x1285   :  { %v9975_v54 = vpop.f32.mrf.mxu0 }
0x1287   :  { %v9976_v14 = vpop.f32.mrf.mxu0 }
0x1288   :  { %v9977_v57 = vadd.f32 %v9976_v14, %v9975_v54 }
0x1289   :  { %v9978_v62 = vpop.f32.mrf.mxu0 }
0x128b   :  { %v9979_v23 = vpop.f32.mrf.mxu0 }
0x128c   :  { %v9980_v12 = vadd.f32 %v9979_v23, %v9978_v62 }
0x128d   :  { %v9981_v24 = vpop.f32.mrf.mxu0 }
0x128f   :  { %v9982_v47 = vpop.f32.mrf.mxu0 }
0x1290   :  { %v9983_v50 = vadd.f32 %v9982_v47, %v9981_v24 }
0x1291   :  { %v9984_v9 = vpop.f32.mrf.mxu0 }
0x1293   :  { %v9985_v35 = vpop.f32.mrf.mxu0 }
0x1294   :  { %v9986_v18 = vadd.f32 %v9985_v35, %v9984_v9 }
0x1295   :  { %v9987_v58 = vpop.f32.mrf.mxu0 }
0x1297   :  { %v9988_v45 = vpop.f32.mrf.mxu0 }
0x1298   :  { %v9989_v51 = vadd.f32 %v9988_v45, %v9987_v58 }
0x1299   :  { %v9990_v38 = vpop.f32.mrf.mxu0 }
0x129b   :  { %v9991_v7 = vpop.f32.mrf.mxu0 }
0x129c   :  { %v9992_v46 = vadd.f32 %v9991_v7, %v9990_v38 }
0x129d   :  { %v9993_v53 = vpop.f32.mrf.mxu0 }
0x129f   :  { %v9994_v29 = vpop.f32.mrf.mxu0 }
0x12a0   :  { %v9995_v3 = vadd.f32 %v9994_v29, %v9993_v53 }
0x1301   :  { %v10012_v13 = vpop.f32.mrf.mxu1 }
0x1303   :  { %v10013_v33 = vpop.f32.mrf.mxu1 }
0x1304   :  { %v10014_v6 = vadd.f32 %v10013_v33, %v10012_v13 }
0x1305   :  { %v10015_v26 = vpop.f32.mrf.mxu1 }
0x1306   :  { %v8819_v59 = vadd.f32 %v10014_v6, %v9974_v63 }
0x1307   :  { %v10016_v44 = vpop.f32.mrf.mxu1 }
0x1308   :  { %v10017_v2 = vadd.f32 %v10016_v44, %v10015_v26 }
0x1309   :  { %v10018_v55 = vpop.f32.mrf.mxu1 }
0x130a   :  { %v8822_v61 = vadd.f32 %v10017_v2, %v9977_v57 }
0x130b   :  { %v10019_v15 = vpop.f32.mrf.mxu1 }
0x130c   :  { %v8849_v32 = vpack.c.bf16 %v8822_v61, %v8819_v59  ;;  %v10020_v21 = vadd.f32 %v10019_v15, %v10018_v55 }
0x130d   :  { %v10021_v17 = vpop.f32.mrf.mxu1 }
0x130e   :  { %10602 = vmatprep.mubr.msk.bf16.mxu0 %vm173_vm0, %v8849_v32  ;;  %v8827_v30 = vadd.f32 %v10020_v21, %v9980_v12  ;;  %v10882_v12 = vld [vmem:[%s14452_s9] sm:$0xff]  }
0x130f   :  { %v10022_v25 = vpop.f32.mrf.mxu1 }
0x1310   :  { %v10023_v56 = vadd.f32 %v10022_v25, %v10021_v17  ;;  %v10881_v25 = vld [vmem:[%s14452_s9 + $0x8] sm:$0xff]  }
0x1311   :  { %v10024_v41 = vpop.f32.mrf.mxu1  ;;  %10622 = vmatprep.subr.bf16.mxu0 %v10881_v25 }
0x1312   :  { %v8830_v49 = vadd.f32 %v10023_v56, %v9983_v50 }
0x1313   :  { %v10025_v40 = vpop.f32.mrf.mxu1 }
0x1314   :  { %v8850_v5 = vpack.c.bf16 %v8830_v49, %v8827_v30  ;;  %v10026_v1 = vadd.f32 %v10025_v40, %v10024_v41  ;;  %v9670_v41 = vld [vmem:[%s14451_s8 + $0x1] ss:$0 sm:$0xff] }
0x1315   :  { %v10027_v60 = vpop.f32.mrf.mxu1 }
0x1316   :  { %10603 = vmatmul.mubr.msk.bf16.vlgmr.msra.gmra.mxu0 %vm173_vm0, %v8850_v5  ;;  %v8835_v42 = vadd.f32 %v10026_v1, %v9986_v18 }
0x1317   :  { %v10028_v34 = vpop.f32.mrf.mxu1  ;;  %10623 = vmatpush3.bf16.msra.mxu0 %v10881_v25 }
0x1318   :  { %v10029_v27 = vadd.f32 %v10028_v34, %v10027_v60  ;;  %10624 = vmatprep.subr.bf16.mxu0 %v10882_v12 }
0x1319   :  { %v10030_v22 = vpop.f32.mrf.mxu1 }
0x131a   :  { %v8838_v19 = vadd.f32 %v10029_v27, %v9989_v51 }
0x131b   :  { %v10031_v11 = vpop.f32.mrf.mxu1  ;;  %10625 = vmatpush3.bf16.msra.mxu0 %v10882_v12 }
0x131c   :  { %v8851_v36 = vpack.c.bf16 %v8838_v19, %v8835_v42  ;;  %v10032_v8 = vadd.f32 %v10031_v11, %v10030_v22 }
0x131d   :  { %v10033_v16 = vpop.f32.mrf.mxu1 }
0x131e   :  { %10606 = vmatprep.mubr.msk.bf16.mxu0 %vm173_vm0, %v8851_v36  ;;  %v8843_v43 = vadd.f32 %v10032_v8, %v9992_v46 }
0x131f   :  { %v10034_v4 = vpop.f32.mrf.mxu1 }
0x1320   :  { %v10035_v48 = vadd.f32 %v10034_v4, %v10033_v16 }
0x1322   :  { %v8846_v20 = vadd.f32 %v10035_v48, %v9995_v3 }
0x1324   :  { %v8852_v28 = vpack.c.bf16 %v8846_v20, %v8843_v43  ;;  %v9677_v20 = vld [vmem:[%s14453_s10] ss:$0 sm:$0xff]  ;;  %s11544_s10 = scalar_lea.vmem %s9193_s12, 1024 }
0x1325   :  { %p11545_p5 = scmp.ne.s32.totalorder %s9193_s12, %s11544_s10  ;;  %p11550_p7 = scmp.lt.s32.totalorder %s11544_s10, %s11544_s10 }
0x1326   :  { %10607 = vmatmul.mubr.msk.bf16.gmra.mxu0 %vm173_vm0, %v8852_v28 }
0x1327   :  { %p11551_p8 = por %p11550_p7, %p11549_p6 }
0x1329   :  { %p11552_p9 = pnand %p11551_p8, %p11545_p5 }
0x13d6   :  { %v10604_v31 = vpop.f32.mrf.mxu0 }
0x13d7   :  { %v8931_v62 = vadd.f32 %v10604_v31, %v9658_v10 }
0x13d8   :  { %v8922_v37 = vpop.f32.mrf.mxu0 }
0x13d9   :  { %v8923_v54 = vadd.f32 %v9658_v10, %v8922_v37  ;;  %v8955_v33 = vmax.f32 %v8931_v62, 0.0 }
0x13da   :  { %v10605_v52 = vpop.f32.mrf.mxu0 }
0x13db   :  { %v8934_v14 = vadd.f32 %v10605_v52, %v9658_v10  ;;  %v8953_v13 = vmax.f32 %v8923_v54, 0.0 }
0x13dc   :  { %v8925_v23 = vpop.f32.mrf.mxu0 }
0x13dd   :  { %v8926_v24 = vadd.f32 %v9658_v10, %v8925_v23  ;;  %v8956_v47 = vmax.f32 %v8934_v14, 0.0 }
0x13df   :  { %v8954_v9 = vmax.f32 %v8926_v24, 0.0  ;;  %v8962_v35 = vpack.c.bf16 %v8956_v47, %v8955_v33 }
0x13e1   :  { %v8961_v26 = vpack.c.bf16 %v8954_v9, %v8953_v13 }
0x13e3   :  { %10614 = vmatprep.mubr.msk.bf16.mxu1 %vm173_vm0, %v8961_v26 }
0x13e4   :  { %10615 = vmatmul.mubr.msk.bf16.vlgmr.msra.gmra.mxu1 %vm173_vm0, %v8962_v35 }
0x13e6   :  { %v10608_v6 = vpop.f32.mrf.mxu0 }
0x13e7   :  { %v8947_v55 = vadd.f32 %v10608_v6, %v9658_v10 }
0x13e8   :  { %v8938_v44 = vpop.f32.mrf.mxu0 }
0x13e9   :  { %v8939_v57 = vadd.f32 %v9658_v10, %v8938_v44  ;;  %v8959_v17 = vmax.f32 %v8947_v55, 0.0 }
0x13ea   :  { %v10609_v63 = vpop.f32.mrf.mxu0 }
0x13eb   :  { %v8950_v2 = vadd.f32 %v10609_v63, %v9658_v10  ;;  %v8957_v15 = vmax.f32 %v8939_v57, 0.0 }
0x13ec   :  { %v8941_v58 = vpop.f32.mrf.mxu0 }
0x13ed   :  { %v8942_v59 = vadd.f32 %v9658_v10, %v8941_v58  ;;  %v8960_v61 = vmax.f32 %v8950_v2, 0.0 }
0x13ef   :  { %v8958_v32 = vmax.f32 %v8942_v59, 0.0  ;;  %v8964_v21 = vpack.c.bf16 %v8960_v61, %v8959_v17 }
0x13f1   :  { %v8963_v45 = vpack.c.bf16 %v8958_v32, %v8957_v15 }
0x13f3   :  { %10618 = vmatprep.mubr.msk.bf16.mxu1 %vm173_vm0, %v8963_v45 }
0x13f4   :  { %10619 = vmatmul.mubr.msk.bf16.gmra.mxu1 %vm173_vm0, %v8964_v21 }
0x14a4   :  { %v10616_v50 = vpop.f32.mrf.mxu1 }
0x14a5   :  { %v9045_v40 = vadd.f32 %v10616_v50, %v9670_v41 }
0x14a6   :  { %v9036_v56 = vpop.f32.mrf.mxu1 }
0x14a7   :  { %v9037_v30 = vadd.f32 %v9670_v41, %v9036_v56  ;;  %v9069_v18 = vmax.f32 %v9045_v40, 0.0 }
0x14a8   :  { %v10617_v38 = vpop.f32.mrf.mxu1 }
0x14a9   :  { %v9048_v49 = vadd.f32 %v10617_v38, %v9670_v41  ;;  %v9067_v1 = vmax.f32 %v9037_v30, 0.0 }
0x14aa   :  { %v9039_v5 = vpop.f32.mrf.mxu1 }
0x14ab   :  { %v9040_v60 = vadd.f32 %v9670_v41, %v9039_v5  ;;  %v9070_v7 = vmax.f32 %v9048_v49, 0.0 }
0x14ad   :  { %v9068_v34 = vmax.f32 %v9040_v60, 0.0  ;;  %v9076_v27 = vpack.c.bf16 %v9070_v7, %v9069_v18 }
0x14af   :  { %v9075_v51 = vpack.c.bf16 %v9068_v34, %v9067_v1 }
0x14b1   :  { %10626 = vmatprep.mubr.msk.bf16.mxu0 %vm173_vm0, %v9075_v51 }
0x14b2   :  { %10627 = vmatmul.mubr.msk.bf16.vlgmr.msra.gmra.mxu0 %vm173_vm0, %v9076_v27 }
0x14b4   :  { %v10620_v22 = vpop.f32.mrf.mxu1 }
0x14b5   :  { %v9061_v36 = vadd.f32 %v10620_v22, %v9670_v41 }
0x14b6   :  { %v9052_v53 = vpop.f32.mrf.mxu1 }
0x14b7   :  { %v9053_v19 = vadd.f32 %v9670_v41, %v9052_v53  ;;  %v9073_v3 = vmax.f32 %v9061_v36, 0.0 }
0x14b8   :  { %v10621_v42 = vpop.f32.mrf.mxu1 }
0x14b9   :  { %v9064_v11 = vadd.f32 %v10621_v42, %v9670_v41  ;;  %v9071_v4 = vmax.f32 %v9053_v19, 0.0 }
0x14ba   :  { %v9055_v16 = vpop.f32.mrf.mxu1 }
0x14bb   :  { %v9056_v29 = vadd.f32 %v9670_v41, %v9055_v16  ;;  %v9074_v8 = vmax.f32 %v9064_v11, 0.0 }
0x14bd   :  { %v9072_v46 = vmax.f32 %v9056_v29, 0.0  ;;  %v9078_v43 = vpack.c.bf16 %v9074_v8, %v9073_v3 }
0x14bf   :  { %v9077_v48 = vpack.c.bf16 %v9072_v46, %v9071_v4 }
0x14c1   :  { %10630 = vmatprep.mubr.msk.bf16.mxu0 %vm173_vm0, %v9077_v48 }
0x14c2   :  { %10631 = vmatmul.mubr.msk.bf16.gmra.mxu0 %vm173_vm0, %v9078_v43 }
0x1572   :  { %v10628_v28 = vpop.f32.mrf.mxu0 }
0x1573   :  { %v9157_v39 = vadd.f32 %v10628_v28, %v9677_v20 }
0x1574   :  { %v9148_v0 = vpop.f32.mrf.mxu0 }
0x1575   :  { %9181 = vst [vmem:[#allocation5 + $0x10] sm:$0xff] %v9157_v39  ;;  %v9149_v31 = vadd.f32 %v9677_v20, %v9148_v0 }
0x1576   :  { %v10629_v37 = vpop.f32.mrf.mxu0 }
0x1577   :  { %9179 = vst [vmem:[#allocation5] sm:$0xff] %v9149_v31  ;;  %v9160_v10 = vadd.f32 %v10629_v37, %v9677_v20 }
0x1578   :  { %v9151_v52 = vpop.f32.mrf.mxu0 }
0x1579   :  { %9182 = vst [vmem:[#allocation5 + $0x18] sm:$0xff] %v9160_v10  ;;  %v9152_v54 = vadd.f32 %v9677_v20, %v9151_v52 }
0x157b   :  { %9180 = vst [vmem:[#allocation5 + $0x8] sm:$0xff] %v9152_v54 }
0x1582   :  { %v10632_v14 = vpop.f32.mrf.mxu0 }
0x1583   :  { %v9173_v62 = vadd.f32 %v10632_v14, %v9677_v20 }
0x1584   :  { %v9164_v23 = vpop.f32.mrf.mxu0 }
0x1585   :  { %9185 = vst [vmem:[#allocation5 + $0x30] sm:$0xff] %v9173_v62  ;;  %v9165_v24 = vadd.f32 %v9677_v20, %v9164_v23 }
0x1586   :  { %v10633_v47 = vpop.f32.mrf.mxu0 }
0x1587   :  { %9183 = vst [vmem:[#allocation5 + $0x20] sm:$0xff] %v9165_v24  ;;  %v9176_v13 = vadd.f32 %v10633_v47, %v9677_v20 }
0x1588   :  { %v9167_v9 = vpop.f32.mrf.mxu0 }
0x1589   :  { %9186 = vst [vmem:[#allocation5 + $0x38] sm:$0xff] %v9176_v13  ;;  %v9168_v33 = vadd.f32 %v9677_v20, %v9167_v9 }
0x158b   :  { %9184 = vst [vmem:[#allocation5 + $0x28] sm:$0xff] %v9168_v33 }
0x158c   :  { %11555 = shalt.err (!%p11552_p9)
}
0x158d   :  { %s11573_s1 = smov 128   ;;  %s11574_s13 = smov 8  }
0x158e   :  { %9198 = dma.vmem_to_hbm [thread:$0]  %s9193_s12, 1024, %s14454_s11, [#allocation4], %s11573_s1, %s11573_s1, %s11574_s13  }
0x158f   :  { %11566 = dma.done.wait [#allocation4], 1024  }
0x1590   :  { %11567 = vsyncadd [#allocation4], 4294966272 }
0x1591   :  { %9202 = vsyncpa [#allocation3], 1 }
0x1592   :  { %9203 = vsyncpa [#allocation4], 1 }

</bundles_post_ra>
